<compile_context>
chip_gen: v7x
topology: tpu7x:2x2x1
jax: 0.10.0
libtpu: 0.0.40
codegen_flags: <defaults>
</compile_context>

<pallas_src>
import jax
import jax.numpy as jnp
from jax.experimental import pallas as pl
from jax.experimental.pallas import tpu as pltpu

ENC_SIZE = 2                    # encoded_image_size (scaled down from 14)
LANE = 128                      # TPU lane width; channel counts padded to this
VMEM_LIMIT = 32 * 1024 * 1024   # explicit scoped-VMEM limit (v5e default is 16MiB)


# -----------------------------------------------------------------------------
# Small helpers
# -----------------------------------------------------------------------------
def _cpad(c):
    """Channel count padded to a multiple of 128 (min 128) for lane-dense I/O."""
    return max(LANE, ((c + LANE - 1) // LANE) * LANE)


def _pick_tile(m, target):
    """Largest multiple-of-8 divisor of m that is <= target (else m itself)."""
    if m <= target:
        return m
    best = 0
    for d in range(8, target + 1, 8):
        if m % d == 0:
            best = d
    return best if best else m


def _largest_divisor(n, cap):
    cap = max(1, min(n, cap))
    for d in range(cap, 0, -1):
        if n % d == 0:
            return d
    return 1


def _mosaic(*sem):
    return pltpu.CompilerParams(dimension_semantics=sem,
                                vmem_limit_bytes=VMEM_LIMIT)


# -----------------------------------------------------------------------------
# Activation prep for the tap-accumulation kernels
# -----------------------------------------------------------------------------
def _tap_decompose(x, kh, kw, stride, pad):
    """Pad + parity/column-offset slab split + row flattening.

    Produces xs (N, S, L, C) where every tap (ki, kj) is an *aligned* read of
    slab `sidx` at flat offset `a * Wqp` (Wqp = per-row width padded to a
    multiple of 8).  taps is a tuple of (slab_idx, row_shift_a, weight_idx).
    """
    N, H, W, C = x.shape
    xp = jnp.pad(x, ((0, 0), (pad, pad), (pad, pad), (0, 0)))
    Hp, Wp = H + 2 * pad, W + 2 * pad
    OH = (Hp - kh) // stride + 1
    OW = (Wp - kw) // stride + 1
    if stride > 1:
        assert Hp % stride == 0 and Wp % stride == 0
    Hq, Wq = Hp // stride, Wp // stride
    Wqp = ((Wq + 7) // 8) * 8           # padded row width => aligned row shifts
    L = Hq * Wqp                        # covers Lout + a_max*Wqp exactly

    key_idx, taps = {}, []
    for ki in range(kh):
        for kj in range(kw):
            rp, a = ki % stride, ki // stride
            cp, b = kj % stride, kj // stride
            key = (rp, cp, b)
            if key not in key_idx:
                key_idx[key] = len(key_idx)
            taps.append((key_idx[key], a, ki * kw + kj))

    slabs = []
    for (rp, cp, b) in key_idx:
        ph = xp[:, rp::stride, cp::stride, :]                    # (N, Hq, Wq, C)
        ph = jnp.pad(ph, ((0, 0), (0, 0), (0, Wqp - Wq), (0, 0)))
        flat = ph.reshape(N, L, C)
        if b:
            # pre-shift by the column offset so in-kernel reads stay aligned
            flat = jnp.pad(flat[:, b:, :], ((0, 0), (0, b), (0, 0)))
        slabs.append(flat)
    xs = jnp.stack(slabs, axis=1)                                # (N, S, L, C)
    return xs, tuple(taps), (OH, OW, Wqp)


def _stem_im2col(x, kh=7, kw=7, stride=2, pad=3, k_pad=256):
    """Tiny JAX-level im2col for the 7x7/s2 stem (input ~83KB): K=147 -> 256."""
    N, H, W, C = x.shape
    xp = jnp.pad(x, ((0, 0), (pad, pad), (pad, pad), (0, 0)))
    Hp, Wp = H + 2 * pad, W + 2 * pad
    OH = (Hp - kh) // stride + 1
    OW = (Wp - kw) // stride + 1
    cols = [xp[:, ki:ki + stride * OH:stride, kj:kj + stride * OW:stride, :]
            for ki in range(kh) for kj in range(kw)]
    patches = jnp.concatenate(cols, axis=-1)                     # (N,OH,OW,147)
    K = kh * kw * C
    patches = jnp.pad(patches, ((0, 0), (0, 0), (0, 0), (0, k_pad - K)))
    return patches.reshape(N * OH * OW, k_pad), OH, OW


# -----------------------------------------------------------------------------
# Pallas kernels
# -----------------------------------------------------------------------------
def _make_pointwise_kernel(out_splits, relu_flags, has_residual):
    """(tm, Cin) @ (Cin, Ctot) + bias (+residual) (+ReLU per split)."""
    def kernel(x_ref, w_ref, b_ref, *rest):
        if has_residual:
            r_ref, *o_refs = rest
        else:
            o_refs = rest
        y = jnp.dot(x_ref[...], w_ref[...],
                    preferred_element_type=jnp.float32) + b_ref[...]
        if has_residual:
            y = y + r_ref[...].astype(jnp.float32)
        off = 0
        for o_ref, c, do_relu in zip(o_refs, out_splits, relu_flags):
            z = y[:, off:off + c]
            if do_relu:
                z = jnp.maximum(z, 0.0)
            o_ref[...] = z.astype(o_ref.dtype)
            off += c
    return kernel


def _make_spatial_conv_kernel(taps, tm, Wqp, rows, OW, relu):
    """KxK conv via aligned tap reads accumulated in a local (register) value."""
    def kernel(x_ref, w_ref, b_ref, o_ref):
        r0 = pl.program_id(1) * tm
        acc = None
        for sidx, a, widx in taps:
            start = pl.multiple_of(r0 + a * Wqp, 8)
            blk = x_ref[sidx, pl.ds(start, tm), :]
            contrib = jnp.dot(blk, w_ref[widx],
                              preferred_element_type=jnp.float32)
            acc = contrib if acc is None else acc + contrib
        y = acc + b_ref[...]                       # folded eval-mode BN bias
        if relu:
            y = jnp.maximum(y, 0.0)
        y = y.reshape(rows, Wqp, y.shape[-1])[:, :OW, :]   # in-kernel halo trim
        o_ref[...] = y.astype(o_ref.dtype)
    return kernel


def _make_pool_kernel(taps, tm, Wqp, rows, OW):
    """3x3/s2 max-pool as a running maximum over aligned tap reads."""
    def kernel(x_ref, o_ref):
        r0 = pl.program_id(1) * tm
        acc = None
        for sidx, a, _ in taps:
            start = pl.multiple_of(r0 + a * Wqp, 8)
            blk = x_ref[sidx, pl.ds(start, tm), :]
            acc = blk if acc is None else jnp.maximum(acc, blk)
        y = acc.reshape(rows, Wqp, acc.shape[-1])[:, :OW, :]
        o_ref[...] = y.astype(o_ref.dtype)
    return kernel


def _make_adaptive_avg_pool_kernel(H, W, enc):
    def bounds(i, size):                           # PyTorch AdaptiveAvgPool2d rule
        return (i * size) // enc, -(-((i + 1) * size) // enc)

    def kernel(x_ref, o_ref):                      # x: (H, W, C) -> o: (enc*enc, C)
        x = x_ref[...].astype(jnp.float32)
        rows = []
        for oi in range(enc):
            hs, he = bounds(oi, H)
            for oj in range(enc):
                ws, we = bounds(oj, W)
                win = x[hs:he, ws:we, :].reshape(-1, x.shape[-1])
                rows.append(jnp.mean(win, axis=0, keepdims=True))
        o_ref[...] = jnp.concatenate(rows, axis=0)  # single lane-dense store
    return kernel


# -----------------------------------------------------------------------------
# Pallas wrappers
# -----------------------------------------------------------------------------
def pointwise_conv(x2d, w, b, out_splits, relu_flags, residual=None):
    """Fused 1x1 conv(s) on a (M, Cin) slab; optional fused residual+ReLU."""
    M, Cin = x2d.shape
    Ctot = w.shape[1]
    target = max(16, min(512, (131072 // max(Ctot, 1)) // 16 * 16))
    tm = _pick_tile(M, target)
    in_specs = [pl.BlockSpec((tm, Cin), lambda i: (i, 0)),
                pl.BlockSpec((Cin, Ctot), lambda i: (0, 0)),
                pl.BlockSpec((1, Ctot), lambda i: (0, 0))]
    args = [x2d, w, b]
    if residual is not None:
        cr = residual.shape[1]
        in_specs.append(pl.BlockSpec((tm, cr), lambda i: (i, 0)))
        args.append(residual)
    outs = pl.pallas_call(
        _make_pointwise_kernel(out_splits, relu_flags, residual is not None),
        out_shape=tuple(jax.ShapeDtypeStruct((M, c), jnp.bfloat16)
                        for c in out_splits),
        grid=(M // tm,),
        in_specs=in_specs,
        out_specs=tuple(pl.BlockSpec((tm, c), lambda i: (i, 0))
                        for c in out_splits),
        compiler_params=_mosaic("parallel"),
    )(*args)
    if not isinstance(outs, (tuple, list)):
        outs = (outs,)
    return tuple(outs)


def spatial_conv(x, w, b, *, kh, kw, stride, pad, relu):
    """KxK conv + folded BN (+ReLU): aligned tap accumulation, trimmed output."""
    N = x.shape[0]
    Cp = w.shape[-1]
    xs, taps, (OH, OW, Wqp) = _tap_decompose(x, kh, kw, stride, pad)
    S, L, Cin = xs.shape[1], xs.shape[2], xs.shape[3]
    rows = _largest_divisor(OH, max(1, 128 // Wqp))
    tm = rows * Wqp
    n_tiles = OH // rows
    return pl.pallas_call(
        _make_spatial_conv_kernel(taps, tm, Wqp, rows, OW, relu),
        out_shape=jax.ShapeDtypeStruct((N, OH, OW, Cp), jnp.bfloat16),
        grid=(N, n_tiles),
        in_specs=[
            # whole slab set resident in VMEM per image (re-DMA'd per batch idx)
            pl.BlockSpec((None, S, L, Cin), lambda n, t: (n, 0, 0, 0)),
            pl.BlockSpec((kh * kw, Cin, Cp), lambda n, t: (0, 0, 0)),
            pl.BlockSpec((1, Cp), lambda n, t: (0, 0)),
        ],
        out_specs=pl.BlockSpec((None, rows, OW, Cp), lambda n, t: (n, t, 0, 0)),
        compiler_params=_mosaic("parallel", "parallel"),
    )(xs, w, b)


def maxpool_3x3_s2_p1(x):
    # zero spatial padding is equivalent to -inf here: the input is post-ReLU
    N, _, _, C = x.shape
    xs, taps, (OH, OW, Wqp) = _tap_decompose(x, 3, 3, 2, 1)
    S, L = xs.shape[1], xs.shape[2]
    rows = _largest_divisor(OH, max(1, 256 // Wqp))
    tm = rows * Wqp
    return pl.pallas_call(
        _make_pool_kernel(taps, tm, Wqp, rows, OW),
        out_shape=jax.ShapeDtypeStruct((N, OH, OW, C), jnp.bfloat16),
        grid=(N, OH // rows),
        in_specs=[pl.BlockSpec((None, S, L, C), lambda n, t: (n, 0, 0, 0))],
        out_specs=pl.BlockSpec((None, rows, OW, C), lambda n, t: (n, t, 0, 0)),
        compiler_params=_mosaic("parallel", "parallel"),
    )(xs)


def adaptive_avg_pool(x, enc):
    N, H, W, C = x.shape
    out = pl.pallas_call(
        _make_adaptive_avg_pool_kernel(H, W, enc),
        out_shape=jax.ShapeDtypeStruct((N, enc * enc, C), jnp.float32),
        grid=(N,),
        in_specs=[pl.BlockSpec((None, H, W, C), lambda n: (n, 0, 0, 0))],
        out_specs=pl.BlockSpec((None, enc * enc, C), lambda n: (n, 0, 0)),
        compiler_params=_mosaic("parallel"),
    )(x)
    return out.reshape(N, enc, enc, C)


# -----------------------------------------------------------------------------
# Parameters (deterministic synthetic init), BN folding and channel padding
# -----------------------------------------------------------------------------
def make_conv_bn(key, kh, kw, cin, cout, eps=1e-5):
    k1, k2, k3, k4, k5 = jax.random.split(key, 5)
    w = jax.random.normal(k1, (kh, kw, cin, cout), jnp.float32) * ((kh * kw * cin) ** -0.5)
    gamma = 1.0 + 0.05 * jax.random.normal(k2, (cout,), jnp.float32)
    beta = 0.05 * jax.random.normal(k3, (cout,), jnp.float32)
    rmean = 0.05 * jax.random.normal(k4, (cout,), jnp.float32)
    rvar = 1.0 + 0.05 * jnp.abs(jax.random.normal(k5, (cout,), jnp.float32))
    scale = gamma / jnp.sqrt(rvar + eps)          # eval-mode BN folded
    bias = beta - rmean * scale
    return dict(w=w, scale=scale, bias=bias)


def _fold_pad(p, cin_pad, cout_pad, pointwise):
    """Fold BN scale into the weights, pad channels, cast to bf16."""
    kh, kw, cin, cout = p["w"].shape
    w = p["w"] * p["scale"][None, None, None, :]
    w = jnp.pad(w, ((0, 0), (0, 0), (0, cin_pad - cin), (0, cout_pad - cout)))
    b = jnp.pad(p["bias"], (0, cout_pad - cout)).reshape(1, cout_pad).astype(jnp.float32)
    if pointwise:
        w = w.reshape(cin_pad, cout_pad)
    else:
        w = w.reshape(kh * kw, cin_pad, cout_pad)
    return w.astype(jnp.bfloat16), b


def _fold_stem(p, k_pad, cout_pad):
    """Stem weights in im2col layout: (kh*kw*cin -> k_pad, cout_pad)."""
    kh, kw, cin, cout = p["w"].shape
    w = p["w"] * p["scale"][None, None, None, :]
    w = w.reshape(kh * kw * cin, cout)
    w = jnp.pad(w, ((0, k_pad - kh * kw * cin), (0, cout_pad - cout)))
    b = jnp.pad(p["bias"], (0, cout_pad - cout)).reshape(1, cout_pad).astype(jnp.float32)
    return w.astype(jnp.bfloat16), b


def build_params(key):
    planes = (8, 16, 32, 64)
    expansion = 4
    keys = iter(jax.random.split(key, 1 + 4 * len(planes)))
    raw = {"stem": make_conv_bn(next(keys), 7, 7, 3, 8)}
    stages, in_c = [], 8
    for p in planes:
        stages.append({
            "conv1": make_conv_bn(next(keys), 1, 1, in_c, p),
            "conv2": make_conv_bn(next(keys), 3, 3, p, p),
            "conv3": make_conv_bn(next(keys), 1, 1, p, p * expansion),
            "down":  make_conv_bn(next(keys), 1, 1, in_c, p * expansion),
        })
        in_c = p * expansion
    raw["stages"] = stages
    return raw


def prep_params(raw, strides=(1, 2, 2, 2)):
    planes = (8, 16, 32, 64)
    expansion = 4
    stem_kp = ((7 * 7 * 3 + 127) // 128) * 128      # 147 -> 256
    stem_cp = _cpad(8)
    stem_w, stem_b = _fold_stem(raw["stem"], stem_kp, stem_cp)
    prepped = {"stem": dict(w=stem_w, b=stem_b, kp=stem_kp, cp=stem_cp)}
    stages, in_cp = [], stem_cp
    for raw_s, p, stride in zip(raw["stages"], planes, strides):
        c1p, c3p = _cpad(p), _cpad(p * expansion)
        w1, b1 = _fold_pad(raw_s["conv1"], in_cp, c1p, pointwise=True)
        w2, b2 = _fold_pad(raw_s["conv2"], c1p, c1p, pointwise=False)
        w3, b3 = _fold_pad(raw_s["conv3"], c1p, c3p, pointwise=True)
        wd, bd = _fold_pad(raw_s["down"], in_cp, c3p, pointwise=True)
        s = dict(w1=w1, b1=b1, w2=w2, b2=b2, w3=w3, b3=b3, wd=wd, bd=bd,
                 c1p=c1p, c3p=c3p, stride=stride)
        if stride == 1:
            # conv1 and the projection shortcut read the same x: fuse into one
            # matmul with two lane-dense outputs.
            s["w1d"] = jnp.concatenate([w1, wd], axis=1)
            s["b1d"] = jnp.concatenate([b1, bd], axis=1)
        stages.append(s)
        in_cp = c3p
    prepped["stages"] = stages
    return prepped


# -----------------------------------------------------------------------------
# Forward pass
# -----------------------------------------------------------------------------
def bottleneck(x, s):
    N, H, W, Cin = x.shape
    stride = s["stride"]
    x2d = x.reshape(N * H * W, Cin)
    if stride == 1:
        out1, short = pointwise_conv(x2d, s["w1d"], s["b1d"],
                                     (s["c1p"], s["c3p"]), (True, False))
    else:
        (out1,) = pointwise_conv(x2d, s["w1"], s["b1"], (s["c1p"],), (True,))
        # TODO(synk): strided shortcut subsample is a JAX-level slice (one small
        # extra HBM copy); an in-kernel strided gather could fold it away.
        xs = x[:, ::2, ::2, :]
        (short,) = pointwise_conv(xs.reshape(-1, Cin), s["wd"], s["bd"],
                                  (s["c3p"],), (False,))
    out1 = out1.reshape(N, H, W, s["c1p"])
    out2 = spatial_conv(out1, s["w2"], s["b2"], kh=3, kw=3, stride=stride,
                        pad=1, relu=True)
    N2, OH, OW, _ = out2.shape
    # conv3 + residual add + ReLU fused into one kernel
    (out3,) = pointwise_conv(out2.reshape(N2 * OH * OW, s["c1p"]),
                             s["w3"], s["b3"], (s["c3p"],), (True,),
                             residual=short)
    return out3.reshape(N2, OH, OW, s["c3p"])


def encoder_cnn_forward(params, images_nchw, enc_size):
    x = jnp.transpose(images_nchw, (0, 2, 3, 1)).astype(jnp.bfloat16)  # NCHW->NHWC
    N = x.shape[0]
    # 7x7/s2 stem as an im2col matmul (K padded to 256) + folded BN + ReLU
    patches, OH, OW = _stem_im2col(x, kh=7, kw=7, stride=2, pad=3,
                                   k_pad=params["stem"]["kp"])
    (y,) = pointwise_conv(patches, params["stem"]["w"], params["stem"]["b"],
                          (params["stem"]["cp"],), (True,))
    x = y.reshape(N, OH, OW, params["stem"]["cp"])
    x = maxpool_3x3_s2_p1(x)
    for s in params["stages"]:
        x = bottleneck(x, s)
    return adaptive_avg_pool(x, enc_size)      # (N, enc, enc, C) == permute(0,2,3,1)


# -----------------------------------------------------------------------------
if __name__ == "__main__":
    key = jax.random.PRNGKey(0)
    pkey, xkey = jax.random.split(key)
    params = prep_params(build_params(pkey))
    images = jax.random.normal(xkey, (2, 3, 96, 96), jnp.float32)   # NCHW input
    fwd = jax.jit(lambda imgs: encoder_cnn_forward(params, imgs, ENC_SIZE))
    out = jax.block_until_ready(fwd(images))
    assert out.shape == (2, ENC_SIZE, ENC_SIZE, 256), out.shape
    assert bool(jnp.all(jnp.isfinite(out)))
    print("KERNEL_OK")
</pallas_src>

<mosaic_0001>
module attributes {stable_mosaic.version = 11 : i64} {
  func.func @kernel(%arg0: i32, %arg1: memref<512x256xbf16, #tpu.memory_space<vmem>>, %arg2: memref<256x128xbf16, #tpu.memory_space<vmem>>, %arg3: memref<1x128xf32, #tpu.memory_space<vmem>>, %arg4: memref<512x128xbf16, #tpu.memory_space<vmem>>) attributes {dimension_semantics = [#tpu.dimension_semantics<parallel>], iteration_bounds = array<i64: 9>, scalar_prefetch = 0 : i64, scratch_operands = 0 : i64, tpu.core_type = #tpu.core_type<tc>, window_params = [{transform_indices = @transform_0, window_bounds = array<i64: 512, 256>}, {pipeline_mode = #tpu.pipeline_mode<synchronous>, transform_indices = @transform_1, window_bounds = array<i64: 256, 128>}, {pipeline_mode = #tpu.pipeline_mode<synchronous>, transform_indices = @transform_2, window_bounds = array<i64: 1, 128>}, {transform_indices = @transform_3, window_bounds = array<i64: 512, 128>}]} {
    %c0 = arith.constant 0 : index
    %c0_0 = arith.constant 0 : index
    %0 = vector.load %arg1[%c0, %c0_0] : memref<512x256xbf16, #tpu.memory_space<vmem>>, vector<512x256xbf16>
    %c0_1 = arith.constant 0 : index
    %c0_2 = arith.constant 0 : index
    %1 = vector.load %arg2[%c0_1, %c0_2] : memref<256x128xbf16, #tpu.memory_space<vmem>>, vector<256x128xbf16>
    %cst = arith.constant dense<0.000000e+00> : vector<512x128xf32>
    %2 = tpu.matmul %0, %1, %cst {dimension_numbers = #tpu.dot_dimension_numbers<[1], [0], [0], [1], [0, 0, 1, 1], [], []>} : vector<512x256xbf16>, vector<256x128xbf16>, vector<512x128xf32> -> vector<512x128xf32>
    %c0_3 = arith.constant 0 : index
    %c0_4 = arith.constant 0 : index
    %3 = vector.load %arg3[%c0_3, %c0_4] : memref<1x128xf32, #tpu.memory_space<vmem>>, vector<1x128xf32>
    %4 = vector.broadcast %3 : vector<1x128xf32> to vector<512x128xf32>
    %5 = arith.addf %2, %4 : vector<512x128xf32>
    %cst_5 = arith.constant 0.000000e+00 : f32
    %6 = vector.broadcast %cst_5 : f32 to vector<512x128xf32>
    %7 = arith.maximumf %5, %6 : vector<512x128xf32>
    %8 = arith.truncf %7 : vector<512x128xf32> to vector<512x128xbf16>
    %c0_6 = arith.constant 0 : index
    %c0_7 = arith.constant 0 : index
    %9 = vector.load %arg4[%c0_6, %c0_7] : memref<512x128xbf16, #tpu.memory_space<vmem>>, vector<512x128xbf16>
    tpu.vector_store %arg4[%c0_6, %c0_7], %8 {strides = array<i32>} : memref<512x128xbf16, #tpu.memory_space<vmem>>, vector<512x128xbf16>,
    return
  }
  func.func @transform_0(%arg0: i32) -> (i32, i32) {
    %c0_i32 = arith.constant 0 : i32
    %c0_i32_0 = arith.constant 0 : i32
    return %arg0, %c0_i32 : i32, i32
  }
  func.func @transform_1(%arg0: i32) -> (i32, i32) {
    %c0_i32 = arith.constant 0 : i32
    %c0_i32_0 = arith.constant 0 : i32
    %c0_i32_1 = arith.constant 0 : i32
    return %c0_i32, %c0_i32_0 : i32, i32
  }
  func.func @transform_2(%arg0: i32) -> (i32, i32) {
    %c0_i32 = arith.constant 0 : i32
    %c0_i32_0 = arith.constant 0 : i32
    %c0_i32_1 = arith.constant 0 : i32
    return %c0_i32, %c0_i32_0 : i32, i32
  }
  func.func @transform_3(%arg0: i32) -> (i32, i32) {
    %c0_i32 = arith.constant 0 : i32
    %c0_i32_0 = arith.constant 0 : i32
    return %arg0, %c0_i32 : i32, i32
  }
}

module attributes {stable_mosaic.version = 11 : i64} {
  func.func @kernel(%arg0: i32, %arg1: i32, %arg2: memref<1x6x800x128xbf16, #tpu.memory_space<vmem>>, %arg3: memref<1x8x24x128xbf16, #tpu.memory_space<vmem>>) attributes {dimension_semantics = [#tpu.dimension_semantics<parallel>, #tpu.dimension_semantics<parallel>], iteration_bounds = array<i64: 2, 3>, scalar_prefetch = 0 : i64, scratch_operands = 0 : i64, tpu.core_type = #tpu.core_type<tc>, window_params = [{transform_indices = @transform_0, window_bounds = array<i64: 1, 6, 800, 128>}, {transform_indices = @transform_1, window_bounds = array<i64: 1, 8, 24, 128>}]} {
    %c256_i32 = arith.constant 256 : i32
    %0 = arith.muli %arg1, %c256_i32 : i32
    %c0_i32 = arith.constant 0 : i32
    %1 = arith.addi %0, %c0_i32 : i32
    %2 = tpu.assume_multiple %1, 8 : i32
    %c0 = arith.constant 0 : index
    %c0_0 = arith.constant 0 : index
    %3 = arith.index_cast %2 : i32 to index
    %c0_1 = arith.constant 0 : index
    %4 = vector.load %arg2[%c0, %c0_0, %3, %c0_1] : memref<1x6x800x128xbf16, #tpu.memory_space<vmem>>, vector<1x1x256x128xbf16>
    %5 = vector.shape_cast %4 : vector<1x1x256x128xbf16> to vector<256x128xbf16>
    %c0_i32_2 = arith.constant 0 : i32
    %6 = arith.addi %0, %c0_i32_2 : i32
    %7 = tpu.assume_multiple %6, 8 : i32
    %c0_3 = arith.constant 0 : index
    %c1 = arith.constant 1 : index
    %8 = arith.index_cast %7 : i32 to index
    %c0_4 = arith.constant 0 : index
    %9 = vector.load %arg2[%c0_3, %c1, %8, %c0_4] : memref<1x6x800x128xbf16, #tpu.memory_space<vmem>>, vector<1x1x256x128xbf16>
    %10 = vector.shape_cast %9 : vector<1x1x256x128xbf16> to vector<256x128xbf16>
    %11 = arith.maximumf %5, %10 : vector<256x128xbf16>
    %c0_i32_5 = arith.constant 0 : i32
    %12 = arith.addi %0, %c0_i32_5 : i32
    %13 = tpu.assume_multiple %12, 8 : i32
    %c0_6 = arith.constant 0 : index
    %c2 = arith.constant 2 : index
    %14 = arith.index_cast %13 : i32 to index
    %c0_7 = arith.constant 0 : index
    %15 = vector.load %arg2[%c0_6, %c2, %14, %c0_7] : memref<1x6x800x128xbf16, #tpu.memory_space<vmem>>, vector<1x1x256x128xbf16>
    %16 = vector.shape_cast %15 : vector<1x1x256x128xbf16> to vector<256x128xbf16>
    %17 = arith.maximumf %11, %16 : vector<256x128xbf16>
    %c0_i32_8 = arith.constant 0 : i32
    %18 = arith.addi %0, %c0_i32_8 : i32
    %19 = tpu.assume_multiple %18, 8 : i32
    %c0_9 = arith.constant 0 : index
    %c3 = arith.constant 3 : index
    %20 = arith.index_cast %19 : i32 to index
    %c0_10 = arith.constant 0 : index
    %21 = vector.load %arg2[%c0_9, %c3, %20, %c0_10] : memref<1x6x800x128xbf16, #tpu.memory_space<vmem>>, vector<1x1x256x128xbf16>
    %22 = vector.shape_cast %21 : vector<1x1x256x128xbf16> to vector<256x128xbf16>
    %23 = arith.maximumf %17, %22 : vector<256x128xbf16>
    %c0_i32_11 = arith.constant 0 : i32
    %24 = arith.addi %0, %c0_i32_11 : i32
    %25 = tpu.assume_multiple %24, 8 : i32
    %c0_12 = arith.constant 0 : index
    %c4 = arith.constant 4 : index
    %26 = arith.index_cast %25 : i32 to index
    %c0_13 = arith.constant 0 : index
    %27 = vector.load %arg2[%c0_12, %c4, %26, %c0_13] : memref<1x6x800x128xbf16, #tpu.memory_space<vmem>>, vector<1x1x256x128xbf16>
    %28 = vector.shape_cast %27 : vector<1x1x256x128xbf16> to vector<256x128xbf16>
    %29 = arith.maximumf %23, %28 : vector<256x128xbf16>
    %c0_i32_14 = arith.constant 0 : i32
    %30 = arith.addi %0, %c0_i32_14 : i32
    %31 = tpu.assume_multiple %30, 8 : i32
    %c0_15 = arith.constant 0 : index
    %c5 = arith.constant 5 : index
    %32 = arith.index_cast %31 : i32 to index
    %c0_16 = arith.constant 0 : index
    %33 = vector.load %arg2[%c0_15, %c5, %32, %c0_16] : memref<1x6x800x128xbf16, #tpu.memory_space<vmem>>, vector<1x1x256x128xbf16>
    %34 = vector.shape_cast %33 : vector<1x1x256x128xbf16> to vector<256x128xbf16>
    %35 = arith.maximumf %29, %34 : vector<256x128xbf16>
    %c32_i32 = arith.constant 32 : i32
    %36 = arith.addi %0, %c32_i32 : i32
    %37 = tpu.assume_multiple %36, 8 : i32
    %c0_17 = arith.constant 0 : index
    %c0_18 = arith.constant 0 : index
    %38 = arith.index_cast %37 : i32 to index
    %c0_19 = arith.constant 0 : index
    %39 = vector.load %arg2[%c0_17, %c0_18, %38, %c0_19] : memref<1x6x800x128xbf16, #tpu.memory_space<vmem>>, vector<1x1x256x128xbf16>
    %40 = vector.shape_cast %39 : vector<1x1x256x128xbf16> to vector<256x128xbf16>
    %41 = arith.maximumf %35, %40 : vector<256x128xbf16>
    %c32_i32_20 = arith.constant 32 : i32
    %42 = arith.addi %0, %c32_i32_20 : i32
    %43 = tpu.assume_multiple %42, 8 : i32
    %c0_21 = arith.constant 0 : index
    %c1_22 = arith.constant 1 : index
    %44 = arith.index_cast %43 : i32 to index
    %c0_23 = arith.constant 0 : index
    %45 = vector.load %arg2[%c0_21, %c1_22, %44, %c0_23] : memref<1x6x800x128xbf16, #tpu.memory_space<vmem>>, vector<1x1x256x128xbf16>
    %46 = vector.shape_cast %45 : vector<1x1x256x128xbf16> to vector<256x128xbf16>
    %47 = arith.maximumf %41, %46 : vector<256x128xbf16>
    %c32_i32_24 = arith.constant 32 : i32
    %48 = arith.addi %0, %c32_i32_24 : i32
    %49 = tpu.assume_multiple %48, 8 : i32
    %c0_25 = arith.constant 0 : index
    %c2_26 = arith.constant 2 : index
    %50 = arith.index_cast %49 : i32 to index
    %c0_27 = arith.constant 0 : index
    %51 = vector.load %arg2[%c0_25, %c2_26, %50, %c0_27] : memref<1x6x800x128xbf16, #tpu.memory_space<vmem>>, vector<1x1x256x128xbf16>
    %52 = vector.shape_cast %51 : vector<1x1x256x128xbf16> to vector<256x128xbf16>
    %53 = arith.maximumf %47, %52 : vector<256x128xbf16>
    %54 = vector.shape_cast %53 : vector<256x128xbf16> to vector<8x32x128xbf16>
    %55 = vector.extract_strided_slice %54 {offsets = [0, 0, 0], sizes = [8, 24, 128], strides = [1, 1, 1]} : vector<8x32x128xbf16> to vector<8x24x128xbf16>
    %c0_28 = arith.constant 0 : index
    %c0_29 = arith.constant 0 : index
    %c0_30 = arith.constant 0 : index
    %c0_31 = arith.constant 0 : index
    %56 = vector.load %arg3[%c0_28, %c0_29, %c0_30, %c0_31] : memref<1x8x24x128xbf16, #tpu.memory_space<vmem>>, vector<1x8x24x128xbf16>
    %57 = vector.shape_cast %56 : vector<1x8x24x128xbf16> to vector<8x24x128xbf16>
    %58 = vector.shape_cast %55 : vector<8x24x128xbf16> to vector<1x8x24x128xbf16>
    tpu.vector_store %arg3[%c0_28, %c0_29, %c0_30, %c0_31], %58 {strides = array<i32>} : memref<1x8x24x128xbf16, #tpu.memory_space<vmem>>, vector<1x8x24x128xbf16>,
    return
  }
  func.func @transform_0(%arg0: i32, %arg1: i32) -> (i32, i32, i32, i32) {
    %c0_i32 = arith.constant 0 : i32
    %c0_i32_0 = arith.constant 0 : i32
    %c0_i32_1 = arith.constant 0 : i32
    %c0_i32_2 = arith.constant 0 : i32
    return %arg0, %c0_i32, %c0_i32_0, %c0_i32_1 : i32, i32, i32, i32
  }
  func.func @transform_1(%arg0: i32, %arg1: i32) -> (i32, i32, i32, i32) {
    %c0_i32 = arith.constant 0 : i32
    %c0_i32_0 = arith.constant 0 : i32
    %c0_i32_1 = arith.constant 0 : i32
    return %arg0, %arg1, %c0_i32, %c0_i32_0 : i32, i32, i32, i32
  }
}

module attributes {stable_mosaic.version = 11 : i64} {
  func.func @kernel(%arg0: i32, %arg1: memref<384x128xbf16, #tpu.memory_space<vmem>>, %arg2: memref<128x256xbf16, #tpu.memory_space<vmem>>, %arg3: memref<1x256xf32, #tpu.memory_space<vmem>>, %arg4: memref<384x128xbf16, #tpu.memory_space<vmem>>, %arg5: memref<384x128xbf16, #tpu.memory_space<vmem>>) attributes {dimension_semantics = [#tpu.dimension_semantics<parallel>], iteration_bounds = array<i64: 3>, scalar_prefetch = 0 : i64, scratch_operands = 0 : i64, tpu.core_type = #tpu.core_type<tc>, window_params = [{transform_indices = @transform_0, window_bounds = array<i64: 384, 128>}, {pipeline_mode = #tpu.pipeline_mode<synchronous>, transform_indices = @transform_1, window_bounds = array<i64: 128, 256>}, {pipeline_mode = #tpu.pipeline_mode<synchronous>, transform_indices = @transform_2, window_bounds = array<i64: 1, 256>}, {transform_indices = @transform_3, window_bounds = array<i64: 384, 128>}, {transform_indices = @transform_4, window_bounds = array<i64: 384, 128>}]} {
    %c0 = arith.constant 0 : index
    %c0_0 = arith.constant 0 : index
    %0 = vector.load %arg1[%c0, %c0_0] : memref<384x128xbf16, #tpu.memory_space<vmem>>, vector<384x128xbf16>
    %c0_1 = arith.constant 0 : index
    %c0_2 = arith.constant 0 : index
    %1 = vector.load %arg2[%c0_1, %c0_2] : memref<128x256xbf16, #tpu.memory_space<vmem>>, vector<128x256xbf16>
    %cst = arith.constant dense<0.000000e+00> : vector<384x256xf32>
    %2 = tpu.matmul %0, %1, %cst {dimension_numbers = #tpu.dot_dimension_numbers<[1], [0], [0], [1], [0, 0, 1, 1], [], []>} : vector<384x128xbf16>, vector<128x256xbf16>, vector<384x256xf32> -> vector<384x256xf32>
    %c0_3 = arith.constant 0 : index
    %c0_4 = arith.constant 0 : index
    %3 = vector.load %arg3[%c0_3, %c0_4] : memref<1x256xf32, #tpu.memory_space<vmem>>, vector<1x256xf32>
    %4 = vector.broadcast %3 : vector<1x256xf32> to vector<384x256xf32>
    %5 = arith.addf %2, %4 : vector<384x256xf32>
    %6 = vector.extract_strided_slice %5 {offsets = [0, 0], sizes = [384, 128], strides = [1, 1]} : vector<384x256xf32> to vector<384x128xf32>
    %cst_5 = arith.constant 0.000000e+00 : f32
    %7 = vector.broadcast %cst_5 : f32 to vector<384x128xf32>
    %8 = arith.maximumf %6, %7 : vector<384x128xf32>
    %9 = arith.truncf %8 : vector<384x128xf32> to vector<384x128xbf16>
    %c0_6 = arith.constant 0 : index
    %c0_7 = arith.constant 0 : index
    %10 = vector.load %arg4[%c0_6, %c0_7] : memref<384x128xbf16, #tpu.memory_space<vmem>>, vector<384x128xbf16>
    tpu.vector_store %arg4[%c0_6, %c0_7], %9 {strides = array<i32>} : memref<384x128xbf16, #tpu.memory_space<vmem>>, vector<384x128xbf16>,
    %11 = vector.extract_strided_slice %5 {offsets = [0, 128], sizes = [384, 128], strides = [1, 1]} : vector<384x256xf32> to vector<384x128xf32>
    %12 = arith.truncf %11 : vector<384x128xf32> to vector<384x128xbf16>
    %c0_8 = arith.constant 0 : index
    %c0_9 = arith.constant 0 : index
    %13 = vector.load %arg5[%c0_8, %c0_9] : memref<384x128xbf16, #tpu.memory_space<vmem>>, vector<384x128xbf16>
    tpu.vector_store %arg5[%c0_8, %c0_9], %12 {strides = array<i32>} : memref<384x128xbf16, #tpu.memory_space<vmem>>, vector<384x128xbf16>,
    return
  }
  func.func @transform_0(%arg0: i32) -> (i32, i32) {
    %c0_i32 = arith.constant 0 : i32
    %c0_i32_0 = arith.constant 0 : i32
    return %arg0, %c0_i32 : i32, i32
  }
  func.func @transform_1(%arg0: i32) -> (i32, i32) {
    %c0_i32 = arith.constant 0 : i32
    %c0_i32_0 = arith.constant 0 : i32
    %c0_i32_1 = arith.constant 0 : i32
    return %c0_i32, %c0_i32_0 : i32, i32
  }
  func.func @transform_2(%arg0: i32) -> (i32, i32) {
    %c0_i32 = arith.constant 0 : i32
    %c0_i32_0 = arith.constant 0 : i32
    %c0_i32_1 = arith.constant 0 : i32
    return %c0_i32, %c0_i32_0 : i32, i32
  }
  func.func @transform_3(%arg0: i32) -> (i32, i32) {
    %c0_i32 = arith.constant 0 : i32
    %c0_i32_0 = arith.constant 0 : i32
    return %arg0, %c0_i32 : i32, i32
  }
  func.func @transform_4(%arg0: i32) -> (i32, i32) {
    %c0_i32 = arith.constant 0 : i32
    %c0_i32_0 = arith.constant 0 : i32
    return %arg0, %c0_i32 : i32, i32
  }
}

module attributes {stable_mosaic.version = 11 : i64} {
  func.func @kernel(%arg0: i32, %arg1: i32, %arg2: memref<1x3x832x128xbf16, #tpu.memory_space<vmem>>, %arg3: memref<9x128x128xbf16, #tpu.memory_space<vmem>>, %arg4: memref<1x128xf32, #tpu.memory_space<vmem>>, %arg5: memref<1x4x24x128xbf16, #tpu.memory_space<vmem>>) attributes {dimension_semantics = [#tpu.dimension_semantics<parallel>, #tpu.dimension_semantics<parallel>], iteration_bounds = array<i64: 2, 6>, scalar_prefetch = 0 : i64, scratch_operands = 0 : i64, tpu.core_type = #tpu.core_type<tc>, window_params = [{transform_indices = @transform_0, window_bounds = array<i64: 1, 3, 832, 128>}, {pipeline_mode = #tpu.pipeline_mode<synchronous>, transform_indices = @transform_1, window_bounds = array<i64: 9, 128, 128>}, {pipeline_mode = #tpu.pipeline_mode<synchronous>, transform_indices = @transform_2, window_bounds = array<i64: 1, 128>}, {transform_indices = @transform_3, window_bounds = array<i64: 1, 4, 24, 128>}]} {
    %c128_i32 = arith.constant 128 : i32
    %0 = arith.muli %arg1, %c128_i32 : i32
    %c0_i32 = arith.constant 0 : i32
    %1 = arith.addi %0, %c0_i32 : i32
    %2 = tpu.assume_multiple %1, 8 : i32
    %c0 = arith.constant 0 : index
    %c0_0 = arith.constant 0 : index
    %3 = arith.index_cast %2 : i32 to index
    %c0_1 = arith.constant 0 : index
    %4 = vector.load %arg2[%c0, %c0_0, %3, %c0_1] : memref<1x3x832x128xbf16, #tpu.memory_space<vmem>>, vector<1x1x128x128xbf16>
    %5 = vector.shape_cast %4 : vector<1x1x128x128xbf16> to vector<128x128xbf16>
    %c0_2 = arith.constant 0 : index
    %c0_3 = arith.constant 0 : index
    %c0_4 = arith.constant 0 : index
    %6 = vector.load %arg3[%c0_2, %c0_3, %c0_4] : memref<9x128x128xbf16, #tpu.memory_space<vmem>>, vector<1x128x128xbf16>
    %7 = vector.shape_cast %6 : vector<1x128x128xbf16> to vector<128x128xbf16>
    %cst = arith.constant dense<0.000000e+00> : vector<128x128xf32>
    %8 = tpu.matmul %5, %7, %cst {dimension_numbers = #tpu.dot_dimension_numbers<[1], [0], [0], [1], [0, 0, 1, 1], [], []>} : vector<128x128xbf16>, vector<128x128xbf16>, vector<128x128xf32> -> vector<128x128xf32>
    %c0_i32_5 = arith.constant 0 : i32
    %9 = arith.addi %0, %c0_i32_5 : i32
    %10 = tpu.assume_multiple %9, 8 : i32
    %c0_6 = arith.constant 0 : index
    %c1 = arith.constant 1 : index
    %11 = arith.index_cast %10 : i32 to index
    %c0_7 = arith.constant 0 : index
    %12 = vector.load %arg2[%c0_6, %c1, %11, %c0_7] : memref<1x3x832x128xbf16, #tpu.memory_space<vmem>>, vector<1x1x128x128xbf16>
    %13 = vector.shape_cast %12 : vector<1x1x128x128xbf16> to vector<128x128xbf16>
    %c1_8 = arith.constant 1 : index
    %c0_9 = arith.constant 0 : index
    %c0_10 = arith.constant 0 : index
    %14 = vector.load %arg3[%c1_8, %c0_9, %c0_10] : memref<9x128x128xbf16, #tpu.memory_space<vmem>>, vector<1x128x128xbf16>
    %15 = vector.shape_cast %14 : vector<1x128x128xbf16> to vector<128x128xbf16>
    %cst_11 = arith.constant dense<0.000000e+00> : vector<128x128xf32>
    %16 = tpu.matmul %13, %15, %cst_11 {dimension_numbers = #tpu.dot_dimension_numbers<[1], [0], [0], [1], [0, 0, 1, 1], [], []>} : vector<128x128xbf16>, vector<128x128xbf16>, vector<128x128xf32> -> vector<128x128xf32>
    %17 = arith.addf %8, %16 : vector<128x128xf32>
    %c0_i32_12 = arith.constant 0 : i32
    %18 = arith.addi %0, %c0_i32_12 : i32
    %19 = tpu.assume_multiple %18, 8 : i32
    %c0_13 = arith.constant 0 : index
    %c2 = arith.constant 2 : index
    %20 = arith.index_cast %19 : i32 to index
    %c0_14 = arith.constant 0 : index
    %21 = vector.load %arg2[%c0_13, %c2, %20, %c0_14] : memref<1x3x832x128xbf16, #tpu.memory_space<vmem>>, vector<1x1x128x128xbf16>
    %22 = vector.shape_cast %21 : vector<1x1x128x128xbf16> to vector<128x128xbf16>
    %c2_15 = arith.constant 2 : index
    %c0_16 = arith.constant 0 : index
    %c0_17 = arith.constant 0 : index
    %23 = vector.load %arg3[%c2_15, %c0_16, %c0_17] : memref<9x128x128xbf16, #tpu.memory_space<vmem>>, vector<1x128x128xbf16>
    %24 = vector.shape_cast %23 : vector<1x128x128xbf16> to vector<128x128xbf16>
    %cst_18 = arith.constant dense<0.000000e+00> : vector<128x128xf32>
    %25 = tpu.matmul %22, %24, %cst_18 {dimension_numbers = #tpu.dot_dimension_numbers<[1], [0], [0], [1], [0, 0, 1, 1], [], []>} : vector<128x128xbf16>, vector<128x128xbf16>, vector<128x128xf32> -> vector<128x128xf32>
    %26 = arith.addf %17, %25 : vector<128x128xf32>
    %c32_i32 = arith.constant 32 : i32
    %27 = arith.addi %0, %c32_i32 : i32
    %28 = tpu.assume_multiple %27, 8 : i32
    %c0_19 = arith.constant 0 : index
    %c0_20 = arith.constant 0 : index
    %29 = arith.index_cast %28 : i32 to index
    %c0_21 = arith.constant 0 : index
    %30 = vector.load %arg2[%c0_19, %c0_20, %29, %c0_21] : memref<1x3x832x128xbf16, #tpu.memory_space<vmem>>, vector<1x1x128x128xbf16>
    %31 = vector.shape_cast %30 : vector<1x1x128x128xbf16> to vector<128x128xbf16>
    %c3 = arith.constant 3 : index
    %c0_22 = arith.constant 0 : index
    %c0_23 = arith.constant 0 : index
    %32 = vector.load %arg3[%c3, %c0_22, %c0_23] : memref<9x128x128xbf16, #tpu.memory_space<vmem>>, vector<1x128x128xbf16>
    %33 = vector.shape_cast %32 : vector<1x128x128xbf16> to vector<128x128xbf16>
    %cst_24 = arith.constant dense<0.000000e+00> : vector<128x128xf32>
    %34 = tpu.matmul %31, %33, %cst_24 {dimension_numbers = #tpu.dot_dimension_numbers<[1], [0], [0], [1], [0, 0, 1, 1], [], []>} : vector<128x128xbf16>, vector<128x128xbf16>, vector<128x128xf32> -> vector<128x128xf32>
    %35 = arith.addf %26, %34 : vector<128x128xf32>
    %c32_i32_25 = arith.constant 32 : i32
    %36 = arith.addi %0, %c32_i32_25 : i32
    %37 = tpu.assume_multiple %36, 8 : i32
    %c0_26 = arith.constant 0 : index
    %c1_27 = arith.constant 1 : index
    %38 = arith.index_cast %37 : i32 to index
    %c0_28 = arith.constant 0 : index
    %39 = vector.load %arg2[%c0_26, %c1_27, %38, %c0_28] : memref<1x3x832x128xbf16, #tpu.memory_space<vmem>>, vector<1x1x128x128xbf16>
    %40 = vector.shape_cast %39 : vector<1x1x128x128xbf16> to vector<128x128xbf16>
    %c4 = arith.constant 4 : index
    %c0_29 = arith.constant 0 : index
    %c0_30 = arith.constant 0 : index
    %41 = vector.load %arg3[%c4, %c0_29, %c0_30] : memref<9x128x128xbf16, #tpu.memory_space<vmem>>, vector<1x128x128xbf16>
    %42 = vector.shape_cast %41 : vector<1x128x128xbf16> to vector<128x128xbf16>
    %cst_31 = arith.constant dense<0.000000e+00> : vector<128x128xf32>
    %43 = tpu.matmul %40, %42, %cst_31 {dimension_numbers = #tpu.dot_dimension_numbers<[1], [0], [0], [1], [0, 0, 1, 1], [], []>} : vector<128x128xbf16>, vector<128x128xbf16>, vector<128x128xf32> -> vector<128x128xf32>
    %44 = arith.addf %35, %43 : vector<128x128xf32>
    %c32_i32_32 = arith.constant 32 : i32
    %45 = arith.addi %0, %c32_i32_32 : i32
    %46 = tpu.assume_multiple %45, 8 : i32
    %c0_33 = arith.constant 0 : index
    %c2_34 = arith.constant 2 : index
    %47 = arith.index_cast %46 : i32 to index
    %c0_35 = arith.constant 0 : index
    %48 = vector.load %arg2[%c0_33, %c2_34, %47, %c0_35] : memref<1x3x832x128xbf16, #tpu.memory_space<vmem>>, vector<1x1x128x128xbf16>
    %49 = vector.shape_cast %48 : vector<1x1x128x128xbf16> to vector<128x128xbf16>
    %c5 = arith.constant 5 : index
    %c0_36 = arith.constant 0 : index
    %c0_37 = arith.constant 0 : index
    %50 = vector.load %arg3[%c5, %c0_36, %c0_37] : memref<9x128x128xbf16, #tpu.memory_space<vmem>>, vector<1x128x128xbf16>
    %51 = vector.shape_cast %50 : vector<1x128x128xbf16> to vector<128x128xbf16>
    %cst_38 = arith.constant dense<0.000000e+00> : vector<128x128xf32>
    %52 = tpu.matmul %49, %51, %cst_38 {dimension_numbers = #tpu.dot_dimension_numbers<[1], [0], [0], [1], [0, 0, 1, 1], [], []>} : vector<128x128xbf16>, vector<128x128xbf16>, vector<128x128xf32> -> vector<128x128xf32>
    %53 = arith.addf %44, %52 : vector<128x128xf32>
    %c64_i32 = arith.constant 64 : i32
    %54 = arith.addi %0, %c64_i32 : i32
    %55 = tpu.assume_multiple %54, 8 : i32
    %c0_39 = arith.constant 0 : index
    %c0_40 = arith.constant 0 : index
    %56 = arith.index_cast %55 : i32 to index
    %c0_41 = arith.constant 0 : index
    %57 = vector.load %arg2[%c0_39, %c0_40, %56, %c0_41] : memref<1x3x832x128xbf16, #tpu.memory_space<vmem>>, vector<1x1x128x128xbf16>
    %58 = vector.shape_cast %57 : vector<1x1x128x128xbf16> to vector<128x128xbf16>
    %c6 = arith.constant 6 : index
    %c0_42 = arith.constant 0 : index
    %c0_43 = arith.constant 0 : index
    %59 = vector.load %arg3[%c6, %c0_42, %c0_43] : memref<9x128x128xbf16, #tpu.memory_space<vmem>>, vector<1x128x128xbf16>
    %60 = vector.shape_cast %59 : vector<1x128x128xbf16> to vector<128x128xbf16>
    %cst_44 = arith.constant dense<0.000000e+00> : vector<128x128xf32>
    %61 = tpu.matmul %58, %60, %cst_44 {dimension_numbers = #tpu.dot_dimension_numbers<[1], [0], [0], [1], [0, 0, 1, 1], [], []>} : vector<128x128xbf16>, vector<128x128xbf16>, vector<128x128xf32> -> vector<128x128xf32>
    %62 = arith.addf %53, %61 : vector<128x128xf32>
    %c64_i32_45 = arith.constant 64 : i32
    %63 = arith.addi %0, %c64_i32_45 : i32
    %64 = tpu.assume_multiple %63, 8 : i32
    %c0_46 = arith.constant 0 : index
    %c1_47 = arith.constant 1 : index
    %65 = arith.index_cast %64 : i32 to index
    %c0_48 = arith.constant 0 : index
    %66 = vector.load %arg2[%c0_46, %c1_47, %65, %c0_48] : memref<1x3x832x128xbf16, #tpu.memory_space<vmem>>, vector<1x1x128x128xbf16>
    %67 = vector.shape_cast %66 : vector<1x1x128x128xbf16> to vector<128x128xbf16>
    %c7 = arith.constant 7 : index
    %c0_49 = arith.constant 0 : index
    %c0_50 = arith.constant 0 : index
    %68 = vector.load %arg3[%c7, %c0_49, %c0_50] : memref<9x128x128xbf16, #tpu.memory_space<vmem>>, vector<1x128x128xbf16>
    %69 = vector.shape_cast %68 : vector<1x128x128xbf16> to vector<128x128xbf16>
    %cst_51 = arith.constant dense<0.000000e+00> : vector<128x128xf32>
    %70 = tpu.matmul %67, %69, %cst_51 {dimension_numbers = #tpu.dot_dimension_numbers<[1], [0], [0], [1], [0, 0, 1, 1], [], []>} : vector<128x128xbf16>, vector<128x128xbf16>, vector<128x128xf32> -> vector<128x128xf32>
    %71 = arith.addf %62, %70 : vector<128x128xf32>
    %c64_i32_52 = arith.constant 64 : i32
    %72 = arith.addi %0, %c64_i32_52 : i32
    %73 = tpu.assume_multiple %72, 8 : i32
    %c0_53 = arith.constant 0 : index
    %c2_54 = arith.constant 2 : index
    %74 = arith.index_cast %73 : i32 to index
    %c0_55 = arith.constant 0 : index
    %75 = vector.load %arg2[%c0_53, %c2_54, %74, %c0_55] : memref<1x3x832x128xbf16, #tpu.memory_space<vmem>>, vector<1x1x128x128xbf16>
    %76 = vector.shape_cast %75 : vector<1x1x128x128xbf16> to vector<128x128xbf16>
    %c8 = arith.constant 8 : index
    %c0_56 = arith.constant 0 : index
    %c0_57 = arith.constant 0 : index
    %77 = vector.load %arg3[%c8, %c0_56, %c0_57] : memref<9x128x128xbf16, #tpu.memory_space<vmem>>, vector<1x128x128xbf16>
    %78 = vector.shape_cast %77 : vector<1x128x128xbf16> to vector<128x128xbf16>
    %cst_58 = arith.constant dense<0.000000e+00> : vector<128x128xf32>
    %79 = tpu.matmul %76, %78, %cst_58 {dimension_numbers = #tpu.dot_dimension_numbers<[1], [0], [0], [1], [0, 0, 1, 1], [], []>} : vector<128x128xbf16>, vector<128x128xbf16>, vector<128x128xf32> -> vector<128x128xf32>
    %80 = arith.addf %71, %79 : vector<128x128xf32>
    %c0_59 = arith.constant 0 : index
    %c0_60 = arith.constant 0 : index
    %81 = vector.load %arg4[%c0_59, %c0_60] : memref<1x128xf32, #tpu.memory_space<vmem>>, vector<1x128xf32>
    %82 = vector.broadcast %81 : vector<1x128xf32> to vector<128x128xf32>
    %83 = arith.addf %80, %82 : vector<128x128xf32>
    %cst_61 = arith.constant 0.000000e+00 : f32
    %84 = vector.broadcast %cst_61 : f32 to vector<128x128xf32>
    %85 = arith.maximumf %83, %84 : vector<128x128xf32>
    %86 = vector.shape_cast %85 : vector<128x128xf32> to vector<4x32x128xf32>
    %87 = vector.extract_strided_slice %86 {offsets = [0, 0, 0], sizes = [4, 24, 128], strides = [1, 1, 1]} : vector<4x32x128xf32> to vector<4x24x128xf32>
    %88 = arith.truncf %87 : vector<4x24x128xf32> to vector<4x24x128xbf16>
    %c0_62 = arith.constant 0 : index
    %c0_63 = arith.constant 0 : index
    %c0_64 = arith.constant 0 : index
    %c0_65 = arith.constant 0 : index
    %89 = vector.load %arg5[%c0_62, %c0_63, %c0_64, %c0_65] : memref<1x4x24x128xbf16, #tpu.memory_space<vmem>>, vector<1x4x24x128xbf16>
    %90 = vector.shape_cast %89 : vector<1x4x24x128xbf16> to vector<4x24x128xbf16>
    %91 = vector.shape_cast %88 : vector<4x24x128xbf16> to vector<1x4x24x128xbf16>
    tpu.vector_store %arg5[%c0_62, %c0_63, %c0_64, %c0_65], %91 {strides = array<i32>} : memref<1x4x24x128xbf16, #tpu.memory_space<vmem>>, vector<1x4x24x128xbf16>,
    return
  }
  func.func @transform_0(%arg0: i32, %arg1: i32) -> (i32, i32, i32, i32) {
    %c0_i32 = arith.constant 0 : i32
    %c0_i32_0 = arith.constant 0 : i32
    %c0_i32_1 = arith.constant 0 : i32
    %c0_i32_2 = arith.constant 0 : i32
    return %arg0, %c0_i32, %c0_i32_0, %c0_i32_1 : i32, i32, i32, i32
  }
  func.func @transform_1(%arg0: i32, %arg1: i32) -> (i32, i32, i32) {
    %c0_i32 = arith.constant 0 : i32
    %c0_i32_0 = arith.constant 0 : i32
    %c0_i32_1 = arith.constant 0 : i32
    %c0_i32_2 = arith.constant 0 : i32
    return %c0_i32, %c0_i32_0, %c0_i32_1 : i32, i32, i32
  }
  func.func @transform_2(%arg0: i32, %arg1: i32) -> (i32, i32) {
    %c0_i32 = arith.constant 0 : i32
    %c0_i32_0 = arith.constant 0 : i32
    %c0_i32_1 = arith.constant 0 : i32
    return %c0_i32, %c0_i32_0 : i32, i32
  }
  func.func @transform_3(%arg0: i32, %arg1: i32) -> (i32, i32, i32, i32) {
    %c0_i32 = arith.constant 0 : i32
    %c0_i32_0 = arith.constant 0 : i32
    %c0_i32_1 = arith.constant 0 : i32
    return %arg0, %arg1, %c0_i32, %c0_i32_0 : i32, i32, i32, i32
  }
}

module attributes {stable_mosaic.version = 11 : i64} {
  func.func @kernel(%arg0: i32, %arg1: memref<384x128xbf16, #tpu.memory_space<vmem>>, %arg2: memref<128x128xbf16, #tpu.memory_space<vmem>>, %arg3: memref<1x128xf32, #tpu.memory_space<vmem>>, %arg4: memref<384x128xbf16, #tpu.memory_space<vmem>>, %arg5: memref<384x128xbf16, #tpu.memory_space<vmem>>) attributes {dimension_semantics = [#tpu.dimension_semantics<parallel>], iteration_bounds = array<i64: 3>, scalar_prefetch = 0 : i64, scratch_operands = 0 : i64, tpu.core_type = #tpu.core_type<tc>, window_params = [{transform_indices = @transform_0, window_bounds = array<i64: 384, 128>}, {pipeline_mode = #tpu.pipeline_mode<synchronous>, transform_indices = @transform_1, window_bounds = array<i64: 128, 128>}, {pipeline_mode = #tpu.pipeline_mode<synchronous>, transform_indices = @transform_2, window_bounds = array<i64: 1, 128>}, {transform_indices = @transform_3, window_bounds = array<i64: 384, 128>}, {transform_indices = @transform_4, window_bounds = array<i64: 384, 128>}]} {
    %c0 = arith.constant 0 : index
    %c0_0 = arith.constant 0 : index
    %0 = vector.load %arg1[%c0, %c0_0] : memref<384x128xbf16, #tpu.memory_space<vmem>>, vector<384x128xbf16>
    %c0_1 = arith.constant 0 : index
    %c0_2 = arith.constant 0 : index
    %1 = vector.load %arg2[%c0_1, %c0_2] : memref<128x128xbf16, #tpu.memory_space<vmem>>, vector<128x128xbf16>
    %cst = arith.constant dense<0.000000e+00> : vector<384x128xf32>
    %2 = tpu.matmul %0, %1, %cst {dimension_numbers = #tpu.dot_dimension_numbers<[1], [0], [0], [1], [0, 0, 1, 1], [], []>} : vector<384x128xbf16>, vector<128x128xbf16>, vector<384x128xf32> -> vector<384x128xf32>
    %c0_3 = arith.constant 0 : index
    %c0_4 = arith.constant 0 : index
    %3 = vector.load %arg3[%c0_3, %c0_4] : memref<1x128xf32, #tpu.memory_space<vmem>>, vector<1x128xf32>
    %4 = vector.broadcast %3 : vector<1x128xf32> to vector<384x128xf32>
    %5 = arith.addf %2, %4 : vector<384x128xf32>
    %c0_5 = arith.constant 0 : index
    %c0_6 = arith.constant 0 : index
    %6 = vector.load %arg4[%c0_5, %c0_6] : memref<384x128xbf16, #tpu.memory_space<vmem>>, vector<384x128xbf16>
    %7 = arith.extf %6 : vector<384x128xbf16> to vector<384x128xf32>
    %8 = arith.addf %5, %7 : vector<384x128xf32>
    %cst_7 = arith.constant 0.000000e+00 : f32
    %9 = vector.broadcast %cst_7 : f32 to vector<384x128xf32>
    %10 = arith.maximumf %8, %9 : vector<384x128xf32>
    %11 = arith.truncf %10 : vector<384x128xf32> to vector<384x128xbf16>
    %c0_8 = arith.constant 0 : index
    %c0_9 = arith.constant 0 : index
    %12 = vector.load %arg5[%c0_8, %c0_9] : memref<384x128xbf16, #tpu.memory_space<vmem>>, vector<384x128xbf16>
    tpu.vector_store %arg5[%c0_8, %c0_9], %11 {strides = array<i32>} : memref<384x128xbf16, #tpu.memory_space<vmem>>, vector<384x128xbf16>,
    return
  }
  func.func @transform_0(%arg0: i32) -> (i32, i32) {
    %c0_i32 = arith.constant 0 : i32
    %c0_i32_0 = arith.constant 0 : i32
    return %arg0, %c0_i32 : i32, i32
  }
  func.func @transform_1(%arg0: i32) -> (i32, i32) {
    %c0_i32 = arith.constant 0 : i32
    %c0_i32_0 = arith.constant 0 : i32
    %c0_i32_1 = arith.constant 0 : i32
    return %c0_i32, %c0_i32_0 : i32, i32
  }
  func.func @transform_2(%arg0: i32) -> (i32, i32) {
    %c0_i32 = arith.constant 0 : i32
    %c0_i32_0 = arith.constant 0 : i32
    %c0_i32_1 = arith.constant 0 : i32
    return %c0_i32, %c0_i32_0 : i32, i32
  }
  func.func @transform_3(%arg0: i32) -> (i32, i32) {
    %c0_i32 = arith.constant 0 : i32
    %c0_i32_0 = arith.constant 0 : i32
    return %arg0, %c0_i32 : i32, i32
  }
  func.func @transform_4(%arg0: i32) -> (i32, i32) {
    %c0_i32 = arith.constant 0 : i32
    %c0_i32_0 = arith.constant 0 : i32
    return %arg0, %c0_i32 : i32, i32
  }
}

module attributes {stable_mosaic.version = 11 : i64} {
  func.func @kernel(%arg0: i32, %arg1: memref<384x128xbf16, #tpu.memory_space<vmem>>, %arg2: memref<128x128xbf16, #tpu.memory_space<vmem>>, %arg3: memref<1x128xf32, #tpu.memory_space<vmem>>, %arg4: memref<384x128xbf16, #tpu.memory_space<vmem>>) attributes {dimension_semantics = [#tpu.dimension_semantics<parallel>], iteration_bounds = array<i64: 3>, scalar_prefetch = 0 : i64, scratch_operands = 0 : i64, tpu.core_type = #tpu.core_type<tc>, window_params = [{transform_indices = @transform_0, window_bounds = array<i64: 384, 128>}, {pipeline_mode = #tpu.pipeline_mode<synchronous>, transform_indices = @transform_1, window_bounds = array<i64: 128, 128>}, {pipeline_mode = #tpu.pipeline_mode<synchronous>, transform_indices = @transform_2, window_bounds = array<i64: 1, 128>}, {transform_indices = @transform_3, window_bounds = array<i64: 384, 128>}]} {
    %c0 = arith.constant 0 : index
    %c0_0 = arith.constant 0 : index
    %0 = vector.load %arg1[%c0, %c0_0] : memref<384x128xbf16, #tpu.memory_space<vmem>>, vector<384x128xbf16>
    %c0_1 = arith.constant 0 : index
    %c0_2 = arith.constant 0 : index
    %1 = vector.load %arg2[%c0_1, %c0_2] : memref<128x128xbf16, #tpu.memory_space<vmem>>, vector<128x128xbf16>
    %cst = arith.constant dense<0.000000e+00> : vector<384x128xf32>
    %2 = tpu.matmul %0, %1, %cst {dimension_numbers = #tpu.dot_dimension_numbers<[1], [0], [0], [1], [0, 0, 1, 1], [], []>} : vector<384x128xbf16>, vector<128x128xbf16>, vector<384x128xf32> -> vector<384x128xf32>
    %c0_3 = arith.constant 0 : index
    %c0_4 = arith.constant 0 : index
    %3 = vector.load %arg3[%c0_3, %c0_4] : memref<1x128xf32, #tpu.memory_space<vmem>>, vector<1x128xf32>
    %4 = vector.broadcast %3 : vector<1x128xf32> to vector<384x128xf32>
    %5 = arith.addf %2, %4 : vector<384x128xf32>
    %cst_5 = arith.constant 0.000000e+00 : f32
    %6 = vector.broadcast %cst_5 : f32 to vector<384x128xf32>
    %7 = arith.maximumf %5, %6 : vector<384x128xf32>
    %8 = arith.truncf %7 : vector<384x128xf32> to vector<384x128xbf16>
    %c0_6 = arith.constant 0 : index
    %c0_7 = arith.constant 0 : index
    %9 = vector.load %arg4[%c0_6, %c0_7] : memref<384x128xbf16, #tpu.memory_space<vmem>>, vector<384x128xbf16>
    tpu.vector_store %arg4[%c0_6, %c0_7], %8 {strides = array<i32>} : memref<384x128xbf16, #tpu.memory_space<vmem>>, vector<384x128xbf16>,
    return
  }
  func.func @transform_0(%arg0: i32) -> (i32, i32) {
    %c0_i32 = arith.constant 0 : i32
    %c0_i32_0 = arith.constant 0 : i32
    return %arg0, %c0_i32 : i32, i32
  }
  func.func @transform_1(%arg0: i32) -> (i32, i32) {
    %c0_i32 = arith.constant 0 : i32
    %c0_i32_0 = arith.constant 0 : i32
    %c0_i32_1 = arith.constant 0 : i32
    return %c0_i32, %c0_i32_0 : i32, i32
  }
  func.func @transform_2(%arg0: i32) -> (i32, i32) {
    %c0_i32 = arith.constant 0 : i32
    %c0_i32_0 = arith.constant 0 : i32
    %c0_i32_1 = arith.constant 0 : i32
    return %c0_i32, %c0_i32_0 : i32, i32
  }
  func.func @transform_3(%arg0: i32) -> (i32, i32) {
    %c0_i32 = arith.constant 0 : i32
    %c0_i32_0 = arith.constant 0 : i32
    return %arg0, %c0_i32 : i32, i32
  }
}

module attributes {stable_mosaic.version = 11 : i64} {
  func.func @kernel(%arg0: i32, %arg1: i32, %arg2: memref<1x6x208x128xbf16, #tpu.memory_space<vmem>>, %arg3: memref<9x128x128xbf16, #tpu.memory_space<vmem>>, %arg4: memref<1x128xf32, #tpu.memory_space<vmem>>, %arg5: memref<1x6x12x128xbf16, #tpu.memory_space<vmem>>) attributes {dimension_semantics = [#tpu.dimension_semantics<parallel>, #tpu.dimension_semantics<parallel>], iteration_bounds = array<i64: 2, 2>, scalar_prefetch = 0 : i64, scratch_operands = 0 : i64, tpu.core_type = #tpu.core_type<tc>, window_params = [{transform_indices = @transform_0, window_bounds = array<i64: 1, 6, 208, 128>}, {pipeline_mode = #tpu.pipeline_mode<synchronous>, transform_indices = @transform_1, window_bounds = array<i64: 9, 128, 128>}, {pipeline_mode = #tpu.pipeline_mode<synchronous>, transform_indices = @transform_2, window_bounds = array<i64: 1, 128>}, {transform_indices = @transform_3, window_bounds = array<i64: 1, 6, 12, 128>}]} {
    %c96_i32 = arith.constant 96 : i32
    %0 = arith.muli %arg1, %c96_i32 : i32
    %c0_i32 = arith.constant 0 : i32
    %1 = arith.addi %0, %c0_i32 : i32
    %2 = tpu.assume_multiple %1, 8 : i32
    %c0 = arith.constant 0 : index
    %c0_0 = arith.constant 0 : index
    %3 = arith.index_cast %2 : i32 to index
    %c0_1 = arith.constant 0 : index
    %4 = vector.load %arg2[%c0, %c0_0, %3, %c0_1] : memref<1x6x208x128xbf16, #tpu.memory_space<vmem>>, vector<1x1x96x128xbf16>
    %5 = vector.shape_cast %4 : vector<1x1x96x128xbf16> to vector<96x128xbf16>
    %c0_2 = arith.constant 0 : index
    %c0_3 = arith.constant 0 : index
    %c0_4 = arith.constant 0 : index
    %6 = vector.load %arg3[%c0_2, %c0_3, %c0_4] : memref<9x128x128xbf16, #tpu.memory_space<vmem>>, vector<1x128x128xbf16>
    %7 = vector.shape_cast %6 : vector<1x128x128xbf16> to vector<128x128xbf16>
    %cst = arith.constant dense<0.000000e+00> : vector<96x128xf32>
    %8 = tpu.matmul %5, %7, %cst {dimension_numbers = #tpu.dot_dimension_numbers<[1], [0], [0], [1], [0, 0, 1, 1], [], []>} : vector<96x128xbf16>, vector<128x128xbf16>, vector<96x128xf32> -> vector<96x128xf32>
    %c0_i32_5 = arith.constant 0 : i32
    %9 = arith.addi %0, %c0_i32_5 : i32
    %10 = tpu.assume_multiple %9, 8 : i32
    %c0_6 = arith.constant 0 : index
    %c1 = arith.constant 1 : index
    %11 = arith.index_cast %10 : i32 to index
    %c0_7 = arith.constant 0 : index
    %12 = vector.load %arg2[%c0_6, %c1, %11, %c0_7] : memref<1x6x208x128xbf16, #tpu.memory_space<vmem>>, vector<1x1x96x128xbf16>
    %13 = vector.shape_cast %12 : vector<1x1x96x128xbf16> to vector<96x128xbf16>
    %c1_8 = arith.constant 1 : index
    %c0_9 = arith.constant 0 : index
    %c0_10 = arith.constant 0 : index
    %14 = vector.load %arg3[%c1_8, %c0_9, %c0_10] : memref<9x128x128xbf16, #tpu.memory_space<vmem>>, vector<1x128x128xbf16>
    %15 = vector.shape_cast %14 : vector<1x128x128xbf16> to vector<128x128xbf16>
    %cst_11 = arith.constant dense<0.000000e+00> : vector<96x128xf32>
    %16 = tpu.matmul %13, %15, %cst_11 {dimension_numbers = #tpu.dot_dimension_numbers<[1], [0], [0], [1], [0, 0, 1, 1], [], []>} : vector<96x128xbf16>, vector<128x128xbf16>, vector<96x128xf32> -> vector<96x128xf32>
    %17 = arith.addf %8, %16 : vector<96x128xf32>
    %c0_i32_12 = arith.constant 0 : i32
    %18 = arith.addi %0, %c0_i32_12 : i32
    %19 = tpu.assume_multiple %18, 8 : i32
    %c0_13 = arith.constant 0 : index
    %c2 = arith.constant 2 : index
    %20 = arith.index_cast %19 : i32 to index
    %c0_14 = arith.constant 0 : index
    %21 = vector.load %arg2[%c0_13, %c2, %20, %c0_14] : memref<1x6x208x128xbf16, #tpu.memory_space<vmem>>, vector<1x1x96x128xbf16>
    %22 = vector.shape_cast %21 : vector<1x1x96x128xbf16> to vector<96x128xbf16>
    %c2_15 = arith.constant 2 : index
    %c0_16 = arith.constant 0 : index
    %c0_17 = arith.constant 0 : index
    %23 = vector.load %arg3[%c2_15, %c0_16, %c0_17] : memref<9x128x128xbf16, #tpu.memory_space<vmem>>, vector<1x128x128xbf16>
    %24 = vector.shape_cast %23 : vector<1x128x128xbf16> to vector<128x128xbf16>
    %cst_18 = arith.constant dense<0.000000e+00> : vector<96x128xf32>
    %25 = tpu.matmul %22, %24, %cst_18 {dimension_numbers = #tpu.dot_dimension_numbers<[1], [0], [0], [1], [0, 0, 1, 1], [], []>} : vector<96x128xbf16>, vector<128x128xbf16>, vector<96x128xf32> -> vector<96x128xf32>
    %26 = arith.addf %17, %25 : vector<96x128xf32>
    %c0_i32_19 = arith.constant 0 : i32
    %27 = arith.addi %0, %c0_i32_19 : i32
    %28 = tpu.assume_multiple %27, 8 : i32
    %c0_20 = arith.constant 0 : index
    %c3 = arith.constant 3 : index
    %29 = arith.index_cast %28 : i32 to index
    %c0_21 = arith.constant 0 : index
    %30 = vector.load %arg2[%c0_20, %c3, %29, %c0_21] : memref<1x6x208x128xbf16, #tpu.memory_space<vmem>>, vector<1x1x96x128xbf16>
    %31 = vector.shape_cast %30 : vector<1x1x96x128xbf16> to vector<96x128xbf16>
    %c3_22 = arith.constant 3 : index
    %c0_23 = arith.constant 0 : index
    %c0_24 = arith.constant 0 : index
    %32 = vector.load %arg3[%c3_22, %c0_23, %c0_24] : memref<9x128x128xbf16, #tpu.memory_space<vmem>>, vector<1x128x128xbf16>
    %33 = vector.shape_cast %32 : vector<1x128x128xbf16> to vector<128x128xbf16>
    %cst_25 = arith.constant dense<0.000000e+00> : vector<96x128xf32>
    %34 = tpu.matmul %31, %33, %cst_25 {dimension_numbers = #tpu.dot_dimension_numbers<[1], [0], [0], [1], [0, 0, 1, 1], [], []>} : vector<96x128xbf16>, vector<128x128xbf16>, vector<96x128xf32> -> vector<96x128xf32>
    %35 = arith.addf %26, %34 : vector<96x128xf32>
    %c0_i32_26 = arith.constant 0 : i32
    %36 = arith.addi %0, %c0_i32_26 : i32
    %37 = tpu.assume_multiple %36, 8 : i32
    %c0_27 = arith.constant 0 : index
    %c4 = arith.constant 4 : index
    %38 = arith.index_cast %37 : i32 to index
    %c0_28 = arith.constant 0 : index
    %39 = vector.load %arg2[%c0_27, %c4, %38, %c0_28] : memref<1x6x208x128xbf16, #tpu.memory_space<vmem>>, vector<1x1x96x128xbf16>
    %40 = vector.shape_cast %39 : vector<1x1x96x128xbf16> to vector<96x128xbf16>
    %c4_29 = arith.constant 4 : index
    %c0_30 = arith.constant 0 : index
    %c0_31 = arith.constant 0 : index
    %41 = vector.load %arg3[%c4_29, %c0_30, %c0_31] : memref<9x128x128xbf16, #tpu.memory_space<vmem>>, vector<1x128x128xbf16>
    %42 = vector.shape_cast %41 : vector<1x128x128xbf16> to vector<128x128xbf16>
    %cst_32 = arith.constant dense<0.000000e+00> : vector<96x128xf32>
    %43 = tpu.matmul %40, %42, %cst_32 {dimension_numbers = #tpu.dot_dimension_numbers<[1], [0], [0], [1], [0, 0, 1, 1], [], []>} : vector<96x128xbf16>, vector<128x128xbf16>, vector<96x128xf32> -> vector<96x128xf32>
    %44 = arith.addf %35, %43 : vector<96x128xf32>
    %c0_i32_33 = arith.constant 0 : i32
    %45 = arith.addi %0, %c0_i32_33 : i32
    %46 = tpu.assume_multiple %45, 8 : i32
    %c0_34 = arith.constant 0 : index
    %c5 = arith.constant 5 : index
    %47 = arith.index_cast %46 : i32 to index
    %c0_35 = arith.constant 0 : index
    %48 = vector.load %arg2[%c0_34, %c5, %47, %c0_35] : memref<1x6x208x128xbf16, #tpu.memory_space<vmem>>, vector<1x1x96x128xbf16>
    %49 = vector.shape_cast %48 : vector<1x1x96x128xbf16> to vector<96x128xbf16>
    %c5_36 = arith.constant 5 : index
    %c0_37 = arith.constant 0 : index
    %c0_38 = arith.constant 0 : index
    %50 = vector.load %arg3[%c5_36, %c0_37, %c0_38] : memref<9x128x128xbf16, #tpu.memory_space<vmem>>, vector<1x128x128xbf16>
    %51 = vector.shape_cast %50 : vector<1x128x128xbf16> to vector<128x128xbf16>
    %cst_39 = arith.constant dense<0.000000e+00> : vector<96x128xf32>
    %52 = tpu.matmul %49, %51, %cst_39 {dimension_numbers = #tpu.dot_dimension_numbers<[1], [0], [0], [1], [0, 0, 1, 1], [], []>} : vector<96x128xbf16>, vector<128x128xbf16>, vector<96x128xf32> -> vector<96x128xf32>
    %53 = arith.addf %44, %52 : vector<96x128xf32>
    %c16_i32 = arith.constant 16 : i32
    %54 = arith.addi %0, %c16_i32 : i32
    %55 = tpu.assume_multiple %54, 8 : i32
    %c0_40 = arith.constant 0 : index
    %c0_41 = arith.constant 0 : index
    %56 = arith.index_cast %55 : i32 to index
    %c0_42 = arith.constant 0 : index
    %57 = vector.load %arg2[%c0_40, %c0_41, %56, %c0_42] : memref<1x6x208x128xbf16, #tpu.memory_space<vmem>>, vector<1x1x96x128xbf16>
    %58 = vector.shape_cast %57 : vector<1x1x96x128xbf16> to vector<96x128xbf16>
    %c6 = arith.constant 6 : index
    %c0_43 = arith.constant 0 : index
    %c0_44 = arith.constant 0 : index
    %59 = vector.load %arg3[%c6, %c0_43, %c0_44] : memref<9x128x128xbf16, #tpu.memory_space<vmem>>, vector<1x128x128xbf16>
    %60 = vector.shape_cast %59 : vector<1x128x128xbf16> to vector<128x128xbf16>
    %cst_45 = arith.constant dense<0.000000e+00> : vector<96x128xf32>
    %61 = tpu.matmul %58, %60, %cst_45 {dimension_numbers = #tpu.dot_dimension_numbers<[1], [0], [0], [1], [0, 0, 1, 1], [], []>} : vector<96x128xbf16>, vector<128x128xbf16>, vector<96x128xf32> -> vector<96x128xf32>
    %62 = arith.addf %53, %61 : vector<96x128xf32>
    %c16_i32_46 = arith.constant 16 : i32
    %63 = arith.addi %0, %c16_i32_46 : i32
    %64 = tpu.assume_multiple %63, 8 : i32
    %c0_47 = arith.constant 0 : index
    %c1_48 = arith.constant 1 : index
    %65 = arith.index_cast %64 : i32 to index
    %c0_49 = arith.constant 0 : index
    %66 = vector.load %arg2[%c0_47, %c1_48, %65, %c0_49] : memref<1x6x208x128xbf16, #tpu.memory_space<vmem>>, vector<1x1x96x128xbf16>
    %67 = vector.shape_cast %66 : vector<1x1x96x128xbf16> to vector<96x128xbf16>
    %c7 = arith.constant 7 : index
    %c0_50 = arith.constant 0 : index
    %c0_51 = arith.constant 0 : index
    %68 = vector.load %arg3[%c7, %c0_50, %c0_51] : memref<9x128x128xbf16, #tpu.memory_space<vmem>>, vector<1x128x128xbf16>
    %69 = vector.shape_cast %68 : vector<1x128x128xbf16> to vector<128x128xbf16>
    %cst_52 = arith.constant dense<0.000000e+00> : vector<96x128xf32>
    %70 = tpu.matmul %67, %69, %cst_52 {dimension_numbers = #tpu.dot_dimension_numbers<[1], [0], [0], [1], [0, 0, 1, 1], [], []>} : vector<96x128xbf16>, vector<128x128xbf16>, vector<96x128xf32> -> vector<96x128xf32>
    %71 = arith.addf %62, %70 : vector<96x128xf32>
    %c16_i32_53 = arith.constant 16 : i32
    %72 = arith.addi %0, %c16_i32_53 : i32
    %73 = tpu.assume_multiple %72, 8 : i32
    %c0_54 = arith.constant 0 : index
    %c2_55 = arith.constant 2 : index
    %74 = arith.index_cast %73 : i32 to index
    %c0_56 = arith.constant 0 : index
    %75 = vector.load %arg2[%c0_54, %c2_55, %74, %c0_56] : memref<1x6x208x128xbf16, #tpu.memory_space<vmem>>, vector<1x1x96x128xbf16>
    %76 = vector.shape_cast %75 : vector<1x1x96x128xbf16> to vector<96x128xbf16>
    %c8 = arith.constant 8 : index
    %c0_57 = arith.constant 0 : index
    %c0_58 = arith.constant 0 : index
    %77 = vector.load %arg3[%c8, %c0_57, %c0_58] : memref<9x128x128xbf16, #tpu.memory_space<vmem>>, vector<1x128x128xbf16>
    %78 = vector.shape_cast %77 : vector<1x128x128xbf16> to vector<128x128xbf16>
    %cst_59 = arith.constant dense<0.000000e+00> : vector<96x128xf32>
    %79 = tpu.matmul %76, %78, %cst_59 {dimension_numbers = #tpu.dot_dimension_numbers<[1], [0], [0], [1], [0, 0, 1, 1], [], []>} : vector<96x128xbf16>, vector<128x128xbf16>, vector<96x128xf32> -> vector<96x128xf32>
    %80 = arith.addf %71, %79 : vector<96x128xf32>
    %c0_60 = arith.constant 0 : index
    %c0_61 = arith.constant 0 : index
    %81 = vector.load %arg4[%c0_60, %c0_61] : memref<1x128xf32, #tpu.memory_space<vmem>>, vector<1x128xf32>
    %82 = vector.broadcast %81 : vector<1x128xf32> to vector<96x128xf32>
    %83 = arith.addf %80, %82 : vector<96x128xf32>
    %cst_62 = arith.constant 0.000000e+00 : f32
    %84 = vector.broadcast %cst_62 : f32 to vector<96x128xf32>
    %85 = arith.maximumf %83, %84 : vector<96x128xf32>
    %86 = vector.shape_cast %85 : vector<96x128xf32> to vector<6x16x128xf32>
    %87 = vector.extract_strided_slice %86 {offsets = [0, 0, 0], sizes = [6, 12, 128], strides = [1, 1, 1]} : vector<6x16x128xf32> to vector<6x12x128xf32>
    %88 = arith.truncf %87 : vector<6x12x128xf32> to vector<6x12x128xbf16>
    %c0_63 = arith.constant 0 : index
    %c0_64 = arith.constant 0 : index
    %c0_65 = arith.constant 0 : index
    %c0_66 = arith.constant 0 : index
    %89 = vector.load %arg5[%c0_63, %c0_64, %c0_65, %c0_66] : memref<1x6x12x128xbf16, #tpu.memory_space<vmem>>, vector<1x6x12x128xbf16>
    %90 = vector.shape_cast %89 : vector<1x6x12x128xbf16> to vector<6x12x128xbf16>
    %91 = vector.shape_cast %88 : vector<6x12x128xbf16> to vector<1x6x12x128xbf16>
    tpu.vector_store %arg5[%c0_63, %c0_64, %c0_65, %c0_66], %91 {strides = array<i32>} : memref<1x6x12x128xbf16, #tpu.memory_space<vmem>>, vector<1x6x12x128xbf16>,
    return
  }
  func.func @transform_0(%arg0: i32, %arg1: i32) -> (i32, i32, i32, i32) {
    %c0_i32 = arith.constant 0 : i32
    %c0_i32_0 = arith.constant 0 : i32
    %c0_i32_1 = arith.constant 0 : i32
    %c0_i32_2 = arith.constant 0 : i32
    return %arg0, %c0_i32, %c0_i32_0, %c0_i32_1 : i32, i32, i32, i32
  }
  func.func @transform_1(%arg0: i32, %arg1: i32) -> (i32, i32, i32) {
    %c0_i32 = arith.constant 0 : i32
    %c0_i32_0 = arith.constant 0 : i32
    %c0_i32_1 = arith.constant 0 : i32
    %c0_i32_2 = arith.constant 0 : i32
    return %c0_i32, %c0_i32_0, %c0_i32_1 : i32, i32, i32
  }
  func.func @transform_2(%arg0: i32, %arg1: i32) -> (i32, i32) {
    %c0_i32 = arith.constant 0 : i32
    %c0_i32_0 = arith.constant 0 : i32
    %c0_i32_1 = arith.constant 0 : i32
    return %c0_i32, %c0_i32_0 : i32, i32
  }
  func.func @transform_3(%arg0: i32, %arg1: i32) -> (i32, i32, i32, i32) {
    %c0_i32 = arith.constant 0 : i32
    %c0_i32_0 = arith.constant 0 : i32
    %c0_i32_1 = arith.constant 0 : i32
    return %arg0, %arg1, %c0_i32, %c0_i32_0 : i32, i32, i32, i32
  }
}

module attributes {stable_mosaic.version = 11 : i64} {
  func.func @kernel(%arg0: i32, %arg1: memref<288x128xbf16, #tpu.memory_space<vmem>>, %arg2: memref<128x128xbf16, #tpu.memory_space<vmem>>, %arg3: memref<1x128xf32, #tpu.memory_space<vmem>>, %arg4: memref<288x128xbf16, #tpu.memory_space<vmem>>) attributes {dimension_semantics = [#tpu.dimension_semantics<parallel>], iteration_bounds = array<i64: 1>, scalar_prefetch = 0 : i64, scratch_operands = 0 : i64, tpu.core_type = #tpu.core_type<tc>, window_params = [{transform_indices = @transform_0, window_bounds = array<i64: 288, 128>}, {pipeline_mode = #tpu.pipeline_mode<synchronous>, transform_indices = @transform_1, window_bounds = array<i64: 128, 128>}, {pipeline_mode = #tpu.pipeline_mode<synchronous>, transform_indices = @transform_2, window_bounds = array<i64: 1, 128>}, {transform_indices = @transform_3, window_bounds = array<i64: 288, 128>}]} {
    %c0 = arith.constant 0 : index
    %c0_0 = arith.constant 0 : index
    %0 = vector.load %arg1[%c0, %c0_0] : memref<288x128xbf16, #tpu.memory_space<vmem>>, vector<288x128xbf16>
    %c0_1 = arith.constant 0 : index
    %c0_2 = arith.constant 0 : index
    %1 = vector.load %arg2[%c0_1, %c0_2] : memref<128x128xbf16, #tpu.memory_space<vmem>>, vector<128x128xbf16>
    %cst = arith.constant dense<0.000000e+00> : vector<288x128xf32>
    %2 = tpu.matmul %0, %1, %cst {dimension_numbers = #tpu.dot_dimension_numbers<[1], [0], [0], [1], [0, 0, 1, 1], [], []>} : vector<288x128xbf16>, vector<128x128xbf16>, vector<288x128xf32> -> vector<288x128xf32>
    %c0_3 = arith.constant 0 : index
    %c0_4 = arith.constant 0 : index
    %3 = vector.load %arg3[%c0_3, %c0_4] : memref<1x128xf32, #tpu.memory_space<vmem>>, vector<1x128xf32>
    %4 = vector.broadcast %3 : vector<1x128xf32> to vector<288x128xf32>
    %5 = arith.addf %2, %4 : vector<288x128xf32>
    %cst_5 = arith.constant 0.000000e+00 : f32
    %6 = vector.broadcast %cst_5 : f32 to vector<288x128xf32>
    %7 = arith.maximumf %5, %6 : vector<288x128xf32>
    %8 = arith.truncf %7 : vector<288x128xf32> to vector<288x128xbf16>
    %c0_6 = arith.constant 0 : index
    %c0_7 = arith.constant 0 : index
    %9 = vector.load %arg4[%c0_6, %c0_7] : memref<288x128xbf16, #tpu.memory_space<vmem>>, vector<288x128xbf16>
    tpu.vector_store %arg4[%c0_6, %c0_7], %8 {strides = array<i32>} : memref<288x128xbf16, #tpu.memory_space<vmem>>, vector<288x128xbf16>,
    return
  }
  func.func @transform_0(%arg0: i32) -> (i32, i32) {
    %c0_i32 = arith.constant 0 : i32
    %c0_i32_0 = arith.constant 0 : i32
    return %arg0, %c0_i32 : i32, i32
  }
  func.func @transform_1(%arg0: i32) -> (i32, i32) {
    %c0_i32 = arith.constant 0 : i32
    %c0_i32_0 = arith.constant 0 : i32
    %c0_i32_1 = arith.constant 0 : i32
    return %c0_i32, %c0_i32_0 : i32, i32
  }
  func.func @transform_2(%arg0: i32) -> (i32, i32) {
    %c0_i32 = arith.constant 0 : i32
    %c0_i32_0 = arith.constant 0 : i32
    %c0_i32_1 = arith.constant 0 : i32
    return %c0_i32, %c0_i32_0 : i32, i32
  }
  func.func @transform_3(%arg0: i32) -> (i32, i32) {
    %c0_i32 = arith.constant 0 : i32
    %c0_i32_0 = arith.constant 0 : i32
    return %arg0, %c0_i32 : i32, i32
  }
}

module attributes {stable_mosaic.version = 11 : i64} {
  func.func @kernel(%arg0: i32, %arg1: memref<288x128xbf16, #tpu.memory_space<vmem>>, %arg2: memref<128x128xbf16, #tpu.memory_space<vmem>>, %arg3: memref<1x128xf32, #tpu.memory_space<vmem>>, %arg4: memref<288x128xbf16, #tpu.memory_space<vmem>>) attributes {dimension_semantics = [#tpu.dimension_semantics<parallel>], iteration_bounds = array<i64: 1>, scalar_prefetch = 0 : i64, scratch_operands = 0 : i64, tpu.core_type = #tpu.core_type<tc>, window_params = [{transform_indices = @transform_0, window_bounds = array<i64: 288, 128>}, {pipeline_mode = #tpu.pipeline_mode<synchronous>, transform_indices = @transform_1, window_bounds = array<i64: 128, 128>}, {pipeline_mode = #tpu.pipeline_mode<synchronous>, transform_indices = @transform_2, window_bounds = array<i64: 1, 128>}, {transform_indices = @transform_3, window_bounds = array<i64: 288, 128>}]} {
    %c0 = arith.constant 0 : index
    %c0_0 = arith.constant 0 : index
    %0 = vector.load %arg1[%c0, %c0_0] : memref<288x128xbf16, #tpu.memory_space<vmem>>, vector<288x128xbf16>
    %c0_1 = arith.constant 0 : index
    %c0_2 = arith.constant 0 : index
    %1 = vector.load %arg2[%c0_1, %c0_2] : memref<128x128xbf16, #tpu.memory_space<vmem>>, vector<128x128xbf16>
    %cst = arith.constant dense<0.000000e+00> : vector<288x128xf32>
    %2 = tpu.matmul %0, %1, %cst {dimension_numbers = #tpu.dot_dimension_numbers<[1], [0], [0], [1], [0, 0, 1, 1], [], []>} : vector<288x128xbf16>, vector<128x128xbf16>, vector<288x128xf32> -> vector<288x128xf32>
    %c0_3 = arith.constant 0 : index
    %c0_4 = arith.constant 0 : index
    %3 = vector.load %arg3[%c0_3, %c0_4] : memref<1x128xf32, #tpu.memory_space<vmem>>, vector<1x128xf32>
    %4 = vector.broadcast %3 : vector<1x128xf32> to vector<288x128xf32>
    %5 = arith.addf %2, %4 : vector<288x128xf32>
    %6 = arith.truncf %5 : vector<288x128xf32> to vector<288x128xbf16>
    %c0_5 = arith.constant 0 : index
    %c0_6 = arith.constant 0 : index
    %7 = vector.load %arg4[%c0_5, %c0_6] : memref<288x128xbf16, #tpu.memory_space<vmem>>, vector<288x128xbf16>
    tpu.vector_store %arg4[%c0_5, %c0_6], %6 {strides = array<i32>} : memref<288x128xbf16, #tpu.memory_space<vmem>>, vector<288x128xbf16>,
    return
  }
  func.func @transform_0(%arg0: i32) -> (i32, i32) {
    %c0_i32 = arith.constant 0 : i32
    %c0_i32_0 = arith.constant 0 : i32
    return %arg0, %c0_i32 : i32, i32
  }
  func.func @transform_1(%arg0: i32) -> (i32, i32) {
    %c0_i32 = arith.constant 0 : i32
    %c0_i32_0 = arith.constant 0 : i32
    %c0_i32_1 = arith.constant 0 : i32
    return %c0_i32, %c0_i32_0 : i32, i32
  }
  func.func @transform_2(%arg0: i32) -> (i32, i32) {
    %c0_i32 = arith.constant 0 : i32
    %c0_i32_0 = arith.constant 0 : i32
    %c0_i32_1 = arith.constant 0 : i32
    return %c0_i32, %c0_i32_0 : i32, i32
  }
  func.func @transform_3(%arg0: i32) -> (i32, i32) {
    %c0_i32 = arith.constant 0 : i32
    %c0_i32_0 = arith.constant 0 : i32
    return %arg0, %c0_i32 : i32, i32
  }
}

module attributes {stable_mosaic.version = 11 : i64} {
  func.func @kernel(%arg0: i32, %arg1: memref<288x128xbf16, #tpu.memory_space<vmem>>, %arg2: memref<128x128xbf16, #tpu.memory_space<vmem>>, %arg3: memref<1x128xf32, #tpu.memory_space<vmem>>, %arg4: memref<288x128xbf16, #tpu.memory_space<vmem>>, %arg5: memref<288x128xbf16, #tpu.memory_space<vmem>>) attributes {dimension_semantics = [#tpu.dimension_semantics<parallel>], iteration_bounds = array<i64: 1>, scalar_prefetch = 0 : i64, scratch_operands = 0 : i64, tpu.core_type = #tpu.core_type<tc>, window_params = [{transform_indices = @transform_0, window_bounds = array<i64: 288, 128>}, {pipeline_mode = #tpu.pipeline_mode<synchronous>, transform_indices = @transform_1, window_bounds = array<i64: 128, 128>}, {pipeline_mode = #tpu.pipeline_mode<synchronous>, transform_indices = @transform_2, window_bounds = array<i64: 1, 128>}, {transform_indices = @transform_3, window_bounds = array<i64: 288, 128>}, {transform_indices = @transform_4, window_bounds = array<i64: 288, 128>}]} {
    %c0 = arith.constant 0 : index
    %c0_0 = arith.constant 0 : index
    %0 = vector.load %arg1[%c0, %c0_0] : memref<288x128xbf16, #tpu.memory_space<vmem>>, vector<288x128xbf16>
    %c0_1 = arith.constant 0 : index
    %c0_2 = arith.constant 0 : index
    %1 = vector.load %arg2[%c0_1, %c0_2] : memref<128x128xbf16, #tpu.memory_space<vmem>>, vector<128x128xbf16>
    %cst = arith.constant dense<0.000000e+00> : vector<288x128xf32>
    %2 = tpu.matmul %0, %1, %cst {dimension_numbers = #tpu.dot_dimension_numbers<[1], [0], [0], [1], [0, 0, 1, 1], [], []>} : vector<288x128xbf16>, vector<128x128xbf16>, vector<288x128xf32> -> vector<288x128xf32>
    %c0_3 = arith.constant 0 : index
    %c0_4 = arith.constant 0 : index
    %3 = vector.load %arg3[%c0_3, %c0_4] : memref<1x128xf32, #tpu.memory_space<vmem>>, vector<1x128xf32>
    %4 = vector.broadcast %3 : vector<1x128xf32> to vector<288x128xf32>
    %5 = arith.addf %2, %4 : vector<288x128xf32>
    %c0_5 = arith.constant 0 : index
    %c0_6 = arith.constant 0 : index
    %6 = vector.load %arg4[%c0_5, %c0_6] : memref<288x128xbf16, #tpu.memory_space<vmem>>, vector<288x128xbf16>
    %7 = arith.extf %6 : vector<288x128xbf16> to vector<288x128xf32>
    %8 = arith.addf %5, %7 : vector<288x128xf32>
    %cst_7 = arith.constant 0.000000e+00 : f32
    %9 = vector.broadcast %cst_7 : f32 to vector<288x128xf32>
    %10 = arith.maximumf %8, %9 : vector<288x128xf32>
    %11 = arith.truncf %10 : vector<288x128xf32> to vector<288x128xbf16>
    %c0_8 = arith.constant 0 : index
    %c0_9 = arith.constant 0 : index
    %12 = vector.load %arg5[%c0_8, %c0_9] : memref<288x128xbf16, #tpu.memory_space<vmem>>, vector<288x128xbf16>
    tpu.vector_store %arg5[%c0_8, %c0_9], %11 {strides = array<i32>} : memref<288x128xbf16, #tpu.memory_space<vmem>>, vector<288x128xbf16>,
    return
  }
  func.func @transform_0(%arg0: i32) -> (i32, i32) {
    %c0_i32 = arith.constant 0 : i32
    %c0_i32_0 = arith.constant 0 : i32
    return %arg0, %c0_i32 : i32, i32
  }
  func.func @transform_1(%arg0: i32) -> (i32, i32) {
    %c0_i32 = arith.constant 0 : i32
    %c0_i32_0 = arith.constant 0 : i32
    %c0_i32_1 = arith.constant 0 : i32
    return %c0_i32, %c0_i32_0 : i32, i32
  }
  func.func @transform_2(%arg0: i32) -> (i32, i32) {
    %c0_i32 = arith.constant 0 : i32
    %c0_i32_0 = arith.constant 0 : i32
    %c0_i32_1 = arith.constant 0 : i32
    return %c0_i32, %c0_i32_0 : i32, i32
  }
  func.func @transform_3(%arg0: i32) -> (i32, i32) {
    %c0_i32 = arith.constant 0 : i32
    %c0_i32_0 = arith.constant 0 : i32
    return %arg0, %c0_i32 : i32, i32
  }
  func.func @transform_4(%arg0: i32) -> (i32, i32) {
    %c0_i32 = arith.constant 0 : i32
    %c0_i32_0 = arith.constant 0 : i32
    return %arg0, %c0_i32 : i32, i32
  }
}

module attributes {stable_mosaic.version = 11 : i64} {
  func.func @kernel(%arg0: i32, %arg1: memref<72x128xbf16, #tpu.memory_space<vmem>>, %arg2: memref<128x128xbf16, #tpu.memory_space<vmem>>, %arg3: memref<1x128xf32, #tpu.memory_space<vmem>>, %arg4: memref<72x128xbf16, #tpu.memory_space<vmem>>) attributes {dimension_semantics = [#tpu.dimension_semantics<parallel>], iteration_bounds = array<i64: 1>, scalar_prefetch = 0 : i64, scratch_operands = 0 : i64, tpu.core_type = #tpu.core_type<tc>, window_params = [{transform_indices = @transform_0, window_bounds = array<i64: 72, 128>}, {pipeline_mode = #tpu.pipeline_mode<synchronous>, transform_indices = @transform_1, window_bounds = array<i64: 128, 128>}, {pipeline_mode = #tpu.pipeline_mode<synchronous>, transform_indices = @transform_2, window_bounds = array<i64: 1, 128>}, {transform_indices = @transform_3, window_bounds = array<i64: 72, 128>}]} {
    %c0 = arith.constant 0 : index
    %c0_0 = arith.constant 0 : index
    %0 = vector.load %arg1[%c0, %c0_0] : memref<72x128xbf16, #tpu.memory_space<vmem>>, vector<72x128xbf16>
    %c0_1 = arith.constant 0 : index
    %c0_2 = arith.constant 0 : index
    %1 = vector.load %arg2[%c0_1, %c0_2] : memref<128x128xbf16, #tpu.memory_space<vmem>>, vector<128x128xbf16>
    %cst = arith.constant dense<0.000000e+00> : vector<72x128xf32>
    %2 = tpu.matmul %0, %1, %cst {dimension_numbers = #tpu.dot_dimension_numbers<[1], [0], [0], [1], [0, 0, 1, 1], [], []>} : vector<72x128xbf16>, vector<128x128xbf16>, vector<72x128xf32> -> vector<72x128xf32>
    %c0_3 = arith.constant 0 : index
    %c0_4 = arith.constant 0 : index
    %3 = vector.load %arg3[%c0_3, %c0_4] : memref<1x128xf32, #tpu.memory_space<vmem>>, vector<1x128xf32>
    %4 = vector.broadcast %3 : vector<1x128xf32> to vector<72x128xf32>
    %5 = arith.addf %2, %4 : vector<72x128xf32>
    %6 = arith.truncf %5 : vector<72x128xf32> to vector<72x128xbf16>
    %c0_5 = arith.constant 0 : index
    %c0_6 = arith.constant 0 : index
    %7 = vector.load %arg4[%c0_5, %c0_6] : memref<72x128xbf16, #tpu.memory_space<vmem>>, vector<72x128xbf16>
    tpu.vector_store %arg4[%c0_5, %c0_6], %6 {strides = array<i32>} : memref<72x128xbf16, #tpu.memory_space<vmem>>, vector<72x128xbf16>,
    return
  }
  func.func @transform_0(%arg0: i32) -> (i32, i32) {
    %c0_i32 = arith.constant 0 : i32
    %c0_i32_0 = arith.constant 0 : i32
    return %arg0, %c0_i32 : i32, i32
  }
  func.func @transform_1(%arg0: i32) -> (i32, i32) {
    %c0_i32 = arith.constant 0 : i32
    %c0_i32_0 = arith.constant 0 : i32
    %c0_i32_1 = arith.constant 0 : i32
    return %c0_i32, %c0_i32_0 : i32, i32
  }
  func.func @transform_2(%arg0: i32) -> (i32, i32) {
    %c0_i32 = arith.constant 0 : i32
    %c0_i32_0 = arith.constant 0 : i32
    %c0_i32_1 = arith.constant 0 : i32
    return %c0_i32, %c0_i32_0 : i32, i32
  }
  func.func @transform_3(%arg0: i32) -> (i32, i32) {
    %c0_i32 = arith.constant 0 : i32
    %c0_i32_0 = arith.constant 0 : i32
    return %arg0, %c0_i32 : i32, i32
  }
}

module attributes {stable_mosaic.version = 11 : i64} {
  func.func @kernel(%arg0: i32, %arg1: i32, %arg2: memref<1x6x56x128xbf16, #tpu.memory_space<vmem>>, %arg3: memref<9x128x128xbf16, #tpu.memory_space<vmem>>, %arg4: memref<1x128xf32, #tpu.memory_space<vmem>>, %arg5: memref<1x6x6x128xbf16, #tpu.memory_space<vmem>>) attributes {dimension_semantics = [#tpu.dimension_semantics<parallel>, #tpu.dimension_semantics<parallel>], iteration_bounds = array<i64: 2, 1>, scalar_prefetch = 0 : i64, scratch_operands = 0 : i64, tpu.core_type = #tpu.core_type<tc>, window_params = [{transform_indices = @transform_0, window_bounds = array<i64: 1, 6, 56, 128>}, {pipeline_mode = #tpu.pipeline_mode<synchronous>, transform_indices = @transform_1, window_bounds = array<i64: 9, 128, 128>}, {pipeline_mode = #tpu.pipeline_mode<synchronous>, transform_indices = @transform_2, window_bounds = array<i64: 1, 128>}, {transform_indices = @transform_3, window_bounds = array<i64: 1, 6, 6, 128>}]} {
    %c48_i32 = arith.constant 48 : i32
    %0 = arith.muli %arg1, %c48_i32 : i32
    %c0_i32 = arith.constant 0 : i32
    %1 = arith.addi %0, %c0_i32 : i32
    %2 = tpu.assume_multiple %1, 8 : i32
    %c0 = arith.constant 0 : index
    %c0_0 = arith.constant 0 : index
    %3 = arith.index_cast %2 : i32 to index
    %c0_1 = arith.constant 0 : index
    %4 = vector.load %arg2[%c0, %c0_0, %3, %c0_1] : memref<1x6x56x128xbf16, #tpu.memory_space<vmem>>, vector<1x1x48x128xbf16>
    %5 = vector.shape_cast %4 : vector<1x1x48x128xbf16> to vector<48x128xbf16>
    %c0_2 = arith.constant 0 : index
    %c0_3 = arith.constant 0 : index
    %c0_4 = arith.constant 0 : index
    %6 = vector.load %arg3[%c0_2, %c0_3, %c0_4] : memref<9x128x128xbf16, #tpu.memory_space<vmem>>, vector<1x128x128xbf16>
    %7 = vector.shape_cast %6 : vector<1x128x128xbf16> to vector<128x128xbf16>
    %cst = arith.constant dense<0.000000e+00> : vector<48x128xf32>
    %8 = tpu.matmul %5, %7, %cst {dimension_numbers = #tpu.dot_dimension_numbers<[1], [0], [0], [1], [0, 0, 1, 1], [], []>} : vector<48x128xbf16>, vector<128x128xbf16>, vector<48x128xf32> -> vector<48x128xf32>
    %c0_i32_5 = arith.constant 0 : i32
    %9 = arith.addi %0, %c0_i32_5 : i32
    %10 = tpu.assume_multiple %9, 8 : i32
    %c0_6 = arith.constant 0 : index
    %c1 = arith.constant 1 : index
    %11 = arith.index_cast %10 : i32 to index
    %c0_7 = arith.constant 0 : index
    %12 = vector.load %arg2[%c0_6, %c1, %11, %c0_7] : memref<1x6x56x128xbf16, #tpu.memory_space<vmem>>, vector<1x1x48x128xbf16>
    %13 = vector.shape_cast %12 : vector<1x1x48x128xbf16> to vector<48x128xbf16>
    %c1_8 = arith.constant 1 : index
    %c0_9 = arith.constant 0 : index
    %c0_10 = arith.constant 0 : index
    %14 = vector.load %arg3[%c1_8, %c0_9, %c0_10] : memref<9x128x128xbf16, #tpu.memory_space<vmem>>, vector<1x128x128xbf16>
    %15 = vector.shape_cast %14 : vector<1x128x128xbf16> to vector<128x128xbf16>
    %cst_11 = arith.constant dense<0.000000e+00> : vector<48x128xf32>
    %16 = tpu.matmul %13, %15, %cst_11 {dimension_numbers = #tpu.dot_dimension_numbers<[1], [0], [0], [1], [0, 0, 1, 1], [], []>} : vector<48x128xbf16>, vector<128x128xbf16>, vector<48x128xf32> -> vector<48x128xf32>
    %17 = arith.addf %8, %16 : vector<48x128xf32>
    %c0_i32_12 = arith.constant 0 : i32
    %18 = arith.addi %0, %c0_i32_12 : i32
    %19 = tpu.assume_multiple %18, 8 : i32
    %c0_13 = arith.constant 0 : index
    %c2 = arith.constant 2 : index
    %20 = arith.index_cast %19 : i32 to index
    %c0_14 = arith.constant 0 : index
    %21 = vector.load %arg2[%c0_13, %c2, %20, %c0_14] : memref<1x6x56x128xbf16, #tpu.memory_space<vmem>>, vector<1x1x48x128xbf16>
    %22 = vector.shape_cast %21 : vector<1x1x48x128xbf16> to vector<48x128xbf16>
    %c2_15 = arith.constant 2 : index
    %c0_16 = arith.constant 0 : index
    %c0_17 = arith.constant 0 : index
    %23 = vector.load %arg3[%c2_15, %c0_16, %c0_17] : memref<9x128x128xbf16, #tpu.memory_space<vmem>>, vector<1x128x128xbf16>
    %24 = vector.shape_cast %23 : vector<1x128x128xbf16> to vector<128x128xbf16>
    %cst_18 = arith.constant dense<0.000000e+00> : vector<48x128xf32>
    %25 = tpu.matmul %22, %24, %cst_18 {dimension_numbers = #tpu.dot_dimension_numbers<[1], [0], [0], [1], [0, 0, 1, 1], [], []>} : vector<48x128xbf16>, vector<128x128xbf16>, vector<48x128xf32> -> vector<48x128xf32>
    %26 = arith.addf %17, %25 : vector<48x128xf32>
    %c0_i32_19 = arith.constant 0 : i32
    %27 = arith.addi %0, %c0_i32_19 : i32
    %28 = tpu.assume_multiple %27, 8 : i32
    %c0_20 = arith.constant 0 : index
    %c3 = arith.constant 3 : index
    %29 = arith.index_cast %28 : i32 to index
    %c0_21 = arith.constant 0 : index
    %30 = vector.load %arg2[%c0_20, %c3, %29, %c0_21] : memref<1x6x56x128xbf16, #tpu.memory_space<vmem>>, vector<1x1x48x128xbf16>
    %31 = vector.shape_cast %30 : vector<1x1x48x128xbf16> to vector<48x128xbf16>
    %c3_22 = arith.constant 3 : index
    %c0_23 = arith.constant 0 : index
    %c0_24 = arith.constant 0 : index
    %32 = vector.load %arg3[%c3_22, %c0_23, %c0_24] : memref<9x128x128xbf16, #tpu.memory_space<vmem>>, vector<1x128x128xbf16>
    %33 = vector.shape_cast %32 : vector<1x128x128xbf16> to vector<128x128xbf16>
    %cst_25 = arith.constant dense<0.000000e+00> : vector<48x128xf32>
    %34 = tpu.matmul %31, %33, %cst_25 {dimension_numbers = #tpu.dot_dimension_numbers<[1], [0], [0], [1], [0, 0, 1, 1], [], []>} : vector<48x128xbf16>, vector<128x128xbf16>, vector<48x128xf32> -> vector<48x128xf32>
    %35 = arith.addf %26, %34 : vector<48x128xf32>
    %c0_i32_26 = arith.constant 0 : i32
    %36 = arith.addi %0, %c0_i32_26 : i32
    %37 = tpu.assume_multiple %36, 8 : i32
    %c0_27 = arith.constant 0 : index
    %c4 = arith.constant 4 : index
    %38 = arith.index_cast %37 : i32 to index
    %c0_28 = arith.constant 0 : index
    %39 = vector.load %arg2[%c0_27, %c4, %38, %c0_28] : memref<1x6x56x128xbf16, #tpu.memory_space<vmem>>, vector<1x1x48x128xbf16>
    %40 = vector.shape_cast %39 : vector<1x1x48x128xbf16> to vector<48x128xbf16>
    %c4_29 = arith.constant 4 : index
    %c0_30 = arith.constant 0 : index
    %c0_31 = arith.constant 0 : index
    %41 = vector.load %arg3[%c4_29, %c0_30, %c0_31] : memref<9x128x128xbf16, #tpu.memory_space<vmem>>, vector<1x128x128xbf16>
    %42 = vector.shape_cast %41 : vector<1x128x128xbf16> to vector<128x128xbf16>
    %cst_32 = arith.constant dense<0.000000e+00> : vector<48x128xf32>
    %43 = tpu.matmul %40, %42, %cst_32 {dimension_numbers = #tpu.dot_dimension_numbers<[1], [0], [0], [1], [0, 0, 1, 1], [], []>} : vector<48x128xbf16>, vector<128x128xbf16>, vector<48x128xf32> -> vector<48x128xf32>
    %44 = arith.addf %35, %43 : vector<48x128xf32>
    %c0_i32_33 = arith.constant 0 : i32
    %45 = arith.addi %0, %c0_i32_33 : i32
    %46 = tpu.assume_multiple %45, 8 : i32
    %c0_34 = arith.constant 0 : index
    %c5 = arith.constant 5 : index
    %47 = arith.index_cast %46 : i32 to index
    %c0_35 = arith.constant 0 : index
    %48 = vector.load %arg2[%c0_34, %c5, %47, %c0_35] : memref<1x6x56x128xbf16, #tpu.memory_space<vmem>>, vector<1x1x48x128xbf16>
    %49 = vector.shape_cast %48 : vector<1x1x48x128xbf16> to vector<48x128xbf16>
    %c5_36 = arith.constant 5 : index
    %c0_37 = arith.constant 0 : index
    %c0_38 = arith.constant 0 : index
    %50 = vector.load %arg3[%c5_36, %c0_37, %c0_38] : memref<9x128x128xbf16, #tpu.memory_space<vmem>>, vector<1x128x128xbf16>
    %51 = vector.shape_cast %50 : vector<1x128x128xbf16> to vector<128x128xbf16>
    %cst_39 = arith.constant dense<0.000000e+00> : vector<48x128xf32>
    %52 = tpu.matmul %49, %51, %cst_39 {dimension_numbers = #tpu.dot_dimension_numbers<[1], [0], [0], [1], [0, 0, 1, 1], [], []>} : vector<48x128xbf16>, vector<128x128xbf16>, vector<48x128xf32> -> vector<48x128xf32>
    %53 = arith.addf %44, %52 : vector<48x128xf32>
    %c8_i32 = arith.constant 8 : i32
    %54 = arith.addi %0, %c8_i32 : i32
    %55 = tpu.assume_multiple %54, 8 : i32
    %c0_40 = arith.constant 0 : index
    %c0_41 = arith.constant 0 : index
    %56 = arith.index_cast %55 : i32 to index
    %c0_42 = arith.constant 0 : index
    %57 = vector.load %arg2[%c0_40, %c0_41, %56, %c0_42] : memref<1x6x56x128xbf16, #tpu.memory_space<vmem>>, vector<1x1x48x128xbf16>
    %58 = vector.shape_cast %57 : vector<1x1x48x128xbf16> to vector<48x128xbf16>
    %c6 = arith.constant 6 : index
    %c0_43 = arith.constant 0 : index
    %c0_44 = arith.constant 0 : index
    %59 = vector.load %arg3[%c6, %c0_43, %c0_44] : memref<9x128x128xbf16, #tpu.memory_space<vmem>>, vector<1x128x128xbf16>
    %60 = vector.shape_cast %59 : vector<1x128x128xbf16> to vector<128x128xbf16>
    %cst_45 = arith.constant dense<0.000000e+00> : vector<48x128xf32>
    %61 = tpu.matmul %58, %60, %cst_45 {dimension_numbers = #tpu.dot_dimension_numbers<[1], [0], [0], [1], [0, 0, 1, 1], [], []>} : vector<48x128xbf16>, vector<128x128xbf16>, vector<48x128xf32> -> vector<48x128xf32>
    %62 = arith.addf %53, %61 : vector<48x128xf32>
    %c8_i32_46 = arith.constant 8 : i32
    %63 = arith.addi %0, %c8_i32_46 : i32
    %64 = tpu.assume_multiple %63, 8 : i32
    %c0_47 = arith.constant 0 : index
    %c1_48 = arith.constant 1 : index
    %65 = arith.index_cast %64 : i32 to index
    %c0_49 = arith.constant 0 : index
    %66 = vector.load %arg2[%c0_47, %c1_48, %65, %c0_49] : memref<1x6x56x128xbf16, #tpu.memory_space<vmem>>, vector<1x1x48x128xbf16>
    %67 = vector.shape_cast %66 : vector<1x1x48x128xbf16> to vector<48x128xbf16>
    %c7 = arith.constant 7 : index
    %c0_50 = arith.constant 0 : index
    %c0_51 = arith.constant 0 : index
    %68 = vector.load %arg3[%c7, %c0_50, %c0_51] : memref<9x128x128xbf16, #tpu.memory_space<vmem>>, vector<1x128x128xbf16>
    %69 = vector.shape_cast %68 : vector<1x128x128xbf16> to vector<128x128xbf16>
    %cst_52 = arith.constant dense<0.000000e+00> : vector<48x128xf32>
    %70 = tpu.matmul %67, %69, %cst_52 {dimension_numbers = #tpu.dot_dimension_numbers<[1], [0], [0], [1], [0, 0, 1, 1], [], []>} : vector<48x128xbf16>, vector<128x128xbf16>, vector<48x128xf32> -> vector<48x128xf32>
    %71 = arith.addf %62, %70 : vector<48x128xf32>
    %c8_i32_53 = arith.constant 8 : i32
    %72 = arith.addi %0, %c8_i32_53 : i32
    %73 = tpu.assume_multiple %72, 8 : i32
    %c0_54 = arith.constant 0 : index
    %c2_55 = arith.constant 2 : index
    %74 = arith.index_cast %73 : i32 to index
    %c0_56 = arith.constant 0 : index
    %75 = vector.load %arg2[%c0_54, %c2_55, %74, %c0_56] : memref<1x6x56x128xbf16, #tpu.memory_space<vmem>>, vector<1x1x48x128xbf16>
    %76 = vector.shape_cast %75 : vector<1x1x48x128xbf16> to vector<48x128xbf16>
    %c8 = arith.constant 8 : index
    %c0_57 = arith.constant 0 : index
    %c0_58 = arith.constant 0 : index
    %77 = vector.load %arg3[%c8, %c0_57, %c0_58] : memref<9x128x128xbf16, #tpu.memory_space<vmem>>, vector<1x128x128xbf16>
    %78 = vector.shape_cast %77 : vector<1x128x128xbf16> to vector<128x128xbf16>
    %cst_59 = arith.constant dense<0.000000e+00> : vector<48x128xf32>
    %79 = tpu.matmul %76, %78, %cst_59 {dimension_numbers = #tpu.dot_dimension_numbers<[1], [0], [0], [1], [0, 0, 1, 1], [], []>} : vector<48x128xbf16>, vector<128x128xbf16>, vector<48x128xf32> -> vector<48x128xf32>
    %80 = arith.addf %71, %79 : vector<48x128xf32>
    %c0_60 = arith.constant 0 : index
    %c0_61 = arith.constant 0 : index
    %81 = vector.load %arg4[%c0_60, %c0_61] : memref<1x128xf32, #tpu.memory_space<vmem>>, vector<1x128xf32>
    %82 = vector.broadcast %81 : vector<1x128xf32> to vector<48x128xf32>
    %83 = arith.addf %80, %82 : vector<48x128xf32>
    %cst_62 = arith.constant 0.000000e+00 : f32
    %84 = vector.broadcast %cst_62 : f32 to vector<48x128xf32>
    %85 = arith.maximumf %83, %84 : vector<48x128xf32>
    %86 = vector.shape_cast %85 : vector<48x128xf32> to vector<6x8x128xf32>
    %87 = vector.extract_strided_slice %86 {offsets = [0, 0, 0], sizes = [6, 6, 128], strides = [1, 1, 1]} : vector<6x8x128xf32> to vector<6x6x128xf32>
    %88 = arith.truncf %87 : vector<6x6x128xf32> to vector<6x6x128xbf16>
    %c0_63 = arith.constant 0 : index
    %c0_64 = arith.constant 0 : index
    %c0_65 = arith.constant 0 : index
    %c0_66 = arith.constant 0 : index
    %89 = vector.load %arg5[%c0_63, %c0_64, %c0_65, %c0_66] : memref<1x6x6x128xbf16, #tpu.memory_space<vmem>>, vector<1x6x6x128xbf16>
    %90 = vector.shape_cast %89 : vector<1x6x6x128xbf16> to vector<6x6x128xbf16>
    %91 = vector.shape_cast %88 : vector<6x6x128xbf16> to vector<1x6x6x128xbf16>
    tpu.vector_store %arg5[%c0_63, %c0_64, %c0_65, %c0_66], %91 {strides = array<i32>} : memref<1x6x6x128xbf16, #tpu.memory_space<vmem>>, vector<1x6x6x128xbf16>,
    return
  }
  func.func @transform_0(%arg0: i32, %arg1: i32) -> (i32, i32, i32, i32) {
    %c0_i32 = arith.constant 0 : i32
    %c0_i32_0 = arith.constant 0 : i32
    %c0_i32_1 = arith.constant 0 : i32
    %c0_i32_2 = arith.constant 0 : i32
    return %arg0, %c0_i32, %c0_i32_0, %c0_i32_1 : i32, i32, i32, i32
  }
  func.func @transform_1(%arg0: i32, %arg1: i32) -> (i32, i32, i32) {
    %c0_i32 = arith.constant 0 : i32
    %c0_i32_0 = arith.constant 0 : i32
    %c0_i32_1 = arith.constant 0 : i32
    %c0_i32_2 = arith.constant 0 : i32
    return %c0_i32, %c0_i32_0, %c0_i32_1 : i32, i32, i32
  }
  func.func @transform_2(%arg0: i32, %arg1: i32) -> (i32, i32) {
    %c0_i32 = arith.constant 0 : i32
    %c0_i32_0 = arith.constant 0 : i32
    %c0_i32_1 = arith.constant 0 : i32
    return %c0_i32, %c0_i32_0 : i32, i32
  }
  func.func @transform_3(%arg0: i32, %arg1: i32) -> (i32, i32, i32, i32) {
    %c0_i32 = arith.constant 0 : i32
    %c0_i32_0 = arith.constant 0 : i32
    %c0_i32_1 = arith.constant 0 : i32
    return %arg0, %arg1, %c0_i32, %c0_i32_0 : i32, i32, i32, i32
  }
}

module attributes {stable_mosaic.version = 11 : i64} {
  func.func @kernel(%arg0: i32, %arg1: memref<72x128xbf16, #tpu.memory_space<vmem>>, %arg2: memref<128x128xbf16, #tpu.memory_space<vmem>>, %arg3: memref<1x128xf32, #tpu.memory_space<vmem>>, %arg4: memref<72x128xbf16, #tpu.memory_space<vmem>>, %arg5: memref<72x128xbf16, #tpu.memory_space<vmem>>) attributes {dimension_semantics = [#tpu.dimension_semantics<parallel>], iteration_bounds = array<i64: 1>, scalar_prefetch = 0 : i64, scratch_operands = 0 : i64, tpu.core_type = #tpu.core_type<tc>, window_params = [{transform_indices = @transform_0, window_bounds = array<i64: 72, 128>}, {pipeline_mode = #tpu.pipeline_mode<synchronous>, transform_indices = @transform_1, window_bounds = array<i64: 128, 128>}, {pipeline_mode = #tpu.pipeline_mode<synchronous>, transform_indices = @transform_2, window_bounds = array<i64: 1, 128>}, {transform_indices = @transform_3, window_bounds = array<i64: 72, 128>}, {transform_indices = @transform_4, window_bounds = array<i64: 72, 128>}]} {
    %c0 = arith.constant 0 : index
    %c0_0 = arith.constant 0 : index
    %0 = vector.load %arg1[%c0, %c0_0] : memref<72x128xbf16, #tpu.memory_space<vmem>>, vector<72x128xbf16>
    %c0_1 = arith.constant 0 : index
    %c0_2 = arith.constant 0 : index
    %1 = vector.load %arg2[%c0_1, %c0_2] : memref<128x128xbf16, #tpu.memory_space<vmem>>, vector<128x128xbf16>
    %cst = arith.constant dense<0.000000e+00> : vector<72x128xf32>
    %2 = tpu.matmul %0, %1, %cst {dimension_numbers = #tpu.dot_dimension_numbers<[1], [0], [0], [1], [0, 0, 1, 1], [], []>} : vector<72x128xbf16>, vector<128x128xbf16>, vector<72x128xf32> -> vector<72x128xf32>
    %c0_3 = arith.constant 0 : index
    %c0_4 = arith.constant 0 : index
    %3 = vector.load %arg3[%c0_3, %c0_4] : memref<1x128xf32, #tpu.memory_space<vmem>>, vector<1x128xf32>
    %4 = vector.broadcast %3 : vector<1x128xf32> to vector<72x128xf32>
    %5 = arith.addf %2, %4 : vector<72x128xf32>
    %c0_5 = arith.constant 0 : index
    %c0_6 = arith.constant 0 : index
    %6 = vector.load %arg4[%c0_5, %c0_6] : memref<72x128xbf16, #tpu.memory_space<vmem>>, vector<72x128xbf16>
    %7 = arith.extf %6 : vector<72x128xbf16> to vector<72x128xf32>
    %8 = arith.addf %5, %7 : vector<72x128xf32>
    %cst_7 = arith.constant 0.000000e+00 : f32
    %9 = vector.broadcast %cst_7 : f32 to vector<72x128xf32>
    %10 = arith.maximumf %8, %9 : vector<72x128xf32>
    %11 = arith.truncf %10 : vector<72x128xf32> to vector<72x128xbf16>
    %c0_8 = arith.constant 0 : index
    %c0_9 = arith.constant 0 : index
    %12 = vector.load %arg5[%c0_8, %c0_9] : memref<72x128xbf16, #tpu.memory_space<vmem>>, vector<72x128xbf16>
    tpu.vector_store %arg5[%c0_8, %c0_9], %11 {strides = array<i32>} : memref<72x128xbf16, #tpu.memory_space<vmem>>, vector<72x128xbf16>,
    return
  }
  func.func @transform_0(%arg0: i32) -> (i32, i32) {
    %c0_i32 = arith.constant 0 : i32
    %c0_i32_0 = arith.constant 0 : i32
    return %arg0, %c0_i32 : i32, i32
  }
  func.func @transform_1(%arg0: i32) -> (i32, i32) {
    %c0_i32 = arith.constant 0 : i32
    %c0_i32_0 = arith.constant 0 : i32
    %c0_i32_1 = arith.constant 0 : i32
    return %c0_i32, %c0_i32_0 : i32, i32
  }
  func.func @transform_2(%arg0: i32) -> (i32, i32) {
    %c0_i32 = arith.constant 0 : i32
    %c0_i32_0 = arith.constant 0 : i32
    %c0_i32_1 = arith.constant 0 : i32
    return %c0_i32, %c0_i32_0 : i32, i32
  }
  func.func @transform_3(%arg0: i32) -> (i32, i32) {
    %c0_i32 = arith.constant 0 : i32
    %c0_i32_0 = arith.constant 0 : i32
    return %arg0, %c0_i32 : i32, i32
  }
  func.func @transform_4(%arg0: i32) -> (i32, i32) {
    %c0_i32 = arith.constant 0 : i32
    %c0_i32_0 = arith.constant 0 : i32
    return %arg0, %c0_i32 : i32, i32
  }
}

module attributes {stable_mosaic.version = 11 : i64} {
  func.func @kernel(%arg0: i32, %arg1: memref<72x128xbf16, #tpu.memory_space<vmem>>, %arg2: memref<128x128xbf16, #tpu.memory_space<vmem>>, %arg3: memref<1x128xf32, #tpu.memory_space<vmem>>, %arg4: memref<72x128xbf16, #tpu.memory_space<vmem>>) attributes {dimension_semantics = [#tpu.dimension_semantics<parallel>], iteration_bounds = array<i64: 1>, scalar_prefetch = 0 : i64, scratch_operands = 0 : i64, tpu.core_type = #tpu.core_type<tc>, window_params = [{transform_indices = @transform_0, window_bounds = array<i64: 72, 128>}, {pipeline_mode = #tpu.pipeline_mode<synchronous>, transform_indices = @transform_1, window_bounds = array<i64: 128, 128>}, {pipeline_mode = #tpu.pipeline_mode<synchronous>, transform_indices = @transform_2, window_bounds = array<i64: 1, 128>}, {transform_indices = @transform_3, window_bounds = array<i64: 72, 128>}]} {
    %c0 = arith.constant 0 : index
    %c0_0 = arith.constant 0 : index
    %0 = vector.load %arg1[%c0, %c0_0] : memref<72x128xbf16, #tpu.memory_space<vmem>>, vector<72x128xbf16>
    %c0_1 = arith.constant 0 : index
    %c0_2 = arith.constant 0 : index
    %1 = vector.load %arg2[%c0_1, %c0_2] : memref<128x128xbf16, #tpu.memory_space<vmem>>, vector<128x128xbf16>
    %cst = arith.constant dense<0.000000e+00> : vector<72x128xf32>
    %2 = tpu.matmul %0, %1, %cst {dimension_numbers = #tpu.dot_dimension_numbers<[1], [0], [0], [1], [0, 0, 1, 1], [], []>} : vector<72x128xbf16>, vector<128x128xbf16>, vector<72x128xf32> -> vector<72x128xf32>
    %c0_3 = arith.constant 0 : index
    %c0_4 = arith.constant 0 : index
    %3 = vector.load %arg3[%c0_3, %c0_4] : memref<1x128xf32, #tpu.memory_space<vmem>>, vector<1x128xf32>
    %4 = vector.broadcast %3 : vector<1x128xf32> to vector<72x128xf32>
    %5 = arith.addf %2, %4 : vector<72x128xf32>
    %cst_5 = arith.constant 0.000000e+00 : f32
    %6 = vector.broadcast %cst_5 : f32 to vector<72x128xf32>
    %7 = arith.maximumf %5, %6 : vector<72x128xf32>
    %8 = arith.truncf %7 : vector<72x128xf32> to vector<72x128xbf16>
    %c0_6 = arith.constant 0 : index
    %c0_7 = arith.constant 0 : index
    %9 = vector.load %arg4[%c0_6, %c0_7] : memref<72x128xbf16, #tpu.memory_space<vmem>>, vector<72x128xbf16>
    tpu.vector_store %arg4[%c0_6, %c0_7], %8 {strides = array<i32>} : memref<72x128xbf16, #tpu.memory_space<vmem>>, vector<72x128xbf16>,
    return
  }
  func.func @transform_0(%arg0: i32) -> (i32, i32) {
    %c0_i32 = arith.constant 0 : i32
    %c0_i32_0 = arith.constant 0 : i32
    return %arg0, %c0_i32 : i32, i32
  }
  func.func @transform_1(%arg0: i32) -> (i32, i32) {
    %c0_i32 = arith.constant 0 : i32
    %c0_i32_0 = arith.constant 0 : i32
    %c0_i32_1 = arith.constant 0 : i32
    return %c0_i32, %c0_i32_0 : i32, i32
  }
  func.func @transform_2(%arg0: i32) -> (i32, i32) {
    %c0_i32 = arith.constant 0 : i32
    %c0_i32_0 = arith.constant 0 : i32
    %c0_i32_1 = arith.constant 0 : i32
    return %c0_i32, %c0_i32_0 : i32, i32
  }
  func.func @transform_3(%arg0: i32) -> (i32, i32) {
    %c0_i32 = arith.constant 0 : i32
    %c0_i32_0 = arith.constant 0 : i32
    return %arg0, %c0_i32 : i32, i32
  }
}

module attributes {stable_mosaic.version = 11 : i64} {
  func.func @kernel(%arg0: i32, %arg1: memref<18x128xbf16, #tpu.memory_space<vmem>>, %arg2: memref<128x256xbf16, #tpu.memory_space<vmem>>, %arg3: memref<1x256xf32, #tpu.memory_space<vmem>>, %arg4: memref<18x256xbf16, #tpu.memory_space<vmem>>) attributes {dimension_semantics = [#tpu.dimension_semantics<parallel>], iteration_bounds = array<i64: 1>, scalar_prefetch = 0 : i64, scratch_operands = 0 : i64, tpu.core_type = #tpu.core_type<tc>, window_params = [{transform_indices = @transform_0, window_bounds = array<i64: 18, 128>}, {pipeline_mode = #tpu.pipeline_mode<synchronous>, transform_indices = @transform_1, window_bounds = array<i64: 128, 256>}, {pipeline_mode = #tpu.pipeline_mode<synchronous>, transform_indices = @transform_2, window_bounds = array<i64: 1, 256>}, {transform_indices = @transform_3, window_bounds = array<i64: 18, 256>}]} {
    %c0 = arith.constant 0 : index
    %c0_0 = arith.constant 0 : index
    %0 = vector.load %arg1[%c0, %c0_0] : memref<18x128xbf16, #tpu.memory_space<vmem>>, vector<18x128xbf16>
    %c0_1 = arith.constant 0 : index
    %c0_2 = arith.constant 0 : index
    %1 = vector.load %arg2[%c0_1, %c0_2] : memref<128x256xbf16, #tpu.memory_space<vmem>>, vector<128x256xbf16>
    %cst = arith.constant dense<0.000000e+00> : vector<18x256xf32>
    %2 = tpu.matmul %0, %1, %cst {dimension_numbers = #tpu.dot_dimension_numbers<[1], [0], [0], [1], [0, 0, 1, 1], [], []>} : vector<18x128xbf16>, vector<128x256xbf16>, vector<18x256xf32> -> vector<18x256xf32>
    %c0_3 = arith.constant 0 : index
    %c0_4 = arith.constant 0 : index
    %3 = vector.load %arg3[%c0_3, %c0_4] : memref<1x256xf32, #tpu.memory_space<vmem>>, vector<1x256xf32>
    %4 = vector.broadcast %3 : vector<1x256xf32> to vector<18x256xf32>
    %5 = arith.addf %2, %4 : vector<18x256xf32>
    %6 = arith.truncf %5 : vector<18x256xf32> to vector<18x256xbf16>
    %c0_5 = arith.constant 0 : index
    %c0_6 = arith.constant 0 : index
    %7 = vector.load %arg4[%c0_5, %c0_6] : memref<18x256xbf16, #tpu.memory_space<vmem>>, vector<18x256xbf16>
    tpu.vector_store %arg4[%c0_5, %c0_6], %6 {strides = array<i32>} : memref<18x256xbf16, #tpu.memory_space<vmem>>, vector<18x256xbf16>,
    return
  }
  func.func @transform_0(%arg0: i32) -> (i32, i32) {
    %c0_i32 = arith.constant 0 : i32
    %c0_i32_0 = arith.constant 0 : i32
    return %arg0, %c0_i32 : i32, i32
  }
  func.func @transform_1(%arg0: i32) -> (i32, i32) {
    %c0_i32 = arith.constant 0 : i32
    %c0_i32_0 = arith.constant 0 : i32
    %c0_i32_1 = arith.constant 0 : i32
    return %c0_i32, %c0_i32_0 : i32, i32
  }
  func.func @transform_2(%arg0: i32) -> (i32, i32) {
    %c0_i32 = arith.constant 0 : i32
    %c0_i32_0 = arith.constant 0 : i32
    %c0_i32_1 = arith.constant 0 : i32
    return %c0_i32, %c0_i32_0 : i32, i32
  }
  func.func @transform_3(%arg0: i32) -> (i32, i32) {
    %c0_i32 = arith.constant 0 : i32
    %c0_i32_0 = arith.constant 0 : i32
    return %arg0, %c0_i32 : i32, i32
  }
}

module attributes {stable_mosaic.version = 11 : i64} {
  func.func @kernel(%arg0: i32, %arg1: i32, %arg2: memref<1x6x32x128xbf16, #tpu.memory_space<vmem>>, %arg3: memref<9x128x128xbf16, #tpu.memory_space<vmem>>, %arg4: memref<1x128xf32, #tpu.memory_space<vmem>>, %arg5: memref<1x3x3x128xbf16, #tpu.memory_space<vmem>>) attributes {dimension_semantics = [#tpu.dimension_semantics<parallel>, #tpu.dimension_semantics<parallel>], iteration_bounds = array<i64: 2, 1>, scalar_prefetch = 0 : i64, scratch_operands = 0 : i64, tpu.core_type = #tpu.core_type<tc>, window_params = [{transform_indices = @transform_0, window_bounds = array<i64: 1, 6, 32, 128>}, {pipeline_mode = #tpu.pipeline_mode<synchronous>, transform_indices = @transform_1, window_bounds = array<i64: 9, 128, 128>}, {pipeline_mode = #tpu.pipeline_mode<synchronous>, transform_indices = @transform_2, window_bounds = array<i64: 1, 128>}, {transform_indices = @transform_3, window_bounds = array<i64: 1, 3, 3, 128>}]} {
    %c24_i32 = arith.constant 24 : i32
    %0 = arith.muli %arg1, %c24_i32 : i32
    %c0_i32 = arith.constant 0 : i32
    %1 = arith.addi %0, %c0_i32 : i32
    %2 = tpu.assume_multiple %1, 8 : i32
    %c0 = arith.constant 0 : index
    %c0_0 = arith.constant 0 : index
    %3 = arith.index_cast %2 : i32 to index
    %c0_1 = arith.constant 0 : index
    %4 = vector.load %arg2[%c0, %c0_0, %3, %c0_1] : memref<1x6x32x128xbf16, #tpu.memory_space<vmem>>, vector<1x1x24x128xbf16>
    %5 = vector.shape_cast %4 : vector<1x1x24x128xbf16> to vector<24x128xbf16>
    %c0_2 = arith.constant 0 : index
    %c0_3 = arith.constant 0 : index
    %c0_4 = arith.constant 0 : index
    %6 = vector.load %arg3[%c0_2, %c0_3, %c0_4] : memref<9x128x128xbf16, #tpu.memory_space<vmem>>, vector<1x128x128xbf16>
    %7 = vector.shape_cast %6 : vector<1x128x128xbf16> to vector<128x128xbf16>
    %cst = arith.constant dense<0.000000e+00> : vector<24x128xf32>
    %8 = tpu.matmul %5, %7, %cst {dimension_numbers = #tpu.dot_dimension_numbers<[1], [0], [0], [1], [0, 0, 1, 1], [], []>} : vector<24x128xbf16>, vector<128x128xbf16>, vector<24x128xf32> -> vector<24x128xf32>
    %c0_i32_5 = arith.constant 0 : i32
    %9 = arith.addi %0, %c0_i32_5 : i32
    %10 = tpu.assume_multiple %9, 8 : i32
    %c0_6 = arith.constant 0 : index
    %c1 = arith.constant 1 : index
    %11 = arith.index_cast %10 : i32 to index
    %c0_7 = arith.constant 0 : index
    %12 = vector.load %arg2[%c0_6, %c1, %11, %c0_7] : memref<1x6x32x128xbf16, #tpu.memory_space<vmem>>, vector<1x1x24x128xbf16>
    %13 = vector.shape_cast %12 : vector<1x1x24x128xbf16> to vector<24x128xbf16>
    %c1_8 = arith.constant 1 : index
    %c0_9 = arith.constant 0 : index
    %c0_10 = arith.constant 0 : index
    %14 = vector.load %arg3[%c1_8, %c0_9, %c0_10] : memref<9x128x128xbf16, #tpu.memory_space<vmem>>, vector<1x128x128xbf16>
    %15 = vector.shape_cast %14 : vector<1x128x128xbf16> to vector<128x128xbf16>
    %cst_11 = arith.constant dense<0.000000e+00> : vector<24x128xf32>
    %16 = tpu.matmul %13, %15, %cst_11 {dimension_numbers = #tpu.dot_dimension_numbers<[1], [0], [0], [1], [0, 0, 1, 1], [], []>} : vector<24x128xbf16>, vector<128x128xbf16>, vector<24x128xf32> -> vector<24x128xf32>
    %17 = arith.addf %8, %16 : vector<24x128xf32>
    %c0_i32_12 = arith.constant 0 : i32
    %18 = arith.addi %0, %c0_i32_12 : i32
    %19 = tpu.assume_multiple %18, 8 : i32
    %c0_13 = arith.constant 0 : index
    %c2 = arith.constant 2 : index
    %20 = arith.index_cast %19 : i32 to index
    %c0_14 = arith.constant 0 : index
    %21 = vector.load %arg2[%c0_13, %c2, %20, %c0_14] : memref<1x6x32x128xbf16, #tpu.memory_space<vmem>>, vector<1x1x24x128xbf16>
    %22 = vector.shape_cast %21 : vector<1x1x24x128xbf16> to vector<24x128xbf16>
    %c2_15 = arith.constant 2 : index
    %c0_16 = arith.constant 0 : index
    %c0_17 = arith.constant 0 : index
    %23 = vector.load %arg3[%c2_15, %c0_16, %c0_17] : memref<9x128x128xbf16, #tpu.memory_space<vmem>>, vector<1x128x128xbf16>
    %24 = vector.shape_cast %23 : vector<1x128x128xbf16> to vector<128x128xbf16>
    %cst_18 = arith.constant dense<0.000000e+00> : vector<24x128xf32>
    %25 = tpu.matmul %22, %24, %cst_18 {dimension_numbers = #tpu.dot_dimension_numbers<[1], [0], [0], [1], [0, 0, 1, 1], [], []>} : vector<24x128xbf16>, vector<128x128xbf16>, vector<24x128xf32> -> vector<24x128xf32>
    %26 = arith.addf %17, %25 : vector<24x128xf32>
    %c0_i32_19 = arith.constant 0 : i32
    %27 = arith.addi %0, %c0_i32_19 : i32
    %28 = tpu.assume_multiple %27, 8 : i32
    %c0_20 = arith.constant 0 : index
    %c3 = arith.constant 3 : index
    %29 = arith.index_cast %28 : i32 to index
    %c0_21 = arith.constant 0 : index
    %30 = vector.load %arg2[%c0_20, %c3, %29, %c0_21] : memref<1x6x32x128xbf16, #tpu.memory_space<vmem>>, vector<1x1x24x128xbf16>
    %31 = vector.shape_cast %30 : vector<1x1x24x128xbf16> to vector<24x128xbf16>
    %c3_22 = arith.constant 3 : index
    %c0_23 = arith.constant 0 : index
    %c0_24 = arith.constant 0 : index
    %32 = vector.load %arg3[%c3_22, %c0_23, %c0_24] : memref<9x128x128xbf16, #tpu.memory_space<vmem>>, vector<1x128x128xbf16>
    %33 = vector.shape_cast %32 : vector<1x128x128xbf16> to vector<128x128xbf16>
    %cst_25 = arith.constant dense<0.000000e+00> : vector<24x128xf32>
    %34 = tpu.matmul %31, %33, %cst_25 {dimension_numbers = #tpu.dot_dimension_numbers<[1], [0], [0], [1], [0, 0, 1, 1], [], []>} : vector<24x128xbf16>, vector<128x128xbf16>, vector<24x128xf32> -> vector<24x128xf32>
    %35 = arith.addf %26, %34 : vector<24x128xf32>
    %c0_i32_26 = arith.constant 0 : i32
    %36 = arith.addi %0, %c0_i32_26 : i32
    %37 = tpu.assume_multiple %36, 8 : i32
    %c0_27 = arith.constant 0 : index
    %c4 = arith.constant 4 : index
    %38 = arith.index_cast %37 : i32 to index
    %c0_28 = arith.constant 0 : index
    %39 = vector.load %arg2[%c0_27, %c4, %38, %c0_28] : memref<1x6x32x128xbf16, #tpu.memory_space<vmem>>, vector<1x1x24x128xbf16>
    %40 = vector.shape_cast %39 : vector<1x1x24x128xbf16> to vector<24x128xbf16>
    %c4_29 = arith.constant 4 : index
    %c0_30 = arith.constant 0 : index
    %c0_31 = arith.constant 0 : index
    %41 = vector.load %arg3[%c4_29, %c0_30, %c0_31] : memref<9x128x128xbf16, #tpu.memory_space<vmem>>, vector<1x128x128xbf16>
    %42 = vector.shape_cast %41 : vector<1x128x128xbf16> to vector<128x128xbf16>
    %cst_32 = arith.constant dense<0.000000e+00> : vector<24x128xf32>
    %43 = tpu.matmul %40, %42, %cst_32 {dimension_numbers = #tpu.dot_dimension_numbers<[1], [0], [0], [1], [0, 0, 1, 1], [], []>} : vector<24x128xbf16>, vector<128x128xbf16>, vector<24x128xf32> -> vector<24x128xf32>
    %44 = arith.addf %35, %43 : vector<24x128xf32>
    %c0_i32_33 = arith.constant 0 : i32
    %45 = arith.addi %0, %c0_i32_33 : i32
    %46 = tpu.assume_multiple %45, 8 : i32
    %c0_34 = arith.constant 0 : index
    %c5 = arith.constant 5 : index
    %47 = arith.index_cast %46 : i32 to index
    %c0_35 = arith.constant 0 : index
    %48 = vector.load %arg2[%c0_34, %c5, %47, %c0_35] : memref<1x6x32x128xbf16, #tpu.memory_space<vmem>>, vector<1x1x24x128xbf16>
    %49 = vector.shape_cast %48 : vector<1x1x24x128xbf16> to vector<24x128xbf16>
    %c5_36 = arith.constant 5 : index
    %c0_37 = arith.constant 0 : index
    %c0_38 = arith.constant 0 : index
    %50 = vector.load %arg3[%c5_36, %c0_37, %c0_38] : memref<9x128x128xbf16, #tpu.memory_space<vmem>>, vector<1x128x128xbf16>
    %51 = vector.shape_cast %50 : vector<1x128x128xbf16> to vector<128x128xbf16>
    %cst_39 = arith.constant dense<0.000000e+00> : vector<24x128xf32>
    %52 = tpu.matmul %49, %51, %cst_39 {dimension_numbers = #tpu.dot_dimension_numbers<[1], [0], [0], [1], [0, 0, 1, 1], [], []>} : vector<24x128xbf16>, vector<128x128xbf16>, vector<24x128xf32> -> vector<24x128xf32>
    %53 = arith.addf %44, %52 : vector<24x128xf32>
    %c8_i32 = arith.constant 8 : i32
    %54 = arith.addi %0, %c8_i32 : i32
    %55 = tpu.assume_multiple %54, 8 : i32
    %c0_40 = arith.constant 0 : index
    %c0_41 = arith.constant 0 : index
    %56 = arith.index_cast %55 : i32 to index
    %c0_42 = arith.constant 0 : index
    %57 = vector.load %arg2[%c0_40, %c0_41, %56, %c0_42] : memref<1x6x32x128xbf16, #tpu.memory_space<vmem>>, vector<1x1x24x128xbf16>
    %58 = vector.shape_cast %57 : vector<1x1x24x128xbf16> to vector<24x128xbf16>
    %c6 = arith.constant 6 : index
    %c0_43 = arith.constant 0 : index
    %c0_44 = arith.constant 0 : index
    %59 = vector.load %arg3[%c6, %c0_43, %c0_44] : memref<9x128x128xbf16, #tpu.memory_space<vmem>>, vector<1x128x128xbf16>
    %60 = vector.shape_cast %59 : vector<1x128x128xbf16> to vector<128x128xbf16>
    %cst_45 = arith.constant dense<0.000000e+00> : vector<24x128xf32>
    %61 = tpu.matmul %58, %60, %cst_45 {dimension_numbers = #tpu.dot_dimension_numbers<[1], [0], [0], [1], [0, 0, 1, 1], [], []>} : vector<24x128xbf16>, vector<128x128xbf16>, vector<24x128xf32> -> vector<24x128xf32>
    %62 = arith.addf %53, %61 : vector<24x128xf32>
    %c8_i32_46 = arith.constant 8 : i32
    %63 = arith.addi %0, %c8_i32_46 : i32
    %64 = tpu.assume_multiple %63, 8 : i32
    %c0_47 = arith.constant 0 : index
    %c1_48 = arith.constant 1 : index
    %65 = arith.index_cast %64 : i32 to index
    %c0_49 = arith.constant 0 : index
    %66 = vector.load %arg2[%c0_47, %c1_48, %65, %c0_49] : memref<1x6x32x128xbf16, #tpu.memory_space<vmem>>, vector<1x1x24x128xbf16>
    %67 = vector.shape_cast %66 : vector<1x1x24x128xbf16> to vector<24x128xbf16>
    %c7 = arith.constant 7 : index
    %c0_50 = arith.constant 0 : index
    %c0_51 = arith.constant 0 : index
    %68 = vector.load %arg3[%c7, %c0_50, %c0_51] : memref<9x128x128xbf16, #tpu.memory_space<vmem>>, vector<1x128x128xbf16>
    %69 = vector.shape_cast %68 : vector<1x128x128xbf16> to vector<128x128xbf16>
    %cst_52 = arith.constant dense<0.000000e+00> : vector<24x128xf32>
    %70 = tpu.matmul %67, %69, %cst_52 {dimension_numbers = #tpu.dot_dimension_numbers<[1], [0], [0], [1], [0, 0, 1, 1], [], []>} : vector<24x128xbf16>, vector<128x128xbf16>, vector<24x128xf32> -> vector<24x128xf32>
    %71 = arith.addf %62, %70 : vector<24x128xf32>
    %c8_i32_53 = arith.constant 8 : i32
    %72 = arith.addi %0, %c8_i32_53 : i32
    %73 = tpu.assume_multiple %72, 8 : i32
    %c0_54 = arith.constant 0 : index
    %c2_55 = arith.constant 2 : index
    %74 = arith.index_cast %73 : i32 to index
    %c0_56 = arith.constant 0 : index
    %75 = vector.load %arg2[%c0_54, %c2_55, %74, %c0_56] : memref<1x6x32x128xbf16, #tpu.memory_space<vmem>>, vector<1x1x24x128xbf16>
    %76 = vector.shape_cast %75 : vector<1x1x24x128xbf16> to vector<24x128xbf16>
    %c8 = arith.constant 8 : index
    %c0_57 = arith.constant 0 : index
    %c0_58 = arith.constant 0 : index
    %77 = vector.load %arg3[%c8, %c0_57, %c0_58] : memref<9x128x128xbf16, #tpu.memory_space<vmem>>, vector<1x128x128xbf16>
    %78 = vector.shape_cast %77 : vector<1x128x128xbf16> to vector<128x128xbf16>
    %cst_59 = arith.constant dense<0.000000e+00> : vector<24x128xf32>
    %79 = tpu.matmul %76, %78, %cst_59 {dimension_numbers = #tpu.dot_dimension_numbers<[1], [0], [0], [1], [0, 0, 1, 1], [], []>} : vector<24x128xbf16>, vector<128x128xbf16>, vector<24x128xf32> -> vector<24x128xf32>
    %80 = arith.addf %71, %79 : vector<24x128xf32>
    %c0_60 = arith.constant 0 : index
    %c0_61 = arith.constant 0 : index
    %81 = vector.load %arg4[%c0_60, %c0_61] : memref<1x128xf32, #tpu.memory_space<vmem>>, vector<1x128xf32>
    %82 = vector.broadcast %81 : vector<1x128xf32> to vector<24x128xf32>
    %83 = arith.addf %80, %82 : vector<24x128xf32>
    %cst_62 = arith.constant 0.000000e+00 : f32
    %84 = vector.broadcast %cst_62 : f32 to vector<24x128xf32>
    %85 = arith.maximumf %83, %84 : vector<24x128xf32>
    %86 = vector.shape_cast %85 : vector<24x128xf32> to vector<3x8x128xf32>
    %87 = vector.extract_strided_slice %86 {offsets = [0, 0, 0], sizes = [3, 3, 128], strides = [1, 1, 1]} : vector<3x8x128xf32> to vector<3x3x128xf32>
    %88 = arith.truncf %87 : vector<3x3x128xf32> to vector<3x3x128xbf16>
    %c0_63 = arith.constant 0 : index
    %c0_64 = arith.constant 0 : index
    %c0_65 = arith.constant 0 : index
    %c0_66 = arith.constant 0 : index
    %89 = vector.load %arg5[%c0_63, %c0_64, %c0_65, %c0_66] : memref<1x3x3x128xbf16, #tpu.memory_space<vmem>>, vector<1x3x3x128xbf16>
    %90 = vector.shape_cast %89 : vector<1x3x3x128xbf16> to vector<3x3x128xbf16>
    %91 = vector.shape_cast %88 : vector<3x3x128xbf16> to vector<1x3x3x128xbf16>
    tpu.vector_store %arg5[%c0_63, %c0_64, %c0_65, %c0_66], %91 {strides = array<i32>} : memref<1x3x3x128xbf16, #tpu.memory_space<vmem>>, vector<1x3x3x128xbf16>,
    return
  }
  func.func @transform_0(%arg0: i32, %arg1: i32) -> (i32, i32, i32, i32) {
    %c0_i32 = arith.constant 0 : i32
    %c0_i32_0 = arith.constant 0 : i32
    %c0_i32_1 = arith.constant 0 : i32
    %c0_i32_2 = arith.constant 0 : i32
    return %arg0, %c0_i32, %c0_i32_0, %c0_i32_1 : i32, i32, i32, i32
  }
  func.func @transform_1(%arg0: i32, %arg1: i32) -> (i32, i32, i32) {
    %c0_i32 = arith.constant 0 : i32
    %c0_i32_0 = arith.constant 0 : i32
    %c0_i32_1 = arith.constant 0 : i32
    %c0_i32_2 = arith.constant 0 : i32
    return %c0_i32, %c0_i32_0, %c0_i32_1 : i32, i32, i32
  }
  func.func @transform_2(%arg0: i32, %arg1: i32) -> (i32, i32) {
    %c0_i32 = arith.constant 0 : i32
    %c0_i32_0 = arith.constant 0 : i32
    %c0_i32_1 = arith.constant 0 : i32
    return %c0_i32, %c0_i32_0 : i32, i32
  }
  func.func @transform_3(%arg0: i32, %arg1: i32) -> (i32, i32, i32, i32) {
    %c0_i32 = arith.constant 0 : i32
    %c0_i32_0 = arith.constant 0 : i32
    %c0_i32_1 = arith.constant 0 : i32
    return %arg0, %arg1, %c0_i32, %c0_i32_0 : i32, i32, i32, i32
  }
}

module attributes {stable_mosaic.version = 11 : i64} {
  func.func @kernel(%arg0: i32, %arg1: memref<18x128xbf16, #tpu.memory_space<vmem>>, %arg2: memref<128x256xbf16, #tpu.memory_space<vmem>>, %arg3: memref<1x256xf32, #tpu.memory_space<vmem>>, %arg4: memref<18x256xbf16, #tpu.memory_space<vmem>>, %arg5: memref<18x256xbf16, #tpu.memory_space<vmem>>) attributes {dimension_semantics = [#tpu.dimension_semantics<parallel>], iteration_bounds = array<i64: 1>, scalar_prefetch = 0 : i64, scratch_operands = 0 : i64, tpu.core_type = #tpu.core_type<tc>, window_params = [{transform_indices = @transform_0, window_bounds = array<i64: 18, 128>}, {pipeline_mode = #tpu.pipeline_mode<synchronous>, transform_indices = @transform_1, window_bounds = array<i64: 128, 256>}, {pipeline_mode = #tpu.pipeline_mode<synchronous>, transform_indices = @transform_2, window_bounds = array<i64: 1, 256>}, {transform_indices = @transform_3, window_bounds = array<i64: 18, 256>}, {transform_indices = @transform_4, window_bounds = array<i64: 18, 256>}]} {
    %c0 = arith.constant 0 : index
    %c0_0 = arith.constant 0 : index
    %0 = vector.load %arg1[%c0, %c0_0] : memref<18x128xbf16, #tpu.memory_space<vmem>>, vector<18x128xbf16>
    %c0_1 = arith.constant 0 : index
    %c0_2 = arith.constant 0 : index
    %1 = vector.load %arg2[%c0_1, %c0_2] : memref<128x256xbf16, #tpu.memory_space<vmem>>, vector<128x256xbf16>
    %cst = arith.constant dense<0.000000e+00> : vector<18x256xf32>
    %2 = tpu.matmul %0, %1, %cst {dimension_numbers = #tpu.dot_dimension_numbers<[1], [0], [0], [1], [0, 0, 1, 1], [], []>} : vector<18x128xbf16>, vector<128x256xbf16>, vector<18x256xf32> -> vector<18x256xf32>
    %c0_3 = arith.constant 0 : index
    %c0_4 = arith.constant 0 : index
    %3 = vector.load %arg3[%c0_3, %c0_4] : memref<1x256xf32, #tpu.memory_space<vmem>>, vector<1x256xf32>
    %4 = vector.broadcast %3 : vector<1x256xf32> to vector<18x256xf32>
    %5 = arith.addf %2, %4 : vector<18x256xf32>
    %c0_5 = arith.constant 0 : index
    %c0_6 = arith.constant 0 : index
    %6 = vector.load %arg4[%c0_5, %c0_6] : memref<18x256xbf16, #tpu.memory_space<vmem>>, vector<18x256xbf16>
    %7 = arith.extf %6 : vector<18x256xbf16> to vector<18x256xf32>
    %8 = arith.addf %5, %7 : vector<18x256xf32>
    %cst_7 = arith.constant 0.000000e+00 : f32
    %9 = vector.broadcast %cst_7 : f32 to vector<18x256xf32>
    %10 = arith.maximumf %8, %9 : vector<18x256xf32>
    %11 = arith.truncf %10 : vector<18x256xf32> to vector<18x256xbf16>
    %c0_8 = arith.constant 0 : index
    %c0_9 = arith.constant 0 : index
    %12 = vector.load %arg5[%c0_8, %c0_9] : memref<18x256xbf16, #tpu.memory_space<vmem>>, vector<18x256xbf16>
    tpu.vector_store %arg5[%c0_8, %c0_9], %11 {strides = array<i32>} : memref<18x256xbf16, #tpu.memory_space<vmem>>, vector<18x256xbf16>,
    return
  }
  func.func @transform_0(%arg0: i32) -> (i32, i32) {
    %c0_i32 = arith.constant 0 : i32
    %c0_i32_0 = arith.constant 0 : i32
    return %arg0, %c0_i32 : i32, i32
  }
  func.func @transform_1(%arg0: i32) -> (i32, i32) {
    %c0_i32 = arith.constant 0 : i32
    %c0_i32_0 = arith.constant 0 : i32
    %c0_i32_1 = arith.constant 0 : i32
    return %c0_i32, %c0_i32_0 : i32, i32
  }
  func.func @transform_2(%arg0: i32) -> (i32, i32) {
    %c0_i32 = arith.constant 0 : i32
    %c0_i32_0 = arith.constant 0 : i32
    %c0_i32_1 = arith.constant 0 : i32
    return %c0_i32, %c0_i32_0 : i32, i32
  }
  func.func @transform_3(%arg0: i32) -> (i32, i32) {
    %c0_i32 = arith.constant 0 : i32
    %c0_i32_0 = arith.constant 0 : i32
    return %arg0, %c0_i32 : i32, i32
  }
  func.func @transform_4(%arg0: i32) -> (i32, i32) {
    %c0_i32 = arith.constant 0 : i32
    %c0_i32_0 = arith.constant 0 : i32
    return %arg0, %c0_i32 : i32, i32
  }
}

module attributes {stable_mosaic.version = 11 : i64} {
  func.func @kernel(%arg0: i32, %arg1: memref<1x3x3x256xbf16, #tpu.memory_space<vmem>>, %arg2: memref<1x4x256xf32, #tpu.memory_space<vmem>>) attributes {dimension_semantics = [#tpu.dimension_semantics<parallel>], iteration_bounds = array<i64: 2>, scalar_prefetch = 0 : i64, scratch_operands = 0 : i64, tpu.core_type = #tpu.core_type<tc>, window_params = [{transform_indices = @transform_0, window_bounds = array<i64: 1, 3, 3, 256>}, {transform_indices = @transform_1, window_bounds = array<i64: 1, 4, 256>}]} {
    %c0 = arith.constant 0 : index
    %c0_0 = arith.constant 0 : index
    %c0_1 = arith.constant 0 : index
    %c0_2 = arith.constant 0 : index
    %0 = vector.load %arg1[%c0, %c0_0, %c0_1, %c0_2] : memref<1x3x3x256xbf16, #tpu.memory_space<vmem>>, vector<1x3x3x256xbf16>
    %1 = vector.shape_cast %0 : vector<1x3x3x256xbf16> to vector<3x3x256xbf16>
    %2 = arith.extf %1 : vector<3x3x256xbf16> to vector<3x3x256xf32>
    %3 = vector.extract_strided_slice %2 {offsets = [0, 0, 0], sizes = [2, 2, 256], strides = [1, 1, 1]} : vector<3x3x256xf32> to vector<2x2x256xf32>
    %4 = vector.shape_cast %3 : vector<2x2x256xf32> to vector<4x256xf32>
    %cst = arith.constant dense<0.000000e+00> : vector<256xf32>
    %5 = vector.multi_reduction <add>, %4, %cst [0] : vector<4x256xf32> to vector<256xf32>
    %6 = vector.shape_cast %5 : vector<256xf32> to vector<1x256xf32>
    %cst_3 = arith.constant 4.000000e+00 : f32
    %7 = vector.broadcast %cst_3 : f32 to vector<1x256xf32>
    %8 = arith.divf %6, %7 : vector<1x256xf32>
    %9 = vector.extract_strided_slice %2 {offsets = [0, 1, 0], sizes = [2, 2, 256], strides = [1, 1, 1]} : vector<3x3x256xf32> to vector<2x2x256xf32>
    %10 = vector.shape_cast %9 : vector<2x2x256xf32> to vector<4x256xf32>
    %cst_4 = arith.constant dense<0.000000e+00> : vector<256xf32>
    %11 = vector.multi_reduction <add>, %10, %cst_4 [0] : vector<4x256xf32> to vector<256xf32>
    %12 = vector.shape_cast %11 : vector<256xf32> to vector<1x256xf32>
    %cst_5 = arith.constant 4.000000e+00 : f32
    %13 = vector.broadcast %cst_5 : f32 to vector<1x256xf32>
    %14 = arith.divf %12, %13 : vector<1x256xf32>
    %15 = vector.extract_strided_slice %2 {offsets = [1, 0, 0], sizes = [2, 2, 256], strides = [1, 1, 1]} : vector<3x3x256xf32> to vector<2x2x256xf32>
    %16 = vector.shape_cast %15 : vector<2x2x256xf32> to vector<4x256xf32>
    %cst_6 = arith.constant dense<0.000000e+00> : vector<256xf32>
    %17 = vector.multi_reduction <add>, %16, %cst_6 [0] : vector<4x256xf32> to vector<256xf32>
    %18 = vector.shape_cast %17 : vector<256xf32> to vector<1x256xf32>
    %cst_7 = arith.constant 4.000000e+00 : f32
    %19 = vector.broadcast %cst_7 : f32 to vector<1x256xf32>
    %20 = arith.divf %18, %19 : vector<1x256xf32>
    %21 = vector.extract_strided_slice %2 {offsets = [1, 1, 0], sizes = [2, 2, 256], strides = [1, 1, 1]} : vector<3x3x256xf32> to vector<2x2x256xf32>
    %22 = vector.shape_cast %21 : vector<2x2x256xf32> to vector<4x256xf32>
    %cst_8 = arith.constant dense<0.000000e+00> : vector<256xf32>
    %23 = vector.multi_reduction <add>, %22, %cst_8 [0] : vector<4x256xf32> to vector<256xf32>
    %24 = vector.shape_cast %23 : vector<256xf32> to vector<1x256xf32>
    %cst_9 = arith.constant 4.000000e+00 : f32
    %25 = vector.broadcast %cst_9 : f32 to vector<1x256xf32>
    %26 = arith.divf %24, %25 : vector<1x256xf32>
    %27 = tpu.concatenate %8, %14, %20, %26 in 0 : vector<1x256xf32>, vector<1x256xf32>, vector<1x256xf32>, vector<1x256xf32> -> vector<4x256xf32>
    %c0_10 = arith.constant 0 : index
    %c0_11 = arith.constant 0 : index
    %c0_12 = arith.constant 0 : index
    %28 = vector.load %arg2[%c0_10, %c0_11, %c0_12] : memref<1x4x256xf32, #tpu.memory_space<vmem>>, vector<1x4x256xf32>
    %29 = vector.shape_cast %28 : vector<1x4x256xf32> to vector<4x256xf32>
    %30 = vector.shape_cast %27 : vector<4x256xf32> to vector<1x4x256xf32>
    tpu.vector_store %arg2[%c0_10, %c0_11, %c0_12], %30 {strides = array<i32>} : memref<1x4x256xf32, #tpu.memory_space<vmem>>, vector<1x4x256xf32>,
    return
  }
  func.func @transform_0(%arg0: i32) -> (i32, i32, i32, i32) {
    %c0_i32 = arith.constant 0 : i32
    %c0_i32_0 = arith.constant 0 : i32
    %c0_i32_1 = arith.constant 0 : i32
    %c0_i32_2 = arith.constant 0 : i32
    return %arg0, %c0_i32, %c0_i32_0, %c0_i32_1 : i32, i32, i32, i32
  }
  func.func @transform_1(%arg0: i32) -> (i32, i32, i32) {
    %c0_i32 = arith.constant 0 : i32
    %c0_i32_0 = arith.constant 0 : i32
    %c0_i32_1 = arith.constant 0 : i32
    return %arg0, %c0_i32, %c0_i32_0 : i32, i32, i32
  }
}

</mosaic_0001>

<bundles_post_ra>
// kernel: _lambda_.18
= control target key start
LH: loop header
LB: loop body
LE: loop exit
PB: predicated region body
PF: predicated region fallthrough
CT: control target
= control target key end

     0   :  { %s2021_s12 = smov 0   ;;  %s2291_s0 = inlined_call_operand.vmem [shape: bf16[4608,256], index: 0, kind: input, shape index: {}]   ;;  %s2292_s1 = inlined_call_operand.vmem [shape: bf16[256,128], index: 1, kind: input, shape index: {}]   ;;  %s2293_s2 = inlined_call_operand.vmem [shape: f32[1,128], index: 2, kind: input, shape index: {}]   ;;  %s2294_s3 = inlined_call_operand.vmem [shape: bf16[4608,128], index: 3, kind: output, shape index: {}]  }
   0x1 LB: > { %s1426_s13 = sadd.s32 4294967295, %s1998_s12   ;;  %p1430_p0 = scmp.ge.s32.totalorder %s1998_s12, 1  ;;  %s1998_s12 = sphi %s2021_s12, %s13_s12  }
   0x2   : > { %p139_p1 = scmp.lt.s32.totalorder %s1998_s12, 10 }
   0x4   : > { %p140_p2 = pnand %p1430_p0, %p139_p1 }
   0x5   : > { %v1880_v0 = vld [vmem:[%s2292_s1] sm:$0xff] (!%p140_p2)   ;;  %v2000_v1 = vmov (!%p140_p2), 0   ;;  %s1431_s16 = sshll.u32 (!%p140_p2), %s1426_s13, 6  ;;  %v1881_v2 = vld [vmem:[%s2292_s1 + $0x8] sm:$0xff] (!%p140_p2)   ;;  %v1882_v3 = vld [vmem:[%s2292_s1 + $0x10] sm:$0xff] (!%p140_p2)  }
   0x6   : > { %143 = sbr.rel (%p140_p2) target bundleno = 411 (0x19b), region = 32  ;;  %697 = vmatprep.subr.bf16.mxu0 (!%p140_p2), %v2000_v1  ;;  %1839 = vmatprep.subr.bf16.mxu1 (!%p140_p2), %v2000_v1  ;;  %p165_p3 = scmp.lt.s32.totalorder (!%p140_p2), %s1431_s16, 575  ;;  %v1883_v4 = vld [vmem:[%s2292_s1 + $0x18] sm:$0xff] (!%p140_p2)   ;;  %v1884_v5 = vld [vmem:[%s2292_s1 + $0x20] sm:$0xff] (!%p140_p2)   ;;  %v1885_v7 = vld [vmem:[%s2292_s1 + $0x28] sm:$0xff] (!%p140_p2)  }
   0x7   : > { %698 = vmatpush1.bf16.msra.mxu0 (!%p140_p2), %v1880_v0  ;;  %1855 = vmatpush1.bf16.msra.mxu1 (!%p140_p2), %v1880_v0  ;;  %v1886_v9 = vld [vmem:[%s2292_s1 + $0x30] sm:$0xff] (!%p140_p2)   ;;  %v1887_v10 = vld [vmem:[%s2292_s1 + $0x38] sm:$0xff] (!%p140_p2)   ;;  %v1888_v11 = vld [vmem:[%s2292_s1 + $0x40] sm:$0xff] (!%p140_p2)  }
   0x8   : > { %699 = vmatprep.subr.bf16.mxu0 (!%p140_p2), %v2000_v1  ;;  %1840 = vmatprep.subr.bf16.mxu1 (!%p140_p2), %v2000_v1  ;;  %v1889_v12 = vld [vmem:[%s2292_s1 + $0x48] sm:$0xff] (!%p140_p2)   ;;  %v1890_v13 = vld [vmem:[%s2292_s1 + $0x50] sm:$0xff] (!%p140_p2)   ;;  %v1891_v14 = vld [vmem:[%s2292_s1 + $0x58] sm:$0xff] (!%p140_p2)  }
   0x9   : > { %v1892_v15 = vld [vmem:[%s2292_s1 + $0x60] sm:$0xff] (!%p140_p2)   ;;  %v1893_v16 = vld [vmem:[%s2292_s1 + $0x68] sm:$0xff] (!%p140_p2)   ;;  %v1894_v17 = vld [vmem:[%s2292_s1 + $0x70] sm:$0xff] (!%p140_p2)  }
   0xa   : > { %v1895_v18 = vld [vmem:[%s2292_s1 + $0x78] sm:$0xff] (!%p140_p2)  }
   0xb   : > { %700 = vmatpush1.bf16.msra.mxu0 (!%p140_p2), %v1881_v2  ;;  %1856 = vmatpush1.bf16.msra.mxu1 (!%p140_p2), %v1881_v2 }
   0xc   : > { %701 = vmatprep.subr.bf16.mxu0 (!%p140_p2), %v2000_v1  ;;  %1841 = vmatprep.subr.bf16.mxu1 (!%p140_p2), %v2000_v1 }
   0xd   : > { %s2296_s16 = smov (!%p165_p3, %s1431_s16), 575 }
   0xe   : > { %s1583_s23 = sshll.u32 %s2296_s16, 3  ;;  %s1435_s29 = sshll.u32 %s2296_s16, 2 }
   0xf   : > { %702 = vmatpush1.bf16.msra.mxu0 %v1882_v3  ;;  %1857 = vmatpush1.bf16.msra.mxu1 %v1882_v3  ;;  %s2058_s28 = scalar_lea.vmem %s2291_s0, %s1583_s23  ;;  %s2194_s4 = scalar_lea.vmem %s2294_s3, %s1435_s29 }
  0x10   : > { %703 = vmatprep.subr.bf16.mxu0 %v2000_v1  ;;  %1842 = vmatprep.subr.bf16.mxu1 %v2000_v1  ;;  %v1898_v6 = vld [vmem:[%s2058_s28 + $0x4] ss:$8 sps:$4 sm:$0xff]   ;;  %v1896_v19 = vld [vmem:[%s2058_s28] ss:$8 sps:$4 sm:$0xff]   ;;  %v1902_v21 = vld [vmem:[%s2058_s28 + $0x14] ss:$8 sps:$4 sm:$0xff]  }
  0x11   : > { %v1901_v8 = vld [vmem:[%s2058_s28 + $0x104] ss:$8 sps:$4 sm:$0xff]   ;;  %729 = vmatprep.mubr.bf16.mxu0 %v1898_v6  ;;  %v1899_v20 = vld [vmem:[%s2058_s28 + $0x100] ss:$8 sps:$4 sm:$0xff]   ;;  %v1904_v22 = vld [vmem:[%s2058_s28 + $0x114] ss:$8 sps:$4 sm:$0xff]  }
  0x12   : > { %857 = vmatprep.mubr.bf16.mxu1 %v1901_v8  ;;  %v1906_v23 = vld [vmem:[%s2058_s28 + $0x10] ss:$8 sps:$4 sm:$0xff]   ;;  %v1908_v25 = vld [vmem:[%s2058_s28 + $0x24] ss:$8 sps:$4 sm:$0xff]   ;;  %v1912_v27 = vld [vmem:[%s2058_s28 + $0x20] ss:$8 sps:$4 sm:$0xff]  }
  0x13   : > { %704 = vmatpush1.bf16.msra.mxu0 %v1883_v4  ;;  %1858 = vmatpush1.bf16.msra.mxu1 %v1883_v4  ;;  %v1907_v24 = vld [vmem:[%s2058_s28 + $0x110] ss:$8 sps:$4 sm:$0xff]   ;;  %v1910_v26 = vld [vmem:[%s2058_s28 + $0x124] ss:$8 sps:$4 sm:$0xff]   ;;  %v1913_v28 = vld [vmem:[%s2058_s28 + $0x120] ss:$8 sps:$4 sm:$0xff]  }
  0x14   : > { %705 = vmatprep.subr.bf16.mxu0 %v2000_v1  ;;  %1843 = vmatprep.subr.bf16.mxu1 %v2000_v1  ;;  %v1914_v29 = vld [vmem:[%s2058_s28 + $0x34] ss:$8 sps:$4 sm:$0xff]   ;;  %v1918_v31 = vld [vmem:[%s2058_s28 + $0x30] ss:$8 sps:$4 sm:$0xff]   ;;  %v1920_v33 = vld [vmem:[%s2058_s28 + $0x44] ss:$8 sps:$4 sm:$0xff]  }
  0x15   : > { %v1916_v30 = vld [vmem:[%s2058_s28 + $0x134] ss:$8 sps:$4 sm:$0xff]   ;;  %v1919_v32 = vld [vmem:[%s2058_s28 + $0x130] ss:$8 sps:$4 sm:$0xff]   ;;  %v1922_v34 = vld [vmem:[%s2058_s28 + $0x144] ss:$8 sps:$4 sm:$0xff]  }
  0x16   : > { %v1924_v35 = vld [vmem:[%s2058_s28 + $0x40] ss:$8 sps:$4 sm:$0xff]   ;;  %v1926_v37 = vld [vmem:[%s2058_s28 + $0x54] ss:$8 sps:$4 sm:$0xff]   ;;  %v1930_v39 = vld [vmem:[%s2058_s28 + $0x50] ss:$8 sps:$4 sm:$0xff]  }
  0x17   : > { %706 = vmatpush1.bf16.msra.mxu0 %v1884_v5  ;;  %1859 = vmatpush1.bf16.msra.mxu1 %v1884_v5  ;;  %v1925_v36 = vld [vmem:[%s2058_s28 + $0x140] ss:$8 sps:$4 sm:$0xff]   ;;  %v1928_v38 = vld [vmem:[%s2058_s28 + $0x154] ss:$8 sps:$4 sm:$0xff]   ;;  %v1931_v40 = vld [vmem:[%s2058_s28 + $0x150] ss:$8 sps:$4 sm:$0xff]  }
  0x18   : > { %707 = vmatprep.subr.bf16.mxu0 %v2000_v1  ;;  %1844 = vmatprep.subr.bf16.mxu1 %v2000_v1  ;;  %v1932_v41 = vld [vmem:[%s2058_s28 + $0x64] ss:$8 sps:$4 sm:$0xff]   ;;  %v1936_v43 = vld [vmem:[%s2058_s28 + $0x60] ss:$8 sps:$4 sm:$0xff]   ;;  %v1938_v45 = vld [vmem:[%s2058_s28 + $0x74] ss:$8 sps:$4 sm:$0xff]  }
  0x19   : > { %v1934_v42 = vld [vmem:[%s2058_s28 + $0x164] ss:$8 sps:$4 sm:$0xff]   ;;  %v1937_v44 = vld [vmem:[%s2058_s28 + $0x160] ss:$8 sps:$4 sm:$0xff]   ;;  %v1940_v46 = vld [vmem:[%s2058_s28 + $0x174] ss:$8 sps:$4 sm:$0xff]  }
  0x1a   : > { %v1942_v47 = vld [vmem:[%s2058_s28 + $0x70] ss:$8 sps:$4 sm:$0xff]   ;;  %v1944_v49 = vld [vmem:[%s2058_s28 + $0x84] ss:$8 sps:$4 sm:$0xff]   ;;  %v1948_v51 = vld [vmem:[%s2058_s28 + $0x80] ss:$8 sps:$4 sm:$0xff]  }
  0x1b   : > { %708 = vmatpush1.bf16.msra.mxu0 %v1885_v7  ;;  %1860 = vmatpush1.bf16.msra.mxu1 %v1885_v7  ;;  %v1943_v48 = vld [vmem:[%s2058_s28 + $0x170] ss:$8 sps:$4 sm:$0xff]   ;;  %v1946_v50 = vld [vmem:[%s2058_s28 + $0x184] ss:$8 sps:$4 sm:$0xff]   ;;  %v1949_v52 = vld [vmem:[%s2058_s28 + $0x180] ss:$8 sps:$4 sm:$0xff]  }
  0x1c   : > { %709 = vmatprep.subr.bf16.mxu0 %v2000_v1  ;;  %1845 = vmatprep.subr.bf16.mxu1 %v2000_v1  ;;  %v1950_v53 = vld [vmem:[%s2058_s28 + $0x94] ss:$8 sps:$4 sm:$0xff]   ;;  %v1954_v55 = vld [vmem:[%s2058_s28 + $0x90] ss:$8 sps:$4 sm:$0xff]   ;;  %v1956_v57 = vld [vmem:[%s2058_s28 + $0xa4] ss:$8 sps:$4 sm:$0xff]  }
  0x1d   : > { %v1952_v54 = vld [vmem:[%s2058_s28 + $0x194] ss:$8 sps:$4 sm:$0xff]   ;;  %v1955_v56 = vld [vmem:[%s2058_s28 + $0x190] ss:$8 sps:$4 sm:$0xff]   ;;  %v1958_v58 = vld [vmem:[%s2058_s28 + $0x1a4] ss:$8 sps:$4 sm:$0xff]  }
  0x1e   : > { %v1960_v59 = vld [vmem:[%s2058_s28 + $0xa0] ss:$8 sps:$4 sm:$0xff]   ;;  %v1962_v61 = vld [vmem:[%s2058_s28 + $0xb4] ss:$8 sps:$4 sm:$0xff]   ;;  %v1966_v63 = vld [vmem:[%s2058_s28 + $0xb0] ss:$8 sps:$4 sm:$0xff]  }
  0x1f   : > { %710 = vmatpush1.bf16.msra.mxu0 %v1886_v9  ;;  %1861 = vmatpush1.bf16.msra.mxu1 %v1886_v9  ;;  %v1961_v60 = vld [vmem:[%s2058_s28 + $0x1a0] ss:$8 sps:$4 sm:$0xff]   ;;  %v1964_v62 = vld [vmem:[%s2058_s28 + $0x1b4] ss:$8 sps:$4 sm:$0xff]   ;;  %v1967_v0 = vld [vmem:[%s2058_s28 + $0x1b0] ss:$8 sps:$4 sm:$0xff]  }
  0x20   : > { %711 = vmatprep.subr.bf16.mxu0 %v2000_v1  ;;  %1846 = vmatprep.subr.bf16.mxu1 %v2000_v1  ;;  %v1970_v2 = vld [vmem:[%s2058_s28 + $0x1c4] ss:$8 sps:$4 sm:$0xff]   ;;  %v1972_v3 = vld [vmem:[%s2058_s28 + $0xc0] ss:$8 sps:$4 sm:$0xff]   ;;  %v1974_v5 = vld [vmem:[%s2058_s28 + $0xd4] ss:$8 sps:$4 sm:$0xff]  }
  0x21   : > { %v1973_v4 = vld [vmem:[%s2058_s28 + $0x1c0] ss:$8 sps:$4 sm:$0xff]   ;;  %v1976_v6 = vld [vmem:[%s2058_s28 + $0x1d4] ss:$8 sps:$4 sm:$0xff]   ;;  %v1978_v7 = vld [vmem:[%s2058_s28 + $0xd0] ss:$8 sps:$4 sm:$0xff]  }
  0x22   : > { %v1979_v8 = vld [vmem:[%s2058_s28 + $0x1d0] ss:$8 sps:$4 sm:$0xff]   ;;  %v1980_v9 = vld [vmem:[%s2058_s28 + $0xe4] ss:$8 sps:$4 sm:$0xff]  }
  0x23   : > { %712 = vmatpush1.bf16.msra.mxu0 %v1887_v10  ;;  %1862 = vmatpush1.bf16.msra.mxu1 %v1887_v10  ;;  %v1982_v10 = vld [vmem:[%s2058_s28 + $0x1e4] ss:$8 sps:$4 sm:$0xff]  }
  0x24   : > { %713 = vmatprep.subr.bf16.mxu0 %v2000_v1  ;;  %1847 = vmatprep.subr.bf16.mxu1 %v2000_v1 }
  0x27   : > { %714 = vmatpush1.bf16.msra.mxu0 %v1888_v11  ;;  %1863 = vmatpush1.bf16.msra.mxu1 %v1888_v11  ;;  %v1984_v11 = vld [vmem:[%s2058_s28 + $0xe0] ss:$8 sps:$4 sm:$0xff]  }
  0x28   : > { %715 = vmatprep.subr.bf16.mxu0 %v2000_v1  ;;  %1848 = vmatprep.subr.bf16.mxu1 %v2000_v1 }
  0x2b   : > { %716 = vmatpush1.bf16.msra.mxu0 %v1889_v12  ;;  %1864 = vmatpush1.bf16.msra.mxu1 %v1889_v12  ;;  %v1985_v12 = vld [vmem:[%s2058_s28 + $0x1e0] ss:$8 sps:$4 sm:$0xff]  }
  0x2c   : > { %717 = vmatprep.subr.bf16.mxu0 %v2000_v1  ;;  %1849 = vmatprep.subr.bf16.mxu1 %v2000_v1 }
  0x2f   : > { %718 = vmatpush1.bf16.msra.mxu0 %v1890_v13  ;;  %1865 = vmatpush1.bf16.msra.mxu1 %v1890_v13  ;;  %v1986_v13 = vld [vmem:[%s2058_s28 + $0xf4] ss:$8 sps:$4 sm:$0xff]  }
  0x30   : > { %719 = vmatprep.subr.bf16.mxu0 %v2000_v1  ;;  %1850 = vmatprep.subr.bf16.mxu1 %v2000_v1 }
  0x33   : > { %720 = vmatpush1.bf16.msra.mxu0 %v1891_v14  ;;  %1866 = vmatpush1.bf16.msra.mxu1 %v1891_v14  ;;  %v1988_v14 = vld [vmem:[%s2058_s28 + $0x1f4] ss:$8 sps:$4 sm:$0xff]  }
  0x34   : > { %721 = vmatprep.subr.bf16.mxu0 %v2000_v1  ;;  %1851 = vmatprep.subr.bf16.mxu1 %v2000_v1 }
  0x37   : > { %722 = vmatpush1.bf16.msra.mxu0 %v1892_v15  ;;  %1867 = vmatpush1.bf16.msra.mxu1 %v1892_v15  ;;  %v1990_v15 = vld [vmem:[%s2058_s28 + $0xf0] ss:$8 sps:$4 sm:$0xff]  }
  0x38   : > { %723 = vmatprep.subr.bf16.mxu0 %v2000_v1  ;;  %1852 = vmatprep.subr.bf16.mxu1 %v2000_v1 }
  0x3b   : > { %724 = vmatpush1.bf16.msra.mxu0 %v1893_v16  ;;  %1868 = vmatpush1.bf16.msra.mxu1 %v1893_v16  ;;  %v1991_v16 = vld [vmem:[%s2058_s28 + $0x1f0] ss:$8 sps:$4 sm:$0xff]  }
  0x3c   : > { %725 = vmatprep.subr.bf16.mxu0 %v2000_v1  ;;  %1853 = vmatprep.subr.bf16.mxu1 %v2000_v1 }
  0x3f   : > { %726 = vmatpush1.bf16.msra.mxu0 %v1894_v17  ;;  %1869 = vmatpush1.bf16.msra.mxu1 %v1894_v17  ;;  %v2184_v17 = vld [vmem:[%s2293_s2] ss:$0 sm:$0xff] }
  0x40   : > { %727 = vmatprep.subr.bf16.mxu0 %v2000_v1  ;;  %1854 = vmatprep.subr.bf16.mxu1 %v2000_v1  ;;  %v1968_v1 = vld [vmem:[%s2058_s28 + $0xc4] ss:$8 sps:$4 sm:$0xff]  }
  0x43   : > { %728 = vmatpush1.bf16.msra.mxu0 %v1895_v18  ;;  %1870 = vmatpush1.bf16.msra.mxu1 %v1895_v18 }
  0x46   : > { %730 = vmatmul.mubr.bf16.vlgmr.msra.gmra.mrb[0].mxu0 %v1896_v19  ;;  %858 = vmatmul.mubr.bf16.vlgmr.msra.gmra.mrb[0].mxu1 %v1899_v20 }
  0x47   : > { %737 = vmatprep.mubr.bf16.mxu0 %v1902_v21  ;;  %865 = vmatprep.mubr.bf16.mxu1 %v1904_v22 }
  0x4e   : > { %738 = vmatmul.mubr.bf16.gmra.mrb[4].mxu0 %v1906_v23  ;;  %866 = vmatmul.mubr.bf16.gmra.mrb[4].mxu1 %v1907_v24 }
  0x4f   : > { %745 = vmatprep.mubr.bf16.mxu0 %v1908_v25  ;;  %873 = vmatprep.mubr.bf16.mxu1 %v1910_v26 }
  0x56   : > { %746 = vmatmul.mubr.bf16.gmra.mrb[8].mxu0 %v1912_v27  ;;  %874 = vmatmul.mubr.bf16.gmra.mrb[8].mxu1 %v1913_v28 }
  0x57   : > { %753 = vmatprep.mubr.bf16.mxu0 %v1914_v29  ;;  %881 = vmatprep.mubr.bf16.mxu1 %v1916_v30 }
  0x5e   : > { %754 = vmatmul.mubr.bf16.gmra.mrb[12].mxu0 %v1918_v31  ;;  %882 = vmatmul.mubr.bf16.gmra.mrb[12].mxu1 %v1919_v32 }
  0x5f   : > { %761 = vmatprep.mubr.bf16.mxu0 %v1920_v33  ;;  %889 = vmatprep.mubr.bf16.mxu1 %v1922_v34 }
  0x66   : > { %762 = vmatmul.mubr.bf16.gmra.mrb[16].mxu0 %v1924_v35  ;;  %890 = vmatmul.mubr.bf16.gmra.mrb[16].mxu1 %v1925_v36 }
  0x67   : > { %769 = vmatprep.mubr.bf16.mxu0 %v1926_v37  ;;  %897 = vmatprep.mubr.bf16.mxu1 %v1928_v38 }
  0x6e   : > { %770 = vmatmul.mubr.bf16.gmra.mrb[20].mxu0 %v1930_v39  ;;  %898 = vmatmul.mubr.bf16.gmra.mrb[20].mxu1 %v1931_v40 }
  0x6f   : > { %777 = vmatprep.mubr.bf16.mxu0 %v1932_v41  ;;  %905 = vmatprep.mubr.bf16.mxu1 %v1934_v42 }
  0x76   : > { %778 = vmatmul.mubr.bf16.gmra.mrb[24].mxu0 %v1936_v43  ;;  %906 = vmatmul.mubr.bf16.gmra.mrb[24].mxu1 %v1937_v44 }
  0x77   : > { %785 = vmatprep.mubr.bf16.mxu0 %v1938_v45  ;;  %913 = vmatprep.mubr.bf16.mxu1 %v1940_v46 }
  0x7e   : > { %786 = vmatmul.mubr.bf16.gmra.mrb[28].mxu0 %v1942_v47  ;;  %914 = vmatmul.mubr.bf16.gmra.mrb[28].mxu1 %v1943_v48 }
  0x7f   : > { %793 = vmatprep.mubr.bf16.mxu0 %v1944_v49  ;;  %921 = vmatprep.mubr.bf16.mxu1 %v1946_v50 }
  0x86   : > { %794 = vmatmul.mubr.bf16.gmra.mrb[32].mxu0 %v1948_v51  ;;  %922 = vmatmul.mubr.bf16.gmra.mrb[32].mxu1 %v1949_v52 }
  0x87   : > { %801 = vmatprep.mubr.bf16.mxu0 %v1950_v53  ;;  %929 = vmatprep.mubr.bf16.mxu1 %v1952_v54 }
  0x8e   : > { %802 = vmatmul.mubr.bf16.gmra.mrb[36].mxu0 %v1954_v55  ;;  %930 = vmatmul.mubr.bf16.gmra.mrb[36].mxu1 %v1955_v56 }
  0x8f   : > { %809 = vmatprep.mubr.bf16.mxu0 %v1956_v57  ;;  %937 = vmatprep.mubr.bf16.mxu1 %v1958_v58 }
  0x96   : > { %810 = vmatmul.mubr.bf16.gmra.mrb[40].mxu0 %v1960_v59  ;;  %938 = vmatmul.mubr.bf16.gmra.mrb[40].mxu1 %v1961_v60 }
  0x97   : > { %817 = vmatprep.mubr.bf16.mxu0 %v1962_v61  ;;  %945 = vmatprep.mubr.bf16.mxu1 %v1964_v62 }
  0x9e   : > { %818 = vmatmul.mubr.bf16.gmra.mrb[44].mxu0 %v1966_v63  ;;  %946 = vmatmul.mubr.bf16.gmra.mrb[44].mxu1 %v1967_v0 }
  0x9f   : > { %825 = vmatprep.mubr.bf16.mxu0 %v1968_v1  ;;  %953 = vmatprep.mubr.bf16.mxu1 %v1970_v2 }
  0xa6   : > { %826 = vmatmul.mubr.bf16.gmra.mrb[48].mxu0 %v1972_v3  ;;  %954 = vmatmul.mubr.bf16.gmra.mrb[48].mxu1 %v1973_v4 }
  0xa7   : > { %833 = vmatprep.mubr.bf16.mxu0 %v1974_v5  ;;  %961 = vmatprep.mubr.bf16.mxu1 %v1976_v6 }
  0xae   : > { %834 = vmatmul.mubr.bf16.gmra.mrb[52].mxu0 %v1978_v7  ;;  %962 = vmatmul.mubr.bf16.gmra.mrb[52].mxu1 %v1979_v8 }
  0xaf   : > { %841 = vmatprep.mubr.bf16.mxu0 %v1980_v9  ;;  %969 = vmatprep.mubr.bf16.mxu1 %v1982_v10 }
  0xb6   : > { %842 = vmatmul.mubr.bf16.gmra.mrb[56].mxu0 %v1984_v11  ;;  %970 = vmatmul.mubr.bf16.gmra.mrb[56].mxu1 %v1985_v12 }
  0xb7   : > { %849 = vmatprep.mubr.bf16.mxu0 %v1986_v13  ;;  %977 = vmatprep.mubr.bf16.mxu1 %v1988_v14 }
  0xbe   : > { %850 = vmatmul.mubr.bf16.gmra.mrb[60].mxu0 %v1990_v15  ;;  %978 = vmatmul.mubr.bf16.gmra.mrb[60].mxu1 %v1991_v16 }
 0x119   : > { %v731_v18 = vpop.f32.mrb[0].mxu0  ;;  %v859_v19 = vpop.f32.mrb[0].mxu1 }
 0x11a   : > { %v732_v20 = vadd.f32 %v2184_v17, %v731_v18  ;;  %v860_v21 = vadd.f32 %v2184_v17, %v859_v19  ;;  %v733_v22 = vpop.f32.mrb[1].mxu0  ;;  %v861_v23 = vpop.f32.mrb[1].mxu1 }
 0x11b   : > { %v734_v24 = vpop.f32.mrb[2].mxu0  ;;  %v862_v25 = vpop.f32.mrb[2].mxu1 }
 0x11c   : > { %v735_v26 = vadd.f32 %v2184_v17, %v734_v24  ;;  %v863_v27 = vadd.f32 %v2184_v17, %v862_v25  ;;  %v736_v28 = vpop.f32.mrb[3].mxu0  ;;  %v864_v29 = vpop.f32.mrb[3].mxu1  ;;  %v986_v30 = vmax.f32 %v732_v20, 0.0  ;;  %v1018_v31 = vmax.f32 %v860_v21, 0.0 }
 0x11e   : > { %v987_v32 = vmax.f32 %v735_v26, 0.0  ;;  %v1019_v33 = vmax.f32 %v863_v27, 0.0 }
 0x120   : > { %v1651_v34 = vpack.c.bf16 %v987_v32, %v986_v30  ;;  %v1731_v35 = vpack.c.bf16 %v1019_v33, %v1018_v31 }
 0x121   : > { %v739_v36 = vpop.f32.mrb[4].mxu0  ;;  %v867_v37 = vpop.f32.mrb[4].mxu1 }
 0x122   : > { %1652 = vst [vmem:[%s2194_s4] sm:$0xff] %v1651_v34   ;;  %1823 = vst [vmem:[%s2194_s4 + $0x80] sm:$0xff] %v1731_v35   ;;  %v740_v38 = vadd.f32 %v2184_v17, %v739_v36  ;;  %v868_v39 = vadd.f32 %v2184_v17, %v867_v37  ;;  %v741_v40 = vpop.f32.mrb[5].mxu0  ;;  %v869_v41 = vpop.f32.mrb[5].mxu1 }
 0x123   : > { %v742_v42 = vpop.f32.mrb[6].mxu0  ;;  %v870_v43 = vpop.f32.mrb[6].mxu1 }
 0x124   : > { %v743_v44 = vadd.f32 %v2184_v17, %v742_v42  ;;  %v871_v45 = vadd.f32 %v2184_v17, %v870_v43  ;;  %v744_v46 = vpop.f32.mrb[7].mxu0  ;;  %v872_v47 = vpop.f32.mrb[7].mxu1  ;;  %v988_v48 = vmax.f32 %v740_v38, 0.0  ;;  %v1020_v49 = vmax.f32 %v868_v39, 0.0 }
 0x126   : > { %v989_v50 = vmax.f32 %v743_v44, 0.0  ;;  %v1021_v51 = vmax.f32 %v871_v45, 0.0 }
 0x128   : > { %v1656_v52 = vpack.c.bf16 %v989_v50, %v988_v48  ;;  %v1736_v53 = vpack.c.bf16 %v1021_v51, %v1020_v49 }
 0x129   : > { %v747_v54 = vpop.f32.mrb[8].mxu0  ;;  %v875_v55 = vpop.f32.mrb[8].mxu1 }
 0x12a   : > { %1808 = vst [vmem:[%s2194_s4 + $0x8] sm:$0xff] %v1656_v52   ;;  %1824 = vst [vmem:[%s2194_s4 + $0x88] sm:$0xff] %v1736_v53   ;;  %v748_v56 = vadd.f32 %v2184_v17, %v747_v54  ;;  %v876_v57 = vadd.f32 %v2184_v17, %v875_v55  ;;  %v749_v58 = vpop.f32.mrb[9].mxu0  ;;  %v877_v59 = vpop.f32.mrb[9].mxu1 }
 0x12b   : > { %v750_v60 = vpop.f32.mrb[10].mxu0  ;;  %v878_v61 = vpop.f32.mrb[10].mxu1 }
 0x12c   : > { %v751_v62 = vadd.f32 %v2184_v17, %v750_v60  ;;  %v879_v63 = vadd.f32 %v2184_v17, %v878_v61  ;;  %v752_v0 = vpop.f32.mrb[11].mxu0  ;;  %v880_v1 = vpop.f32.mrb[11].mxu1  ;;  %v990_v2 = vmax.f32 %v748_v56, 0.0  ;;  %v1022_v3 = vmax.f32 %v876_v57, 0.0 }
 0x12e   : > { %v991_v4 = vmax.f32 %v751_v62, 0.0  ;;  %v1023_v5 = vmax.f32 %v879_v63, 0.0 }
 0x130   : > { %v1661_v6 = vpack.c.bf16 %v991_v4, %v990_v2  ;;  %v1741_v7 = vpack.c.bf16 %v1023_v5, %v1022_v3 }
 0x131   : > { %v755_v8 = vpop.f32.mrb[12].mxu0  ;;  %v883_v9 = vpop.f32.mrb[12].mxu1 }
 0x132   : > { %1809 = vst [vmem:[%s2194_s4 + $0x10] sm:$0xff] %v1661_v6   ;;  %1825 = vst [vmem:[%s2194_s4 + $0x90] sm:$0xff] %v1741_v7   ;;  %v756_v10 = vadd.f32 %v2184_v17, %v755_v8  ;;  %v884_v11 = vadd.f32 %v2184_v17, %v883_v9  ;;  %v757_v12 = vpop.f32.mrb[13].mxu0  ;;  %v885_v13 = vpop.f32.mrb[13].mxu1 }
 0x133   : > { %v758_v14 = vpop.f32.mrb[14].mxu0  ;;  %v886_v15 = vpop.f32.mrb[14].mxu1 }
 0x134   : > { %v759_v16 = vadd.f32 %v2184_v17, %v758_v14  ;;  %v887_v18 = vadd.f32 %v2184_v17, %v886_v15  ;;  %v760_v19 = vpop.f32.mrb[15].mxu0  ;;  %v888_v20 = vpop.f32.mrb[15].mxu1  ;;  %v992_v21 = vmax.f32 %v756_v10, 0.0  ;;  %v1024_v22 = vmax.f32 %v884_v11, 0.0 }
 0x136   : > { %v993_v23 = vmax.f32 %v759_v16, 0.0  ;;  %v1025_v24 = vmax.f32 %v887_v18, 0.0 }
 0x138   : > { %v1666_v25 = vpack.c.bf16 %v993_v23, %v992_v21  ;;  %v1746_v26 = vpack.c.bf16 %v1025_v24, %v1024_v22 }
 0x139   : > { %v763_v27 = vpop.f32.mrb[16].mxu0  ;;  %v891_v28 = vpop.f32.mrb[16].mxu1 }
 0x13a   : > { %1810 = vst [vmem:[%s2194_s4 + $0x18] sm:$0xff] %v1666_v25   ;;  %1826 = vst [vmem:[%s2194_s4 + $0x98] sm:$0xff] %v1746_v26   ;;  %v764_v29 = vadd.f32 %v2184_v17, %v763_v27  ;;  %v892_v30 = vadd.f32 %v2184_v17, %v891_v28  ;;  %v765_v31 = vpop.f32.mrb[17].mxu0  ;;  %v893_v32 = vpop.f32.mrb[17].mxu1 }
 0x13b   : > { %v766_v33 = vpop.f32.mrb[18].mxu0  ;;  %v894_v34 = vpop.f32.mrb[18].mxu1 }
 0x13c   : > { %v767_v35 = vadd.f32 %v2184_v17, %v766_v33  ;;  %v895_v36 = vadd.f32 %v2184_v17, %v894_v34  ;;  %v768_v37 = vpop.f32.mrb[19].mxu0  ;;  %v896_v38 = vpop.f32.mrb[19].mxu1  ;;  %v994_v39 = vmax.f32 %v764_v29, 0.0  ;;  %v1026_v40 = vmax.f32 %v892_v30, 0.0 }
 0x13e   : > { %v995_v41 = vmax.f32 %v767_v35, 0.0  ;;  %v1027_v42 = vmax.f32 %v895_v36, 0.0 }
 0x140   : > { %v1671_v43 = vpack.c.bf16 %v995_v41, %v994_v39  ;;  %v1751_v44 = vpack.c.bf16 %v1027_v42, %v1026_v40 }
 0x141   : > { %v771_v45 = vpop.f32.mrb[20].mxu0  ;;  %v899_v46 = vpop.f32.mrb[20].mxu1 }
 0x142   : > { %1811 = vst [vmem:[%s2194_s4 + $0x20] sm:$0xff] %v1671_v43   ;;  %1827 = vst [vmem:[%s2194_s4 + $0xa0] sm:$0xff] %v1751_v44   ;;  %v772_v47 = vadd.f32 %v2184_v17, %v771_v45  ;;  %v900_v48 = vadd.f32 %v2184_v17, %v899_v46  ;;  %v773_v49 = vpop.f32.mrb[21].mxu0  ;;  %v901_v50 = vpop.f32.mrb[21].mxu1 }
 0x143   : > { %v774_v51 = vpop.f32.mrb[22].mxu0  ;;  %v902_v52 = vpop.f32.mrb[22].mxu1 }
 0x144   : > { %v775_v53 = vadd.f32 %v2184_v17, %v774_v51  ;;  %v903_v54 = vadd.f32 %v2184_v17, %v902_v52  ;;  %v776_v55 = vpop.f32.mrb[23].mxu0  ;;  %v904_v56 = vpop.f32.mrb[23].mxu1  ;;  %v996_v57 = vmax.f32 %v772_v47, 0.0  ;;  %v1028_v58 = vmax.f32 %v900_v48, 0.0 }
 0x146   : > { %v997_v59 = vmax.f32 %v775_v53, 0.0  ;;  %v1029_v60 = vmax.f32 %v903_v54, 0.0 }
 0x148   : > { %v1676_v61 = vpack.c.bf16 %v997_v59, %v996_v57  ;;  %v1756_v62 = vpack.c.bf16 %v1029_v60, %v1028_v58 }
 0x149   : > { %v779_v63 = vpop.f32.mrb[24].mxu0  ;;  %v907_v0 = vpop.f32.mrb[24].mxu1 }
 0x14a   : > { %1812 = vst [vmem:[%s2194_s4 + $0x28] sm:$0xff] %v1676_v61   ;;  %1828 = vst [vmem:[%s2194_s4 + $0xa8] sm:$0xff] %v1756_v62   ;;  %v780_v1 = vadd.f32 %v2184_v17, %v779_v63  ;;  %v908_v2 = vadd.f32 %v2184_v17, %v907_v0  ;;  %v781_v3 = vpop.f32.mrb[25].mxu0  ;;  %v909_v4 = vpop.f32.mrb[25].mxu1 }
 0x14b   : > { %v782_v5 = vpop.f32.mrb[26].mxu0  ;;  %v910_v6 = vpop.f32.mrb[26].mxu1 }
 0x14c   : > { %v783_v7 = vadd.f32 %v2184_v17, %v782_v5  ;;  %v911_v8 = vadd.f32 %v2184_v17, %v910_v6  ;;  %v784_v9 = vpop.f32.mrb[27].mxu0  ;;  %v912_v10 = vpop.f32.mrb[27].mxu1  ;;  %v998_v11 = vmax.f32 %v780_v1, 0.0  ;;  %v1030_v12 = vmax.f32 %v908_v2, 0.0 }
 0x14e   : > { %v999_v13 = vmax.f32 %v783_v7, 0.0  ;;  %v1031_v14 = vmax.f32 %v911_v8, 0.0 }
 0x150   : > { %v1681_v15 = vpack.c.bf16 %v999_v13, %v998_v11  ;;  %v1761_v16 = vpack.c.bf16 %v1031_v14, %v1030_v12 }
 0x151   : > { %v787_v18 = vpop.f32.mrb[28].mxu0  ;;  %v915_v19 = vpop.f32.mrb[28].mxu1 }
 0x152   : > { %1813 = vst [vmem:[%s2194_s4 + $0x30] sm:$0xff] %v1681_v15   ;;  %1829 = vst [vmem:[%s2194_s4 + $0xb0] sm:$0xff] %v1761_v16   ;;  %v788_v20 = vadd.f32 %v2184_v17, %v787_v18  ;;  %v916_v21 = vadd.f32 %v2184_v17, %v915_v19  ;;  %v789_v22 = vpop.f32.mrb[29].mxu0  ;;  %v917_v23 = vpop.f32.mrb[29].mxu1 }
 0x153   : > { %v790_v24 = vpop.f32.mrb[30].mxu0  ;;  %v918_v25 = vpop.f32.mrb[30].mxu1 }
 0x154   : > { %v791_v26 = vadd.f32 %v2184_v17, %v790_v24  ;;  %v919_v27 = vadd.f32 %v2184_v17, %v918_v25  ;;  %v792_v28 = vpop.f32.mrb[31].mxu0  ;;  %v920_v29 = vpop.f32.mrb[31].mxu1  ;;  %v1000_v30 = vmax.f32 %v788_v20, 0.0  ;;  %v1032_v31 = vmax.f32 %v916_v21, 0.0 }
 0x156   : > { %v1001_v32 = vmax.f32 %v791_v26, 0.0  ;;  %v1033_v33 = vmax.f32 %v919_v27, 0.0 }
 0x158   : > { %v1686_v34 = vpack.c.bf16 %v1001_v32, %v1000_v30  ;;  %v1766_v35 = vpack.c.bf16 %v1033_v33, %v1032_v31 }
 0x159   : > { %v795_v36 = vpop.f32.mrb[32].mxu0  ;;  %v923_v37 = vpop.f32.mrb[32].mxu1 }
 0x15a   : > { %1814 = vst [vmem:[%s2194_s4 + $0x38] sm:$0xff] %v1686_v34   ;;  %1830 = vst [vmem:[%s2194_s4 + $0xb8] sm:$0xff] %v1766_v35   ;;  %v796_v38 = vadd.f32 %v2184_v17, %v795_v36  ;;  %v924_v39 = vadd.f32 %v2184_v17, %v923_v37  ;;  %v797_v40 = vpop.f32.mrb[33].mxu0  ;;  %v925_v41 = vpop.f32.mrb[33].mxu1 }
 0x15b   : > { %v798_v42 = vpop.f32.mrb[34].mxu0  ;;  %v926_v43 = vpop.f32.mrb[34].mxu1 }
 0x15c   : > { %v799_v44 = vadd.f32 %v2184_v17, %v798_v42  ;;  %v927_v45 = vadd.f32 %v2184_v17, %v926_v43  ;;  %v800_v46 = vpop.f32.mrb[35].mxu0  ;;  %v928_v47 = vpop.f32.mrb[35].mxu1  ;;  %v1002_v48 = vmax.f32 %v796_v38, 0.0  ;;  %v1034_v49 = vmax.f32 %v924_v39, 0.0 }
 0x15e   : > { %v1003_v50 = vmax.f32 %v799_v44, 0.0  ;;  %v1035_v51 = vmax.f32 %v927_v45, 0.0 }
 0x160   : > { %v1691_v52 = vpack.c.bf16 %v1003_v50, %v1002_v48  ;;  %v1771_v53 = vpack.c.bf16 %v1035_v51, %v1034_v49 }
 0x161   : > { %v803_v54 = vpop.f32.mrb[36].mxu0  ;;  %v931_v55 = vpop.f32.mrb[36].mxu1 }
 0x162   : > { %1815 = vst [vmem:[%s2194_s4 + $0x40] sm:$0xff] %v1691_v52   ;;  %1831 = vst [vmem:[%s2194_s4 + $0xc0] sm:$0xff] %v1771_v53   ;;  %v804_v56 = vadd.f32 %v2184_v17, %v803_v54  ;;  %v932_v57 = vadd.f32 %v2184_v17, %v931_v55  ;;  %v805_v58 = vpop.f32.mrb[37].mxu0  ;;  %v933_v59 = vpop.f32.mrb[37].mxu1 }
 0x163   : > { %v806_v60 = vpop.f32.mrb[38].mxu0  ;;  %v934_v61 = vpop.f32.mrb[38].mxu1 }
 0x164   : > { %v807_v62 = vadd.f32 %v2184_v17, %v806_v60  ;;  %v935_v63 = vadd.f32 %v2184_v17, %v934_v61  ;;  %v808_v0 = vpop.f32.mrb[39].mxu0  ;;  %v936_v1 = vpop.f32.mrb[39].mxu1  ;;  %v1004_v2 = vmax.f32 %v804_v56, 0.0  ;;  %v1036_v3 = vmax.f32 %v932_v57, 0.0 }
 0x166   : > { %v1005_v4 = vmax.f32 %v807_v62, 0.0  ;;  %v1037_v5 = vmax.f32 %v935_v63, 0.0 }
 0x168   : > { %v1696_v6 = vpack.c.bf16 %v1005_v4, %v1004_v2  ;;  %v1776_v7 = vpack.c.bf16 %v1037_v5, %v1036_v3 }
 0x169   : > { %v811_v8 = vpop.f32.mrb[40].mxu0  ;;  %v939_v9 = vpop.f32.mrb[40].mxu1 }
 0x16a   : > { %1816 = vst [vmem:[%s2194_s4 + $0x48] sm:$0xff] %v1696_v6   ;;  %1832 = vst [vmem:[%s2194_s4 + $0xc8] sm:$0xff] %v1776_v7   ;;  %v812_v10 = vadd.f32 %v2184_v17, %v811_v8  ;;  %v940_v11 = vadd.f32 %v2184_v17, %v939_v9  ;;  %v813_v12 = vpop.f32.mrb[41].mxu0  ;;  %v941_v13 = vpop.f32.mrb[41].mxu1 }
 0x16b   : > { %v814_v14 = vpop.f32.mrb[42].mxu0  ;;  %v942_v15 = vpop.f32.mrb[42].mxu1 }
 0x16c   : > { %v815_v16 = vadd.f32 %v2184_v17, %v814_v14  ;;  %v943_v18 = vadd.f32 %v2184_v17, %v942_v15  ;;  %v816_v19 = vpop.f32.mrb[43].mxu0  ;;  %v944_v20 = vpop.f32.mrb[43].mxu1  ;;  %v1006_v21 = vmax.f32 %v812_v10, 0.0  ;;  %v1038_v22 = vmax.f32 %v940_v11, 0.0 }
 0x16e   : > { %v1007_v23 = vmax.f32 %v815_v16, 0.0  ;;  %v1039_v24 = vmax.f32 %v943_v18, 0.0 }
 0x170   : > { %v1701_v25 = vpack.c.bf16 %v1007_v23, %v1006_v21  ;;  %v1781_v26 = vpack.c.bf16 %v1039_v24, %v1038_v22 }
 0x171   : > { %v819_v27 = vpop.f32.mrb[44].mxu0  ;;  %v947_v28 = vpop.f32.mrb[44].mxu1 }
 0x172   : > { %1817 = vst [vmem:[%s2194_s4 + $0x50] sm:$0xff] %v1701_v25   ;;  %1833 = vst [vmem:[%s2194_s4 + $0xd0] sm:$0xff] %v1781_v26   ;;  %v820_v29 = vadd.f32 %v2184_v17, %v819_v27  ;;  %v948_v30 = vadd.f32 %v2184_v17, %v947_v28  ;;  %v821_v31 = vpop.f32.mrb[45].mxu0  ;;  %v949_v32 = vpop.f32.mrb[45].mxu1 }
 0x173   : > { %v822_v33 = vpop.f32.mrb[46].mxu0  ;;  %v950_v34 = vpop.f32.mrb[46].mxu1 }
 0x174   : > { %v823_v35 = vadd.f32 %v2184_v17, %v822_v33  ;;  %v951_v36 = vadd.f32 %v2184_v17, %v950_v34  ;;  %v824_v37 = vpop.f32.mrb[47].mxu0  ;;  %v952_v38 = vpop.f32.mrb[47].mxu1  ;;  %v1008_v39 = vmax.f32 %v820_v29, 0.0  ;;  %v1040_v40 = vmax.f32 %v948_v30, 0.0 }
 0x176   : > { %v1009_v41 = vmax.f32 %v823_v35, 0.0  ;;  %v1041_v42 = vmax.f32 %v951_v36, 0.0 }
 0x178   : > { %v1706_v43 = vpack.c.bf16 %v1009_v41, %v1008_v39  ;;  %v1786_v44 = vpack.c.bf16 %v1041_v42, %v1040_v40 }
 0x179   : > { %v827_v45 = vpop.f32.mrb[48].mxu0  ;;  %v955_v46 = vpop.f32.mrb[48].mxu1 }
 0x17a   : > { %1818 = vst [vmem:[%s2194_s4 + $0x58] sm:$0xff] %v1706_v43   ;;  %1834 = vst [vmem:[%s2194_s4 + $0xd8] sm:$0xff] %v1786_v44   ;;  %v828_v47 = vadd.f32 %v2184_v17, %v827_v45  ;;  %v956_v48 = vadd.f32 %v2184_v17, %v955_v46  ;;  %v829_v49 = vpop.f32.mrb[49].mxu0  ;;  %v957_v50 = vpop.f32.mrb[49].mxu1 }
 0x17b   : > { %v830_v51 = vpop.f32.mrb[50].mxu0  ;;  %v958_v52 = vpop.f32.mrb[50].mxu1 }
 0x17c   : > { %v831_v53 = vadd.f32 %v2184_v17, %v830_v51  ;;  %v959_v54 = vadd.f32 %v2184_v17, %v958_v52  ;;  %v832_v55 = vpop.f32.mrb[51].mxu0  ;;  %v960_v56 = vpop.f32.mrb[51].mxu1  ;;  %v1010_v57 = vmax.f32 %v828_v47, 0.0  ;;  %v1042_v58 = vmax.f32 %v956_v48, 0.0 }
 0x17e   : > { %v1011_v59 = vmax.f32 %v831_v53, 0.0  ;;  %v1043_v60 = vmax.f32 %v959_v54, 0.0 }
 0x180   : > { %v1711_v61 = vpack.c.bf16 %v1011_v59, %v1010_v57  ;;  %v1791_v62 = vpack.c.bf16 %v1043_v60, %v1042_v58 }
 0x181   : > { %v835_v63 = vpop.f32.mrb[52].mxu0  ;;  %v963_v0 = vpop.f32.mrb[52].mxu1 }
 0x182   : > { %1819 = vst [vmem:[%s2194_s4 + $0x60] sm:$0xff] %v1711_v61   ;;  %1835 = vst [vmem:[%s2194_s4 + $0xe0] sm:$0xff] %v1791_v62   ;;  %v836_v1 = vadd.f32 %v2184_v17, %v835_v63  ;;  %v964_v2 = vadd.f32 %v2184_v17, %v963_v0  ;;  %v837_v3 = vpop.f32.mrb[53].mxu0  ;;  %v965_v4 = vpop.f32.mrb[53].mxu1 }
 0x183   : > { %v838_v5 = vpop.f32.mrb[54].mxu0  ;;  %v966_v6 = vpop.f32.mrb[54].mxu1 }
 0x184   : > { %v839_v7 = vadd.f32 %v2184_v17, %v838_v5  ;;  %v967_v8 = vadd.f32 %v2184_v17, %v966_v6  ;;  %v840_v9 = vpop.f32.mrb[55].mxu0  ;;  %v968_v10 = vpop.f32.mrb[55].mxu1  ;;  %v1012_v11 = vmax.f32 %v836_v1, 0.0  ;;  %v1044_v12 = vmax.f32 %v964_v2, 0.0 }
 0x186   : > { %v1013_v13 = vmax.f32 %v839_v7, 0.0  ;;  %v1045_v14 = vmax.f32 %v967_v8, 0.0 }
 0x188   : > { %v1716_v15 = vpack.c.bf16 %v1013_v13, %v1012_v11  ;;  %v1796_v16 = vpack.c.bf16 %v1045_v14, %v1044_v12 }
 0x189   : > { %v843_v18 = vpop.f32.mrb[56].mxu0  ;;  %v971_v19 = vpop.f32.mrb[56].mxu1 }
 0x18a   : > { %1820 = vst [vmem:[%s2194_s4 + $0x68] sm:$0xff] %v1716_v15   ;;  %1836 = vst [vmem:[%s2194_s4 + $0xe8] sm:$0xff] %v1796_v16   ;;  %v844_v20 = vadd.f32 %v2184_v17, %v843_v18  ;;  %v972_v21 = vadd.f32 %v2184_v17, %v971_v19  ;;  %v845_v22 = vpop.f32.mrb[57].mxu0  ;;  %v973_v23 = vpop.f32.mrb[57].mxu1 }
 0x18b   : > { %v846_v24 = vpop.f32.mrb[58].mxu0  ;;  %v974_v25 = vpop.f32.mrb[58].mxu1 }
 0x18c   : > { %v847_v26 = vadd.f32 %v2184_v17, %v846_v24  ;;  %v975_v27 = vadd.f32 %v2184_v17, %v974_v25  ;;  %v848_v28 = vpop.f32.mrb[59].mxu0  ;;  %v976_v29 = vpop.f32.mrb[59].mxu1  ;;  %v1014_v30 = vmax.f32 %v844_v20, 0.0  ;;  %v1046_v31 = vmax.f32 %v972_v21, 0.0 }
 0x18e   : > { %v1015_v32 = vmax.f32 %v847_v26, 0.0  ;;  %v1047_v33 = vmax.f32 %v975_v27, 0.0 }
 0x190   : > { %v1721_v34 = vpack.c.bf16 %v1015_v32, %v1014_v30  ;;  %v1801_v35 = vpack.c.bf16 %v1047_v33, %v1046_v31 }
 0x191   : > { %v851_v36 = vpop.f32.mrb[60].mxu0  ;;  %v979_v37 = vpop.f32.mrb[60].mxu1 }
 0x192   : > { %1821 = vst [vmem:[%s2194_s4 + $0x70] sm:$0xff] %v1721_v34   ;;  %1837 = vst [vmem:[%s2194_s4 + $0xf0] sm:$0xff] %v1801_v35   ;;  %v852_v38 = vadd.f32 %v2184_v17, %v851_v36  ;;  %v980_v39 = vadd.f32 %v2184_v17, %v979_v37  ;;  %v853_v40 = vpop.f32.mrb[61].mxu0  ;;  %v981_v41 = vpop.f32.mrb[61].mxu1 }
 0x193   : > { %v854_v42 = vpop.f32.mrb[62].mxu0  ;;  %v982_v43 = vpop.f32.mrb[62].mxu1 }
 0x194   : > { %v855_v44 = vadd.f32 %v2184_v17, %v854_v42  ;;  %v983_v45 = vadd.f32 %v2184_v17, %v982_v43  ;;  %v856_v46 = vpop.f32.mrb[63].mxu0  ;;  %v984_v47 = vpop.f32.mrb[63].mxu1  ;;  %v1016_v48 = vmax.f32 %v852_v38, 0.0  ;;  %v1048_v49 = vmax.f32 %v980_v39, 0.0 }
 0x196   : > { %v1017_v50 = vmax.f32 %v855_v44, 0.0  ;;  %v1049_v51 = vmax.f32 %v983_v45, 0.0 }
 0x198   : > { %v1726_v52 = vpack.c.bf16 %v1017_v50, %v1016_v48  ;;  %v1806_v53 = vpack.c.bf16 %v1049_v51, %v1048_v49 }
 0x19a   : > { %1822 = vst [vmem:[%s2194_s4 + $0x78] sm:$0xff] %v1726_v52   ;;  %1838 = vst [vmem:[%s2194_s4 + $0xf8] sm:$0xff] %v1806_v53  }
 0x19b PF: > { %s13_s12 = sadd.s32 1, %s1998_s12  }
 0x19c   : > { %p10_p4 = scmp.ge.s32.totalorder %s13_s12, 11  }
 0x19e   :  { %12 = sbr.rel (!%p10_p4) target bundleno = 1 (0x1), region = 62 }

// kernel: _lambda_.19
= control target key start
LH: loop header
LB: loop body
LE: loop exit
PB: predicated region body
PF: predicated region fallthrough
CT: control target
= control target key end

     0   :  { %s1084_s6 = smov 0   ;;  %s1086_s7 = smov 0   ;;  %s1378_s0 = inlined_call_operand.vmem [shape: bf16[2,6,800,128], index: 0, kind: input, shape index: {}]   ;;  %s1379_s1 = inlined_call_operand.vmem [shape: bf16[2,24,24,128], index: 1, kind: output, shape index: {}]  }
   0x1   :  { %s1088_s8 = smov 0   ;;  %s1090_s9 = smov 0  }
   0x2   :  { %s1092_s10 = smov 0  }
   0x3 LB: > { %s20_s11 = sadd.s32 1, %s1064_s8  ;;  %s23_s12 = sadd.s32 1, %s1068_s9  ;;  %s1072_s10 = sphi %s1092_s10, %s11_s10   ;;  %s1068_s9 = sphi %s1090_s9, %s1383_s9   ;;  %s1064_s8 = sphi %s1088_s8, %s1382_s8   ;;  %s1060_s7 = sphi %s1086_s7, %s1381_s7   ;;  %s1056_s6 = sphi %s1084_s6, %s1380_s6  }
   0x4   : > { %p21_p0 = scmp.ge.s32.totalorder %s20_s11, 3  ;;  %p724_p1 = scmp.ge.s32.totalorder %s1072_s10, 1 }
   0x5   : > { %p101_p2 = scmp.lt.s32.totalorder %s1072_s10, 7 }
   0x6   : > { %s1385_s11 = smov (%p21_p0, %s20_s11), 0  ;;  %s1387_s12 = smov (!%p21_p0, %s23_s12), %s1068_s9 }
   0x7   : > { %p102_p3 = pnand %p724_p1, %p101_p2  ;;  %p25_p4 = scmp.ge.s32.totalorder %s1387_s12, 2 }
   0x8   : > { %p126_p5 = scmp.lt.s32.totalorder (!%p102_p3), %s1060_s7, 1  ;;  %s726_s13 = sshll.u32 (!%p102_p3), %s1056_s6, 3 }
   0x9   : > { %s1389_s12 = smov (%p25_p4, %s1387_s12), 0  ;;  %105 = sbr.rel (%p102_p3) target bundleno = 108 (0x6c), region = 24 }
   0xa   : > { %p134_p6 = scmp.lt.s32.totalorder (!%p102_p3), %s726_s13, 23  ;;  %s728_s14 = sshll.u32 (!%p102_p3), %s1056_s6, 8 }
   0xb   : > { %s143_s16 = sshra.s32 (!%p102_p3), %s728_s14, 3  ;;  %s426_s24 = sadd.s32 (!%p102_p3), 32, %s728_s14 }
   0xc   : > { %s729_s18 = sshll.u32 (!%p102_p3), %s143_s16, 2  ;;  %s427_s25 = sshra.s32 (!%p102_p3), %s426_s24, 3 }
   0xd   : > { %s855_s27 = sshll.u32 (!%p102_p3), %s427_s25, 2 }
  0x10   : > { %s1391_s7 = smov (!%p126_p5, %s1060_s7), 1  ;;  %s1393_s13 = smov (!%p134_p6, %s726_s13), 23 }
  0x11   : > { %s991_s15 = smul.u32 2400, %s1391_s7 }
  0x12   : > { %s992_s17 = smul.u32 3, %s1393_s13 }
  0x13   : > { %s130_s21 = scalar_lea.vmem %s1378_s0, %s991_s15  ;;  %s993_s22 = smul.u32 72, %s1391_s7 }
  0x14   : > { %s1121_s23 = scalar_lea.vmem %s130_s21, %s729_s18  ;;  %s1136_s28 = scalar_lea.vmem %s130_s21, %s855_s27 }
  0x15   : > { %v147_v0 = vld [vmem:[%s1121_s23] sm:$0xf]  ;;  %v148_v1 = vld [vmem:[%s1121_s23 + $0x4] sm:$0xf]  ;;  %v731_v2 = vld [vmem:[%s1121_s23 + $0x190] sm:$0xf]  ;;  %s1132_s26 = sadd.s32 %s993_s22, %s992_s17 }
  0x16   : > { %v732_v3 = vld [vmem:[%s1121_s23 + $0x194] sm:$0xf]  ;;  %v198_v4 = vmax.bf16 %v731_v2, %v147_v0  ;;  %v756_v5 = vld [vmem:[%s1121_s23 + $0x320] sm:$0xf]  ;;  %v757_v7 = vld [vmem:[%s1121_s23 + $0x324] sm:$0xf] }
  0x17   : > { %v199_v6 = vmax.bf16 %v732_v3, %v148_v1  ;;  %v781_v8 = vld [vmem:[%s1121_s23 + $0x4b0] sm:$0xf]  ;;  %v782_v10 = vld [vmem:[%s1121_s23 + $0x4b4] sm:$0xf]  ;;  %v806_v11 = vld [vmem:[%s1121_s23 + $0x640] sm:$0xf] }
  0x18   : > { %v249_v9 = vmax.bf16 %v756_v5, %v198_v4  ;;  %v807_v13 = vld [vmem:[%s1121_s23 + $0x644] sm:$0xf]  ;;  %v149_v14 = vld [vmem:[%s1121_s23 + $0x8] sm:$0xf]  ;;  %v150_v16 = vld [vmem:[%s1121_s23 + $0x10] sm:$0xf] }
  0x19   : > { %v250_v12 = vmax.bf16 %v757_v7, %v199_v6  ;;  %v733_v17 = vld [vmem:[%s1121_s23 + $0x198] sm:$0xf]  ;;  %v734_v18 = vld [vmem:[%s1121_s23 + $0x1a0] sm:$0xf]  ;;  %v831_v20 = vld [vmem:[%s1121_s23 + $0x7d0] sm:$0xf] }
  0x1a   : > { %v300_v15 = vmax.bf16 %v781_v8, %v249_v9  ;;  %v200_v21 = vmax.bf16 %v733_v17, %v149_v14  ;;  %v201_v22 = vmax.bf16 %v734_v18, %v150_v16  ;;  %s727_s29 = sshll.u32 %s1132_s26, 2  ;;  %v832_v24 = vld [vmem:[%s1121_s23 + $0x7d4] sm:$0xf]  ;;  %v431_v25 = vld [vmem:[%s1136_s28] sm:$0xf] }
  0x1b   : > { %v301_v19 = vmax.bf16 %v782_v10, %v250_v12  ;;  %v758_v27 = vld [vmem:[%s1121_s23 + $0x328] sm:$0xf]  ;;  %v759_v28 = vld [vmem:[%s1121_s23 + $0x330] sm:$0xf]  ;;  %v783_v29 = vld [vmem:[%s1121_s23 + $0x4b8] sm:$0xf]  ;;  %s1176_s3 = scalar_lea.vmem %s1379_s1, %s727_s29 }
  0x1c   : > { %v351_v23 = vmax.bf16 %v806_v11, %v300_v15  ;;  %v432_v31 = vld [vmem:[%s1136_s28 + $0x4] sm:$0xf]  ;;  %v857_v32 = vld [vmem:[%s1136_s28 + $0x190] sm:$0xf]  ;;  %v251_v33 = vmax.bf16 %v758_v27, %v200_v21  ;;  %v252_v34 = vmax.bf16 %v759_v28, %v201_v22  ;;  %v784_v35 = vld [vmem:[%s1121_s23 + $0x4c0] sm:$0xf] }
  0x1d   : > { %v352_v26 = vmax.bf16 %v807_v13, %v301_v19  ;;  %v858_v37 = vld [vmem:[%s1136_s28 + $0x194] sm:$0xf]  ;;  %v808_v38 = vld [vmem:[%s1121_s23 + $0x648] sm:$0xf]  ;;  %v809_v39 = vld [vmem:[%s1121_s23 + $0x650] sm:$0xf] }
  0x1e   : > { %v402_v30 = vmax.bf16 %v831_v20, %v351_v23  ;;  %v882_v41 = vld [vmem:[%s1136_s28 + $0x320] sm:$0xf]  ;;  %v883_v42 = vld [vmem:[%s1136_s28 + $0x324] sm:$0xf]  ;;  %v302_v43 = vmax.bf16 %v783_v29, %v251_v33  ;;  %v303_v44 = vmax.bf16 %v784_v35, %v252_v34  ;;  %v833_v45 = vld [vmem:[%s1121_s23 + $0x7d8] sm:$0xf] }
  0x1f   : > { %v403_v36 = vmax.bf16 %v832_v24, %v352_v26  ;;  %v834_v47 = vld [vmem:[%s1121_s23 + $0x7e0] sm:$0xf]  ;;  %v433_v48 = vld [vmem:[%s1136_s28 + $0x8] sm:$0xf]  ;;  %v151_v49 = vld [vmem:[%s1121_s23 + $0x14] sm:$0xf] }
  0x20   : > { %v455_v40 = vmax.bf16 %v431_v25, %v402_v30  ;;  %v353_v51 = vmax.bf16 %v808_v38, %v302_v43  ;;  %v354_v52 = vmax.bf16 %v809_v39, %v303_v44  ;;  %v152_v53 = vld [vmem:[%s1121_s23 + $0x18] sm:$0xf]  ;;  %v735_v54 = vld [vmem:[%s1121_s23 + $0x1a4] sm:$0xf]  ;;  %v736_v55 = vld [vmem:[%s1121_s23 + $0x1a8] sm:$0xf] }
  0x21   : > { %v456_v46 = vmax.bf16 %v432_v31, %v403_v36  ;;  %v434_v57 = vld [vmem:[%s1136_s28 + $0x10] sm:$0xf]  ;;  %v202_v58 = vmax.bf16 %v735_v54, %v151_v49  ;;  %v203_v59 = vmax.bf16 %v736_v55, %v152_v53  ;;  %v760_v60 = vld [vmem:[%s1121_s23 + $0x334] sm:$0xf]  ;;  %v761_v61 = vld [vmem:[%s1121_s23 + $0x338] sm:$0xf] }
  0x22   : > { %v506_v50 = vmax.bf16 %v857_v32, %v455_v40  ;;  %v404_v63 = vmax.bf16 %v833_v45, %v353_v51  ;;  %v405_v0 = vmax.bf16 %v834_v47, %v354_v52  ;;  %v785_v1 = vld [vmem:[%s1121_s23 + $0x4c4] sm:$0xf]  ;;  %v786_v2 = vld [vmem:[%s1121_s23 + $0x4c8] sm:$0xf]  ;;  %v859_v4 = vld [vmem:[%s1136_s28 + $0x198] sm:$0xf] }
  0x23   : > { %v507_v56 = vmax.bf16 %v858_v37, %v456_v46  ;;  %v860_v5 = vld [vmem:[%s1136_s28 + $0x1a0] sm:$0xf]  ;;  %v884_v6 = vld [vmem:[%s1136_s28 + $0x328] sm:$0xf]  ;;  %v253_v7 = vmax.bf16 %v760_v60, %v202_v58  ;;  %v254_v8 = vmax.bf16 %v761_v61, %v203_v59  ;;  %v885_v11 = vld [vmem:[%s1136_s28 + $0x330] sm:$0xf] }
  0x24   : > { %v557_v62 = vmax.bf16 %v882_v41, %v506_v50  ;;  %v457_v9 = vmax.bf16 %v433_v48, %v404_v63  ;;  %v458_v10 = vmax.bf16 %v434_v57, %v405_v0  ;;  %v810_v12 = vld [vmem:[%s1121_s23 + $0x654] sm:$0xf]  ;;  %v811_v13 = vld [vmem:[%s1121_s23 + $0x658] sm:$0xf]  ;;  %v835_v17 = vld [vmem:[%s1121_s23 + $0x7e4] sm:$0xf] }
  0x25   : > { %v558_v3 = vmax.bf16 %v883_v42, %v507_v56  ;;  %v304_v15 = vmax.bf16 %v785_v1, %v253_v7  ;;  %v305_v16 = vmax.bf16 %v786_v2, %v254_v8  ;;  %v836_v18 = vld [vmem:[%s1121_s23 + $0x7e8] sm:$0xf]  ;;  %v153_v19 = vld [vmem:[%s1121_s23 + $0x20] sm:$0xf]  ;;  %v154_v22 = vld [vmem:[%s1121_s23 + $0x24] sm:$0xf] }
  0x26   : > { %v508_v20 = vmax.bf16 %v859_v4, %v457_v9  ;;  %v509_v21 = vmax.bf16 %v860_v5, %v458_v10  ;;  %v737_v23 = vld [vmem:[%s1121_s23 + $0x1b0] sm:$0xf]  ;;  %v738_v24 = vld [vmem:[%s1121_s23 + $0x1b4] sm:$0xf]  ;;  %v762_v30 = vld [vmem:[%s1121_s23 + $0x340] sm:$0xf] }
  0x27   : > { %v968_v14 = vcombine.low %v557_v62, %v558_v3  ;;  %v355_v25 = vmax.bf16 %v810_v12, %v304_v15  ;;  %v356_v26 = vmax.bf16 %v811_v13, %v305_v16  ;;  %v435_v27 = vld [vmem:[%s1136_s28 + $0x14] sm:$0xf]  ;;  %v204_v28 = vmax.bf16 %v737_v23, %v153_v19  ;;  %v763_v31 = vld [vmem:[%s1121_s23 + $0x344] sm:$0xf]  ;;  %v436_v34 = vld [vmem:[%s1136_s28 + $0x18] sm:$0xf] }
  0x28   : > { %v205_v29 = vmax.bf16 %v738_v24, %v154_v22  ;;  %v559_v32 = vmax.bf16 %v884_v6, %v508_v20  ;;  %v560_v33 = vmax.bf16 %v885_v11, %v509_v21  ;;  %v787_v35 = vld [vmem:[%s1121_s23 + $0x4d0] sm:$0xf]  ;;  %v788_v36 = vld [vmem:[%s1121_s23 + $0x4d4] sm:$0xf]  ;;  %v861_v39 = vld [vmem:[%s1136_s28 + $0x1a4] sm:$0xf] }
  0x29   : > { %912 = vst [vmem:[%s1176_s3] sm:$0xff] %v968_v14   ;;  %v406_v37 = vmax.bf16 %v835_v17, %v355_v25  ;;  %v407_v38 = vmax.bf16 %v836_v18, %v356_v26  ;;  %v862_v40 = vld [vmem:[%s1136_s28 + $0x1a8] sm:$0xf]  ;;  %v255_v41 = vmax.bf16 %v762_v30, %v204_v28  ;;  %v886_v44 = vld [vmem:[%s1136_s28 + $0x334] sm:$0xf]  ;;  %v887_v45 = vld [vmem:[%s1136_s28 + $0x338] sm:$0xf] }
  0x2a   : > { %v256_v42 = vmax.bf16 %v763_v31, %v205_v29  ;;  %v969_v43 = vcombine.low %v559_v32, %v560_v33  ;;  %v812_v46 = vld [vmem:[%s1121_s23 + $0x660] sm:$0xf]  ;;  %v813_v47 = vld [vmem:[%s1121_s23 + $0x664] sm:$0xf]  ;;  %v837_v52 = vld [vmem:[%s1121_s23 + $0x7f0] sm:$0xf] }
  0x2b   : > { %v459_v48 = vmax.bf16 %v435_v27, %v406_v37  ;;  %v460_v49 = vmax.bf16 %v436_v34, %v407_v38  ;;  %v306_v50 = vmax.bf16 %v787_v35, %v255_v41  ;;  %v838_v53 = vld [vmem:[%s1121_s23 + $0x7f4] sm:$0xf]  ;;  %v155_v54 = vld [vmem:[%s1121_s23 + $0x28] sm:$0xf]  ;;  %v156_v55 = vld [vmem:[%s1121_s23 + $0x30] sm:$0xf] }
  0x2c   : > { %v307_v51 = vmax.bf16 %v788_v36, %v256_v42  ;;  %970 = vst [vmem:[%s1176_s3 + $0x8] sm:$0xff] %v969_v43   ;;  %v739_v56 = vld [vmem:[%s1121_s23 + $0x1b8] sm:$0xf]  ;;  %v740_v57 = vld [vmem:[%s1121_s23 + $0x1c0] sm:$0xf] }
  0x2d   : > { %v510_v58 = vmax.bf16 %v861_v39, %v459_v48  ;;  %v511_v59 = vmax.bf16 %v862_v40, %v460_v49  ;;  %v357_v60 = vmax.bf16 %v812_v46, %v306_v50  ;;  %v764_v62 = vld [vmem:[%s1121_s23 + $0x348] sm:$0xf]  ;;  %v765_v63 = vld [vmem:[%s1121_s23 + $0x350] sm:$0xf]  ;;  %v437_v0 = vld [vmem:[%s1136_s28 + $0x20] sm:$0xf]  ;;  %v206_v3 = vmax.bf16 %v739_v56, %v155_v54 }
  0x2e   : > { %v358_v61 = vmax.bf16 %v813_v47, %v307_v51  ;;  %v438_v1 = vld [vmem:[%s1136_s28 + $0x24] sm:$0xf]  ;;  %v863_v2 = vld [vmem:[%s1136_s28 + $0x1b0] sm:$0xf]  ;;  %v207_v4 = vmax.bf16 %v740_v57, %v156_v55  ;;  %v864_v9 = vld [vmem:[%s1136_s28 + $0x1b4] sm:$0xf] }
  0x2f   : > { %v561_v5 = vmax.bf16 %v886_v44, %v510_v58  ;;  %v562_v6 = vmax.bf16 %v887_v45, %v511_v59  ;;  %v408_v7 = vmax.bf16 %v837_v52, %v357_v60  ;;  %v789_v10 = vld [vmem:[%s1121_s23 + $0x4d8] sm:$0xf]  ;;  %v790_v11 = vld [vmem:[%s1121_s23 + $0x4e0] sm:$0xf]  ;;  %v889_v13 = vld [vmem:[%s1136_s28 + $0x344] sm:$0xf]  ;;  %v257_v14 = vmax.bf16 %v764_v62, %v206_v3 }
  0x30   : > { %v409_v8 = vmax.bf16 %v838_v53, %v358_v61  ;;  %v888_v12 = vld [vmem:[%s1136_s28 + $0x340] sm:$0xf]  ;;  %v258_v15 = vmax.bf16 %v765_v63, %v207_v4  ;;  %v814_v16 = vld [vmem:[%s1121_s23 + $0x668] sm:$0xf]  ;;  %v815_v20 = vld [vmem:[%s1121_s23 + $0x670] sm:$0xf] }
  0x31   : > { %v971_v17 = vcombine.low %v561_v5, %v562_v6  ;;  %v461_v18 = vmax.bf16 %v437_v0, %v408_v7  ;;  %v839_v21 = vld [vmem:[%s1121_s23 + $0x7f8] sm:$0xf]  ;;  %v157_v22 = vld [vmem:[%s1121_s23 + $0x34] sm:$0xf]  ;;  %v308_v23 = vmax.bf16 %v789_v10, %v257_v14  ;;  %v741_v26 = vld [vmem:[%s1121_s23 + $0x1c4] sm:$0xf] }
  0x32   : > { %v462_v19 = vmax.bf16 %v438_v1, %v409_v8  ;;  %v309_v24 = vmax.bf16 %v790_v11, %v258_v15  ;;  %v158_v25 = vld [vmem:[%s1121_s23 + $0x38] sm:$0xf]  ;;  %v742_v27 = vld [vmem:[%s1121_s23 + $0x1c8] sm:$0xf]  ;;  %v840_v30 = vld [vmem:[%s1121_s23 + $0x800] sm:$0xf]  ;;  %v208_v31 = vmax.bf16 %v741_v26, %v157_v22 }
  0x33   : > { %972 = vst [vmem:[%s1176_s3 + $0x10] sm:$0xff] %v971_v17   ;;  %v512_v28 = vmax.bf16 %v863_v2, %v461_v18  ;;  %v209_v32 = vmax.bf16 %v742_v27, %v158_v25  ;;  %v766_v33 = vld [vmem:[%s1121_s23 + $0x354] sm:$0xf]  ;;  %v767_v34 = vld [vmem:[%s1121_s23 + $0x358] sm:$0xf]  ;;  %v359_v35 = vmax.bf16 %v814_v16, %v308_v23 }
  0x34   : > { %v513_v29 = vmax.bf16 %v864_v9, %v462_v19  ;;  %v360_v36 = vmax.bf16 %v815_v20, %v309_v24  ;;  %v791_v37 = vld [vmem:[%s1121_s23 + $0x4e4] sm:$0xf]  ;;  %v792_v38 = vld [vmem:[%s1121_s23 + $0x4e8] sm:$0xf]  ;;  %v440_v42 = vld [vmem:[%s1136_s28 + $0x30] sm:$0xf]  ;;  %v259_v44 = vmax.bf16 %v766_v33, %v208_v31 }
  0x35   : > { %v563_v39 = vmax.bf16 %v888_v12, %v512_v28  ;;  %v439_v41 = vld [vmem:[%s1136_s28 + $0x28] sm:$0xf]  ;;  %v865_v43 = vld [vmem:[%s1136_s28 + $0x1b8] sm:$0xf]  ;;  %v260_v45 = vmax.bf16 %v767_v34, %v209_v32  ;;  %v410_v46 = vmax.bf16 %v839_v21, %v359_v35  ;;  %v866_v48 = vld [vmem:[%s1136_s28 + $0x1c0] sm:$0xf] }
  0x36   : > { %v564_v40 = vmax.bf16 %v889_v13, %v513_v29  ;;  %v411_v47 = vmax.bf16 %v840_v30, %v360_v36  ;;  %v816_v49 = vld [vmem:[%s1121_s23 + $0x674] sm:$0xf]  ;;  %v817_v50 = vld [vmem:[%s1121_s23 + $0x678] sm:$0xf]  ;;  %v890_v52 = vld [vmem:[%s1136_s28 + $0x348] sm:$0xf]  ;;  %v310_v54 = vmax.bf16 %v791_v37, %v259_v44 }
  0x37   : > { %v891_v53 = vld [vmem:[%s1136_s28 + $0x350] sm:$0xf]  ;;  %v311_v55 = vmax.bf16 %v792_v38, %v260_v45  ;;  %v841_v56 = vld [vmem:[%s1121_s23 + $0x804] sm:$0xf]  ;;  %v842_v57 = vld [vmem:[%s1121_s23 + $0x808] sm:$0xf]  ;;  %v463_v59 = vmax.bf16 %v439_v41, %v410_v46 }
  0x38   : > { %v973_v51 = vcombine.low %v563_v39, %v564_v40  ;;  %v159_v58 = vld [vmem:[%s1121_s23 + $0x40] sm:$0xf]  ;;  %v464_v60 = vmax.bf16 %v440_v42, %v411_v47  ;;  %v160_v61 = vld [vmem:[%s1121_s23 + $0x44] sm:$0xf]  ;;  %v743_v62 = vld [vmem:[%s1121_s23 + $0x1d0] sm:$0xf]  ;;  %v361_v0 = vmax.bf16 %v816_v49, %v310_v54 }
  0x39   : > { %v744_v63 = vld [vmem:[%s1121_s23 + $0x1d4] sm:$0xf]  ;;  %v362_v1 = vmax.bf16 %v817_v50, %v311_v55  ;;  %v210_v3 = vmax.bf16 %v743_v62, %v159_v58  ;;  %v768_v5 = vld [vmem:[%s1121_s23 + $0x360] sm:$0xf]  ;;  %v769_v6 = vld [vmem:[%s1121_s23 + $0x364] sm:$0xf]  ;;  %v514_v7 = vmax.bf16 %v865_v43, %v463_v59 }
  0x3a   : > { %974 = vst [vmem:[%s1176_s3 + $0x18] sm:$0xff] %v973_v51   ;;  %v441_v2 = vld [vmem:[%s1136_s28 + $0x34] sm:$0xf]  ;;  %v211_v4 = vmax.bf16 %v744_v63, %v160_v61  ;;  %v515_v8 = vmax.bf16 %v866_v48, %v464_v60  ;;  %v442_v9 = vld [vmem:[%s1136_s28 + $0x38] sm:$0xf]  ;;  %v412_v12 = vmax.bf16 %v841_v56, %v361_v0 }
  0x3b   : > { %v793_v10 = vld [vmem:[%s1121_s23 + $0x4f0] sm:$0xf]  ;;  %v794_v11 = vld [vmem:[%s1121_s23 + $0x4f4] sm:$0xf]  ;;  %v413_v13 = vmax.bf16 %v842_v57, %v362_v1  ;;  %v867_v14 = vld [vmem:[%s1136_s28 + $0x1c4] sm:$0xf]  ;;  %v261_v16 = vmax.bf16 %v768_v5, %v210_v3  ;;  %v565_v18 = vmax.bf16 %v890_v52, %v514_v7 }
  0x3c   : > { %v868_v15 = vld [vmem:[%s1136_s28 + $0x1c8] sm:$0xf]  ;;  %v262_v17 = vmax.bf16 %v769_v6, %v211_v4  ;;  %v566_v19 = vmax.bf16 %v891_v53, %v515_v8  ;;  %v892_v20 = vld [vmem:[%s1136_s28 + $0x354] sm:$0xf]  ;;  %v893_v21 = vld [vmem:[%s1136_s28 + $0x358] sm:$0xf]  ;;  %v465_v24 = vmax.bf16 %v441_v2, %v412_v12 }
  0x3d   : > { %v818_v22 = vld [vmem:[%s1121_s23 + $0x680] sm:$0xf]  ;;  %v819_v23 = vld [vmem:[%s1121_s23 + $0x684] sm:$0xf]  ;;  %v466_v25 = vmax.bf16 %v442_v9, %v413_v13  ;;  %v312_v26 = vmax.bf16 %v793_v10, %v261_v16  ;;  %v843_v28 = vld [vmem:[%s1121_s23 + $0x810] sm:$0xf] }
  0x3e   : > { %v313_v27 = vmax.bf16 %v794_v11, %v262_v17  ;;  %v844_v29 = vld [vmem:[%s1121_s23 + $0x814] sm:$0xf]  ;;  %v161_v30 = vld [vmem:[%s1121_s23 + $0x48] sm:$0xf]  ;;  %v975_v31 = vcombine.low %v565_v18, %v566_v19  ;;  %v162_v32 = vld [vmem:[%s1121_s23 + $0x50] sm:$0xf]  ;;  %v516_v35 = vmax.bf16 %v867_v14, %v465_v24 }
  0x3f   : > { %v745_v33 = vld [vmem:[%s1121_s23 + $0x1d8] sm:$0xf]  ;;  %v746_v34 = vld [vmem:[%s1121_s23 + $0x1e0] sm:$0xf]  ;;  %v517_v36 = vmax.bf16 %v868_v15, %v466_v25  ;;  %v363_v37 = vmax.bf16 %v818_v22, %v312_v26  ;;  %v770_v39 = vld [vmem:[%s1121_s23 + $0x368] sm:$0xf] }
  0x40   : > { %v364_v38 = vmax.bf16 %v819_v23, %v313_v27  ;;  %v771_v40 = vld [vmem:[%s1121_s23 + $0x370] sm:$0xf]  ;;  %976 = vst [vmem:[%s1176_s3 + $0x20] sm:$0xff] %v975_v31   ;;  %v443_v41 = vld [vmem:[%s1136_s28 + $0x40] sm:$0xf]  ;;  %v212_v44 = vmax.bf16 %v745_v33, %v161_v30  ;;  %v213_v45 = vmax.bf16 %v746_v34, %v162_v32  ;;  %v567_v46 = vmax.bf16 %v892_v20, %v516_v35 }
  0x41   : > { %v444_v42 = vld [vmem:[%s1136_s28 + $0x44] sm:$0xf]  ;;  %v869_v43 = vld [vmem:[%s1136_s28 + $0x1d0] sm:$0xf]  ;;  %v568_v47 = vmax.bf16 %v893_v21, %v517_v36  ;;  %v414_v48 = vmax.bf16 %v843_v28, %v363_v37  ;;  %v870_v50 = vld [vmem:[%s1136_s28 + $0x1d4] sm:$0xf] }
  0x42   : > { %v415_v49 = vmax.bf16 %v844_v29, %v364_v38  ;;  %v795_v51 = vld [vmem:[%s1121_s23 + $0x4f8] sm:$0xf]  ;;  %v796_v52 = vld [vmem:[%s1121_s23 + $0x500] sm:$0xf]  ;;  %v895_v54 = vld [vmem:[%s1136_s28 + $0x364] sm:$0xf]  ;;  %v263_v55 = vmax.bf16 %v770_v39, %v212_v44  ;;  %v264_v56 = vmax.bf16 %v771_v40, %v213_v45 }
  0x43   : > { %v894_v53 = vld [vmem:[%s1136_s28 + $0x360] sm:$0xf]  ;;  %v820_v57 = vld [vmem:[%s1121_s23 + $0x688] sm:$0xf]  ;;  %v977_v58 = vcombine.low %v567_v46, %v568_v47  ;;  %v467_v59 = vmax.bf16 %v443_v41, %v414_v48  ;;  %v821_v61 = vld [vmem:[%s1121_s23 + $0x690] sm:$0xf] }
  0x44   : > { %v468_v60 = vmax.bf16 %v444_v42, %v415_v49  ;;  %v845_v62 = vld [vmem:[%s1121_s23 + $0x818] sm:$0xf]  ;;  %v163_v63 = vld [vmem:[%s1121_s23 + $0x54] sm:$0xf]  ;;  %v314_v0 = vmax.bf16 %v795_v51, %v263_v55  ;;  %v315_v1 = vmax.bf16 %v796_v52, %v264_v56  ;;  %v747_v3 = vld [vmem:[%s1121_s23 + $0x1e4] sm:$0xf] }
  0x45   : > { %v164_v2 = vld [vmem:[%s1121_s23 + $0x58] sm:$0xf]  ;;  %v748_v4 = vld [vmem:[%s1121_s23 + $0x1e8] sm:$0xf]  ;;  %978 = vst [vmem:[%s1176_s3 + $0x28] sm:$0xff] %v977_v58   ;;  %v518_v5 = vmax.bf16 %v869_v43, %v467_v59  ;;  %v214_v8 = vmax.bf16 %v747_v3, %v163_v63 }
  0x46   : > { %v519_v6 = vmax.bf16 %v870_v50, %v468_v60  ;;  %v846_v7 = vld [vmem:[%s1121_s23 + $0x820] sm:$0xf]  ;;  %v215_v9 = vmax.bf16 %v748_v4, %v164_v2  ;;  %v772_v10 = vld [vmem:[%s1121_s23 + $0x374] sm:$0xf]  ;;  %v773_v11 = vld [vmem:[%s1121_s23 + $0x378] sm:$0xf]  ;;  %v365_v12 = vmax.bf16 %v820_v57, %v314_v0  ;;  %v366_v13 = vmax.bf16 %v821_v61, %v315_v1 }
  0x47   : > { %v797_v14 = vld [vmem:[%s1121_s23 + $0x504] sm:$0xf]  ;;  %v798_v15 = vld [vmem:[%s1121_s23 + $0x508] sm:$0xf]  ;;  %v569_v16 = vmax.bf16 %v894_v53, %v518_v5  ;;  %v446_v19 = vld [vmem:[%s1136_s28 + $0x50] sm:$0xf]  ;;  %v265_v21 = vmax.bf16 %v772_v10, %v214_v8 }
  0x48   : > { %v570_v17 = vmax.bf16 %v895_v54, %v519_v6  ;;  %v445_v18 = vld [vmem:[%s1136_s28 + $0x48] sm:$0xf]  ;;  %v871_v20 = vld [vmem:[%s1136_s28 + $0x1d8] sm:$0xf]  ;;  %v266_v22 = vmax.bf16 %v773_v11, %v215_v9  ;;  %v416_v23 = vmax.bf16 %v845_v62, %v365_v12  ;;  %v417_v24 = vmax.bf16 %v846_v7, %v366_v13  ;;  %v872_v25 = vld [vmem:[%s1136_s28 + $0x1e0] sm:$0xf] }
  0x49   : > { %v822_v26 = vld [vmem:[%s1121_s23 + $0x694] sm:$0xf]  ;;  %v823_v27 = vld [vmem:[%s1121_s23 + $0x698] sm:$0xf]  ;;  %v896_v29 = vld [vmem:[%s1136_s28 + $0x368] sm:$0xf]  ;;  %v316_v31 = vmax.bf16 %v797_v14, %v265_v21 }
  0x4a   : > { %v979_v28 = vcombine.low %v569_v16, %v570_v17  ;;  %v897_v30 = vld [vmem:[%s1136_s28 + $0x370] sm:$0xf]  ;;  %v317_v32 = vmax.bf16 %v798_v15, %v266_v22  ;;  %v847_v33 = vld [vmem:[%s1121_s23 + $0x824] sm:$0xf]  ;;  %v848_v34 = vld [vmem:[%s1121_s23 + $0x828] sm:$0xf]  ;;  %v469_v36 = vmax.bf16 %v445_v18, %v416_v23  ;;  %v470_v37 = vmax.bf16 %v446_v19, %v417_v24 }
  0x4b   : > { %v165_v35 = vld [vmem:[%s1121_s23 + $0x60] sm:$0xf]  ;;  %v166_v38 = vld [vmem:[%s1121_s23 + $0x64] sm:$0xf]  ;;  %v749_v39 = vld [vmem:[%s1121_s23 + $0x1f0] sm:$0xf]  ;;  %v367_v41 = vmax.bf16 %v822_v26, %v316_v31 }
  0x4c   : > { %v750_v40 = vld [vmem:[%s1121_s23 + $0x1f4] sm:$0xf]  ;;  %980 = vst [vmem:[%s1176_s3 + $0x30] sm:$0xff] %v979_v28   ;;  %v368_v42 = vmax.bf16 %v823_v27, %v317_v32  ;;  %v216_v44 = vmax.bf16 %v749_v39, %v165_v35  ;;  %v774_v46 = vld [vmem:[%s1121_s23 + $0x380] sm:$0xf]  ;;  %v520_v48 = vmax.bf16 %v871_v20, %v469_v36  ;;  %v521_v49 = vmax.bf16 %v872_v25, %v470_v37 }
  0x4d   : > { %v447_v43 = vld [vmem:[%s1136_s28 + $0x54] sm:$0xf]  ;;  %v217_v45 = vmax.bf16 %v750_v40, %v166_v38  ;;  %v775_v47 = vld [vmem:[%s1121_s23 + $0x384] sm:$0xf]  ;;  %v448_v50 = vld [vmem:[%s1136_s28 + $0x58] sm:$0xf]  ;;  %v418_v53 = vmax.bf16 %v847_v33, %v367_v41 }
  0x4e   : > { %v799_v51 = vld [vmem:[%s1121_s23 + $0x510] sm:$0xf]  ;;  %v800_v52 = vld [vmem:[%s1121_s23 + $0x514] sm:$0xf]  ;;  %v419_v54 = vmax.bf16 %v848_v34, %v368_v42  ;;  %v873_v55 = vld [vmem:[%s1136_s28 + $0x1e4] sm:$0xf]  ;;  %v267_v57 = vmax.bf16 %v774_v46, %v216_v44  ;;  %v571_v59 = vmax.bf16 %v896_v29, %v520_v48  ;;  %v572_v60 = vmax.bf16 %v897_v30, %v521_v49 }
  0x4f   : > { %v874_v56 = vld [vmem:[%s1136_s28 + $0x1e8] sm:$0xf]  ;;  %v268_v58 = vmax.bf16 %v775_v47, %v217_v45  ;;  %v898_v61 = vld [vmem:[%s1136_s28 + $0x374] sm:$0xf]  ;;  %v899_v62 = vld [vmem:[%s1136_s28 + $0x378] sm:$0xf]  ;;  %v471_v1 = vmax.bf16 %v447_v43, %v418_v53 }
  0x50   : > { %v824_v63 = vld [vmem:[%s1121_s23 + $0x6a0] sm:$0xf]  ;;  %v825_v0 = vld [vmem:[%s1121_s23 + $0x6a4] sm:$0xf]  ;;  %v472_v2 = vmax.bf16 %v448_v50, %v419_v54  ;;  %v318_v3 = vmax.bf16 %v799_v51, %v267_v57  ;;  %v849_v5 = vld [vmem:[%s1121_s23 + $0x830] sm:$0xf]  ;;  %v981_v8 = vcombine.low %v571_v59, %v572_v60 }
  0x51   : > { %v319_v4 = vmax.bf16 %v800_v52, %v268_v58  ;;  %v850_v6 = vld [vmem:[%s1121_s23 + $0x834] sm:$0xf]  ;;  %v167_v7 = vld [vmem:[%s1121_s23 + $0x68] sm:$0xf]  ;;  %v168_v9 = vld [vmem:[%s1121_s23 + $0x70] sm:$0xf]  ;;  %v522_v12 = vmax.bf16 %v873_v55, %v471_v1 }
  0x52   : > { %v751_v10 = vld [vmem:[%s1121_s23 + $0x1f8] sm:$0xf]  ;;  %v752_v11 = vld [vmem:[%s1121_s23 + $0x200] sm:$0xf]  ;;  %v523_v13 = vmax.bf16 %v874_v56, %v472_v2  ;;  %v369_v14 = vmax.bf16 %v824_v63, %v318_v3  ;;  %v776_v16 = vld [vmem:[%s1121_s23 + $0x388] sm:$0xf] }
  0x53   : > { %v370_v15 = vmax.bf16 %v825_v0, %v319_v4  ;;  %v777_v17 = vld [vmem:[%s1121_s23 + $0x390] sm:$0xf]  ;;  %982 = vst [vmem:[%s1176_s3 + $0x38] sm:$0xff] %v981_v8   ;;  %v449_v18 = vld [vmem:[%s1136_s28 + $0x60] sm:$0xf]  ;;  %v218_v21 = vmax.bf16 %v751_v10, %v167_v7  ;;  %v219_v22 = vmax.bf16 %v752_v11, %v168_v9  ;;  %v573_v23 = vmax.bf16 %v898_v61, %v522_v12 }
  0x54   : > { %v450_v19 = vld [vmem:[%s1136_s28 + $0x64] sm:$0xf]  ;;  %v875_v20 = vld [vmem:[%s1136_s28 + $0x1f0] sm:$0xf]  ;;  %v574_v24 = vmax.bf16 %v899_v62, %v523_v13  ;;  %v420_v25 = vmax.bf16 %v849_v5, %v369_v14  ;;  %v876_v27 = vld [vmem:[%s1136_s28 + $0x1f4] sm:$0xf] }
  0x55   : > { %v421_v26 = vmax.bf16 %v850_v6, %v370_v15  ;;  %v801_v28 = vld [vmem:[%s1121_s23 + $0x518] sm:$0xf]  ;;  %v802_v29 = vld [vmem:[%s1121_s23 + $0x520] sm:$0xf]  ;;  %v901_v31 = vld [vmem:[%s1136_s28 + $0x384] sm:$0xf]  ;;  %v269_v32 = vmax.bf16 %v776_v16, %v218_v21  ;;  %v270_v33 = vmax.bf16 %v777_v17, %v219_v22 }
  0x56   : > { %v900_v30 = vld [vmem:[%s1136_s28 + $0x380] sm:$0xf]  ;;  %v826_v34 = vld [vmem:[%s1121_s23 + $0x6a8] sm:$0xf]  ;;  %v983_v35 = vcombine.low %v573_v23, %v574_v24  ;;  %v473_v36 = vmax.bf16 %v449_v18, %v420_v25  ;;  %v827_v38 = vld [vmem:[%s1121_s23 + $0x6b0] sm:$0xf] }
  0x57   : > { %v474_v37 = vmax.bf16 %v450_v19, %v421_v26  ;;  %v851_v39 = vld [vmem:[%s1121_s23 + $0x838] sm:$0xf]  ;;  %v169_v40 = vld [vmem:[%s1121_s23 + $0x74] sm:$0xf]  ;;  %v320_v41 = vmax.bf16 %v801_v28, %v269_v32  ;;  %v321_v42 = vmax.bf16 %v802_v29, %v270_v33  ;;  %v753_v44 = vld [vmem:[%s1121_s23 + $0x204] sm:$0xf] }
  0x58   : > { %v170_v43 = vld [vmem:[%s1121_s23 + $0x78] sm:$0xf]  ;;  %v754_v45 = vld [vmem:[%s1121_s23 + $0x208] sm:$0xf]  ;;  %984 = vst [vmem:[%s1176_s3 + $0x40] sm:$0xff] %v983_v35   ;;  %v524_v46 = vmax.bf16 %v875_v20, %v473_v36  ;;  %v220_v49 = vmax.bf16 %v753_v44, %v169_v40 }
  0x59   : > { %v525_v47 = vmax.bf16 %v876_v27, %v474_v37  ;;  %v852_v48 = vld [vmem:[%s1121_s23 + $0x840] sm:$0xf]  ;;  %v221_v50 = vmax.bf16 %v754_v45, %v170_v43  ;;  %v778_v51 = vld [vmem:[%s1121_s23 + $0x394] sm:$0xf]  ;;  %v779_v52 = vld [vmem:[%s1121_s23 + $0x398] sm:$0xf]  ;;  %v371_v53 = vmax.bf16 %v826_v34, %v320_v41  ;;  %v372_v54 = vmax.bf16 %v827_v38, %v321_v42 }
  0x5a   : > { %v803_v55 = vld [vmem:[%s1121_s23 + $0x524] sm:$0xf]  ;;  %v804_v56 = vld [vmem:[%s1121_s23 + $0x528] sm:$0xf]  ;;  %v575_v57 = vmax.bf16 %v900_v30, %v524_v46  ;;  %v452_v60 = vld [vmem:[%s1136_s28 + $0x70] sm:$0xf]  ;;  %v271_v61 = vmax.bf16 %v778_v51, %v220_v49 }
  0x5b   : > { %v576_v58 = vmax.bf16 %v901_v31, %v525_v47  ;;  %v451_v59 = vld [vmem:[%s1136_s28 + $0x68] sm:$0xf]  ;;  %v272_v62 = vmax.bf16 %v779_v52, %v221_v50  ;;  %v422_v63 = vmax.bf16 %v851_v39, %v371_v53  ;;  %v423_v0 = vmax.bf16 %v852_v48, %v372_v54  ;;  %v828_v1 = vld [vmem:[%s1121_s23 + $0x6b4] sm:$0xf]  ;;  %v829_v2 = vld [vmem:[%s1121_s23 + $0x6b8] sm:$0xf] }
  0x5c   : > { %v877_v4 = vld [vmem:[%s1136_s28 + $0x1f8] sm:$0xf]  ;;  %v878_v5 = vld [vmem:[%s1136_s28 + $0x200] sm:$0xf]  ;;  %v322_v6 = vmax.bf16 %v803_v55, %v271_v61  ;;  %v853_v10 = vld [vmem:[%s1121_s23 + $0x844] sm:$0xf] }
  0x5d   : > { %v985_v3 = vcombine.low %v575_v57, %v576_v58  ;;  %v323_v7 = vmax.bf16 %v804_v56, %v272_v62  ;;  %v475_v8 = vmax.bf16 %v451_v59, %v422_v63  ;;  %v476_v9 = vmax.bf16 %v452_v60, %v423_v0  ;;  %v854_v11 = vld [vmem:[%s1121_s23 + $0x848] sm:$0xf]  ;;  %v903_v13 = vld [vmem:[%s1136_s28 + $0x390] sm:$0xf]  ;;  %v453_v18 = vld [vmem:[%s1136_s28 + $0x74] sm:$0xf] }
  0x5e   : > { %v902_v12 = vld [vmem:[%s1136_s28 + $0x388] sm:$0xf]  ;;  %v373_v14 = vmax.bf16 %v828_v1, %v322_v6  ;;  %v454_v19 = vld [vmem:[%s1136_s28 + $0x78] sm:$0xf]  ;;  %v879_v24 = vld [vmem:[%s1136_s28 + $0x204] sm:$0xf] }
  0x5f   : > { %986 = vst [vmem:[%s1176_s3 + $0x48] sm:$0xff] %v985_v3   ;;  %v374_v15 = vmax.bf16 %v829_v2, %v323_v7  ;;  %v526_v16 = vmax.bf16 %v877_v4, %v475_v8  ;;  %v527_v17 = vmax.bf16 %v878_v5, %v476_v9  ;;  %v880_v25 = vld [vmem:[%s1136_s28 + $0x208] sm:$0xf]  ;;  %v904_v29 = vld [vmem:[%s1136_s28 + $0x394] sm:$0xf] }
  0x60   : > { %v424_v20 = vmax.bf16 %v853_v10, %v373_v14  ;;  %v905_v30 = vld [vmem:[%s1136_s28 + $0x398] sm:$0xf] }
  0x61   : > { %v425_v21 = vmax.bf16 %v854_v11, %v374_v15  ;;  %v577_v22 = vmax.bf16 %v902_v12, %v526_v16  ;;  %v578_v23 = vmax.bf16 %v903_v13, %v527_v17 }
  0x62   : > { %v477_v26 = vmax.bf16 %v453_v18, %v424_v20 }
  0x63   : > { %v478_v27 = vmax.bf16 %v454_v19, %v425_v21  ;;  %v987_v28 = vcombine.low %v577_v22, %v578_v23 }
  0x64   : > { %v528_v31 = vmax.bf16 %v879_v24, %v477_v26 }
  0x65   : > { %v529_v32 = vmax.bf16 %v880_v25, %v478_v27  ;;  %988 = vst [vmem:[%s1176_s3 + $0x50] sm:$0xff] %v987_v28  }
  0x66   : > { %v579_v33 = vmax.bf16 %v904_v29, %v528_v31 }
  0x67   : > { %v580_v34 = vmax.bf16 %v905_v30, %v529_v32 }
  0x69   : > { %v989_v35 = vcombine.low %v579_v33, %v580_v34 }
  0x6b   : > { %990 = vst [vmem:[%s1176_s3 + $0x58] sm:$0xff] %v989_v35  }
  0x6c PF: > { %s11_s10 = sadd.s32 1, %s1072_s10   ;;  %s1380_s6 = smov %s1064_s8 }
  0x6d   : > { %p8_p7 = scmp.ge.s32.totalorder %s11_s10, 8   ;;  %s1381_s7 = smov %s1068_s9 }
  0x6e   : > { %s1382_s8 = smov %s1385_s11  ;;  %s1383_s9 = smov %s1389_s12 }
  0x6f   :  { %10 = sbr.rel (!%p8_p7) target bundleno = 3 (0x3), region = 63 }

// kernel: _lambda_.20
= control target key start
LH: loop header
LB: loop body
LE: loop exit
PB: predicated region body
PF: predicated region fallthrough
CT: control target
= control target key end

     0   :  { %s2042_s15 = smov 0   ;;  %s2320_s0 = inlined_call_operand.vmem [shape: bf16[1152,128], index: 0, kind: input, shape index: {}]   ;;  %s2321_s1 = inlined_call_operand.vmem [shape: bf16[128,256], index: 1, kind: input, shape index: {}]   ;;  %s2322_s2 = inlined_call_operand.vmem [shape: f32[1,256], index: 2, kind: input, shape index: {}]   ;;  %s2323_s3 = inlined_call_operand.vmem [shape: bf16[1152,128], index: 3, kind: output, shape index: {0}]   ;;  %s2324_s4 = inlined_call_operand.vmem [shape: bf16[1152,128], index: 4, kind: output, shape index: {1}]  }
   0x1 LB: > { %s1407_s16 = sadd.s32 4294967295, %s2014_s15   ;;  %p1411_p0 = scmp.ge.s32.totalorder %s2014_s15, 1  ;;  %s2014_s15 = sphi %s2042_s15, %s15_s15  }
   0x2   : > { %p166_p1 = scmp.lt.s32.totalorder %s2014_s15, 4 }
   0x4   : > { %p167_p2 = pnand %p1411_p0, %p166_p1 }
   0x5   : > { %v1960_v0 = vld [vmem:[%s2321_s1 + $0x4] ss:$8 sps:$4 sm:$0xff] (!%p167_p2)   ;;  %s197_s19 = smul.u32 (!%p167_p2), 48, %s1407_s16  ;;  %v1962_v1 = vld [vmem:[%s2321_s1] ss:$8 sps:$4 sm:$0xff] (!%p167_p2)   ;;  %v2016_v2 = vmov (!%p167_p2), 0   ;;  %v282_v41 = vlaneseq (!%p167_p2) }
   0x6   : > { %170 = sbr.rel (%p167_p2) target bundleno = 348 (0x15c), region = 32  ;;  %548 = vmatprep.mubr.bf16.mxu0 (!%p167_p2), %v2016_v2  ;;  %668 = vmatprep.mubr.bf16.mxu1 (!%p167_p2), %v2016_v2  ;;  %v1963_v3 = vld [vmem:[%s2321_s1 + $0x14] ss:$8 sps:$4 sm:$0xff] (!%p167_p2)   ;;  %v1965_v4 = vld [vmem:[%s2321_s1 + $0x10] ss:$8 sps:$4 sm:$0xff] (!%p167_p2)  }
   0x7   : > { %516 = vmatprep.subr.bf16.mxu0 (!%p167_p2), %v1960_v0  ;;  %1935 = vmatprep.subr.bf16.mxu1 (!%p167_p2), %v1960_v0  ;;  %p198_p3 = scmp.lt.s32.totalorder (!%p167_p2), %s197_s19, 143  ;;  %v1966_v5 = vld [vmem:[%s2321_s1 + $0x24] ss:$8 sps:$4 sm:$0xff] (!%p167_p2)   ;;  %v1968_v6 = vld [vmem:[%s2321_s1 + $0x20] ss:$8 sps:$4 sm:$0xff] (!%p167_p2)   ;;  %v283_v42 = vshrl.u32 (!%p167_p2), %v282_v41, 7 }
   0x8   : > { %517 = vmatpush1.bf16.msra.mxu0 (!%p167_p2), %v1962_v1  ;;  %1943 = vmatpush1.bf16.msra.mxu1 (!%p167_p2), %v1962_v1  ;;  %v1969_v7 = vld [vmem:[%s2321_s1 + $0x34] ss:$8 sps:$4 sm:$0xff] (!%p167_p2)   ;;  %v1971_v8 = vld [vmem:[%s2321_s1 + $0x30] ss:$8 sps:$4 sm:$0xff] (!%p167_p2)   ;;  %v1972_v9 = vld [vmem:[%s2321_s1 + $0x44] ss:$8 sps:$4 sm:$0xff] (!%p167_p2)  }
   0x9   : > { %518 = vmatprep.subr.bf16.mxu0 (!%p167_p2), %v1963_v3  ;;  %1936 = vmatprep.subr.bf16.mxu1 (!%p167_p2), %v1963_v3  ;;  %v1974_v10 = vld [vmem:[%s2321_s1 + $0x40] ss:$8 sps:$4 sm:$0xff] (!%p167_p2)   ;;  %v1975_v11 = vld [vmem:[%s2321_s1 + $0x54] ss:$8 sps:$4 sm:$0xff] (!%p167_p2)   ;;  %v1977_v12 = vld [vmem:[%s2321_s1 + $0x50] ss:$8 sps:$4 sm:$0xff] (!%p167_p2)  }
   0xa   : > { %v1978_v13 = vld [vmem:[%s2321_s1 + $0x64] ss:$8 sps:$4 sm:$0xff] (!%p167_p2)   ;;  %v1980_v14 = vld [vmem:[%s2321_s1 + $0x60] ss:$8 sps:$4 sm:$0xff] (!%p167_p2)   ;;  %v1981_v15 = vld [vmem:[%s2321_s1 + $0x74] ss:$8 sps:$4 sm:$0xff] (!%p167_p2)  }
   0xb   : > { %v1983_v16 = vld [vmem:[%s2321_s1 + $0x70] ss:$8 sps:$4 sm:$0xff] (!%p167_p2)   ;;  %v284_v43 = vsub.s32 (!%p167_p2), 0, %v283_v42  ;;  %v280_v44 = vld [vmem:[%s2322_s2] sm:$0x3] (!%p167_p2)  ;;  %v288_v45 = vsub.s32 (!%p167_p2), 1, %v283_v42 }
   0xc   : > { %519 = vmatpush1.bf16.msra.mxu0 (!%p167_p2), %v1965_v4  ;;  %1944 = vmatpush1.bf16.msra.mxu1 (!%p167_p2), %v1965_v4 }
   0xd   : > { %s2326_s19 = smov (!%p198_p3, %s197_s19), 143  ;;  %520 = vmatprep.subr.bf16.mxu0 %v1966_v5  ;;  %1937 = vmatprep.subr.bf16.mxu1 %v1966_v5  ;;  %v2157_v46 = vrot.slane %v280_v44, %v284_v43  ;;  %v2159_v49 = vrot.slane %v280_v44, %v288_v45 }
   0xe   : > { %s2067_s28 = sshll.u32 %s2326_s19, 2 }
   0xf   : > { %s2079_s9 = scalar_lea.vmem %s2320_s0, %s2067_s28  ;;  %s2173_s8 = scalar_lea.vmem %s2324_s4, %s2067_s28 }
  0x10   : > { %521 = vmatpush1.bf16.msra.mxu0 %v1968_v6  ;;  %1945 = vmatpush1.bf16.msra.mxu1 %v1968_v6  ;;  %v1984_v17 = vld [vmem:[%s2079_s9] sm:$0xff]   ;;  %v1986_v19 = vld [vmem:[%s2079_s9 + $0x8] sm:$0xff]   ;;  %v1988_v21 = vld [vmem:[%s2079_s9 + $0x10] sm:$0xff]   ;;  %s2179_s11 = scalar_lea.vmem %s2323_s3, %s2067_s28 }
  0x11   : > { %522 = vmatprep.subr.bf16.mxu0 %v1969_v7  ;;  %1938 = vmatprep.subr.bf16.mxu1 %v1969_v7  ;;  %v1985_v18 = vld [vmem:[%s2079_s9 + $0x60] sm:$0xff]   ;;  %v1987_v20 = vld [vmem:[%s2079_s9 + $0x68] sm:$0xff]   ;;  %v1989_v22 = vld [vmem:[%s2079_s9 + $0x70] sm:$0xff]  }
  0x12   : > { %v1990_v23 = vld [vmem:[%s2079_s9 + $0x18] sm:$0xff]   ;;  %v1992_v25 = vld [vmem:[%s2079_s9 + $0x20] sm:$0xff]   ;;  %v1994_v27 = vld [vmem:[%s2079_s9 + $0x28] sm:$0xff]  }
  0x13   : > { %v1991_v24 = vld [vmem:[%s2079_s9 + $0x78] sm:$0xff]   ;;  %v1993_v26 = vld [vmem:[%s2079_s9 + $0x80] sm:$0xff]   ;;  %v1995_v28 = vld [vmem:[%s2079_s9 + $0x88] sm:$0xff]  }
  0x14   : > { %523 = vmatpush1.bf16.msra.mxu0 %v1971_v8  ;;  %1946 = vmatpush1.bf16.msra.mxu1 %v1971_v8  ;;  %v1996_v29 = vld [vmem:[%s2079_s9 + $0x30] sm:$0xff]   ;;  %v1998_v31 = vld [vmem:[%s2079_s9 + $0x38] sm:$0xff]   ;;  %v2000_v33 = vld [vmem:[%s2079_s9 + $0x40] sm:$0xff]  }
  0x15   : > { %524 = vmatprep.subr.bf16.mxu0 %v1972_v9  ;;  %1939 = vmatprep.subr.bf16.mxu1 %v1972_v9  ;;  %v1997_v30 = vld [vmem:[%s2079_s9 + $0x90] sm:$0xff]   ;;  %v1999_v32 = vld [vmem:[%s2079_s9 + $0x98] sm:$0xff]   ;;  %v2001_v34 = vld [vmem:[%s2079_s9 + $0xa0] sm:$0xff]  }
  0x16   : > { %v2002_v35 = vld [vmem:[%s2079_s9 + $0x48] sm:$0xff]   ;;  %v2004_v37 = vld [vmem:[%s2079_s9 + $0x50] sm:$0xff]   ;;  %v2006_v39 = vld [vmem:[%s2079_s9 + $0x58] sm:$0xff]  }
  0x17   : > { %v2003_v36 = vld [vmem:[%s2079_s9 + $0xa8] sm:$0xff]   ;;  %v2005_v38 = vld [vmem:[%s2079_s9 + $0xb0] sm:$0xff]   ;;  %v2007_v40 = vld [vmem:[%s2079_s9 + $0xb8] sm:$0xff]  }
  0x18   : > { %525 = vmatpush1.bf16.msra.mxu0 %v1974_v10  ;;  %1947 = vmatpush1.bf16.msra.mxu1 %v1974_v10 }
  0x19   : > { %526 = vmatprep.subr.bf16.mxu0 %v1975_v11  ;;  %1940 = vmatprep.subr.bf16.mxu1 %v1975_v11 }
  0x1c   : > { %527 = vmatpush1.bf16.msra.mxu0 %v1977_v12  ;;  %1948 = vmatpush1.bf16.msra.mxu1 %v1977_v12 }
  0x1d   : > { %528 = vmatprep.subr.bf16.mxu0 %v1978_v13  ;;  %1941 = vmatprep.subr.bf16.mxu1 %v1978_v13 }
  0x20   : > { %529 = vmatpush1.bf16.msra.mxu0 %v1980_v14  ;;  %1949 = vmatpush1.bf16.msra.mxu1 %v1980_v14 }
  0x21   : > { %530 = vmatprep.subr.bf16.mxu0 %v1981_v15  ;;  %1942 = vmatprep.subr.bf16.mxu1 %v1981_v15 }
  0x24   : > { %531 = vmatpush1.bf16.msra.mxu0 %v1983_v16  ;;  %1950 = vmatpush1.bf16.msra.mxu1 %v1983_v16 }
  0x27   : > { %549 = vmatmul.mubr.bf16.vlgmr.msra.gmra.mrb[0].mxu0 %v1984_v17  ;;  %669 = vmatmul.mubr.bf16.vlgmr.msra.gmra.mrb[0].mxu1 %v1985_v18 }
  0x28   : > { %558 = vmatprep.mubr.bf16.mxu0 %v2016_v2  ;;  %678 = vmatprep.mubr.bf16.mxu1 %v2016_v2 }
  0x2f   : > { %559 = vmatmul.mubr.bf16.gmra.mrb[4].mxu0 %v1986_v19  ;;  %679 = vmatmul.mubr.bf16.gmra.mrb[4].mxu1 %v1987_v20 }
  0x30   : > { %568 = vmatprep.mubr.bf16.mxu0 %v2016_v2  ;;  %688 = vmatprep.mubr.bf16.mxu1 %v2016_v2 }
  0x37   : > { %569 = vmatmul.mubr.bf16.gmra.mrb[8].mxu0 %v1988_v21  ;;  %689 = vmatmul.mubr.bf16.gmra.mrb[8].mxu1 %v1989_v22 }
  0x38   : > { %578 = vmatprep.mubr.bf16.mxu0 %v2016_v2  ;;  %698 = vmatprep.mubr.bf16.mxu1 %v2016_v2 }
  0x3f   : > { %579 = vmatmul.mubr.bf16.gmra.mrb[12].mxu0 %v1990_v23  ;;  %699 = vmatmul.mubr.bf16.gmra.mrb[12].mxu1 %v1991_v24 }
  0x40   : > { %588 = vmatprep.mubr.bf16.mxu0 %v2016_v2  ;;  %708 = vmatprep.mubr.bf16.mxu1 %v2016_v2 }
  0x47   : > { %589 = vmatmul.mubr.bf16.gmra.mrb[16].mxu0 %v1992_v25  ;;  %709 = vmatmul.mubr.bf16.gmra.mrb[16].mxu1 %v1993_v26 }
  0x48   : > { %598 = vmatprep.mubr.bf16.mxu0 %v2016_v2  ;;  %718 = vmatprep.mubr.bf16.mxu1 %v2016_v2 }
  0x4f   : > { %599 = vmatmul.mubr.bf16.gmra.mrb[20].mxu0 %v1994_v27  ;;  %719 = vmatmul.mubr.bf16.gmra.mrb[20].mxu1 %v1995_v28 }
  0x50   : > { %608 = vmatprep.mubr.bf16.mxu0 %v2016_v2  ;;  %728 = vmatprep.mubr.bf16.mxu1 %v2016_v2 }
  0x57   : > { %609 = vmatmul.mubr.bf16.gmra.mrb[24].mxu0 %v1996_v29  ;;  %729 = vmatmul.mubr.bf16.gmra.mrb[24].mxu1 %v1997_v30 }
  0x58   : > { %618 = vmatprep.mubr.bf16.mxu0 %v2016_v2  ;;  %738 = vmatprep.mubr.bf16.mxu1 %v2016_v2 }
  0x5f   : > { %619 = vmatmul.mubr.bf16.gmra.mrb[28].mxu0 %v1998_v31  ;;  %739 = vmatmul.mubr.bf16.gmra.mrb[28].mxu1 %v1999_v32 }
  0x60   : > { %628 = vmatprep.mubr.bf16.mxu0 %v2016_v2  ;;  %748 = vmatprep.mubr.bf16.mxu1 %v2016_v2 }
  0x67   : > { %629 = vmatmul.mubr.bf16.gmra.mrb[32].mxu0 %v2000_v33  ;;  %749 = vmatmul.mubr.bf16.gmra.mrb[32].mxu1 %v2001_v34 }
  0x68   : > { %638 = vmatprep.mubr.bf16.mxu0 %v2016_v2  ;;  %758 = vmatprep.mubr.bf16.mxu1 %v2016_v2 }
  0x6f   : > { %639 = vmatmul.mubr.bf16.gmra.mrb[36].mxu0 %v2002_v35  ;;  %759 = vmatmul.mubr.bf16.gmra.mrb[36].mxu1 %v2003_v36 }
  0x70   : > { %648 = vmatprep.mubr.bf16.mxu0 %v2016_v2  ;;  %768 = vmatprep.mubr.bf16.mxu1 %v2016_v2 }
  0x77   : > { %649 = vmatmul.mubr.bf16.gmra.mrb[40].mxu0 %v2004_v37  ;;  %769 = vmatmul.mubr.bf16.gmra.mrb[40].mxu1 %v2005_v38 }
  0x78   : > { %658 = vmatprep.mubr.bf16.mxu0 %v2016_v2  ;;  %778 = vmatprep.mubr.bf16.mxu1 %v2016_v2 }
  0x7f   : > { %659 = vmatmul.mubr.bf16.gmra.mrb[44].mxu0 %v2006_v39  ;;  %779 = vmatmul.mubr.bf16.gmra.mrb[44].mxu1 %v2007_v40 }
  0xfa   : > { %v550_v47 = vpop.f32.mrb[0].mxu0  ;;  %v670_v48 = vpop.f32.mrb[0].mxu1 }
  0xfb   : > { %v551_v50 = vadd.f32 %v550_v47, %v2157_v46  ;;  %v671_v51 = vadd.f32 %v670_v48, %v2157_v46  ;;  %v552_v52 = vpop.f32.mrb[1].mxu0  ;;  %v672_v53 = vpop.f32.mrb[1].mxu1 }
  0xfc   : > { %v554_v54 = vpop.f32.mrb[2].mxu0  ;;  %v674_v55 = vpop.f32.mrb[2].mxu1  ;;  %v553_v60 = vadd.f32 %v552_v52, %v2159_v49  ;;  %v673_v61 = vadd.f32 %v672_v53, %v2159_v49 }
  0xfd   : > { %v555_v56 = vadd.f32 %v554_v54, %v2157_v46  ;;  %v675_v57 = vadd.f32 %v674_v55, %v2157_v46  ;;  %v556_v58 = vpop.f32.mrb[3].mxu0  ;;  %v676_v59 = vpop.f32.mrb[3].mxu1  ;;  %v789_v0 = vmax.f32 %v551_v50, 0.0  ;;  %v813_v1 = vmax.f32 %v671_v51, 0.0 }
  0xfe   : > { %v557_v62 = vadd.f32 %v556_v58, %v2159_v49  ;;  %v677_v63 = vadd.f32 %v676_v59, %v2159_v49 }
  0xff   : > { %v790_v2 = vmax.f32 %v555_v56, 0.0  ;;  %v814_v3 = vmax.f32 %v675_v57, 0.0 }
 0x100   : > { %v1772_v4 = vpack.c.bf16 %v557_v62, %v553_v60  ;;  %v1832_v5 = vpack.c.bf16 %v677_v63, %v673_v61 }
 0x101   : > { %v1652_v6 = vpack.c.bf16 %v790_v2, %v789_v0  ;;  %v1712_v7 = vpack.c.bf16 %v814_v3, %v813_v1 }
 0x102   : > { %1773 = vst [vmem:[%s2173_s8] sm:$0xff] %v1772_v4   ;;  %1923 = vst [vmem:[%s2173_s8 + $0x60] sm:$0xff] %v1832_v5   ;;  %v560_v8 = vpop.f32.mrb[4].mxu0  ;;  %v680_v9 = vpop.f32.mrb[4].mxu1 }
 0x103   : > { %1653 = vst [vmem:[%s2179_s11] sm:$0xff] %v1652_v6   ;;  %1900 = vst [vmem:[%s2179_s11 + $0x60] sm:$0xff] %v1712_v7   ;;  %v561_v10 = vadd.f32 %v560_v8, %v2157_v46  ;;  %v681_v11 = vadd.f32 %v680_v9, %v2157_v46  ;;  %v562_v12 = vpop.f32.mrb[5].mxu0  ;;  %v682_v13 = vpop.f32.mrb[5].mxu1 }
 0x104   : > { %v564_v14 = vpop.f32.mrb[6].mxu0  ;;  %v684_v15 = vpop.f32.mrb[6].mxu1  ;;  %v563_v20 = vadd.f32 %v562_v12, %v2159_v49  ;;  %v683_v21 = vadd.f32 %v682_v13, %v2159_v49 }
 0x105   : > { %v565_v16 = vadd.f32 %v564_v14, %v2157_v46  ;;  %v685_v17 = vadd.f32 %v684_v15, %v2157_v46  ;;  %v566_v18 = vpop.f32.mrb[7].mxu0  ;;  %v686_v19 = vpop.f32.mrb[7].mxu1  ;;  %v791_v24 = vmax.f32 %v561_v10, 0.0  ;;  %v815_v25 = vmax.f32 %v681_v11, 0.0 }
 0x106   : > { %v567_v22 = vadd.f32 %v566_v18, %v2159_v49  ;;  %v687_v23 = vadd.f32 %v686_v19, %v2159_v49 }
 0x107   : > { %v792_v26 = vmax.f32 %v565_v16, 0.0  ;;  %v816_v27 = vmax.f32 %v685_v17, 0.0 }
 0x108   : > { %v1777_v28 = vpack.c.bf16 %v567_v22, %v563_v20  ;;  %v1837_v29 = vpack.c.bf16 %v687_v23, %v683_v21 }
 0x109   : > { %v1657_v30 = vpack.c.bf16 %v792_v26, %v791_v24  ;;  %v1717_v31 = vpack.c.bf16 %v816_v27, %v815_v25 }
 0x10a   : > { %1912 = vst [vmem:[%s2173_s8 + $0x8] sm:$0xff] %v1777_v28   ;;  %1924 = vst [vmem:[%s2173_s8 + $0x68] sm:$0xff] %v1837_v29   ;;  %v570_v32 = vpop.f32.mrb[8].mxu0  ;;  %v690_v33 = vpop.f32.mrb[8].mxu1 }
 0x10b   : > { %1889 = vst [vmem:[%s2179_s11 + $0x8] sm:$0xff] %v1657_v30   ;;  %1901 = vst [vmem:[%s2179_s11 + $0x68] sm:$0xff] %v1717_v31   ;;  %v571_v34 = vadd.f32 %v570_v32, %v2157_v46  ;;  %v691_v35 = vadd.f32 %v690_v33, %v2157_v46  ;;  %v572_v36 = vpop.f32.mrb[9].mxu0  ;;  %v692_v37 = vpop.f32.mrb[9].mxu1 }
 0x10c   : > { %v574_v38 = vpop.f32.mrb[10].mxu0  ;;  %v694_v39 = vpop.f32.mrb[10].mxu1  ;;  %v573_v44 = vadd.f32 %v572_v36, %v2159_v49  ;;  %v693_v45 = vadd.f32 %v692_v37, %v2159_v49 }
 0x10d   : > { %v575_v40 = vadd.f32 %v574_v38, %v2157_v46  ;;  %v695_v41 = vadd.f32 %v694_v39, %v2157_v46  ;;  %v576_v42 = vpop.f32.mrb[11].mxu0  ;;  %v696_v43 = vpop.f32.mrb[11].mxu1  ;;  %v793_v50 = vmax.f32 %v571_v34, 0.0  ;;  %v817_v51 = vmax.f32 %v691_v35, 0.0 }
 0x10e   : > { %v577_v47 = vadd.f32 %v576_v42, %v2159_v49  ;;  %v697_v48 = vadd.f32 %v696_v43, %v2159_v49 }
 0x10f   : > { %v794_v52 = vmax.f32 %v575_v40, 0.0  ;;  %v818_v53 = vmax.f32 %v695_v41, 0.0 }
 0x110   : > { %v1782_v54 = vpack.c.bf16 %v577_v47, %v573_v44  ;;  %v1842_v55 = vpack.c.bf16 %v697_v48, %v693_v45 }
 0x111   : > { %v1662_v56 = vpack.c.bf16 %v794_v52, %v793_v50  ;;  %v1722_v57 = vpack.c.bf16 %v818_v53, %v817_v51 }
 0x112   : > { %1913 = vst [vmem:[%s2173_s8 + $0x10] sm:$0xff] %v1782_v54   ;;  %1925 = vst [vmem:[%s2173_s8 + $0x70] sm:$0xff] %v1842_v55   ;;  %v580_v58 = vpop.f32.mrb[12].mxu0  ;;  %v700_v59 = vpop.f32.mrb[12].mxu1 }
 0x113   : > { %1890 = vst [vmem:[%s2179_s11 + $0x10] sm:$0xff] %v1662_v56   ;;  %1902 = vst [vmem:[%s2179_s11 + $0x70] sm:$0xff] %v1722_v57   ;;  %v581_v60 = vadd.f32 %v580_v58, %v2157_v46  ;;  %v701_v61 = vadd.f32 %v700_v59, %v2157_v46  ;;  %v582_v62 = vpop.f32.mrb[13].mxu0  ;;  %v702_v63 = vpop.f32.mrb[13].mxu1 }
 0x114   : > { %v584_v0 = vpop.f32.mrb[14].mxu0  ;;  %v704_v1 = vpop.f32.mrb[14].mxu1  ;;  %v583_v6 = vadd.f32 %v582_v62, %v2159_v49  ;;  %v703_v7 = vadd.f32 %v702_v63, %v2159_v49 }
 0x115   : > { %v585_v2 = vadd.f32 %v584_v0, %v2157_v46  ;;  %v705_v3 = vadd.f32 %v704_v1, %v2157_v46  ;;  %v586_v4 = vpop.f32.mrb[15].mxu0  ;;  %v706_v5 = vpop.f32.mrb[15].mxu1  ;;  %v795_v10 = vmax.f32 %v581_v60, 0.0  ;;  %v819_v11 = vmax.f32 %v701_v61, 0.0 }
 0x116   : > { %v587_v8 = vadd.f32 %v586_v4, %v2159_v49  ;;  %v707_v9 = vadd.f32 %v706_v5, %v2159_v49 }
 0x117   : > { %v796_v12 = vmax.f32 %v585_v2, 0.0  ;;  %v820_v13 = vmax.f32 %v705_v3, 0.0 }
 0x118   : > { %v1787_v14 = vpack.c.bf16 %v587_v8, %v583_v6  ;;  %v1847_v15 = vpack.c.bf16 %v707_v9, %v703_v7 }
 0x119   : > { %v1667_v16 = vpack.c.bf16 %v796_v12, %v795_v10  ;;  %v1727_v17 = vpack.c.bf16 %v820_v13, %v819_v11 }
 0x11a   : > { %1914 = vst [vmem:[%s2173_s8 + $0x18] sm:$0xff] %v1787_v14   ;;  %1926 = vst [vmem:[%s2173_s8 + $0x78] sm:$0xff] %v1847_v15   ;;  %v590_v18 = vpop.f32.mrb[16].mxu0  ;;  %v710_v19 = vpop.f32.mrb[16].mxu1 }
 0x11b   : > { %1891 = vst [vmem:[%s2179_s11 + $0x18] sm:$0xff] %v1667_v16   ;;  %1903 = vst [vmem:[%s2179_s11 + $0x78] sm:$0xff] %v1727_v17   ;;  %v591_v20 = vadd.f32 %v590_v18, %v2157_v46  ;;  %v711_v21 = vadd.f32 %v710_v19, %v2157_v46  ;;  %v592_v22 = vpop.f32.mrb[17].mxu0  ;;  %v712_v23 = vpop.f32.mrb[17].mxu1 }
 0x11c   : > { %v594_v24 = vpop.f32.mrb[18].mxu0  ;;  %v714_v25 = vpop.f32.mrb[18].mxu1  ;;  %v593_v30 = vadd.f32 %v592_v22, %v2159_v49  ;;  %v713_v31 = vadd.f32 %v712_v23, %v2159_v49 }
 0x11d   : > { %v595_v26 = vadd.f32 %v594_v24, %v2157_v46  ;;  %v715_v27 = vadd.f32 %v714_v25, %v2157_v46  ;;  %v596_v28 = vpop.f32.mrb[19].mxu0  ;;  %v716_v29 = vpop.f32.mrb[19].mxu1  ;;  %v797_v34 = vmax.f32 %v591_v20, 0.0  ;;  %v821_v35 = vmax.f32 %v711_v21, 0.0 }
 0x11e   : > { %v597_v32 = vadd.f32 %v596_v28, %v2159_v49  ;;  %v717_v33 = vadd.f32 %v716_v29, %v2159_v49 }
 0x11f   : > { %v798_v36 = vmax.f32 %v595_v26, 0.0  ;;  %v822_v37 = vmax.f32 %v715_v27, 0.0 }
 0x120   : > { %v1792_v38 = vpack.c.bf16 %v597_v32, %v593_v30  ;;  %v1852_v39 = vpack.c.bf16 %v717_v33, %v713_v31 }
 0x121   : > { %v1672_v40 = vpack.c.bf16 %v798_v36, %v797_v34  ;;  %v1732_v41 = vpack.c.bf16 %v822_v37, %v821_v35 }
 0x122   : > { %1915 = vst [vmem:[%s2173_s8 + $0x20] sm:$0xff] %v1792_v38   ;;  %1927 = vst [vmem:[%s2173_s8 + $0x80] sm:$0xff] %v1852_v39   ;;  %v600_v42 = vpop.f32.mrb[20].mxu0  ;;  %v720_v43 = vpop.f32.mrb[20].mxu1 }
 0x123   : > { %1892 = vst [vmem:[%s2179_s11 + $0x20] sm:$0xff] %v1672_v40   ;;  %1904 = vst [vmem:[%s2179_s11 + $0x80] sm:$0xff] %v1732_v41   ;;  %v601_v44 = vadd.f32 %v600_v42, %v2157_v46  ;;  %v721_v45 = vadd.f32 %v720_v43, %v2157_v46  ;;  %v602_v47 = vpop.f32.mrb[21].mxu0  ;;  %v722_v48 = vpop.f32.mrb[21].mxu1 }
 0x124   : > { %v604_v50 = vpop.f32.mrb[22].mxu0  ;;  %v724_v51 = vpop.f32.mrb[22].mxu1  ;;  %v603_v56 = vadd.f32 %v602_v47, %v2159_v49  ;;  %v723_v57 = vadd.f32 %v722_v48, %v2159_v49 }
 0x125   : > { %v605_v52 = vadd.f32 %v604_v50, %v2157_v46  ;;  %v725_v53 = vadd.f32 %v724_v51, %v2157_v46  ;;  %v606_v54 = vpop.f32.mrb[23].mxu0  ;;  %v726_v55 = vpop.f32.mrb[23].mxu1  ;;  %v799_v60 = vmax.f32 %v601_v44, 0.0  ;;  %v823_v61 = vmax.f32 %v721_v45, 0.0 }
 0x126   : > { %v607_v58 = vadd.f32 %v606_v54, %v2159_v49  ;;  %v727_v59 = vadd.f32 %v726_v55, %v2159_v49 }
 0x127   : > { %v800_v62 = vmax.f32 %v605_v52, 0.0  ;;  %v824_v63 = vmax.f32 %v725_v53, 0.0 }
 0x128   : > { %v1797_v0 = vpack.c.bf16 %v607_v58, %v603_v56  ;;  %v1857_v1 = vpack.c.bf16 %v727_v59, %v723_v57 }
 0x129   : > { %v1677_v2 = vpack.c.bf16 %v800_v62, %v799_v60  ;;  %v1737_v3 = vpack.c.bf16 %v824_v63, %v823_v61 }
 0x12a   : > { %1916 = vst [vmem:[%s2173_s8 + $0x28] sm:$0xff] %v1797_v0   ;;  %1928 = vst [vmem:[%s2173_s8 + $0x88] sm:$0xff] %v1857_v1   ;;  %v610_v4 = vpop.f32.mrb[24].mxu0  ;;  %v730_v5 = vpop.f32.mrb[24].mxu1 }
 0x12b   : > { %1893 = vst [vmem:[%s2179_s11 + $0x28] sm:$0xff] %v1677_v2   ;;  %1905 = vst [vmem:[%s2179_s11 + $0x88] sm:$0xff] %v1737_v3   ;;  %v611_v6 = vadd.f32 %v610_v4, %v2157_v46  ;;  %v731_v7 = vadd.f32 %v730_v5, %v2157_v46  ;;  %v612_v8 = vpop.f32.mrb[25].mxu0  ;;  %v732_v9 = vpop.f32.mrb[25].mxu1 }
 0x12c   : > { %v614_v10 = vpop.f32.mrb[26].mxu0  ;;  %v734_v11 = vpop.f32.mrb[26].mxu1  ;;  %v613_v16 = vadd.f32 %v612_v8, %v2159_v49  ;;  %v733_v17 = vadd.f32 %v732_v9, %v2159_v49 }
 0x12d   : > { %v615_v12 = vadd.f32 %v614_v10, %v2157_v46  ;;  %v735_v13 = vadd.f32 %v734_v11, %v2157_v46  ;;  %v616_v14 = vpop.f32.mrb[27].mxu0  ;;  %v736_v15 = vpop.f32.mrb[27].mxu1  ;;  %v801_v20 = vmax.f32 %v611_v6, 0.0  ;;  %v825_v21 = vmax.f32 %v731_v7, 0.0 }
 0x12e   : > { %v617_v18 = vadd.f32 %v616_v14, %v2159_v49  ;;  %v737_v19 = vadd.f32 %v736_v15, %v2159_v49 }
 0x12f   : > { %v802_v22 = vmax.f32 %v615_v12, 0.0  ;;  %v826_v23 = vmax.f32 %v735_v13, 0.0 }
 0x130   : > { %v1802_v24 = vpack.c.bf16 %v617_v18, %v613_v16  ;;  %v1862_v25 = vpack.c.bf16 %v737_v19, %v733_v17 }
 0x131   : > { %v1682_v26 = vpack.c.bf16 %v802_v22, %v801_v20  ;;  %v1742_v27 = vpack.c.bf16 %v826_v23, %v825_v21 }
 0x132   : > { %1917 = vst [vmem:[%s2173_s8 + $0x30] sm:$0xff] %v1802_v24   ;;  %1929 = vst [vmem:[%s2173_s8 + $0x90] sm:$0xff] %v1862_v25   ;;  %v620_v28 = vpop.f32.mrb[28].mxu0  ;;  %v740_v29 = vpop.f32.mrb[28].mxu1 }
 0x133   : > { %1894 = vst [vmem:[%s2179_s11 + $0x30] sm:$0xff] %v1682_v26   ;;  %1906 = vst [vmem:[%s2179_s11 + $0x90] sm:$0xff] %v1742_v27   ;;  %v621_v30 = vadd.f32 %v620_v28, %v2157_v46  ;;  %v741_v31 = vadd.f32 %v740_v29, %v2157_v46  ;;  %v622_v32 = vpop.f32.mrb[29].mxu0  ;;  %v742_v33 = vpop.f32.mrb[29].mxu1 }
 0x134   : > { %v624_v34 = vpop.f32.mrb[30].mxu0  ;;  %v744_v35 = vpop.f32.mrb[30].mxu1  ;;  %v623_v40 = vadd.f32 %v622_v32, %v2159_v49  ;;  %v743_v41 = vadd.f32 %v742_v33, %v2159_v49 }
 0x135   : > { %v625_v36 = vadd.f32 %v624_v34, %v2157_v46  ;;  %v745_v37 = vadd.f32 %v744_v35, %v2157_v46  ;;  %v626_v38 = vpop.f32.mrb[31].mxu0  ;;  %v746_v39 = vpop.f32.mrb[31].mxu1  ;;  %v803_v44 = vmax.f32 %v621_v30, 0.0  ;;  %v827_v45 = vmax.f32 %v741_v31, 0.0 }
 0x136   : > { %v627_v42 = vadd.f32 %v626_v38, %v2159_v49  ;;  %v747_v43 = vadd.f32 %v746_v39, %v2159_v49 }
 0x137   : > { %v804_v47 = vmax.f32 %v625_v36, 0.0  ;;  %v828_v48 = vmax.f32 %v745_v37, 0.0 }
 0x138   : > { %v1807_v50 = vpack.c.bf16 %v627_v42, %v623_v40  ;;  %v1867_v51 = vpack.c.bf16 %v747_v43, %v743_v41 }
 0x139   : > { %v1687_v52 = vpack.c.bf16 %v804_v47, %v803_v44  ;;  %v1747_v53 = vpack.c.bf16 %v828_v48, %v827_v45 }
 0x13a   : > { %1918 = vst [vmem:[%s2173_s8 + $0x38] sm:$0xff] %v1807_v50   ;;  %1930 = vst [vmem:[%s2173_s8 + $0x98] sm:$0xff] %v1867_v51   ;;  %v630_v54 = vpop.f32.mrb[32].mxu0  ;;  %v750_v55 = vpop.f32.mrb[32].mxu1 }
 0x13b   : > { %1895 = vst [vmem:[%s2179_s11 + $0x38] sm:$0xff] %v1687_v52   ;;  %1907 = vst [vmem:[%s2179_s11 + $0x98] sm:$0xff] %v1747_v53   ;;  %v631_v56 = vadd.f32 %v630_v54, %v2157_v46  ;;  %v751_v57 = vadd.f32 %v750_v55, %v2157_v46  ;;  %v632_v58 = vpop.f32.mrb[33].mxu0  ;;  %v752_v59 = vpop.f32.mrb[33].mxu1 }
 0x13c   : > { %v634_v60 = vpop.f32.mrb[34].mxu0  ;;  %v754_v61 = vpop.f32.mrb[34].mxu1  ;;  %v633_v2 = vadd.f32 %v632_v58, %v2159_v49  ;;  %v753_v3 = vadd.f32 %v752_v59, %v2159_v49 }
 0x13d   : > { %v635_v62 = vadd.f32 %v634_v60, %v2157_v46  ;;  %v755_v63 = vadd.f32 %v754_v61, %v2157_v46  ;;  %v636_v0 = vpop.f32.mrb[35].mxu0  ;;  %v756_v1 = vpop.f32.mrb[35].mxu1  ;;  %v805_v6 = vmax.f32 %v631_v56, 0.0  ;;  %v829_v7 = vmax.f32 %v751_v57, 0.0 }
 0x13e   : > { %v637_v4 = vadd.f32 %v636_v0, %v2159_v49  ;;  %v757_v5 = vadd.f32 %v756_v1, %v2159_v49 }
 0x13f   : > { %v806_v8 = vmax.f32 %v635_v62, 0.0  ;;  %v830_v9 = vmax.f32 %v755_v63, 0.0 }
 0x140   : > { %v1812_v10 = vpack.c.bf16 %v637_v4, %v633_v2  ;;  %v1872_v11 = vpack.c.bf16 %v757_v5, %v753_v3 }
 0x141   : > { %v1692_v12 = vpack.c.bf16 %v806_v8, %v805_v6  ;;  %v1752_v13 = vpack.c.bf16 %v830_v9, %v829_v7 }
 0x142   : > { %1919 = vst [vmem:[%s2173_s8 + $0x40] sm:$0xff] %v1812_v10   ;;  %1931 = vst [vmem:[%s2173_s8 + $0xa0] sm:$0xff] %v1872_v11   ;;  %v640_v14 = vpop.f32.mrb[36].mxu0  ;;  %v760_v15 = vpop.f32.mrb[36].mxu1 }
 0x143   : > { %1896 = vst [vmem:[%s2179_s11 + $0x40] sm:$0xff] %v1692_v12   ;;  %1908 = vst [vmem:[%s2179_s11 + $0xa0] sm:$0xff] %v1752_v13   ;;  %v641_v16 = vadd.f32 %v640_v14, %v2157_v46  ;;  %v761_v17 = vadd.f32 %v760_v15, %v2157_v46  ;;  %v642_v18 = vpop.f32.mrb[37].mxu0  ;;  %v762_v19 = vpop.f32.mrb[37].mxu1 }
 0x144   : > { %v644_v20 = vpop.f32.mrb[38].mxu0  ;;  %v764_v21 = vpop.f32.mrb[38].mxu1  ;;  %v643_v26 = vadd.f32 %v642_v18, %v2159_v49  ;;  %v763_v27 = vadd.f32 %v762_v19, %v2159_v49 }
 0x145   : > { %v645_v22 = vadd.f32 %v644_v20, %v2157_v46  ;;  %v765_v23 = vadd.f32 %v764_v21, %v2157_v46  ;;  %v646_v24 = vpop.f32.mrb[39].mxu0  ;;  %v766_v25 = vpop.f32.mrb[39].mxu1  ;;  %v807_v30 = vmax.f32 %v641_v16, 0.0  ;;  %v831_v31 = vmax.f32 %v761_v17, 0.0 }
 0x146   : > { %v647_v28 = vadd.f32 %v646_v24, %v2159_v49  ;;  %v767_v29 = vadd.f32 %v766_v25, %v2159_v49 }
 0x147   : > { %v808_v32 = vmax.f32 %v645_v22, 0.0  ;;  %v832_v33 = vmax.f32 %v765_v23, 0.0 }
 0x148   : > { %v1817_v34 = vpack.c.bf16 %v647_v28, %v643_v26  ;;  %v1877_v35 = vpack.c.bf16 %v767_v29, %v763_v27 }
 0x149   : > { %v1697_v36 = vpack.c.bf16 %v808_v32, %v807_v30  ;;  %v1757_v37 = vpack.c.bf16 %v832_v33, %v831_v31 }
 0x14a   : > { %1920 = vst [vmem:[%s2173_s8 + $0x48] sm:$0xff] %v1817_v34   ;;  %1932 = vst [vmem:[%s2173_s8 + $0xa8] sm:$0xff] %v1877_v35   ;;  %v650_v38 = vpop.f32.mrb[40].mxu0  ;;  %v770_v39 = vpop.f32.mrb[40].mxu1 }
 0x14b   : > { %1897 = vst [vmem:[%s2179_s11 + $0x48] sm:$0xff] %v1697_v36   ;;  %1909 = vst [vmem:[%s2179_s11 + $0xa8] sm:$0xff] %v1757_v37   ;;  %v651_v40 = vadd.f32 %v650_v38, %v2157_v46  ;;  %v771_v41 = vadd.f32 %v770_v39, %v2157_v46  ;;  %v652_v42 = vpop.f32.mrb[41].mxu0  ;;  %v772_v43 = vpop.f32.mrb[41].mxu1 }
 0x14c   : > { %v654_v44 = vpop.f32.mrb[42].mxu0  ;;  %v774_v45 = vpop.f32.mrb[42].mxu1  ;;  %v653_v52 = vadd.f32 %v652_v42, %v2159_v49  ;;  %v773_v53 = vadd.f32 %v772_v43, %v2159_v49 }
 0x14d   : > { %v655_v47 = vadd.f32 %v654_v44, %v2157_v46  ;;  %v775_v48 = vadd.f32 %v774_v45, %v2157_v46  ;;  %v656_v50 = vpop.f32.mrb[43].mxu0  ;;  %v776_v51 = vpop.f32.mrb[43].mxu1  ;;  %v809_v56 = vmax.f32 %v651_v40, 0.0  ;;  %v833_v57 = vmax.f32 %v771_v41, 0.0 }
 0x14e   : > { %v657_v54 = vadd.f32 %v656_v50, %v2159_v49  ;;  %v777_v55 = vadd.f32 %v776_v51, %v2159_v49 }
 0x14f   : > { %v810_v58 = vmax.f32 %v655_v47, 0.0  ;;  %v834_v59 = vmax.f32 %v775_v48, 0.0 }
 0x150   : > { %v1822_v60 = vpack.c.bf16 %v657_v54, %v653_v52  ;;  %v1882_v61 = vpack.c.bf16 %v777_v55, %v773_v53 }
 0x151   : > { %v1702_v62 = vpack.c.bf16 %v810_v58, %v809_v56  ;;  %v1762_v63 = vpack.c.bf16 %v834_v59, %v833_v57 }
 0x152   : > { %1921 = vst [vmem:[%s2173_s8 + $0x50] sm:$0xff] %v1822_v60   ;;  %1933 = vst [vmem:[%s2173_s8 + $0xb0] sm:$0xff] %v1882_v61   ;;  %v660_v0 = vpop.f32.mrb[44].mxu0  ;;  %v780_v1 = vpop.f32.mrb[44].mxu1 }
 0x153   : > { %1898 = vst [vmem:[%s2179_s11 + $0x50] sm:$0xff] %v1702_v62   ;;  %1910 = vst [vmem:[%s2179_s11 + $0xb0] sm:$0xff] %v1762_v63   ;;  %v661_v2 = vadd.f32 %v660_v0, %v2157_v46  ;;  %v781_v3 = vadd.f32 %v780_v1, %v2157_v46  ;;  %v662_v4 = vpop.f32.mrb[45].mxu0  ;;  %v782_v5 = vpop.f32.mrb[45].mxu1 }
 0x154   : > { %v664_v6 = vpop.f32.mrb[46].mxu0  ;;  %v784_v7 = vpop.f32.mrb[46].mxu1  ;;  %v663_v12 = vadd.f32 %v662_v4, %v2159_v49  ;;  %v783_v13 = vadd.f32 %v782_v5, %v2159_v49 }
 0x155   : > { %v665_v8 = vadd.f32 %v664_v6, %v2157_v46  ;;  %v785_v9 = vadd.f32 %v784_v7, %v2157_v46  ;;  %v666_v10 = vpop.f32.mrb[47].mxu0  ;;  %v786_v11 = vpop.f32.mrb[47].mxu1  ;;  %v811_v16 = vmax.f32 %v661_v2, 0.0  ;;  %v835_v17 = vmax.f32 %v781_v3, 0.0 }
 0x156   : > { %v667_v14 = vadd.f32 %v666_v10, %v2159_v49  ;;  %v787_v15 = vadd.f32 %v786_v11, %v2159_v49 }
 0x157   : > { %v812_v18 = vmax.f32 %v665_v8, 0.0  ;;  %v836_v19 = vmax.f32 %v785_v9, 0.0 }
 0x158   : > { %v1827_v20 = vpack.c.bf16 %v667_v14, %v663_v12  ;;  %v1887_v21 = vpack.c.bf16 %v787_v15, %v783_v13 }
 0x159   : > { %v1707_v46 = vpack.c.bf16 %v812_v18, %v811_v16  ;;  %v1767_v22 = vpack.c.bf16 %v836_v19, %v835_v17 }
 0x15a   : > { %1922 = vst [vmem:[%s2173_s8 + $0x58] sm:$0xff] %v1827_v20   ;;  %1934 = vst [vmem:[%s2173_s8 + $0xb8] sm:$0xff] %v1887_v21  }
 0x15b   : > { %1899 = vst [vmem:[%s2179_s11 + $0x58] sm:$0xff] %v1707_v46   ;;  %1911 = vst [vmem:[%s2179_s11 + $0xb8] sm:$0xff] %v1767_v22  }
 0x15c PF: > { %s15_s15 = sadd.s32 1, %s2014_s15  }
 0x15d   : > { %p12_p4 = scmp.ge.s32.totalorder %s15_s15, 5  }
 0x15f   :  { %14 = sbr.rel (!%p12_p4) target bundleno = 1 (0x1), region = 74 }

// kernel: _lambda_.23
= control target key start
LH: loop header
LB: loop body
LE: loop exit
PB: predicated region body
PF: predicated region fallthrough
CT: control target
= control target key end

     0   :  { %s1468_s12 = smov 0   ;;  %s1621_s0 = inlined_call_operand.vmem [shape: bf16[1152,128], index: 0, kind: input, shape index: {}]   ;;  %s1622_s1 = inlined_call_operand.vmem [shape: bf16[128,128], index: 1, kind: input, shape index: {}]   ;;  %s1623_s2 = inlined_call_operand.vmem [shape: f32[1,128], index: 2, kind: input, shape index: {}]   ;;  %s1624_s3 = inlined_call_operand.vmem [shape: bf16[1152,128], index: 3, kind: output, shape index: {}]  }
   0x1 LB: > { %s1007_s13 = sadd.s32 4294967295, %s1446_s12   ;;  %p1011_p0 = scmp.ge.s32.totalorder %s1446_s12, 1  ;;  %s1446_s12 = sphi %s1468_s12, %s13_s12  }
   0x2   : > { %p138_p1 = scmp.lt.s32.totalorder %s1446_s12, 4 }
   0x4   : > { %p139_p2 = pnand %p1011_p0, %p138_p1 }
   0x5   : > { %v1408_v0 = vld [vmem:[%s1622_s1] sm:$0xff] (!%p139_p2)   ;;  %s162_s16 = smul.u32 (!%p139_p2), 48, %s1007_s13  ;;  %v1409_v1 = vld [vmem:[%s1622_s1 + $0x8] sm:$0xff] (!%p139_p2)   ;;  %v1410_v2 = vld [vmem:[%s1622_s1 + $0x10] sm:$0xff] (!%p139_p2)  }
   0x6   : > { %142 = sbr.rel (%p139_p2) target bundleno = 300 (0x12c), region = 32  ;;  %1320 = vmatprep.subr.bf16.mxu0 (!%p139_p2), %v1408_v0  ;;  %1384 = vmatprep.subr.bf16.mxu1 (!%p139_p2), %v1408_v0  ;;  %v1411_v3 = vld [vmem:[%s1622_s1 + $0x18] sm:$0xff] (!%p139_p2)   ;;  %v1412_v6 = vld [vmem:[%s1622_s1 + $0x20] sm:$0xff] (!%p139_p2)   ;;  %v1413_v7 = vld [vmem:[%s1622_s1 + $0x28] sm:$0xff] (!%p139_p2)  }
   0x7   : > { %p163_p3 = scmp.lt.s32.totalorder (!%p139_p2), %s162_s16, 143  ;;  %1321 = vmatpush3.bf16.msra.mxu0 (!%p139_p2), %v1408_v0  ;;  %1392 = vmatpush3.bf16.msra.mxu1 (!%p139_p2), %v1408_v0  ;;  %v1414_v8 = vld [vmem:[%s1622_s1 + $0x30] sm:$0xff] (!%p139_p2)   ;;  %v1415_v9 = vld [vmem:[%s1622_s1 + $0x38] sm:$0xff] (!%p139_p2)   ;;  %v1537_v32 = vld [vmem:[%s1623_s2] ss:$0 sm:$0xff] (!%p139_p2) }
   0x8   : > { %1322 = vmatprep.subr.bf16.mxu0 (!%p139_p2), %v1409_v1  ;;  %1385 = vmatprep.subr.bf16.mxu1 (!%p139_p2), %v1409_v1 }
   0xb   : > { %1323 = vmatpush3.bf16.msra.mxu0 (!%p139_p2), %v1409_v1  ;;  %1393 = vmatpush3.bf16.msra.mxu1 (!%p139_p2), %v1409_v1 }
   0xc   : > { %1324 = vmatprep.subr.bf16.mxu0 (!%p139_p2), %v1410_v2  ;;  %1386 = vmatprep.subr.bf16.mxu1 (!%p139_p2), %v1410_v2 }
   0xd   : > { %s1626_s16 = smov (!%p163_p3, %s162_s16), 143 }
   0xe   : > { %s1012_s21 = sshll.u32 %s1626_s16, 2 }
   0xf   : > { %s1496_s26 = scalar_lea.vmem %s1621_s0, %s1012_s21  ;;  %1325 = vmatpush3.bf16.msra.mxu0 %v1410_v2  ;;  %1394 = vmatpush3.bf16.msra.mxu1 %v1410_v2  ;;  %s1552_s13 = scalar_lea.vmem %s1624_s3, %s1012_s21 }
  0x10   : > { %v1416_v4 = vld [vmem:[%s1496_s26] sm:$0xff]   ;;  %1326 = vmatprep.subr.bf16.mxu0 %v1411_v3  ;;  %1387 = vmatprep.subr.bf16.mxu1 %v1411_v3  ;;  %v1418_v10 = vld [vmem:[%s1496_s26 + $0x8] sm:$0xff]   ;;  %v1420_v12 = vld [vmem:[%s1496_s26 + $0x10] sm:$0xff]  }
  0x11   : > { %v1417_v5 = vld [vmem:[%s1496_s26 + $0x60] sm:$0xff]   ;;  %1336 = vmatprep.mubr.bf16.mxu0 %v1416_v4  ;;  %v1419_v11 = vld [vmem:[%s1496_s26 + $0x68] sm:$0xff]   ;;  %v1421_v13 = vld [vmem:[%s1496_s26 + $0x70] sm:$0xff]  }
  0x12   : > { %1360 = vmatprep.mubr.bf16.mxu1 %v1417_v5  ;;  %v1422_v14 = vld [vmem:[%s1496_s26 + $0x18] sm:$0xff]   ;;  %v1424_v16 = vld [vmem:[%s1496_s26 + $0x20] sm:$0xff]   ;;  %v1426_v18 = vld [vmem:[%s1496_s26 + $0x28] sm:$0xff]  }
  0x13   : > { %1327 = vmatpush3.bf16.msra.mxu0 %v1411_v3  ;;  %1395 = vmatpush3.bf16.msra.mxu1 %v1411_v3  ;;  %v1423_v15 = vld [vmem:[%s1496_s26 + $0x78] sm:$0xff]   ;;  %v1425_v17 = vld [vmem:[%s1496_s26 + $0x80] sm:$0xff]   ;;  %v1427_v19 = vld [vmem:[%s1496_s26 + $0x88] sm:$0xff]  }
  0x14   : > { %1328 = vmatprep.subr.bf16.mxu0 %v1412_v6  ;;  %1388 = vmatprep.subr.bf16.mxu1 %v1412_v6  ;;  %v1428_v20 = vld [vmem:[%s1496_s26 + $0x30] sm:$0xff]   ;;  %v1430_v22 = vld [vmem:[%s1496_s26 + $0x38] sm:$0xff]   ;;  %v1432_v24 = vld [vmem:[%s1496_s26 + $0x40] sm:$0xff]  }
  0x15   : > { %v1429_v21 = vld [vmem:[%s1496_s26 + $0x90] sm:$0xff]   ;;  %v1431_v23 = vld [vmem:[%s1496_s26 + $0x98] sm:$0xff]   ;;  %v1433_v25 = vld [vmem:[%s1496_s26 + $0xa0] sm:$0xff]  }
  0x16   : > { %v1434_v26 = vld [vmem:[%s1496_s26 + $0x48] sm:$0xff]   ;;  %v1436_v28 = vld [vmem:[%s1496_s26 + $0x50] sm:$0xff]   ;;  %v1438_v30 = vld [vmem:[%s1496_s26 + $0x58] sm:$0xff]  }
  0x17   : > { %1329 = vmatpush3.bf16.msra.mxu0 %v1412_v6  ;;  %1396 = vmatpush3.bf16.msra.mxu1 %v1412_v6  ;;  %v1435_v27 = vld [vmem:[%s1496_s26 + $0xa8] sm:$0xff]   ;;  %v1437_v29 = vld [vmem:[%s1496_s26 + $0xb0] sm:$0xff]   ;;  %v1439_v31 = vld [vmem:[%s1496_s26 + $0xb8] sm:$0xff]  }
  0x18   : > { %1330 = vmatprep.subr.bf16.mxu0 %v1413_v7  ;;  %1389 = vmatprep.subr.bf16.mxu1 %v1413_v7 }
  0x1b   : > { %1331 = vmatpush3.bf16.msra.mxu0 %v1413_v7  ;;  %1397 = vmatpush3.bf16.msra.mxu1 %v1413_v7 }
  0x1c   : > { %1332 = vmatprep.subr.bf16.mxu0 %v1414_v8  ;;  %1390 = vmatprep.subr.bf16.mxu1 %v1414_v8 }
  0x1f   : > { %1333 = vmatpush3.bf16.msra.mxu0 %v1414_v8  ;;  %1398 = vmatpush3.bf16.msra.mxu1 %v1414_v8 }
  0x20   : > { %1334 = vmatprep.subr.bf16.mxu0 %v1415_v9  ;;  %1391 = vmatprep.subr.bf16.mxu1 %v1415_v9 }
  0x23   : > { %1335 = vmatpush3.bf16.msra.mxu0 %v1415_v9  ;;  %1399 = vmatpush3.bf16.msra.mxu1 %v1415_v9 }
  0x26   : > { %1337 = vmatmul.mubr.bf16.vlgmr.msra.gmra.mrb[0].mxu0 %v1418_v10  ;;  %1361 = vmatmul.mubr.bf16.vlgmr.msra.gmra.mrb[0].mxu1 %v1419_v11 }
  0x27   : > { %1340 = vmatprep.mubr.bf16.mxu0 %v1420_v12  ;;  %1364 = vmatprep.mubr.bf16.mxu1 %v1421_v13 }
  0x2e   : > { %1341 = vmatmul.mubr.bf16.gmra.mrb[4].mxu0 %v1422_v14  ;;  %1365 = vmatmul.mubr.bf16.gmra.mrb[4].mxu1 %v1423_v15 }
  0x2f   : > { %1344 = vmatprep.mubr.bf16.mxu0 %v1424_v16  ;;  %1368 = vmatprep.mubr.bf16.mxu1 %v1425_v17 }
  0x36   : > { %1345 = vmatmul.mubr.bf16.gmra.mrb[8].mxu0 %v1426_v18  ;;  %1369 = vmatmul.mubr.bf16.gmra.mrb[8].mxu1 %v1427_v19 }
  0x37   : > { %1348 = vmatprep.mubr.bf16.mxu0 %v1428_v20  ;;  %1372 = vmatprep.mubr.bf16.mxu1 %v1429_v21 }
  0x3e   : > { %1349 = vmatmul.mubr.bf16.gmra.mrb[12].mxu0 %v1430_v22  ;;  %1373 = vmatmul.mubr.bf16.gmra.mrb[12].mxu1 %v1431_v23 }
  0x3f   : > { %1352 = vmatprep.mubr.bf16.mxu0 %v1432_v24  ;;  %1376 = vmatprep.mubr.bf16.mxu1 %v1433_v25 }
  0x46   : > { %1353 = vmatmul.mubr.bf16.gmra.mrb[16].mxu0 %v1434_v26  ;;  %1377 = vmatmul.mubr.bf16.gmra.mrb[16].mxu1 %v1435_v27 }
  0x47   : > { %1356 = vmatprep.mubr.bf16.mxu0 %v1436_v28  ;;  %1380 = vmatprep.mubr.bf16.mxu1 %v1437_v29 }
  0x4e   : > { %1357 = vmatmul.mubr.bf16.gmra.mrb[20].mxu0 %v1438_v30  ;;  %1381 = vmatmul.mubr.bf16.gmra.mrb[20].mxu1 %v1439_v31 }
  0xf9   : > { %v1338_v33 = vpop.f32.mrb[0].mxu0  ;;  %v1362_v34 = vpop.f32.mrb[0].mxu1 }
  0xfa   : > { %v481_v35 = vadd.f32 %v1338_v33, %v1537_v32  ;;  %v577_v36 = vadd.f32 %v1362_v34, %v1537_v32  ;;  %v472_v37 = vpop.f32.mrb[1].mxu0  ;;  %v568_v38 = vpop.f32.mrb[1].mxu1 }
  0xfb   : > { %v473_v39 = vadd.f32 %v1537_v32, %v472_v37  ;;  %v569_v40 = vadd.f32 %v1537_v32, %v568_v38  ;;  %v1339_v41 = vpop.f32.mrb[2].mxu0  ;;  %v1363_v42 = vpop.f32.mrb[2].mxu1 }
  0xfc   : > { %v484_v43 = vadd.f32 %v1339_v41, %v1537_v32  ;;  %v580_v44 = vadd.f32 %v1363_v42, %v1537_v32  ;;  %v475_v45 = vpop.f32.mrb[3].mxu0  ;;  %v571_v46 = vpop.f32.mrb[3].mxu1  ;;  %v665_v49 = vmax.f32 %v481_v35, 0.0  ;;  %v689_v50 = vmax.f32 %v577_v36, 0.0 }
  0xfd   : > { %v476_v47 = vadd.f32 %v1537_v32, %v475_v45  ;;  %v572_v48 = vadd.f32 %v1537_v32, %v571_v46  ;;  %v663_v53 = vmax.f32 %v473_v39, 0.0  ;;  %v687_v54 = vmax.f32 %v569_v40, 0.0 }
  0xfe   : > { %v666_v51 = vmax.f32 %v484_v43, 0.0  ;;  %v690_v52 = vmax.f32 %v580_v44, 0.0 }
  0xff   : > { %v664_v55 = vmax.f32 %v476_v47, 0.0  ;;  %v688_v56 = vmax.f32 %v572_v48, 0.0 }
 0x100   : > { %v1153_v57 = vpack.c.bf16 %v666_v51, %v665_v49  ;;  %v1213_v58 = vpack.c.bf16 %v690_v52, %v689_v50 }
 0x101   : > { %v1148_v59 = vpack.c.bf16 %v664_v55, %v663_v53  ;;  %v1208_v60 = vpack.c.bf16 %v688_v56, %v687_v54  ;;  %v1342_v61 = vpop.f32.mrb[4].mxu0  ;;  %v1366_v62 = vpop.f32.mrb[4].mxu1 }
 0x102   : > { %1265 = vst [vmem:[%s1552_s13 + $0x8] sm:$0xff] %v1153_v57   ;;  %1277 = vst [vmem:[%s1552_s13 + $0x68] sm:$0xff] %v1213_v58   ;;  %v497_v63 = vadd.f32 %v1342_v61, %v1537_v32  ;;  %v593_v0 = vadd.f32 %v1366_v62, %v1537_v32  ;;  %v488_v1 = vpop.f32.mrb[5].mxu0  ;;  %v584_v2 = vpop.f32.mrb[5].mxu1 }
 0x103   : > { %1149 = vst [vmem:[%s1552_s13] sm:$0xff] %v1148_v59   ;;  %1276 = vst [vmem:[%s1552_s13 + $0x60] sm:$0xff] %v1208_v60   ;;  %v489_v3 = vadd.f32 %v1537_v32, %v488_v1  ;;  %v585_v4 = vadd.f32 %v1537_v32, %v584_v2  ;;  %v1343_v5 = vpop.f32.mrb[6].mxu0  ;;  %v1367_v6 = vpop.f32.mrb[6].mxu1 }
 0x104   : > { %v500_v7 = vadd.f32 %v1343_v5, %v1537_v32  ;;  %v596_v8 = vadd.f32 %v1367_v6, %v1537_v32  ;;  %v491_v9 = vpop.f32.mrb[7].mxu0  ;;  %v587_v10 = vpop.f32.mrb[7].mxu1  ;;  %v669_v13 = vmax.f32 %v497_v63, 0.0  ;;  %v693_v14 = vmax.f32 %v593_v0, 0.0 }
 0x105   : > { %v492_v11 = vadd.f32 %v1537_v32, %v491_v9  ;;  %v588_v12 = vadd.f32 %v1537_v32, %v587_v10  ;;  %v667_v17 = vmax.f32 %v489_v3, 0.0  ;;  %v691_v18 = vmax.f32 %v585_v4, 0.0 }
 0x106   : > { %v670_v15 = vmax.f32 %v500_v7, 0.0  ;;  %v694_v16 = vmax.f32 %v596_v8, 0.0 }
 0x107   : > { %v668_v19 = vmax.f32 %v492_v11, 0.0  ;;  %v692_v20 = vmax.f32 %v588_v12, 0.0 }
 0x108   : > { %v1163_v21 = vpack.c.bf16 %v670_v15, %v669_v13  ;;  %v1223_v22 = vpack.c.bf16 %v694_v16, %v693_v14 }
 0x109   : > { %v1158_v23 = vpack.c.bf16 %v668_v19, %v667_v17  ;;  %v1218_v24 = vpack.c.bf16 %v692_v20, %v691_v18  ;;  %v1346_v25 = vpop.f32.mrb[8].mxu0  ;;  %v1370_v26 = vpop.f32.mrb[8].mxu1 }
 0x10a   : > { %1267 = vst [vmem:[%s1552_s13 + $0x18] sm:$0xff] %v1163_v21   ;;  %1279 = vst [vmem:[%s1552_s13 + $0x78] sm:$0xff] %v1223_v22   ;;  %v513_v27 = vadd.f32 %v1346_v25, %v1537_v32  ;;  %v609_v28 = vadd.f32 %v1370_v26, %v1537_v32  ;;  %v504_v29 = vpop.f32.mrb[9].mxu0  ;;  %v600_v30 = vpop.f32.mrb[9].mxu1 }
 0x10b   : > { %1266 = vst [vmem:[%s1552_s13 + $0x10] sm:$0xff] %v1158_v23   ;;  %1278 = vst [vmem:[%s1552_s13 + $0x70] sm:$0xff] %v1218_v24   ;;  %v505_v31 = vadd.f32 %v1537_v32, %v504_v29  ;;  %v601_v33 = vadd.f32 %v1537_v32, %v600_v30  ;;  %v1347_v34 = vpop.f32.mrb[10].mxu0  ;;  %v1371_v35 = vpop.f32.mrb[10].mxu1 }
 0x10c   : > { %v516_v36 = vadd.f32 %v1347_v34, %v1537_v32  ;;  %v612_v37 = vadd.f32 %v1371_v35, %v1537_v32  ;;  %v507_v38 = vpop.f32.mrb[11].mxu0  ;;  %v603_v39 = vpop.f32.mrb[11].mxu1  ;;  %v673_v42 = vmax.f32 %v513_v27, 0.0  ;;  %v697_v43 = vmax.f32 %v609_v28, 0.0 }
 0x10d   : > { %v508_v40 = vadd.f32 %v1537_v32, %v507_v38  ;;  %v604_v41 = vadd.f32 %v1537_v32, %v603_v39  ;;  %v671_v46 = vmax.f32 %v505_v31, 0.0  ;;  %v695_v47 = vmax.f32 %v601_v33, 0.0 }
 0x10e   : > { %v674_v44 = vmax.f32 %v516_v36, 0.0  ;;  %v698_v45 = vmax.f32 %v612_v37, 0.0 }
 0x10f   : > { %v672_v48 = vmax.f32 %v508_v40, 0.0  ;;  %v696_v49 = vmax.f32 %v604_v41, 0.0 }
 0x110   : > { %v1173_v50 = vpack.c.bf16 %v674_v44, %v673_v42  ;;  %v1233_v51 = vpack.c.bf16 %v698_v45, %v697_v43 }
 0x111   : > { %v1168_v52 = vpack.c.bf16 %v672_v48, %v671_v46  ;;  %v1228_v53 = vpack.c.bf16 %v696_v49, %v695_v47  ;;  %v1350_v54 = vpop.f32.mrb[12].mxu0  ;;  %v1374_v55 = vpop.f32.mrb[12].mxu1 }
 0x112   : > { %1269 = vst [vmem:[%s1552_s13 + $0x28] sm:$0xff] %v1173_v50   ;;  %1281 = vst [vmem:[%s1552_s13 + $0x88] sm:$0xff] %v1233_v51   ;;  %v529_v56 = vadd.f32 %v1350_v54, %v1537_v32  ;;  %v625_v57 = vadd.f32 %v1374_v55, %v1537_v32  ;;  %v520_v58 = vpop.f32.mrb[13].mxu0  ;;  %v616_v59 = vpop.f32.mrb[13].mxu1 }
 0x113   : > { %1268 = vst [vmem:[%s1552_s13 + $0x20] sm:$0xff] %v1168_v52   ;;  %1280 = vst [vmem:[%s1552_s13 + $0x80] sm:$0xff] %v1228_v53   ;;  %v521_v60 = vadd.f32 %v1537_v32, %v520_v58  ;;  %v617_v61 = vadd.f32 %v1537_v32, %v616_v59  ;;  %v1351_v62 = vpop.f32.mrb[14].mxu0  ;;  %v1375_v63 = vpop.f32.mrb[14].mxu1 }
 0x114   : > { %v532_v0 = vadd.f32 %v1351_v62, %v1537_v32  ;;  %v628_v1 = vadd.f32 %v1375_v63, %v1537_v32  ;;  %v523_v2 = vpop.f32.mrb[15].mxu0  ;;  %v619_v3 = vpop.f32.mrb[15].mxu1  ;;  %v677_v6 = vmax.f32 %v529_v56, 0.0  ;;  %v701_v7 = vmax.f32 %v625_v57, 0.0 }
 0x115   : > { %v524_v4 = vadd.f32 %v1537_v32, %v523_v2  ;;  %v620_v5 = vadd.f32 %v1537_v32, %v619_v3  ;;  %v675_v10 = vmax.f32 %v521_v60, 0.0  ;;  %v699_v11 = vmax.f32 %v617_v61, 0.0 }
 0x116   : > { %v678_v8 = vmax.f32 %v532_v0, 0.0  ;;  %v702_v9 = vmax.f32 %v628_v1, 0.0 }
 0x117   : > { %v676_v12 = vmax.f32 %v524_v4, 0.0  ;;  %v700_v13 = vmax.f32 %v620_v5, 0.0 }
 0x118   : > { %v1183_v14 = vpack.c.bf16 %v678_v8, %v677_v6  ;;  %v1243_v15 = vpack.c.bf16 %v702_v9, %v701_v7 }
 0x119   : > { %v1178_v16 = vpack.c.bf16 %v676_v12, %v675_v10  ;;  %v1238_v17 = vpack.c.bf16 %v700_v13, %v699_v11  ;;  %v1354_v18 = vpop.f32.mrb[16].mxu0  ;;  %v1378_v19 = vpop.f32.mrb[16].mxu1 }
 0x11a   : > { %1271 = vst [vmem:[%s1552_s13 + $0x38] sm:$0xff] %v1183_v14   ;;  %1283 = vst [vmem:[%s1552_s13 + $0x98] sm:$0xff] %v1243_v15   ;;  %v545_v20 = vadd.f32 %v1354_v18, %v1537_v32  ;;  %v641_v21 = vadd.f32 %v1378_v19, %v1537_v32  ;;  %v536_v22 = vpop.f32.mrb[17].mxu0  ;;  %v632_v23 = vpop.f32.mrb[17].mxu1 }
 0x11b   : > { %1270 = vst [vmem:[%s1552_s13 + $0x30] sm:$0xff] %v1178_v16   ;;  %1282 = vst [vmem:[%s1552_s13 + $0x90] sm:$0xff] %v1238_v17   ;;  %v537_v24 = vadd.f32 %v1537_v32, %v536_v22  ;;  %v633_v25 = vadd.f32 %v1537_v32, %v632_v23  ;;  %v1355_v26 = vpop.f32.mrb[18].mxu0  ;;  %v1379_v27 = vpop.f32.mrb[18].mxu1 }
 0x11c   : > { %v548_v28 = vadd.f32 %v1355_v26, %v1537_v32  ;;  %v644_v29 = vadd.f32 %v1379_v27, %v1537_v32  ;;  %v539_v30 = vpop.f32.mrb[19].mxu0  ;;  %v635_v31 = vpop.f32.mrb[19].mxu1  ;;  %v681_v35 = vmax.f32 %v545_v20, 0.0  ;;  %v705_v36 = vmax.f32 %v641_v21, 0.0 }
 0x11d   : > { %v540_v33 = vadd.f32 %v1537_v32, %v539_v30  ;;  %v636_v34 = vadd.f32 %v1537_v32, %v635_v31  ;;  %v679_v39 = vmax.f32 %v537_v24, 0.0  ;;  %v703_v40 = vmax.f32 %v633_v25, 0.0 }
 0x11e   : > { %v682_v37 = vmax.f32 %v548_v28, 0.0  ;;  %v706_v38 = vmax.f32 %v644_v29, 0.0 }
 0x11f   : > { %v680_v41 = vmax.f32 %v540_v33, 0.0  ;;  %v704_v42 = vmax.f32 %v636_v34, 0.0 }
 0x120   : > { %v1193_v43 = vpack.c.bf16 %v682_v37, %v681_v35  ;;  %v1253_v44 = vpack.c.bf16 %v706_v38, %v705_v36 }
 0x121   : > { %v1188_v45 = vpack.c.bf16 %v680_v41, %v679_v39  ;;  %v1248_v46 = vpack.c.bf16 %v704_v42, %v703_v40  ;;  %v1358_v47 = vpop.f32.mrb[20].mxu0  ;;  %v1382_v48 = vpop.f32.mrb[20].mxu1 }
 0x122   : > { %1273 = vst [vmem:[%s1552_s13 + $0x48] sm:$0xff] %v1193_v43   ;;  %1285 = vst [vmem:[%s1552_s13 + $0xa8] sm:$0xff] %v1253_v44   ;;  %v561_v49 = vadd.f32 %v1358_v47, %v1537_v32  ;;  %v657_v50 = vadd.f32 %v1382_v48, %v1537_v32  ;;  %v552_v51 = vpop.f32.mrb[21].mxu0  ;;  %v648_v52 = vpop.f32.mrb[21].mxu1 }
 0x123   : > { %1272 = vst [vmem:[%s1552_s13 + $0x40] sm:$0xff] %v1188_v45   ;;  %1284 = vst [vmem:[%s1552_s13 + $0xa0] sm:$0xff] %v1248_v46   ;;  %v553_v53 = vadd.f32 %v1537_v32, %v552_v51  ;;  %v649_v54 = vadd.f32 %v1537_v32, %v648_v52  ;;  %v1359_v55 = vpop.f32.mrb[22].mxu0  ;;  %v1383_v56 = vpop.f32.mrb[22].mxu1 }
 0x124   : > { %v564_v57 = vadd.f32 %v1359_v55, %v1537_v32  ;;  %v660_v58 = vadd.f32 %v1383_v56, %v1537_v32  ;;  %v555_v59 = vpop.f32.mrb[23].mxu0  ;;  %v651_v60 = vpop.f32.mrb[23].mxu1  ;;  %v685_v63 = vmax.f32 %v561_v49, 0.0  ;;  %v709_v0 = vmax.f32 %v657_v50, 0.0 }
 0x125   : > { %v556_v61 = vadd.f32 %v1537_v32, %v555_v59  ;;  %v652_v62 = vadd.f32 %v1537_v32, %v651_v60  ;;  %v683_v3 = vmax.f32 %v553_v53, 0.0  ;;  %v707_v4 = vmax.f32 %v649_v54, 0.0 }
 0x126   : > { %v686_v1 = vmax.f32 %v564_v57, 0.0  ;;  %v710_v2 = vmax.f32 %v660_v58, 0.0 }
 0x127   : > { %v684_v5 = vmax.f32 %v556_v61, 0.0  ;;  %v708_v6 = vmax.f32 %v652_v62, 0.0 }
 0x128   : > { %v1203_v7 = vpack.c.bf16 %v686_v1, %v685_v63  ;;  %v1263_v8 = vpack.c.bf16 %v710_v2, %v709_v0 }
 0x129   : > { %v1198_v9 = vpack.c.bf16 %v684_v5, %v683_v3  ;;  %v1258_v10 = vpack.c.bf16 %v708_v6, %v707_v4 }
 0x12a   : > { %1275 = vst [vmem:[%s1552_s13 + $0x58] sm:$0xff] %v1203_v7   ;;  %1287 = vst [vmem:[%s1552_s13 + $0xb8] sm:$0xff] %v1263_v8  }
 0x12b   : > { %1274 = vst [vmem:[%s1552_s13 + $0x50] sm:$0xff] %v1198_v9   ;;  %1286 = vst [vmem:[%s1552_s13 + $0xb0] sm:$0xff] %v1258_v10  }
 0x12c PF: > { %s13_s12 = sadd.s32 1, %s1446_s12  }
 0x12d   : > { %p10_p4 = scmp.ge.s32.totalorder %s13_s12, 5  }
 0x12f   :  { %12 = sbr.rel (!%p10_p4) target bundleno = 1 (0x1), region = 62 }

// kernel: _lambda_.22
= control target key start
LH: loop header
LB: loop body
LE: loop exit
PB: predicated region body
PF: predicated region fallthrough
CT: control target
= control target key end

     0   :  { %s1798_s15 = smov 0   ;;  %s2146_s0 = inlined_call_operand.vmem [shape: bf16[1152,128], index: 0, kind: input, shape index: {}]   ;;  %s2147_s1 = inlined_call_operand.vmem [shape: bf16[128,128], index: 1, kind: input, shape index: {}]   ;;  %s2148_s2 = inlined_call_operand.vmem [shape: f32[1,128], index: 2, kind: input, shape index: {}]   ;;  %s2149_s3 = inlined_call_operand.vmem [shape: bf16[1152,128], index: 3, kind: input, shape index: {}]   ;;  %s2150_s4 = inlined_call_operand.vmem [shape: bf16[1152,128], index: 4, kind: output, shape index: {}]  }
   0x1 LB: > { %s1212_s16 = sadd.s32 4294967295, %s1771_s15   ;;  %p1216_p0 = scmp.ge.s32.totalorder %s1771_s15, 1  ;;  %s1771_s15 = sphi %s1798_s15, %s14_s15  }
   0x2   : > { %p174_p1 = scmp.lt.s32.totalorder %s1771_s15, 4 }
   0x4   : > { %p175_p2 = pnand %p1216_p0, %p174_p1 }
   0x5   : > { %v1733_v0 = vld [vmem:[%s2147_s1] sm:$0xff] (!%p175_p2)   ;;  %s205_s19 = smul.u32 (!%p175_p2), 48, %s1212_s16  ;;  %v1734_v1 = vld [vmem:[%s2147_s1 + $0x8] sm:$0xff] (!%p175_p2)   ;;  %v1735_v2 = vld [vmem:[%s2147_s1 + $0x10] sm:$0xff] (!%p175_p2)  }
   0x6   : > { %178 = sbr.rel (%p175_p2) target bundleno = 303 (0x12f), region = 36  ;;  %1645 = vmatprep.subr.bf16.mxu0 (!%p175_p2), %v1733_v0  ;;  %1709 = vmatprep.subr.bf16.mxu1 (!%p175_p2), %v1733_v0  ;;  %v1736_v3 = vld [vmem:[%s2147_s1 + $0x18] sm:$0xff] (!%p175_p2)   ;;  %v1737_v6 = vld [vmem:[%s2147_s1 + $0x20] sm:$0xff] (!%p175_p2)   ;;  %v1738_v7 = vld [vmem:[%s2147_s1 + $0x28] sm:$0xff] (!%p175_p2)  }
   0x7   : > { %p206_p3 = scmp.lt.s32.totalorder (!%p175_p2), %s205_s19, 143  ;;  %1646 = vmatpush3.bf16.msra.mxu0 (!%p175_p2), %v1733_v0  ;;  %1717 = vmatpush3.bf16.msra.mxu1 (!%p175_p2), %v1733_v0  ;;  %v1739_v8 = vld [vmem:[%s2147_s1 + $0x30] sm:$0xff] (!%p175_p2)   ;;  %v1740_v9 = vld [vmem:[%s2147_s1 + $0x38] sm:$0xff] (!%p175_p2)   ;;  %v1919_v56 = vld [vmem:[%s2148_s2] ss:$0 sm:$0xff] (!%p175_p2) }
   0x8   : > { %1647 = vmatprep.subr.bf16.mxu0 (!%p175_p2), %v1734_v1  ;;  %1710 = vmatprep.subr.bf16.mxu1 (!%p175_p2), %v1734_v1 }
   0xb   : > { %1648 = vmatpush3.bf16.msra.mxu0 (!%p175_p2), %v1734_v1  ;;  %1718 = vmatpush3.bf16.msra.mxu1 (!%p175_p2), %v1734_v1 }
   0xc   : > { %1649 = vmatprep.subr.bf16.mxu0 (!%p175_p2), %v1735_v2  ;;  %1711 = vmatprep.subr.bf16.mxu1 (!%p175_p2), %v1735_v2 }
   0xd   : > { %s2152_s19 = smov (!%p206_p3, %s205_s19), 143 }
   0xe   : > { %s1815_s24 = sshll.u32 %s2152_s19, 2 }
   0xf   : > { %s1824_s29 = scalar_lea.vmem %s2146_s0, %s1815_s24  ;;  %1650 = vmatpush3.bf16.msra.mxu0 %v1735_v2  ;;  %1719 = vmatpush3.bf16.msra.mxu1 %v1735_v2  ;;  %s1866_s14 = scalar_lea.vmem %s2149_s3, %s1815_s24 }
  0x10   : > { %v1741_v4 = vld [vmem:[%s1824_s29] sm:$0xff]   ;;  %1651 = vmatprep.subr.bf16.mxu0 %v1736_v3  ;;  %1712 = vmatprep.subr.bf16.mxu1 %v1736_v3  ;;  %v1743_v10 = vld [vmem:[%s1824_s29 + $0x8] sm:$0xff]   ;;  %v1745_v12 = vld [vmem:[%s1824_s29 + $0x10] sm:$0xff]   ;;  %s1965_s20 = scalar_lea.vmem %s2150_s4, %s1815_s24 }
  0x11   : > { %v1742_v5 = vld [vmem:[%s1824_s29 + $0x60] sm:$0xff]   ;;  %1661 = vmatprep.mubr.bf16.mxu0 %v1741_v4  ;;  %v1744_v11 = vld [vmem:[%s1824_s29 + $0x68] sm:$0xff]   ;;  %v1746_v13 = vld [vmem:[%s1824_s29 + $0x70] sm:$0xff]  }
  0x12   : > { %1685 = vmatprep.mubr.bf16.mxu1 %v1742_v5  ;;  %v1747_v14 = vld [vmem:[%s1824_s29 + $0x18] sm:$0xff]   ;;  %v1749_v16 = vld [vmem:[%s1824_s29 + $0x20] sm:$0xff]   ;;  %v1751_v18 = vld [vmem:[%s1824_s29 + $0x28] sm:$0xff]  }
  0x13   : > { %1652 = vmatpush3.bf16.msra.mxu0 %v1736_v3  ;;  %1720 = vmatpush3.bf16.msra.mxu1 %v1736_v3  ;;  %v1748_v15 = vld [vmem:[%s1824_s29 + $0x78] sm:$0xff]   ;;  %v1750_v17 = vld [vmem:[%s1824_s29 + $0x80] sm:$0xff]   ;;  %v1752_v19 = vld [vmem:[%s1824_s29 + $0x88] sm:$0xff]  }
  0x14   : > { %1653 = vmatprep.subr.bf16.mxu0 %v1737_v6  ;;  %1713 = vmatprep.subr.bf16.mxu1 %v1737_v6  ;;  %v1753_v20 = vld [vmem:[%s1824_s29 + $0x30] sm:$0xff]   ;;  %v1755_v22 = vld [vmem:[%s1824_s29 + $0x38] sm:$0xff]   ;;  %v1757_v24 = vld [vmem:[%s1824_s29 + $0x40] sm:$0xff]  }
  0x15   : > { %v1754_v21 = vld [vmem:[%s1824_s29 + $0x90] sm:$0xff]   ;;  %v1756_v23 = vld [vmem:[%s1824_s29 + $0x98] sm:$0xff]   ;;  %v1758_v25 = vld [vmem:[%s1824_s29 + $0xa0] sm:$0xff]  }
  0x16   : > { %v1759_v26 = vld [vmem:[%s1824_s29 + $0x48] sm:$0xff]   ;;  %v1761_v28 = vld [vmem:[%s1824_s29 + $0x50] sm:$0xff]   ;;  %v1763_v30 = vld [vmem:[%s1824_s29 + $0x58] sm:$0xff]  }
  0x17   : > { %1654 = vmatpush3.bf16.msra.mxu0 %v1737_v6  ;;  %1721 = vmatpush3.bf16.msra.mxu1 %v1737_v6  ;;  %v1760_v27 = vld [vmem:[%s1824_s29 + $0xa8] sm:$0xff]   ;;  %v1762_v29 = vld [vmem:[%s1824_s29 + $0xb0] sm:$0xff]   ;;  %v1764_v31 = vld [vmem:[%s1824_s29 + $0xb8] sm:$0xff]  }
  0x18   : > { %1655 = vmatprep.subr.bf16.mxu0 %v1738_v7  ;;  %1714 = vmatprep.subr.bf16.mxu1 %v1738_v7  ;;  %v1869_v32 = vld [vmem:[%s1866_s14 + $0x8] sm:$0xff]   ;;  %v1875_v34 = vld [vmem:[%s1866_s14] sm:$0xff]   ;;  %v1881_v36 = vld [vmem:[%s1866_s14 + $0x18] sm:$0xff]  }
  0x19   : > { %v1872_v33 = vld [vmem:[%s1866_s14 + $0x68] sm:$0xff]   ;;  %v1878_v35 = vld [vmem:[%s1866_s14 + $0x60] sm:$0xff]   ;;  %v1884_v37 = vld [vmem:[%s1866_s14 + $0x78] sm:$0xff]   ;;  %v1357_v40 = vunpack.c.l.bf16 %v1869_v32  ;;  %v1353_v42 = vunpack.c.l.bf16 %v1875_v34  ;;  %v1358_v45 = vunpack.c.h.bf16 %v1869_v32  ;;  %v1354_v47 = vunpack.c.h.bf16 %v1875_v34 }
  0x1a   : > { %v1887_v38 = vld [vmem:[%s1866_s14 + $0x10] sm:$0xff]   ;;  %v1405_v41 = vunpack.c.l.bf16 %v1872_v33  ;;  %v1401_v43 = vunpack.c.l.bf16 %v1878_v35  ;;  %v1897_v44 = vld [vmem:[%s1866_s14 + $0x28] sm:$0xff]   ;;  %v1406_v46 = vunpack.c.h.bf16 %v1872_v33  ;;  %v1402_v48 = vunpack.c.h.bf16 %v1878_v35  ;;  %v1907_v50 = vld [vmem:[%s1866_s14 + $0x20] sm:$0xff]  }
  0x1b   : > { %1656 = vmatpush3.bf16.msra.mxu0 %v1738_v7  ;;  %1722 = vmatpush3.bf16.msra.mxu1 %v1738_v7  ;;  %v1890_v39 = vld [vmem:[%s1866_s14 + $0x70] sm:$0xff]   ;;  %v1904_v49 = vld [vmem:[%s1866_s14 + $0x88] sm:$0xff]   ;;  %v1910_v51 = vld [vmem:[%s1866_s14 + $0x80] sm:$0xff]   ;;  %v1365_v52 = vunpack.c.l.bf16 %v1881_v36  ;;  %v1413_v53 = vunpack.c.l.bf16 %v1884_v37  ;;  %v1361_v54 = vunpack.c.l.bf16 %v1887_v38  ;;  %v1366_v57 = vunpack.c.h.bf16 %v1881_v36 }
  0x1c   : > { %1657 = vmatprep.subr.bf16.mxu0 %v1739_v8  ;;  %1715 = vmatprep.subr.bf16.mxu1 %v1739_v8  ;;  %v1409_v55 = vunpack.c.l.bf16 %v1890_v39  ;;  %v1414_v58 = vunpack.c.h.bf16 %v1884_v37  ;;  %v1362_v59 = vunpack.c.h.bf16 %v1887_v38  ;;  %v1410_v60 = vunpack.c.h.bf16 %v1890_v39  ;;  %v1926_v61 = vld [vmem:[%s1866_s14 + $0x38] sm:$0xff]   ;;  %v1936_v3 = vld [vmem:[%s1866_s14 + $0x30] sm:$0xff]  }
  0x1d   : > { %v1929_v62 = vld [vmem:[%s1866_s14 + $0x98] sm:$0xff]   ;;  %v1373_v63 = vunpack.c.l.bf16 %v1897_v44  ;;  %v1421_v0 = vunpack.c.l.bf16 %v1904_v49  ;;  %v1369_v1 = vunpack.c.l.bf16 %v1907_v50  ;;  %v1417_v2 = vunpack.c.l.bf16 %v1910_v51  ;;  %v1939_v4 = vld [vmem:[%s1866_s14 + $0x90] sm:$0xff]  }
  0x1e   : > { %v1374_v7 = vunpack.c.h.bf16 %v1897_v44  ;;  %v1382_v35 = vunpack.c.h.bf16 %v1926_v61 }
  0x1f   : > { %1658 = vmatpush3.bf16.msra.mxu0 %v1739_v8  ;;  %1723 = vmatpush3.bf16.msra.mxu1 %v1739_v8  ;;  %v1422_v8 = vunpack.c.h.bf16 %v1904_v49 }
  0x20   : > { %1659 = vmatprep.subr.bf16.mxu0 %v1740_v9  ;;  %1716 = vmatprep.subr.bf16.mxu1 %v1740_v9 }
  0x23   : > { %1660 = vmatpush3.bf16.msra.mxu0 %v1740_v9  ;;  %1724 = vmatpush3.bf16.msra.mxu1 %v1740_v9  ;;  %v1370_v9 = vunpack.c.h.bf16 %v1907_v50 }
  0x26   : > { %1662 = vmatmul.mubr.bf16.vlgmr.msra.gmra.mrb[0].mxu0 %v1743_v10  ;;  %1686 = vmatmul.mubr.bf16.vlgmr.msra.gmra.mrb[0].mxu1 %v1744_v11  ;;  %v1418_v10 = vunpack.c.h.bf16 %v1910_v51 }
  0x27   : > { %1665 = vmatprep.mubr.bf16.mxu0 %v1745_v12  ;;  %1689 = vmatprep.mubr.bf16.mxu1 %v1746_v13 }
  0x2e   : > { %1666 = vmatmul.mubr.bf16.gmra.mrb[4].mxu0 %v1747_v14  ;;  %1690 = vmatmul.mubr.bf16.gmra.mrb[4].mxu1 %v1748_v15  ;;  %v1381_v15 = vunpack.c.l.bf16 %v1926_v61 }
  0x2f   : > { %1669 = vmatprep.mubr.bf16.mxu0 %v1749_v16  ;;  %1693 = vmatprep.mubr.bf16.mxu1 %v1750_v17  ;;  %v1429_v16 = vunpack.c.l.bf16 %v1929_v62 }
  0x36   : > { %1670 = vmatmul.mubr.bf16.gmra.mrb[8].mxu0 %v1751_v18  ;;  %1694 = vmatmul.mubr.bf16.gmra.mrb[8].mxu1 %v1752_v19 }
  0x37   : > { %1673 = vmatprep.mubr.bf16.mxu0 %v1753_v20  ;;  %1697 = vmatprep.mubr.bf16.mxu1 %v1754_v21  ;;  %v1377_v21 = vunpack.c.l.bf16 %v1936_v3 }
  0x3e   : > { %1674 = vmatmul.mubr.bf16.gmra.mrb[12].mxu0 %v1755_v22  ;;  %1698 = vmatmul.mubr.bf16.gmra.mrb[12].mxu1 %v1756_v23  ;;  %v1425_v22 = vunpack.c.l.bf16 %v1939_v4 }
  0x3f   : > { %1677 = vmatprep.mubr.bf16.mxu0 %v1757_v24  ;;  %1701 = vmatprep.mubr.bf16.mxu1 %v1758_v25 }
  0x46   : > { %1678 = vmatmul.mubr.bf16.gmra.mrb[16].mxu0 %v1759_v26  ;;  %1702 = vmatmul.mubr.bf16.gmra.mrb[16].mxu1 %v1760_v27 }
  0x47   : > { %1681 = vmatprep.mubr.bf16.mxu0 %v1761_v28  ;;  %1705 = vmatprep.mubr.bf16.mxu1 %v1762_v29 }
  0x4e   : > { %1682 = vmatmul.mubr.bf16.gmra.mrb[20].mxu0 %v1763_v30  ;;  %1706 = vmatmul.mubr.bf16.gmra.mrb[20].mxu1 %v1764_v31 }
  0xf9   : > { %v1663_v5 = vpop.f32.mrb[0].mxu0  ;;  %v1687_v6 = vpop.f32.mrb[0].mxu1 }
  0xfa   : > { %v530_v11 = vadd.f32 %v1663_v5, %v1919_v56  ;;  %v626_v12 = vadd.f32 %v1687_v6, %v1919_v56  ;;  %v521_v13 = vpop.f32.mrb[1].mxu0  ;;  %v617_v14 = vpop.f32.mrb[1].mxu1  ;;  %v1378_v6 = vunpack.c.h.bf16 %v1936_v3 }
  0xfb   : > { %v522_v17 = vadd.f32 %v1919_v56, %v521_v13  ;;  %v618_v18 = vadd.f32 %v1919_v56, %v617_v14  ;;  %v1664_v19 = vpop.f32.mrb[2].mxu0  ;;  %v1688_v20 = vpop.f32.mrb[2].mxu1 }
  0xfc   : > { %v810_v23 = vadd.f32 %v1357_v40, %v530_v11  ;;  %v834_v24 = vadd.f32 %v1405_v41, %v626_v12  ;;  %v533_v25 = vadd.f32 %v1664_v19, %v1919_v56  ;;  %v629_v26 = vadd.f32 %v1688_v20, %v1919_v56  ;;  %v524_v27 = vpop.f32.mrb[3].mxu0  ;;  %v620_v28 = vpop.f32.mrb[3].mxu1 }
  0xfd   : > { %v808_v29 = vadd.f32 %v1353_v42, %v522_v17  ;;  %v832_v30 = vadd.f32 %v1401_v43, %v618_v18  ;;  %v525_v31 = vadd.f32 %v1919_v56, %v524_v27  ;;  %v621_v32 = vadd.f32 %v1919_v56, %v620_v28 }
  0xfe   : > { %v811_v33 = vadd.f32 %v1358_v45, %v533_v25  ;;  %v835_v34 = vadd.f32 %v1406_v46, %v629_v26  ;;  %v1430_v40 = vunpack.c.h.bf16 %v1929_v62  ;;  %v1426_v11 = vunpack.c.h.bf16 %v1939_v4 }
  0xff   : > { %v809_v41 = vadd.f32 %v1354_v47, %v525_v31  ;;  %v833_v5 = vadd.f32 %v1402_v48, %v621_v32  ;;  %v858_v12 = vmax.f32 %v810_v23, 0.0  ;;  %v882_v42 = vmax.f32 %v834_v24, 0.0  ;;  %v1972_v32 = vld [vmem:[%s1866_s14 + $0x48] sm:$0xff]  }
 0x100   : > { %v859_v43 = vmax.f32 %v811_v33, 0.0  ;;  %v883_v13 = vmax.f32 %v835_v34, 0.0  ;;  %v856_v14 = vmax.f32 %v808_v29, 0.0  ;;  %v880_v17 = vmax.f32 %v832_v30, 0.0  ;;  %v1975_v33 = vld [vmem:[%s1866_s14 + $0xa8] sm:$0xff]  }
 0x101   : > { %v857_v45 = vmax.f32 %v809_v41, 0.0  ;;  %v881_v46 = vmax.f32 %v833_v5, 0.0  ;;  %v1667_v47 = vpop.f32.mrb[4].mxu0  ;;  %v1691_v48 = vpop.f32.mrb[4].mxu1 }
 0x102   : > { %v1455_v18 = vpack.c.bf16 %v859_v43, %v858_v12  ;;  %v1515_v19 = vpack.c.bf16 %v883_v13, %v882_v42  ;;  %v546_v20 = vadd.f32 %v1667_v47, %v1919_v56  ;;  %v642_v23 = vadd.f32 %v1691_v48, %v1919_v56  ;;  %v537_v24 = vpop.f32.mrb[5].mxu0  ;;  %v633_v25 = vpop.f32.mrb[5].mxu1  ;;  %v1986_v13 = vld [vmem:[%s1866_s14 + $0x40] sm:$0xff]  }
 0x103   : > { %v1450_v26 = vpack.c.bf16 %v857_v45, %v856_v14  ;;  %v1510_v27 = vpack.c.bf16 %v881_v46, %v880_v17  ;;  %v538_v28 = vadd.f32 %v1919_v56, %v537_v24  ;;  %v634_v29 = vadd.f32 %v1919_v56, %v633_v25  ;;  %v1668_v30 = vpop.f32.mrb[6].mxu0  ;;  %v1692_v31 = vpop.f32.mrb[6].mxu1  ;;  %v1989_v14 = vld [vmem:[%s1866_s14 + $0xa0] sm:$0xff]  }
 0x104   : > { %1590 = vst [vmem:[%s1965_s20 + $0x8] sm:$0xff] %v1455_v18   ;;  %1602 = vst [vmem:[%s1965_s20 + $0x68] sm:$0xff] %v1515_v19   ;;  %v814_v34 = vadd.f32 %v1365_v52, %v546_v20  ;;  %v838_v41 = vadd.f32 %v1413_v53, %v642_v23  ;;  %v549_v5 = vadd.f32 %v1668_v30, %v1919_v56  ;;  %v540_v42 = vpop.f32.mrb[7].mxu0  ;;  %v636_v43 = vpop.f32.mrb[7].mxu1  ;;  %v1389_v48 = vunpack.c.l.bf16 %v1972_v32 }
 0x105   : > { %v645_v12 = vadd.f32 %v1692_v31, %v1919_v56  ;;  %1451 = vst [vmem:[%s1965_s20] sm:$0xff] %v1450_v26   ;;  %1601 = vst [vmem:[%s1965_s20 + $0x60] sm:$0xff] %v1510_v27   ;;  %v812_v17 = vadd.f32 %v1361_v54, %v538_v28  ;;  %v836_v52 = vadd.f32 %v1409_v55, %v634_v29  ;;  %v1437_v18 = vunpack.c.l.bf16 %v1975_v33 }
 0x106   : > { %v541_v53 = vadd.f32 %v1919_v56, %v540_v42  ;;  %v637_v45 = vadd.f32 %v1919_v56, %v636_v43  ;;  %v815_v46 = vadd.f32 %v1366_v57, %v549_v5  ;;  %v1385_v19 = vunpack.c.l.bf16 %v1986_v13 }
 0x107   : > { %v839_v47 = vadd.f32 %v1414_v58, %v645_v12  ;;  %v1433_v20 = vunpack.c.l.bf16 %v1989_v14  ;;  %v862_v23 = vmax.f32 %v814_v34, 0.0  ;;  %v886_v36 = vmax.f32 %v838_v41, 0.0 }
 0x108   : > { %v813_v54 = vadd.f32 %v1362_v59, %v541_v53  ;;  %v837_v55 = vadd.f32 %v1410_v60, %v637_v45  ;;  %v863_v57 = vmax.f32 %v815_v46, 0.0  ;;  %v860_v37 = vmax.f32 %v812_v17, 0.0 }
 0x109   : > { %v887_v24 = vmax.f32 %v839_v47, 0.0  ;;  %v884_v58 = vmax.f32 %v836_v52, 0.0  ;;  %v1671_v27 = vpop.f32.mrb[8].mxu0  ;;  %v1695_v38 = vpop.f32.mrb[8].mxu1 }
 0x10a   : > { %v861_v25 = vmax.f32 %v813_v54, 0.0  ;;  %v885_v26 = vmax.f32 %v837_v55, 0.0  ;;  %v1465_v59 = vpack.c.bf16 %v863_v57, %v862_v23  ;;  %v562_v39 = vadd.f32 %v1671_v27, %v1919_v56  ;;  %v553_v29 = vpop.f32.mrb[9].mxu0  ;;  %v649_v30 = vpop.f32.mrb[9].mxu1 }
 0x10b   : > { %v1525_v28 = vpack.c.bf16 %v887_v24, %v886_v36  ;;  %v658_v60 = vadd.f32 %v1695_v38, %v1919_v56  ;;  %v554_v41 = vadd.f32 %v1919_v56, %v553_v29  ;;  %v650_v5 = vadd.f32 %v1919_v56, %v649_v30  ;;  %v1672_v12 = vpop.f32.mrb[10].mxu0  ;;  %v1696_v42 = vpop.f32.mrb[10].mxu1 }
 0x10c   : > { %v1460_v31 = vpack.c.bf16 %v861_v25, %v860_v37  ;;  %v1520_v34 = vpack.c.bf16 %v885_v26, %v884_v58  ;;  %1592 = vst [vmem:[%s1965_s20 + $0x18] sm:$0xff] %v1465_v59   ;;  %v818_v43 = vadd.f32 %v1373_v63, %v562_v39  ;;  %v565_v52 = vadd.f32 %v1672_v12, %v1919_v56  ;;  %v556_v45 = vpop.f32.mrb[11].mxu0  ;;  %v652_v46 = vpop.f32.mrb[11].mxu1  ;;  %v2051_v12 = vld [vmem:[%s1866_s14 + $0xb8] sm:$0xff]  }
 0x10d   : > { %1604 = vst [vmem:[%s1965_s20 + $0x78] sm:$0xff] %v1525_v28   ;;  %v842_v17 = vadd.f32 %v1421_v0, %v658_v60  ;;  %v661_v53 = vadd.f32 %v1696_v42, %v1919_v56  ;;  %v816_v47 = vadd.f32 %v1369_v1, %v554_v41  ;;  %v840_v54 = vadd.f32 %v1417_v2, %v650_v5  ;;  %v2048_v5 = vld [vmem:[%s1866_s14 + $0x58] sm:$0xff]  }
 0x10e   : > { %1591 = vst [vmem:[%s1965_s20 + $0x10] sm:$0xff] %v1460_v31   ;;  %1603 = vst [vmem:[%s1965_s20 + $0x70] sm:$0xff] %v1520_v34   ;;  %v557_v55 = vadd.f32 %v1919_v56, %v556_v45  ;;  %v653_v63 = vadd.f32 %v1919_v56, %v652_v46  ;;  %v819_v0 = vadd.f32 %v1374_v7, %v565_v52  ;;  %v1390_v36 = vunpack.c.h.bf16 %v1972_v32  ;;  %v2062_v46 = vld [vmem:[%s1866_s14 + $0x50] sm:$0xff]  }
 0x10f   : > { %v843_v23 = vadd.f32 %v1422_v8, %v661_v53  ;;  %v1438_v57 = vunpack.c.h.bf16 %v1975_v33  ;;  %v1386_v24 = vunpack.c.h.bf16 %v1986_v13  ;;  %v1434_v37 = vunpack.c.h.bf16 %v1989_v14 }
 0x110   : > { %v817_v1 = vadd.f32 %v1370_v9, %v557_v55  ;;  %v841_v2 = vadd.f32 %v1418_v10, %v653_v63  ;;  %v866_v58 = vmax.f32 %v818_v43, 0.0  ;;  %v890_v44 = vmax.f32 %v842_v17, 0.0 }
 0x111   : > { %v867_v7 = vmax.f32 %v819_v0, 0.0  ;;  %v891_v25 = vmax.f32 %v843_v23, 0.0  ;;  %v864_v49 = vmax.f32 %v816_v47, 0.0  ;;  %v888_v8 = vmax.f32 %v840_v54, 0.0  ;;  %v1675_v38 = vpop.f32.mrb[12].mxu0  ;;  %v1699_v50 = vpop.f32.mrb[12].mxu1 }
 0x112   : > { %v865_v26 = vmax.f32 %v817_v1, 0.0  ;;  %v889_v27 = vmax.f32 %v841_v2, 0.0  ;;  %v578_v10 = vadd.f32 %v1675_v38, %v1919_v56  ;;  %v674_v59 = vadd.f32 %v1699_v50, %v1919_v56  ;;  %v569_v28 = vpop.f32.mrb[13].mxu0  ;;  %v665_v39 = vpop.f32.mrb[13].mxu1  ;;  %v2065_v47 = vld [vmem:[%s1866_s14 + $0xb0] sm:$0xff]  }
 0x113   : > { %v1475_v51 = vpack.c.bf16 %v867_v7, %v866_v58  ;;  %v1535_v9 = vpack.c.bf16 %v891_v25, %v890_v44  ;;  %v570_v30 = vadd.f32 %v1919_v56, %v569_v28  ;;  %v666_v31 = vadd.f32 %v1919_v56, %v665_v39  ;;  %v1676_v34 = vpop.f32.mrb[14].mxu0  ;;  %v1700_v41 = vpop.f32.mrb[14].mxu1 }
 0x114   : > { %v1470_v60 = vpack.c.bf16 %v865_v26, %v864_v49  ;;  %v1530_v29 = vpack.c.bf16 %v889_v27, %v888_v8  ;;  %v822_v42 = vadd.f32 %v1381_v15, %v578_v10  ;;  %v846_v43 = vadd.f32 %v1429_v16, %v674_v59  ;;  %v572_v53 = vpop.f32.mrb[15].mxu0  ;;  %v668_v45 = vpop.f32.mrb[15].mxu1 }
 0x115   : > { %1594 = vst [vmem:[%s1965_s20 + $0x28] sm:$0xff] %v1475_v51   ;;  %1606 = vst [vmem:[%s1965_s20 + $0x88] sm:$0xff] %v1535_v9   ;;  %v581_v17 = vadd.f32 %v1676_v34, %v1919_v56  ;;  %v677_v52 = vadd.f32 %v1700_v41, %v1919_v56  ;;  %v820_v54 = vadd.f32 %v1377_v21, %v570_v30  ;;  %v1397_v23 = vunpack.c.l.bf16 %v2048_v5 }
 0x116   : > { %1593 = vst [vmem:[%s1965_s20 + $0x20] sm:$0xff] %v1470_v60   ;;  %1605 = vst [vmem:[%s1965_s20 + $0x80] sm:$0xff] %v1530_v29   ;;  %v844_v15 = vadd.f32 %v1425_v22, %v666_v31  ;;  %v573_v16 = vadd.f32 %v1919_v56, %v572_v53  ;;  %v669_v55 = vadd.f32 %v1919_v56, %v668_v45  ;;  %v1445_v1 = vunpack.c.l.bf16 %v2051_v12 }
 0x117   : > { %v823_v63 = vadd.f32 %v1382_v35, %v581_v17  ;;  %v847_v0 = vadd.f32 %v1430_v40, %v677_v52  ;;  %v1393_v2 = vunpack.c.l.bf16 %v2062_v46  ;;  %v1441_v58 = vunpack.c.l.bf16 %v2065_v47 }
 0x118   : > { %v821_v21 = vadd.f32 %v1378_v6, %v573_v16  ;;  %v845_v22 = vadd.f32 %v1426_v11, %v669_v55  ;;  %v870_v44 = vmax.f32 %v822_v42, 0.0  ;;  %v894_v61 = vmax.f32 %v846_v43, 0.0 }
 0x119   : > { %v871_v35 = vmax.f32 %v823_v63, 0.0  ;;  %v895_v7 = vmax.f32 %v847_v0, 0.0  ;;  %v868_v62 = vmax.f32 %v820_v54, 0.0  ;;  %v892_v40 = vmax.f32 %v844_v15, 0.0  ;;  %v1679_v8 = vpop.f32.mrb[16].mxu0  ;;  %v1703_v3 = vpop.f32.mrb[16].mxu1 }
 0x11a   : > { %v869_v25 = vmax.f32 %v821_v21, 0.0  ;;  %v893_v49 = vmax.f32 %v845_v22, 0.0  ;;  %v594_v4 = vadd.f32 %v1679_v8, %v1919_v56  ;;  %v690_v11 = vadd.f32 %v1703_v3, %v1919_v56  ;;  %v585_v27 = vpop.f32.mrb[17].mxu0  ;;  %v681_v38 = vpop.f32.mrb[17].mxu1 }
 0x11b   : > { %v1485_v6 = vpack.c.bf16 %v871_v35, %v870_v44  ;;  %v1545_v26 = vpack.c.bf16 %v895_v7, %v894_v61  ;;  %v586_v9 = vadd.f32 %v1919_v56, %v585_v27  ;;  %v682_v10 = vadd.f32 %v1919_v56, %v681_v38  ;;  %v1680_v59 = vpop.f32.mrb[18].mxu0  ;;  %v1704_v28 = vpop.f32.mrb[18].mxu1 }
 0x11c   : > { %v1480_v50 = vpack.c.bf16 %v869_v25, %v868_v62  ;;  %v1540_v51 = vpack.c.bf16 %v893_v49, %v892_v40  ;;  %v826_v39 = vadd.f32 %v1389_v48, %v594_v4  ;;  %v850_v60 = vadd.f32 %v1437_v18, %v690_v11  ;;  %v588_v31 = vpop.f32.mrb[19].mxu0  ;;  %v684_v34 = vpop.f32.mrb[19].mxu1 }
 0x11d   : > { %1596 = vst [vmem:[%s1965_s20 + $0x38] sm:$0xff] %v1485_v6   ;;  %1608 = vst [vmem:[%s1965_s20 + $0x98] sm:$0xff] %v1545_v26   ;;  %v597_v29 = vadd.f32 %v1680_v59, %v1919_v56  ;;  %v693_v30 = vadd.f32 %v1704_v28, %v1919_v56  ;;  %v824_v41 = vadd.f32 %v1385_v19, %v586_v9  ;;  %v1398_v52 = vunpack.c.h.bf16 %v2048_v5 }
 0x11e   : > { %1595 = vst [vmem:[%s1965_s20 + $0x30] sm:$0xff] %v1480_v50   ;;  %1607 = vst [vmem:[%s1965_s20 + $0x90] sm:$0xff] %v1540_v51   ;;  %v848_v42 = vadd.f32 %v1433_v20, %v682_v10  ;;  %v589_v43 = vadd.f32 %v1919_v56, %v588_v31  ;;  %v685_v48 = vadd.f32 %v1919_v56, %v684_v34  ;;  %v1446_v53 = vunpack.c.h.bf16 %v2051_v12 }
 0x11f   : > { %v827_v18 = vadd.f32 %v1390_v36, %v597_v29  ;;  %v851_v17 = vadd.f32 %v1438_v57, %v693_v30  ;;  %v1394_v45 = vunpack.c.h.bf16 %v2062_v46  ;;  %v1442_v54 = vunpack.c.h.bf16 %v2065_v47 }
 0x120   : > { %v825_v19 = vadd.f32 %v1386_v24, %v589_v43  ;;  %v849_v20 = vadd.f32 %v1434_v37, %v685_v48  ;;  %v874_v15 = vmax.f32 %v826_v39, 0.0  ;;  %v898_v32 = vmax.f32 %v850_v60, 0.0 }
 0x121   : > { %v875_v36 = vmax.f32 %v827_v18, 0.0  ;;  %v899_v16 = vmax.f32 %v851_v17, 0.0  ;;  %v872_v33 = vmax.f32 %v824_v41, 0.0  ;;  %v896_v57 = vmax.f32 %v848_v42, 0.0  ;;  %v1683_v0 = vpop.f32.mrb[20].mxu0  ;;  %v1707_v13 = vpop.f32.mrb[20].mxu1 }
 0x122   : > { %v873_v55 = vmax.f32 %v825_v19, 0.0  ;;  %v897_v63 = vmax.f32 %v849_v20, 0.0  ;;  %v610_v14 = vadd.f32 %v1683_v0, %v1919_v56  ;;  %v706_v37 = vadd.f32 %v1707_v13, %v1919_v56  ;;  %v601_v22 = vpop.f32.mrb[21].mxu0  ;;  %v697_v44 = vpop.f32.mrb[21].mxu1 }
 0x123   : > { %v1495_v24 = vpack.c.bf16 %v875_v36, %v874_v15  ;;  %v1555_v21 = vpack.c.bf16 %v899_v16, %v898_v32  ;;  %v602_v7 = vadd.f32 %v1919_v56, %v601_v22  ;;  %v698_v62 = vadd.f32 %v1919_v56, %v697_v44  ;;  %v1684_v40 = vpop.f32.mrb[22].mxu0  ;;  %v1708_v25 = vpop.f32.mrb[22].mxu1 }
 0x124   : > { %v1490_v61 = vpack.c.bf16 %v873_v55, %v872_v33  ;;  %v1550_v35 = vpack.c.bf16 %v897_v63, %v896_v57  ;;  %v830_v49 = vadd.f32 %v1397_v23, %v610_v14  ;;  %v854_v8 = vadd.f32 %v1445_v1, %v706_v37  ;;  %v604_v26 = vpop.f32.mrb[23].mxu0  ;;  %v700_v4 = vpop.f32.mrb[23].mxu1 }
 0x125   : > { %1598 = vst [vmem:[%s1965_s20 + $0x48] sm:$0xff] %v1495_v24   ;;  %1610 = vst [vmem:[%s1965_s20 + $0xa8] sm:$0xff] %v1555_v21   ;;  %v613_v3 = vadd.f32 %v1684_v40, %v1919_v56  ;;  %v709_v6 = vadd.f32 %v1708_v25, %v1919_v56  ;;  %v828_v11 = vadd.f32 %v1393_v2, %v602_v7 }
 0x126   : > { %1597 = vst [vmem:[%s1965_s20 + $0x40] sm:$0xff] %v1490_v61   ;;  %1609 = vst [vmem:[%s1965_s20 + $0xa0] sm:$0xff] %v1550_v35   ;;  %v852_v27 = vadd.f32 %v1441_v58, %v698_v62  ;;  %v605_v5 = vadd.f32 %v1919_v56, %v604_v26  ;;  %v701_v23 = vadd.f32 %v1919_v56, %v700_v4  ;;  %v878_v51 = vmax.f32 %v830_v49, 0.0 }
 0x127   : > { %v831_v12 = vadd.f32 %v1398_v52, %v613_v3  ;;  %v855_v1 = vadd.f32 %v1446_v53, %v709_v6  ;;  %v902_v9 = vmax.f32 %v854_v8, 0.0  ;;  %v876_v2 = vmax.f32 %v828_v11, 0.0 }
 0x128   : > { %v829_v38 = vadd.f32 %v1394_v45, %v605_v5  ;;  %v853_v50 = vadd.f32 %v1442_v54, %v701_v23  ;;  %v900_v59 = vmax.f32 %v852_v27, 0.0 }
 0x129   : > { %v879_v10 = vmax.f32 %v831_v12, 0.0  ;;  %v903_v46 = vmax.f32 %v855_v1, 0.0 }
 0x12a   : > { %v877_v47 = vmax.f32 %v829_v38, 0.0  ;;  %v901_v58 = vmax.f32 %v853_v50, 0.0 }
 0x12b   : > { %v1505_v28 = vpack.c.bf16 %v879_v10, %v878_v51  ;;  %v1565_v39 = vpack.c.bf16 %v903_v46, %v902_v9 }
 0x12c   : > { %v1500_v60 = vpack.c.bf16 %v877_v47, %v876_v2  ;;  %v1560_v56 = vpack.c.bf16 %v901_v58, %v900_v59 }
 0x12d   : > { %1600 = vst [vmem:[%s1965_s20 + $0x58] sm:$0xff] %v1505_v28   ;;  %1612 = vst [vmem:[%s1965_s20 + $0xb8] sm:$0xff] %v1565_v39  }
 0x12e   : > { %1599 = vst [vmem:[%s1965_s20 + $0x50] sm:$0xff] %v1500_v60   ;;  %1611 = vst [vmem:[%s1965_s20 + $0xb0] sm:$0xff] %v1560_v56  }
 0x12f PF: > { %s14_s15 = sadd.s32 1, %s1771_s15  }
 0x130   : > { %p11_p4 = scmp.ge.s32.totalorder %s14_s15, 5  }
 0x132   :  { %13 = sbr.rel (!%p11_p4) target bundleno = 1 (0x1), region = 69 }

// kernel: _lambda_.21
= control target key start
LH: loop header
LB: loop body
LE: loop exit
PB: predicated region body
PF: predicated region fallthrough
CT: control target
= control target key end

     0   :  { %s3663_s12 = smov 0   ;;  %s3665_s13 = smov 0   ;;  %s4046_s0 = inlined_call_operand.vmem [shape: bf16[2,3,832,128], index: 0, kind: input, shape index: {}]   ;;  %s4047_s1 = inlined_call_operand.vmem [shape: bf16[9,128,128], index: 1, kind: input, shape index: {}]   ;;  %s4048_s2 = inlined_call_operand.vmem [shape: f32[1,128], index: 2, kind: input, shape index: {}]   ;;  %s4049_s3 = inlined_call_operand.vmem [shape: bf16[2,24,24,128], index: 3, kind: output, shape index: {}]  }
   0x1   :  { %s3667_s14 = smov 0   ;;  %s3669_s15 = smov 0  }
   0x2   :  { %s3671_s16 = smov 0  }
   0x3 LB: > { %s22_s17 = sadd.s32 1, %s3633_s14  ;;  %s25_s18 = sadd.s32 1, %s3637_s15  ;;  %s3641_s16 = sphi %s3671_s16, %s13_s16   ;;  %s3637_s15 = sphi %s3669_s15, %s4053_s15   ;;  %s3633_s14 = sphi %s3667_s14, %s4052_s14   ;;  %s3629_s13 = sphi %s3665_s13, %s4051_s13   ;;  %s3625_s12 = sphi %s3663_s12, %s4050_s12  }
   0x4   : > { %p23_p0 = scmp.ge.s32.totalorder %s22_s17, 6  ;;  %p2524_p1 = scmp.ge.s32.totalorder %s3641_s16, 1 }
   0x5   : > { %p151_p2 = scmp.lt.s32.totalorder %s3641_s16, 13 }
   0x6   : > { %s4055_s17 = smov (%p23_p0, %s22_s17), 0  ;;  %s4057_s18 = smov (!%p23_p0, %s25_s18), %s3637_s15 }
   0x7   : > { %p152_p3 = pnand %p2524_p1, %p151_p2  ;;  %p27_p4 = scmp.ge.s32.totalorder %s4057_s18, 2 }
   0x8   : > { %v3459_v0 = vld [vmem:[%s4047_s1 + $0x40] sm:$0xff] (!%p152_p3)   ;;  %p180_p5 = scmp.lt.s32.totalorder (!%p152_p3), %s3629_s13, 1  ;;  %s3702_s23 = sshll.u32 (!%p152_p3), %s3625_s12, 7  ;;  %v3461_v2 = vld [vmem:[%s4047_s1 + $0x48] sm:$0xff] (!%p152_p3)   ;;  %v3463_v4 = vld [vmem:[%s4047_s1 + $0x50] sm:$0xff] (!%p152_p3)  }
   0x9   : > { %s4059_s18 = smov (%p27_p4, %s4057_s18), 0  ;;  %155 = sbr.rel (%p152_p3) target bundleno = 403 (0x193), region = 32 }
   0xa   : > { %v3460_v1 = vld [vmem:[%s4047_s1] sm:$0xff] (!%p152_p3)   ;;  %3112 = vmatprep.subr.bf16.mxu0 (!%p152_p3), %v3459_v0  ;;  %v3462_v3 = vld [vmem:[%s4047_s1 + $0x8] sm:$0xff] (!%p152_p3)   ;;  %v3464_v5 = vld [vmem:[%s4047_s1 + $0x10] sm:$0xff] (!%p152_p3)   ;;  %s198_s5 = sshra.s32 (!%p152_p3), %s3702_s23, 3  ;;  %s1598_s19 = sadd.s32 (!%p152_p3), 64, %s3702_s23 }
   0xb   : > { %3144 = vmatprep.subr.bf16.mxu1 (!%p152_p3), %v3460_v1  ;;  %3113 = vmatpush3.bf16.msra.mxu0 (!%p152_p3), %v3459_v0  ;;  %v3465_v6 = vld [vmem:[%s4047_s1 + $0x58] sm:$0xff] (!%p152_p3)   ;;  %s2529_s9 = sshll.u32 (!%p152_p3), %s198_s5, 2  ;;  %s1599_s24 = sshra.s32 (!%p152_p3), %s1598_s19, 3  ;;  %v3467_v8 = vld [vmem:[%s4047_s1 + $0x60] sm:$0xff] (!%p152_p3)   ;;  %v3469_v10 = vld [vmem:[%s4047_s1 + $0x68] sm:$0xff] (!%p152_p3)  }
   0xc   : > { %3145 = vmatpush3.bf16.msra.mxu1 (!%p152_p3), %v3460_v1  ;;  %3114 = vmatprep.subr.bf16.mxu0 (!%p152_p3), %v3461_v2  ;;  %v3466_v7 = vld [vmem:[%s4047_s1 + $0x18] sm:$0xff] (!%p152_p3)   ;;  %s2775_s25 = sshll.u32 (!%p152_p3), %s1599_s24, 2  ;;  %v3468_v9 = vld [vmem:[%s4047_s1 + $0x20] sm:$0xff] (!%p152_p3)   ;;  %v3470_v11 = vld [vmem:[%s4047_s1 + $0x28] sm:$0xff] (!%p152_p3)   ;;  %s885_s24 = sadd.s32 (!%p152_p3), 32, %s3702_s23 }
   0xd   : > { %3146 = vmatprep.subr.bf16.mxu1 (!%p152_p3), %v3462_v3  ;;  %v3471_v14 = vld [vmem:[%s4047_s1 + $0x70] sm:$0xff] (!%p152_p3)   ;;  %v3473_v16 = vld [vmem:[%s4047_s1 + $0x78] sm:$0xff] (!%p152_p3)   ;;  %v3479_v19 = vld [vmem:[%s4047_s1 + $0x80] sm:$0xff] (!%p152_p3)   ;;  %s886_s27 = sshra.s32 (!%p152_p3), %s885_s24, 3 }
   0xe   : > { %v3472_v15 = vld [vmem:[%s4047_s1 + $0x30] sm:$0xff] (!%p152_p3)   ;;  %v3474_v17 = vld [vmem:[%s4047_s1 + $0x38] sm:$0xff] (!%p152_p3)   ;;  %v3480_v20 = vld [vmem:[%s4047_s1 + $0xc0] sm:$0xff] (!%p152_p3)  }
   0xf   : > { %3115 = vmatpush3.bf16.msra.mxu0 (!%p152_p3), %v3461_v2  ;;  %v3481_v22 = vld [vmem:[%s4047_s1 + $0x88] sm:$0xff] (!%p152_p3)   ;;  %v3487_v27 = vld [vmem:[%s4047_s1 + $0x90] sm:$0xff] (!%p152_p3)   ;;  %v3489_v30 = vld [vmem:[%s4047_s1 + $0x98] sm:$0xff] (!%p152_p3)  }
  0x10   : > { %s4061_s13 = smov (!%p180_p5, %s3629_s13), 1  ;;  %3147 = vmatpush3.bf16.msra.mxu1 %v3462_v3  ;;  %3116 = vmatprep.subr.bf16.mxu0 %v3463_v4  ;;  %v3482_v23 = vld [vmem:[%s4047_s1 + $0xc8] sm:$0xff]   ;;  %v3488_v28 = vld [vmem:[%s4047_s1 + $0xd0] sm:$0xff]   ;;  %v3490_v31 = vld [vmem:[%s4047_s1 + $0xd8] sm:$0xff]  }
  0x11   : > { %s3416_s6 = smul.u32 1248, %s4061_s13  ;;  %3148 = vmatprep.subr.bf16.mxu1 %v3464_v5  ;;  %v3495_v35 = vld [vmem:[%s4047_s1 + $0xa0] sm:$0xff]   ;;  %v3497_v38 = vld [vmem:[%s4047_s1 + $0xa8] sm:$0xff]   ;;  %v3503_v43 = vld [vmem:[%s4047_s1 + $0xb0] sm:$0xff]  }
  0x12   : > { %v3496_v36 = vld [vmem:[%s4047_s1 + $0xe0] sm:$0xff]   ;;  %v3498_v39 = vld [vmem:[%s4047_s1 + $0xe8] sm:$0xff]   ;;  %v3504_v44 = vld [vmem:[%s4047_s1 + $0xf0] sm:$0xff]   ;;  %s3418_s10 = smul.u32 72, %s4061_s13 }
  0x13   : > { %s3730_s22 = scalar_lea.vmem %s4046_s0, %s3416_s6  ;;  %3117 = vmatpush3.bf16.msra.mxu0 %v3463_v4  ;;  %s2644_s6 = sshll.u32 %s886_s27, 2  ;;  %v3505_v46 = vld [vmem:[%s4047_s1 + $0xb8] sm:$0xff]   ;;  %v3511_v51 = vld [vmem:[%s4047_s1 + $0x100] sm:$0xff]   ;;  %v3513_v54 = vld [vmem:[%s4047_s1 + $0x108] sm:$0xff]  }
  0x14   : > { %3149 = vmatpush3.bf16.msra.mxu1 %v3464_v5  ;;  %3118 = vmatprep.subr.bf16.mxu0 %v3465_v6  ;;  %s3736_s28 = scalar_lea.vmem %s3730_s22, %s2775_s25  ;;  %s3742_s4 = scalar_lea.vmem %s3730_s22, %s2529_s9  ;;  %v3506_v47 = vld [vmem:[%s4047_s1 + $0xf8] sm:$0xff]   ;;  %v3512_v52 = vld [vmem:[%s4047_s1 + $0x140] sm:$0xff]   ;;  %v3514_v55 = vld [vmem:[%s4047_s1 + $0x148] sm:$0xff]  }
  0x15   : > { %3150 = vmatprep.subr.bf16.mxu1 %v3466_v7  ;;  %v3475_v12 = vld [vmem:[%s3742_s4 + $0x1a0] sm:$0xff]   ;;  %v3477_v18 = vld [vmem:[%s3742_s4 + $0x1a8] sm:$0xff]   ;;  %v3483_v24 = vld [vmem:[%s3742_s4 + $0x1b0] sm:$0xff]   ;;  %s3812_s11 = scalar_lea.vmem %s3730_s22, %s2644_s6 }
  0x16   : > { %v3476_v13 = vld [vmem:[%s3742_s4] sm:$0xff]   ;;  %3128 = vmatprep.mubr.bf16.mxu0 %v3475_v12  ;;  %v3478_v21 = vld [vmem:[%s3742_s4 + $0x8] sm:$0xff]   ;;  %v3484_v25 = vld [vmem:[%s3742_s4 + $0x10] sm:$0xff]  }
  0x17   : > { %3119 = vmatpush3.bf16.msra.mxu0 %v3465_v6  ;;  %3160 = vmatprep.mubr.bf16.mxu1 %v3476_v13  ;;  %v3485_v26 = vld [vmem:[%s3742_s4 + $0x1b8] sm:$0xff]   ;;  %v3491_v32 = vld [vmem:[%s3742_s4 + $0x1c0] sm:$0xff]   ;;  %v3493_v34 = vld [vmem:[%s3742_s4 + $0x1c8] sm:$0xff]  }
  0x18   : > { %3151 = vmatpush3.bf16.msra.mxu1 %v3466_v7  ;;  %3120 = vmatprep.subr.bf16.mxu0 %v3467_v8  ;;  %v3486_v29 = vld [vmem:[%s3742_s4 + $0x18] sm:$0xff]   ;;  %v3492_v33 = vld [vmem:[%s3742_s4 + $0x20] sm:$0xff]   ;;  %v3494_v37 = vld [vmem:[%s3742_s4 + $0x28] sm:$0xff]  }
  0x19   : > { %3152 = vmatprep.subr.bf16.mxu1 %v3468_v9  ;;  %v3499_v40 = vld [vmem:[%s3742_s4 + $0x1d0] sm:$0xff]   ;;  %v3501_v42 = vld [vmem:[%s3742_s4 + $0x1d8] sm:$0xff]   ;;  %v3507_v48 = vld [vmem:[%s3742_s4 + $0x340] sm:$0xff]  }
  0x1a   : > { %v3500_v41 = vld [vmem:[%s3742_s4 + $0x30] sm:$0xff]   ;;  %v3502_v45 = vld [vmem:[%s3742_s4 + $0x38] sm:$0xff]   ;;  %v3508_v49 = vld [vmem:[%s3812_s11] sm:$0xff]  }
  0x1b   : > { %3121 = vmatpush3.bf16.msra.mxu0 %v3467_v8  ;;  %v3509_v50 = vld [vmem:[%s3742_s4 + $0x348] sm:$0xff]   ;;  %v3515_v56 = vld [vmem:[%s3742_s4 + $0x350] sm:$0xff]   ;;  %v3517_v58 = vld [vmem:[%s3742_s4 + $0x358] sm:$0xff]  }
  0x1c   : > { %3153 = vmatpush3.bf16.msra.mxu1 %v3468_v9  ;;  %3122 = vmatprep.subr.bf16.mxu0 %v3469_v10  ;;  %v3510_v53 = vld [vmem:[%s3812_s11 + $0x8] sm:$0xff]   ;;  %v3516_v57 = vld [vmem:[%s3812_s11 + $0x10] sm:$0xff]   ;;  %v3518_v61 = vld [vmem:[%s3812_s11 + $0x18] sm:$0xff]  }
  0x1d   : > { %3154 = vmatprep.subr.bf16.mxu1 %v3470_v11  ;;  %v3519_v59 = vld [vmem:[%s4047_s1 + $0x110] sm:$0xff]   ;;  %v3521_v62 = vld [vmem:[%s4047_s1 + $0x118] sm:$0xff]   ;;  %v3523_v0 = vld [vmem:[%s3742_s4 + $0x360] sm:$0xff]  }
  0x1e   : > { %v3520_v60 = vld [vmem:[%s4047_s1 + $0x150] sm:$0xff]   ;;  %v3522_v63 = vld [vmem:[%s4047_s1 + $0x158] sm:$0xff]   ;;  %v3524_v1 = vld [vmem:[%s3812_s11 + $0x20] sm:$0xff]  }
  0x1f   : > { %3123 = vmatpush3.bf16.msra.mxu0 %v3469_v10  ;;  %v3525_v2 = vld [vmem:[%s3742_s4 + $0x368] sm:$0xff]   ;;  %v3527_v3 = vld [vmem:[%s4047_s1 + $0x120] sm:$0xff]   ;;  %v3531_v8 = vld [vmem:[%s3742_s4 + $0x370] sm:$0xff]  }
  0x20   : > { %3155 = vmatpush3.bf16.msra.mxu1 %v3470_v11  ;;  %3124 = vmatprep.subr.bf16.mxu0 %v3471_v14  ;;  %v3528_v4 = vld [vmem:[%s4047_s1 + $0x160] sm:$0xff]   ;;  %v3526_v5 = vld [vmem:[%s3812_s11 + $0x28] sm:$0xff]   ;;  %v3532_v9 = vld [vmem:[%s3812_s11 + $0x30] sm:$0xff]  }
  0x21   : > { %3156 = vmatprep.subr.bf16.mxu1 %v3472_v15  ;;  %v3529_v6 = vld [vmem:[%s4047_s1 + $0x128] sm:$0xff]   ;;  %v3533_v10 = vld [vmem:[%s3742_s4 + $0x378] sm:$0xff]   ;;  %v3535_v11 = vld [vmem:[%s4047_s1 + $0x130] sm:$0xff]  }
  0x22   : > { %v3530_v7 = vld [vmem:[%s4047_s1 + $0x168] sm:$0xff]   ;;  %v3536_v12 = vld [vmem:[%s4047_s1 + $0x170] sm:$0xff]   ;;  %v3534_v13 = vld [vmem:[%s3812_s11 + $0x38] sm:$0xff]  }
  0x23   : > { %3125 = vmatpush3.bf16.msra.mxu0 %v3471_v14  ;;  %v3537_v14 = vld [vmem:[%s4047_s1 + $0x138] sm:$0xff]  }
  0x24   : > { %3157 = vmatpush3.bf16.msra.mxu1 %v3472_v15  ;;  %3126 = vmatprep.subr.bf16.mxu0 %v3473_v16  ;;  %v3538_v15 = vld [vmem:[%s4047_s1 + $0x178] sm:$0xff]  }
  0x25   : > { %3158 = vmatprep.subr.bf16.mxu1 %v3474_v17 }
  0x27   : > { %3127 = vmatpush3.bf16.msra.mxu0 %v3473_v16  ;;  %v3539_v16 = vld [vmem:[%s3812_s11 + $0x1a0] sm:$0xff]  }
  0x28   : > { %3159 = vmatpush3.bf16.msra.mxu1 %v3474_v17  ;;  %3176 = vmatprep.subr.bf16.mxu0 %v3479_v19  ;;  %v3540_v17 = vld [vmem:[%s3812_s11 + $0x340] sm:$0xff]  }
  0x29   : > { %3208 = vmatprep.subr.bf16.mxu1 %v3480_v20 }
  0x2a   : > { %3129 = vmatmul.mubr.bf16.vlgmr.msra.gmra.mrb[0].mxu0 %v3477_v18  ;;  %v3541_v18 = vld [vmem:[%s3812_s11 + $0x1a8] sm:$0xff]  }
  0x2b   : > { %3161 = vmatmul.mubr.bf16.vlgmr.msra.gmra.mrb[0].mxu1 %v3478_v21  ;;  %3177 = vmatpush3.bf16.msra.mxu0 %v3479_v19  ;;  %v3543_v19 = vld [vmem:[%s4047_s1 + $0x180] sm:$0xff]   ;;  %v3542_v21 = vld [vmem:[%s3812_s11 + $0x348] sm:$0xff]  }
  0x2c   : > { %3209 = vmatpush3.bf16.msra.mxu1 %v3480_v20  ;;  %3178 = vmatprep.subr.bf16.mxu0 %v3481_v22  ;;  %v3544_v20 = vld [vmem:[%s4047_s1 + $0x1c0] sm:$0xff]  }
  0x2d   : > { %3210 = vmatprep.subr.bf16.mxu1 %v3482_v23  ;;  %3132 = vmatprep.mubr.bf16.mxu0 %v3483_v24  ;;  %v3547_v24 = vld [vmem:[%s3812_s11 + $0x1b0] sm:$0xff]  }
  0x2e   : > { %3164 = vmatprep.mubr.bf16.mxu1 %v3484_v25  ;;  %v3548_v25 = vld [vmem:[%s3812_s11 + $0x350] sm:$0xff]  }
  0x2f   : > { %3179 = vmatpush3.bf16.msra.mxu0 %v3481_v22  ;;  %v3545_v22 = vld [vmem:[%s4047_s1 + $0x188] sm:$0xff]  }
  0x30   : > { %3211 = vmatpush3.bf16.msra.mxu1 %v3482_v23  ;;  %3180 = vmatprep.subr.bf16.mxu0 %v3487_v27  ;;  %v3546_v23 = vld [vmem:[%s4047_s1 + $0x1c8] sm:$0xff]  }
  0x31   : > { %3212 = vmatprep.subr.bf16.mxu1 %v3488_v28 }
  0x32   : > { %3133 = vmatmul.mubr.bf16.gmra.mrb[4].mxu0 %v3485_v26  ;;  %v3549_v26 = vld [vmem:[%s3812_s11 + $0x1b8] sm:$0xff]  }
  0x33   : > { %3165 = vmatmul.mubr.bf16.gmra.mrb[4].mxu1 %v3486_v29  ;;  %3181 = vmatpush3.bf16.msra.mxu0 %v3487_v27  ;;  %v3551_v27 = vld [vmem:[%s4047_s1 + $0x190] sm:$0xff]   ;;  %v3550_v29 = vld [vmem:[%s3812_s11 + $0x358] sm:$0xff]  }
  0x34   : > { %3213 = vmatpush3.bf16.msra.mxu1 %v3488_v28  ;;  %3182 = vmatprep.subr.bf16.mxu0 %v3489_v30  ;;  %v3552_v28 = vld [vmem:[%s4047_s1 + $0x1d0] sm:$0xff]  }
  0x35   : > { %3214 = vmatprep.subr.bf16.mxu1 %v3490_v31  ;;  %3136 = vmatprep.mubr.bf16.mxu0 %v3491_v32  ;;  %v3555_v32 = vld [vmem:[%s3812_s11 + $0x1c0] sm:$0xff]  }
  0x36   : > { %3168 = vmatprep.mubr.bf16.mxu1 %v3492_v33  ;;  %v3556_v33 = vld [vmem:[%s3812_s11 + $0x360] sm:$0xff]  }
  0x37   : > { %3183 = vmatpush3.bf16.msra.mxu0 %v3489_v30  ;;  %v3553_v30 = vld [vmem:[%s4047_s1 + $0x198] sm:$0xff]  }
  0x38   : > { %3215 = vmatpush3.bf16.msra.mxu1 %v3490_v31  ;;  %3184 = vmatprep.subr.bf16.mxu0 %v3495_v35  ;;  %v3554_v31 = vld [vmem:[%s4047_s1 + $0x1d8] sm:$0xff]  }
  0x39   : > { %3216 = vmatprep.subr.bf16.mxu1 %v3496_v36 }
  0x3a   : > { %3137 = vmatmul.mubr.bf16.gmra.mrb[8].mxu0 %v3493_v34  ;;  %v3557_v34 = vld [vmem:[%s3812_s11 + $0x1c8] sm:$0xff]  }
  0x3b   : > { %3169 = vmatmul.mubr.bf16.gmra.mrb[8].mxu1 %v3494_v37  ;;  %3185 = vmatpush3.bf16.msra.mxu0 %v3495_v35  ;;  %v3559_v35 = vld [vmem:[%s4047_s1 + $0x1a0] sm:$0xff]   ;;  %v3558_v37 = vld [vmem:[%s3812_s11 + $0x368] sm:$0xff]  }
  0x3c   : > { %3217 = vmatpush3.bf16.msra.mxu1 %v3496_v36  ;;  %3186 = vmatprep.subr.bf16.mxu0 %v3497_v38  ;;  %v3560_v36 = vld [vmem:[%s4047_s1 + $0x1e0] sm:$0xff]  }
  0x3d   : > { %3218 = vmatprep.subr.bf16.mxu1 %v3498_v39  ;;  %3140 = vmatprep.mubr.bf16.mxu0 %v3499_v40  ;;  %v3563_v40 = vld [vmem:[%s3812_s11 + $0x1d0] sm:$0xff]  }
  0x3e   : > { %3172 = vmatprep.mubr.bf16.mxu1 %v3500_v41  ;;  %v3564_v41 = vld [vmem:[%s3812_s11 + $0x370] sm:$0xff]  }
  0x3f   : > { %3187 = vmatpush3.bf16.msra.mxu0 %v3497_v38  ;;  %v3561_v38 = vld [vmem:[%s4047_s1 + $0x1a8] sm:$0xff]  }
  0x40   : > { %3219 = vmatpush3.bf16.msra.mxu1 %v3498_v39  ;;  %3188 = vmatprep.subr.bf16.mxu0 %v3503_v43  ;;  %v3562_v39 = vld [vmem:[%s4047_s1 + $0x1e8] sm:$0xff]  }
  0x41   : > { %3220 = vmatprep.subr.bf16.mxu1 %v3504_v44 }
  0x42   : > { %3141 = vmatmul.mubr.bf16.gmra.mrb[12].mxu0 %v3501_v42  ;;  %v3565_v42 = vld [vmem:[%s3812_s11 + $0x1d8] sm:$0xff]  }
  0x43   : > { %3173 = vmatmul.mubr.bf16.gmra.mrb[12].mxu1 %v3502_v45  ;;  %3189 = vmatpush3.bf16.msra.mxu0 %v3503_v43  ;;  %v3567_v43 = vld [vmem:[%s4047_s1 + $0x1b0] sm:$0xff]   ;;  %v3566_v45 = vld [vmem:[%s3812_s11 + $0x378] sm:$0xff]  }
  0x44   : > { %3221 = vmatpush3.bf16.msra.mxu1 %v3504_v44  ;;  %3190 = vmatprep.subr.bf16.mxu0 %v3505_v46  ;;  %v3568_v44 = vld [vmem:[%s4047_s1 + $0x1f0] sm:$0xff]  }
  0x45   : > { %3222 = vmatprep.subr.bf16.mxu1 %v3506_v47  ;;  %3192 = vmatprep.mubr.bf16.mxu0 %v3507_v48  ;;  %v3571_v48 = vld [vmem:[%s3736_s28] sm:$0xff]  }
  0x46   : > { %3224 = vmatprep.mubr.bf16.mxu1 %v3508_v49  ;;  %v3572_v49 = vld [vmem:[%s3736_s28 + $0x1a0] sm:$0xff]  }
  0x47   : > { %3191 = vmatpush3.bf16.msra.mxu0 %v3505_v46  ;;  %v3569_v46 = vld [vmem:[%s4047_s1 + $0x1b8] sm:$0xff]  }
  0x48   : > { %3223 = vmatpush3.bf16.msra.mxu1 %v3506_v47  ;;  %3240 = vmatprep.subr.bf16.mxu0 %v3511_v51  ;;  %v3570_v47 = vld [vmem:[%s4047_s1 + $0x1f8] sm:$0xff]  }
  0x49   : > { %3272 = vmatprep.subr.bf16.mxu1 %v3512_v52 }
  0x4a   : > { %3193 = vmatmul.mubr.bf16.vlgmr.msra.gmra.mrb[16].mxu0 %v3509_v50  ;;  %v3575_v50 = vld [vmem:[%s4047_s1 + $0x200] sm:$0xff]  }
  0x4b   : > { %3225 = vmatmul.mubr.bf16.vlgmr.msra.gmra.mrb[16].mxu1 %v3510_v53  ;;  %3241 = vmatpush3.bf16.msra.mxu0 %v3511_v51  ;;  %v3573_v51 = vld [vmem:[%s3736_s28 + $0x8] sm:$0xff]  }
  0x4c   : > { %3273 = vmatpush3.bf16.msra.mxu1 %v3512_v52  ;;  %3242 = vmatprep.subr.bf16.mxu0 %v3513_v54  ;;  %v3574_v52 = vld [vmem:[%s3736_s28 + $0x1a8] sm:$0xff]  }
  0x4d   : > { %3274 = vmatprep.subr.bf16.mxu1 %v3514_v55  ;;  %3196 = vmatprep.mubr.bf16.mxu0 %v3515_v56  ;;  %v3576_v53 = vld [vmem:[%s4047_s1 + $0x208] sm:$0xff]   ;;  %v3581_v56 = vld [vmem:[%s4047_s1 + $0x210] sm:$0xff]  }
  0x4e   : > { %3228 = vmatprep.mubr.bf16.mxu1 %v3516_v57  ;;  %v3579_v57 = vld [vmem:[%s3736_s28 + $0x18] sm:$0xff]  }
  0x4f   : > { %3243 = vmatpush3.bf16.msra.mxu0 %v3513_v54  ;;  %v3577_v54 = vld [vmem:[%s3736_s28 + $0x10] sm:$0xff]  }
  0x50   : > { %3275 = vmatpush3.bf16.msra.mxu1 %v3514_v55  ;;  %3244 = vmatprep.subr.bf16.mxu0 %v3519_v59  ;;  %v3578_v55 = vld [vmem:[%s3736_s28 + $0x1b0] sm:$0xff]  }
  0x51   : > { %3276 = vmatprep.subr.bf16.mxu1 %v3520_v60 }
  0x52   : > { %3197 = vmatmul.mubr.bf16.gmra.mrb[20].mxu0 %v3517_v58  ;;  %v3580_v58 = vld [vmem:[%s3736_s28 + $0x1b8] sm:$0xff]  }
  0x53   : > { %3229 = vmatmul.mubr.bf16.gmra.mrb[20].mxu1 %v3518_v61  ;;  %3245 = vmatpush3.bf16.msra.mxu0 %v3519_v59  ;;  %v3582_v59 = vld [vmem:[%s4047_s1 + $0x218] sm:$0xff]   ;;  %v3584_v61 = vld [vmem:[%s3736_s28 + $0x1c0] sm:$0xff]  }
  0x54   : > { %3277 = vmatpush3.bf16.msra.mxu1 %v3520_v60  ;;  %3246 = vmatprep.subr.bf16.mxu0 %v3521_v62  ;;  %v3583_v60 = vld [vmem:[%s3736_s28 + $0x20] sm:$0xff]  }
  0x55   : > { %3278 = vmatprep.subr.bf16.mxu1 %v3522_v63  ;;  %3200 = vmatprep.mubr.bf16.mxu0 %v3523_v0  ;;  %v3586_v0 = vld [vmem:[%s3736_s28 + $0x1c8] sm:$0xff]  }
  0x56   : > { %3232 = vmatprep.mubr.bf16.mxu1 %v3524_v1  ;;  %v3588_v1 = vld [vmem:[%s4047_s1 + $0x228] sm:$0xff]  }
  0x57   : > { %3247 = vmatpush3.bf16.msra.mxu0 %v3521_v62  ;;  %v3587_v62 = vld [vmem:[%s4047_s1 + $0x220] sm:$0xff]  }
  0x58   : > { %3279 = vmatpush3.bf16.msra.mxu1 %v3522_v63  ;;  %3248 = vmatprep.subr.bf16.mxu0 %v3527_v3  ;;  %v3585_v63 = vld [vmem:[%s3736_s28 + $0x28] sm:$0xff]  }
  0x59   : > { %3280 = vmatprep.subr.bf16.mxu1 %v3528_v4 }
  0x5a   : > { %3201 = vmatmul.mubr.bf16.gmra.mrb[24].mxu0 %v3525_v2  ;;  %v3589_v2 = vld [vmem:[%s3736_s28 + $0x30] sm:$0xff]  }
  0x5b   : > { %3233 = vmatmul.mubr.bf16.gmra.mrb[24].mxu1 %v3526_v5  ;;  %3249 = vmatpush3.bf16.msra.mxu0 %v3527_v3  ;;  %v3590_v3 = vld [vmem:[%s3736_s28 + $0x1d0] sm:$0xff]   ;;  %v3591_v5 = vld [vmem:[%s3736_s28 + $0x38] sm:$0xff]  }
  0x5c   : > { %3281 = vmatpush3.bf16.msra.mxu1 %v3528_v4  ;;  %3250 = vmatprep.subr.bf16.mxu0 %v3529_v6  ;;  %v3593_v4 = vld [vmem:[%s4047_s1 + $0x230] sm:$0xff]  }
  0x5d   : > { %3282 = vmatprep.subr.bf16.mxu1 %v3530_v7  ;;  %3204 = vmatprep.mubr.bf16.mxu0 %v3531_v8  ;;  %v3595_v8 = vld [vmem:[%s3736_s28 + $0x340] sm:$0xff]  }
  0x5e   : > { %3236 = vmatprep.mubr.bf16.mxu1 %v3532_v9  ;;  %v3596_v9 = vld [vmem:[%s3736_s28 + $0x360] sm:$0xff]  }
  0x5f   : > { %3251 = vmatpush3.bf16.msra.mxu0 %v3529_v6  ;;  %v3592_v6 = vld [vmem:[%s3736_s28 + $0x1d8] sm:$0xff]  }
  0x60   : > { %3283 = vmatpush3.bf16.msra.mxu1 %v3530_v7  ;;  %3252 = vmatprep.subr.bf16.mxu0 %v3535_v11  ;;  %v3594_v7 = vld [vmem:[%s4047_s1 + $0x238] sm:$0xff]  }
  0x61   : > { %3284 = vmatprep.subr.bf16.mxu1 %v3536_v12 }
  0x62   : > { %3205 = vmatmul.mubr.bf16.gmra.mrb[28].mxu0 %v3533_v10  ;;  %v3597_v10 = vld [vmem:[%s3736_s28 + $0x348] sm:$0xff]  }
  0x63   : > { %3237 = vmatmul.mubr.bf16.gmra.mrb[28].mxu1 %v3534_v13  ;;  %3253 = vmatpush3.bf16.msra.mxu0 %v3535_v11  ;;  %v3598_v11 = vld [vmem:[%s3736_s28 + $0x368] sm:$0xff]   ;;  %v3600_v13 = vld [vmem:[%s3736_s28 + $0x370] sm:$0xff]  }
  0x64   : > { %3285 = vmatpush3.bf16.msra.mxu1 %v3536_v12  ;;  %3254 = vmatprep.subr.bf16.mxu0 %v3537_v14  ;;  %v3599_v12 = vld [vmem:[%s3736_s28 + $0x350] sm:$0xff]  }
  0x65   : > { %3286 = vmatprep.subr.bf16.mxu1 %v3538_v15  ;;  %3256 = vmatprep.mubr.bf16.mxu0 %v3539_v16 }
  0x66   : > { %3288 = vmatprep.mubr.bf16.mxu1 %v3540_v17 }
  0x67   : > { %3255 = vmatpush3.bf16.msra.mxu0 %v3537_v14  ;;  %v3601_v14 = vld [vmem:[%s3736_s28 + $0x358] sm:$0xff]  }
  0x68   : > { %3287 = vmatpush3.bf16.msra.mxu1 %v3538_v15  ;;  %3304 = vmatprep.subr.bf16.mxu0 %v3543_v19  ;;  %v3602_v15 = vld [vmem:[%s3736_s28 + $0x378] sm:$0xff]   ;;  %s2526_s28 = sshll.u32 %s3625_s12, 2 }
  0x69   : > { %3336 = vmatprep.subr.bf16.mxu1 %v3544_v20  ;;  %p188_p6 = scmp.lt.s32.totalorder %s2526_s28, 23 }
  0x6a   : > { %3257 = vmatmul.mubr.bf16.vlgmr.msra.gmra.mrb[32].mxu0 %v3541_v18 }
  0x6b   : > { %3289 = vmatmul.mubr.bf16.vlgmr.msra.gmra.mrb[32].mxu1 %v3542_v21  ;;  %3305 = vmatpush3.bf16.msra.mxu0 %v3543_v19  ;;  %s4063_s28 = smov (!%p188_p6, %s2526_s28), 23 }
  0x6c   : > { %3337 = vmatpush3.bf16.msra.mxu1 %v3544_v20  ;;  %3306 = vmatprep.subr.bf16.mxu0 %v3545_v22  ;;  %s3417_s12 = smul.u32 3, %s4063_s28 }
  0x6d   : > { %3338 = vmatprep.subr.bf16.mxu1 %v3546_v23  ;;  %3260 = vmatprep.mubr.bf16.mxu0 %v3547_v24 }
  0x6e   : > { %3292 = vmatprep.mubr.bf16.mxu1 %v3548_v25  ;;  %s192_s11 = sadd.s32 %s3418_s10, %s3417_s12 }
  0x6f   : > { %3307 = vmatpush3.bf16.msra.mxu0 %v3545_v22  ;;  %s2527_s13 = sshll.u32 %s192_s11, 2 }
  0x70   : > { %3339 = vmatpush3.bf16.msra.mxu1 %v3546_v23  ;;  %3308 = vmatprep.subr.bf16.mxu0 %v3551_v27  ;;  %s4020_s4 = scalar_lea.vmem %s4049_s3, %s2527_s13 }
  0x71   : > { %3340 = vmatprep.subr.bf16.mxu1 %v3552_v28 }
  0x72   : > { %3261 = vmatmul.mubr.bf16.gmra.mrb[36].mxu0 %v3549_v26 }
  0x73   : > { %3293 = vmatmul.mubr.bf16.gmra.mrb[36].mxu1 %v3550_v29  ;;  %3309 = vmatpush3.bf16.msra.mxu0 %v3551_v27 }
  0x74   : > { %3341 = vmatpush3.bf16.msra.mxu1 %v3552_v28  ;;  %3310 = vmatprep.subr.bf16.mxu0 %v3553_v30 }
  0x75   : > { %3342 = vmatprep.subr.bf16.mxu1 %v3554_v31  ;;  %3264 = vmatprep.mubr.bf16.mxu0 %v3555_v32 }
  0x76   : > { %3296 = vmatprep.mubr.bf16.mxu1 %v3556_v33 }
  0x77   : > { %3311 = vmatpush3.bf16.msra.mxu0 %v3553_v30 }
  0x78   : > { %3343 = vmatpush3.bf16.msra.mxu1 %v3554_v31  ;;  %3312 = vmatprep.subr.bf16.mxu0 %v3559_v35 }
  0x79   : > { %3344 = vmatprep.subr.bf16.mxu1 %v3560_v36 }
  0x7a   : > { %3265 = vmatmul.mubr.bf16.gmra.mrb[40].mxu0 %v3557_v34 }
  0x7b   : > { %3297 = vmatmul.mubr.bf16.gmra.mrb[40].mxu1 %v3558_v37  ;;  %3313 = vmatpush3.bf16.msra.mxu0 %v3559_v35 }
  0x7c   : > { %3345 = vmatpush3.bf16.msra.mxu1 %v3560_v36  ;;  %3314 = vmatprep.subr.bf16.mxu0 %v3561_v38 }
  0x7d   : > { %3346 = vmatprep.subr.bf16.mxu1 %v3562_v39  ;;  %3268 = vmatprep.mubr.bf16.mxu0 %v3563_v40 }
  0x7e   : > { %3300 = vmatprep.mubr.bf16.mxu1 %v3564_v41 }
  0x7f   : > { %3315 = vmatpush3.bf16.msra.mxu0 %v3561_v38 }
  0x80   : > { %3347 = vmatpush3.bf16.msra.mxu1 %v3562_v39  ;;  %3316 = vmatprep.subr.bf16.mxu0 %v3567_v43 }
  0x81   : > { %3348 = vmatprep.subr.bf16.mxu1 %v3568_v44 }
  0x82   : > { %3269 = vmatmul.mubr.bf16.gmra.mrb[44].mxu0 %v3565_v42 }
  0x83   : > { %3301 = vmatmul.mubr.bf16.gmra.mrb[44].mxu1 %v3566_v45  ;;  %3317 = vmatpush3.bf16.msra.mxu0 %v3567_v43 }
  0x84   : > { %3349 = vmatpush3.bf16.msra.mxu1 %v3568_v44  ;;  %3318 = vmatprep.subr.bf16.mxu0 %v3569_v46 }
  0x85   : > { %3350 = vmatprep.subr.bf16.mxu1 %v3570_v47  ;;  %3320 = vmatprep.mubr.bf16.mxu0 %v3571_v48 }
  0x86   : > { %3352 = vmatprep.mubr.bf16.mxu1 %v3572_v49 }
  0x87   : > { %3319 = vmatpush3.bf16.msra.mxu0 %v3569_v46 }
  0x88   : > { %3351 = vmatpush3.bf16.msra.mxu1 %v3570_v47  ;;  %3368 = vmatprep.subr.bf16.mxu0 %v3575_v50 }
  0x89   : > { %3400 = vmatprep.subr.bf16.mxu1 %v3575_v50 }
  0x8a   : > { %3321 = vmatmul.mubr.bf16.vlgmr.msra.gmra.mrb[48].mxu0 %v3573_v51 }
  0x8b   : > { %3353 = vmatmul.mubr.bf16.vlgmr.msra.gmra.mrb[48].mxu1 %v3574_v52  ;;  %3369 = vmatpush3.bf16.msra.mxu0 %v3575_v50 }
  0x8c   : > { %3408 = vmatpush3.bf16.msra.mxu1 %v3575_v50  ;;  %3370 = vmatprep.subr.bf16.mxu0 %v3576_v53 }
  0x8d   : > { %3401 = vmatprep.subr.bf16.mxu1 %v3576_v53  ;;  %3324 = vmatprep.mubr.bf16.mxu0 %v3577_v54 }
  0x8e   : > { %3356 = vmatprep.mubr.bf16.mxu1 %v3578_v55 }
  0x8f   : > { %3371 = vmatpush3.bf16.msra.mxu0 %v3576_v53 }
  0x90   : > { %3409 = vmatpush3.bf16.msra.mxu1 %v3576_v53  ;;  %3372 = vmatprep.subr.bf16.mxu0 %v3581_v56 }
  0x91   : > { %3402 = vmatprep.subr.bf16.mxu1 %v3581_v56 }
  0x92   : > { %3325 = vmatmul.mubr.bf16.gmra.mrb[52].mxu0 %v3579_v57 }
  0x93   : > { %3357 = vmatmul.mubr.bf16.gmra.mrb[52].mxu1 %v3580_v58  ;;  %3373 = vmatpush3.bf16.msra.mxu0 %v3581_v56 }
  0x94   : > { %3410 = vmatpush3.bf16.msra.mxu1 %v3581_v56  ;;  %3374 = vmatprep.subr.bf16.mxu0 %v3582_v59 }
  0x95   : > { %3403 = vmatprep.subr.bf16.mxu1 %v3582_v59  ;;  %3328 = vmatprep.mubr.bf16.mxu0 %v3583_v60 }
  0x96   : > { %3360 = vmatprep.mubr.bf16.mxu1 %v3584_v61 }
  0x97   : > { %3375 = vmatpush3.bf16.msra.mxu0 %v3582_v59 }
  0x98   : > { %3411 = vmatpush3.bf16.msra.mxu1 %v3582_v59  ;;  %3376 = vmatprep.subr.bf16.mxu0 %v3587_v62 }
  0x99   : > { %3404 = vmatprep.subr.bf16.mxu1 %v3587_v62 }
  0x9a   : > { %3329 = vmatmul.mubr.bf16.gmra.mrb[56].mxu0 %v3585_v63 }
  0x9b   : > { %3361 = vmatmul.mubr.bf16.gmra.mrb[56].mxu1 %v3586_v0  ;;  %3377 = vmatpush3.bf16.msra.mxu0 %v3587_v62 }
  0x9c   : > { %3412 = vmatpush3.bf16.msra.mxu1 %v3587_v62  ;;  %3378 = vmatprep.subr.bf16.mxu0 %v3588_v1 }
  0x9d   : > { %3405 = vmatprep.subr.bf16.mxu1 %v3588_v1  ;;  %3332 = vmatprep.mubr.bf16.mxu0 %v3589_v2 }
  0x9e   : > { %3364 = vmatprep.mubr.bf16.mxu1 %v3590_v3 }
  0x9f   : > { %3379 = vmatpush3.bf16.msra.mxu0 %v3588_v1 }
  0xa0   : > { %3413 = vmatpush3.bf16.msra.mxu1 %v3588_v1  ;;  %3380 = vmatprep.subr.bf16.mxu0 %v3593_v4 }
  0xa1   : > { %3406 = vmatprep.subr.bf16.mxu1 %v3593_v4 }
  0xa2   : > { %3333 = vmatmul.mubr.bf16.gmra.mrb[60].mxu0 %v3591_v5 }
  0xa3   : > { %3365 = vmatmul.mubr.bf16.gmra.mrb[60].mxu1 %v3592_v6  ;;  %3381 = vmatpush3.bf16.msra.mxu0 %v3593_v4 }
  0xa4   : > { %3414 = vmatpush3.bf16.msra.mxu1 %v3593_v4  ;;  %3382 = vmatprep.subr.bf16.mxu0 %v3594_v7 }
  0xa5   : > { %3407 = vmatprep.subr.bf16.mxu1 %v3594_v7  ;;  %3384 = vmatprep.mubr.bf16.mxu0 %v3595_v8 }
  0xa6   : > { %3392 = vmatprep.mubr.bf16.mxu1 %v3596_v9 }
  0xa7   : > { %3383 = vmatpush3.bf16.msra.mxu0 %v3594_v7 }
  0xa8   : > { %3415 = vmatpush3.bf16.msra.mxu1 %v3594_v7 }
  0xaa   : > { %3385 = vmatmul.mubr.bf16.vlgmr.msra.gmra.mrb[64].mxu0 %v3597_v10 }
  0xab   : > { %3393 = vmatmul.mubr.bf16.vlgmr.msra.gmra.mrb[64].mxu1 %v3598_v11  ;;  %3388 = vmatprep.mubr.bf16.mxu0 %v3599_v12 }
  0xac   : > { %3396 = vmatprep.mubr.bf16.mxu1 %v3600_v13 }
  0xb2   : > { %3389 = vmatmul.mubr.bf16.gmra.mrb[68].mxu0 %v3601_v14 }
  0xb3   : > { %3397 = vmatmul.mubr.bf16.gmra.mrb[68].mxu1 %v3602_v15 }
  0xfd   : > { %v3130_v16 = vpop.f32.mrb[0].mxu0 }
  0xfe   : > { %v3162_v17 = vpop.f32.mrb[0].mxu1  ;;  %v400_v18 = vpop.f32.mrb[1].mxu0 }
  0xff   : > { %v598_v19 = vadd.f32 %v3162_v17, %v3130_v16  ;;  %v589_v20 = vpop.f32.mrb[1].mxu1  ;;  %v3131_v21 = vpop.f32.mrb[2].mxu0 }
 0x100   : > { %v590_v22 = vadd.f32 %v589_v20, %v400_v18  ;;  %v3163_v23 = vpop.f32.mrb[2].mxu1  ;;  %v403_v24 = vpop.f32.mrb[3].mxu0 }
 0x101   : > { %v592_v25 = vpop.f32.mrb[3].mxu1 }
 0x102   : > { %v593_v26 = vadd.f32 %v592_v25, %v403_v24 }
 0x105   : > { %v3134_v27 = vpop.f32.mrb[4].mxu0 }
 0x106   : > { %v3166_v28 = vpop.f32.mrb[4].mxu1  ;;  %v415_v29 = vpop.f32.mrb[5].mxu0 }
 0x107   : > { %v613_v30 = vadd.f32 %v3166_v28, %v3134_v27  ;;  %v604_v31 = vpop.f32.mrb[5].mxu1  ;;  %v3135_v32 = vpop.f32.mrb[6].mxu0 }
 0x108   : > { %v605_v33 = vadd.f32 %v604_v31, %v415_v29  ;;  %v3167_v34 = vpop.f32.mrb[6].mxu1  ;;  %v418_v35 = vpop.f32.mrb[7].mxu0 }
 0x109   : > { %v607_v36 = vpop.f32.mrb[7].mxu1 }
 0x10a   : > { %v608_v37 = vadd.f32 %v607_v36, %v418_v35 }
 0x10d   : > { %v3138_v38 = vpop.f32.mrb[8].mxu0 }
 0x10e   : > { %v3170_v39 = vpop.f32.mrb[8].mxu1  ;;  %v430_v40 = vpop.f32.mrb[9].mxu0 }
 0x10f   : > { %v628_v41 = vadd.f32 %v3170_v39, %v3138_v38  ;;  %v619_v42 = vpop.f32.mrb[9].mxu1  ;;  %v3139_v43 = vpop.f32.mrb[10].mxu0 }
 0x110   : > { %v620_v44 = vadd.f32 %v619_v42, %v430_v40  ;;  %v3171_v45 = vpop.f32.mrb[10].mxu1  ;;  %v433_v46 = vpop.f32.mrb[11].mxu0 }
 0x111   : > { %v622_v47 = vpop.f32.mrb[11].mxu1 }
 0x112   : > { %v623_v48 = vadd.f32 %v622_v47, %v433_v46 }
 0x115   : > { %v3142_v49 = vpop.f32.mrb[12].mxu0 }
 0x116   : > { %v3174_v50 = vpop.f32.mrb[12].mxu1  ;;  %v445_v51 = vpop.f32.mrb[13].mxu0 }
 0x117   : > { %v643_v52 = vadd.f32 %v3174_v50, %v3142_v49  ;;  %v634_v53 = vpop.f32.mrb[13].mxu1  ;;  %v3143_v54 = vpop.f32.mrb[14].mxu0 }
 0x118   : > { %v635_v55 = vadd.f32 %v634_v53, %v445_v51  ;;  %v3175_v56 = vpop.f32.mrb[14].mxu1  ;;  %v448_v57 = vpop.f32.mrb[15].mxu0 }
 0x119   : > { %v637_v58 = vpop.f32.mrb[15].mxu1 }
 0x11a   : > { %v638_v59 = vadd.f32 %v637_v58, %v448_v57 }
 0x11d   : > { %v3194_v60 = vpop.f32.mrb[16].mxu0 }
 0x11e   : > { %v875_v61 = vadd.f32 %v3194_v60, %v598_v19  ;;  %v3226_v62 = vpop.f32.mrb[16].mxu1  ;;  %v814_v63 = vpop.f32.mrb[17].mxu0 }
 0x11f   : > { %v873_v0 = vadd.f32 %v814_v63, %v590_v22  ;;  %v1053_v1 = vpop.f32.mrb[17].mxu1  ;;  %v3195_v2 = vpop.f32.mrb[18].mxu0 }
 0x120   : > { %v1114_v3 = vadd.f32 %v3226_v62, %v875_v61  ;;  %v3227_v4 = vpop.f32.mrb[18].mxu1  ;;  %v817_v5 = vpop.f32.mrb[19].mxu0 }
 0x121   : > { %v1112_v6 = vadd.f32 %v1053_v1, %v873_v0  ;;  %v874_v7 = vadd.f32 %v817_v5, %v593_v26  ;;  %v1056_v8 = vpop.f32.mrb[19].mxu1 }
 0x123   : > { %v1113_v9 = vadd.f32 %v1056_v8, %v874_v7 }
 0x125   : > { %v3198_v10 = vpop.f32.mrb[20].mxu0 }
 0x126   : > { %v878_v11 = vadd.f32 %v3198_v10, %v613_v30  ;;  %v3230_v12 = vpop.f32.mrb[20].mxu1  ;;  %v829_v13 = vpop.f32.mrb[21].mxu0 }
 0x127   : > { %v876_v14 = vadd.f32 %v829_v13, %v605_v33  ;;  %v1068_v15 = vpop.f32.mrb[21].mxu1  ;;  %v3199_v16 = vpop.f32.mrb[22].mxu0 }
 0x128   : > { %v1117_v17 = vadd.f32 %v3230_v12, %v878_v11  ;;  %v3231_v18 = vpop.f32.mrb[22].mxu1  ;;  %v832_v19 = vpop.f32.mrb[23].mxu0 }
 0x129   : > { %v1115_v20 = vadd.f32 %v1068_v15, %v876_v14  ;;  %v877_v21 = vadd.f32 %v832_v19, %v608_v37  ;;  %v1071_v22 = vpop.f32.mrb[23].mxu1 }
 0x12b   : > { %v1116_v23 = vadd.f32 %v1071_v22, %v877_v21 }
 0x12d   : > { %v3202_v24 = vpop.f32.mrb[24].mxu0 }
 0x12e   : > { %v881_v25 = vadd.f32 %v3202_v24, %v628_v41  ;;  %v3234_v27 = vpop.f32.mrb[24].mxu1  ;;  %v844_v26 = vpop.f32.mrb[25].mxu0 }
 0x12f   : > { %v879_v28 = vadd.f32 %v844_v26, %v620_v44  ;;  %v1083_v29 = vpop.f32.mrb[25].mxu1  ;;  %v3203_v31 = vpop.f32.mrb[26].mxu0 }
 0x130   : > { %v1120_v30 = vadd.f32 %v3234_v27, %v881_v25  ;;  %v3235_v32 = vpop.f32.mrb[26].mxu1  ;;  %v847_v34 = vpop.f32.mrb[27].mxu0 }
 0x131   : > { %v1118_v33 = vadd.f32 %v1083_v29, %v879_v28  ;;  %v880_v35 = vadd.f32 %v847_v34, %v623_v48  ;;  %v1086_v36 = vpop.f32.mrb[27].mxu1 }
 0x133   : > { %v1119_v38 = vadd.f32 %v1086_v36, %v880_v35 }
 0x135   : > { %v3206_v39 = vpop.f32.mrb[28].mxu0 }
 0x136   : > { %v884_v40 = vadd.f32 %v3206_v39, %v643_v52  ;;  %v3238_v42 = vpop.f32.mrb[28].mxu1  ;;  %v859_v37 = vpop.f32.mrb[29].mxu0 }
 0x137   : > { %v882_v43 = vadd.f32 %v859_v37, %v635_v55  ;;  %v1098_v45 = vpop.f32.mrb[29].mxu1  ;;  %v3207_v46 = vpop.f32.mrb[30].mxu0 }
 0x138   : > { %v1123_v41 = vadd.f32 %v3238_v42, %v884_v40  ;;  %v3239_v47 = vpop.f32.mrb[30].mxu1  ;;  %v862_v49 = vpop.f32.mrb[31].mxu0 }
 0x139   : > { %v1121_v44 = vadd.f32 %v1098_v45, %v882_v43  ;;  %v883_v50 = vadd.f32 %v862_v49, %v638_v59  ;;  %v1101_v51 = vpop.f32.mrb[31].mxu1 }
 0x13b   : > { %v1122_v53 = vadd.f32 %v1101_v51, %v883_v50 }
 0x13d   : > { %v3258_v54 = vpop.f32.mrb[32].mxu0 }
 0x13e   : > { %v1351_v56 = vadd.f32 %v3258_v54, %v1114_v3  ;;  %v3290_v57 = vpop.f32.mrb[32].mxu1  ;;  %v1290_v48 = vpop.f32.mrb[33].mxu0 }
 0x13f   : > { %v1349_v58 = vadd.f32 %v1290_v48, %v1112_v6  ;;  %v1527_v60 = vpop.f32.mrb[33].mxu1  ;;  %v3259_v61 = vpop.f32.mrb[34].mxu0 }
 0x140   : > { %v1588_v52 = vadd.f32 %v3290_v57, %v1351_v56  ;;  %v3291_v62 = vpop.f32.mrb[34].mxu1  ;;  %v1293_v63 = vpop.f32.mrb[35].mxu0 }
 0x141   : > { %v1586_v55 = vadd.f32 %v1527_v60, %v1349_v58  ;;  %v1350_v0 = vadd.f32 %v1293_v63, %v1113_v9  ;;  %v1530_v1 = vpop.f32.mrb[35].mxu1 }
 0x143   : > { %v1587_v2 = vadd.f32 %v1530_v1, %v1350_v0 }
 0x145   : > { %v3262_v4 = vpop.f32.mrb[36].mxu0 }
 0x146   : > { %v1354_v5 = vadd.f32 %v3262_v4, %v1117_v17  ;;  %v3294_v7 = vpop.f32.mrb[36].mxu1  ;;  %v1305_v59 = vpop.f32.mrb[37].mxu0 }
 0x147   : > { %v1352_v8 = vadd.f32 %v1305_v59, %v1115_v20  ;;  %v1542_v10 = vpop.f32.mrb[37].mxu1  ;;  %v3263_v11 = vpop.f32.mrb[38].mxu0 }
 0x148   : > { %v1591_v3 = vadd.f32 %v3294_v7, %v1354_v5  ;;  %v3295_v12 = vpop.f32.mrb[38].mxu1  ;;  %v1308_v13 = vpop.f32.mrb[39].mxu0 }
 0x149   : > { %v1589_v6 = vadd.f32 %v1542_v10, %v1352_v8  ;;  %v1353_v14 = vadd.f32 %v1308_v13, %v1116_v23  ;;  %v1545_v15 = vpop.f32.mrb[39].mxu1 }
 0x14b   : > { %v1590_v16 = vadd.f32 %v1545_v15, %v1353_v14 }
 0x14d   : > { %v3266_v18 = vpop.f32.mrb[40].mxu0 }
 0x14e   : > { %v1357_v19 = vadd.f32 %v3266_v18, %v1120_v30  ;;  %v3298_v21 = vpop.f32.mrb[40].mxu1  ;;  %v1320_v9 = vpop.f32.mrb[41].mxu0 }
 0x14f   : > { %v1355_v22 = vadd.f32 %v1320_v9, %v1118_v33  ;;  %v1557_v24 = vpop.f32.mrb[41].mxu1  ;;  %v3267_v25 = vpop.f32.mrb[42].mxu0 }
 0x150   : > { %v1594_v17 = vadd.f32 %v3298_v21, %v1357_v19  ;;  %v3299_v27 = vpop.f32.mrb[42].mxu1  ;;  %v1323_v26 = vpop.f32.mrb[43].mxu0 }
 0x151   : > { %v1592_v20 = vadd.f32 %v1557_v24, %v1355_v22  ;;  %v1356_v28 = vadd.f32 %v1323_v26, %v1119_v38  ;;  %v1560_v29 = vpop.f32.mrb[43].mxu1 }
 0x153   : > { %v1593_v31 = vadd.f32 %v1560_v29, %v1356_v28 }
 0x155   : > { %v3270_v32 = vpop.f32.mrb[44].mxu0 }
 0x156   : > { %v1360_v34 = vadd.f32 %v3270_v32, %v1123_v41  ;;  %v3302_v35 = vpop.f32.mrb[44].mxu1  ;;  %v1335_v23 = vpop.f32.mrb[45].mxu0 }
 0x157   : > { %v1358_v36 = vadd.f32 %v1335_v23, %v1121_v44  ;;  %v1572_v39 = vpop.f32.mrb[45].mxu1  ;;  %v3271_v40 = vpop.f32.mrb[46].mxu0 }
 0x158   : > { %v1597_v30 = vadd.f32 %v3302_v35, %v1360_v34  ;;  %v3303_v42 = vpop.f32.mrb[46].mxu1  ;;  %v1338_v37 = vpop.f32.mrb[47].mxu0 }
 0x159   : > { %v1595_v33 = vadd.f32 %v1572_v39, %v1358_v36  ;;  %v1359_v43 = vadd.f32 %v1338_v37, %v1122_v53  ;;  %v1575_v45 = vpop.f32.mrb[47].mxu1 }
 0x15b   : > { %v1596_v46 = vadd.f32 %v1575_v45, %v1359_v43 }
 0x15d   : > { %v3322_v47 = vpop.f32.mrb[48].mxu0 }
 0x15e   : > { %v1827_v49 = vadd.f32 %v3322_v47, %v1588_v52  ;;  %v3354_v50 = vpop.f32.mrb[48].mxu1  ;;  %v1766_v38 = vpop.f32.mrb[49].mxu0 }
 0x15f   : > { %v1825_v51 = vadd.f32 %v1766_v38, %v1586_v55  ;;  %v2003_v54 = vpop.f32.mrb[49].mxu1  ;;  %v3323_v56 = vpop.f32.mrb[50].mxu0 }
 0x160   : > { %v2064_v41 = vadd.f32 %v3354_v50, %v1827_v49  ;;  %v3355_v57 = vpop.f32.mrb[50].mxu1  ;;  %v1769_v48 = vpop.f32.mrb[51].mxu0 }
 0x161   : > { %v2062_v44 = vadd.f32 %v2003_v54, %v1825_v51  ;;  %v1826_v58 = vadd.f32 %v1769_v48, %v1587_v2  ;;  %v2006_v60 = vpop.f32.mrb[51].mxu1 }
 0x163   : > { %v2063_v61 = vadd.f32 %v2006_v60, %v1826_v58 }
 0x165   : > { %v3326_v62 = vpop.f32.mrb[52].mxu0 }
 0x166   : > { %v1830_v63 = vadd.f32 %v3326_v62, %v1591_v3  ;;  %v3358_v0 = vpop.f32.mrb[52].mxu1  ;;  %v1781_v53 = vpop.f32.mrb[53].mxu0 }
 0x167   : > { %v1828_v1 = vadd.f32 %v1781_v53, %v1589_v6  ;;  %v2018_v4 = vpop.f32.mrb[53].mxu1  ;;  %v3327_v5 = vpop.f32.mrb[54].mxu0 }
 0x168   : > { %v4006_v52 = vadd.f32 %v3358_v0, %v1830_v63  ;;  %v3359_v7 = vpop.f32.mrb[54].mxu1  ;;  %v1784_v55 = vpop.f32.mrb[55].mxu0 }
 0x169   : > { %v4008_v59 = vadd.f32 %v2018_v4, %v1828_v1  ;;  %v1829_v8 = vadd.f32 %v1784_v55, %v1590_v16  ;;  %v2021_v10 = vpop.f32.mrb[55].mxu1 }
 0x16b   : > { %v4010_v11 = vadd.f32 %v2021_v10, %v1829_v8 }
 0x16d   : > { %v3330_v2 = vpop.f32.mrb[56].mxu0 }
 0x16e   : > { %v1833_v12 = vadd.f32 %v3330_v2, %v1594_v17  ;;  %v3362_v13 = vpop.f32.mrb[56].mxu1  ;;  %v1796_v3 = vpop.f32.mrb[57].mxu0 }
 0x16f   : > { %v1831_v14 = vadd.f32 %v1796_v3, %v1592_v20  ;;  %v2033_v15 = vpop.f32.mrb[57].mxu1  ;;  %v3331_v6 = vpop.f32.mrb[58].mxu0 }
 0x170   : > { %v2070_v18 = vadd.f32 %v3362_v13, %v1833_v12  ;;  %v3363_v19 = vpop.f32.mrb[58].mxu1  ;;  %v1799_v21 = vpop.f32.mrb[59].mxu0 }
 0x171   : > { %v2068_v9 = vadd.f32 %v2033_v15, %v1831_v14  ;;  %v1832_v22 = vadd.f32 %v1799_v21, %v1593_v31  ;;  %v2036_v24 = vpop.f32.mrb[59].mxu1 }
 0x173   : > { %v2069_v25 = vadd.f32 %v2036_v24, %v1832_v22 }
 0x175   : > { %v3334_v16 = vpop.f32.mrb[60].mxu0 }
 0x176   : > { %v1836_v27 = vadd.f32 %v3334_v16, %v1597_v30  ;;  %v3366_v26 = vpop.f32.mrb[60].mxu1  ;;  %v1811_v28 = vpop.f32.mrb[61].mxu0  ;;  %v2906_v30 = vld [vmem:[%s4048_s2] ss:$0 sm:$0xff] }
 0x177   : > { %v1834_v17 = vadd.f32 %v1811_v28, %v1595_v33  ;;  %v2048_v29 = vpop.f32.mrb[61].mxu1  ;;  %v3335_v32 = vpop.f32.mrb[62].mxu0 }
 0x178   : > { %v2073_v20 = vadd.f32 %v3366_v26, %v1836_v27  ;;  %v3367_v34 = vpop.f32.mrb[62].mxu1  ;;  %v1814_v35 = vpop.f32.mrb[63].mxu0 }
 0x179   : > { %v2071_v23 = vadd.f32 %v2048_v29, %v1834_v17  ;;  %v1835_v36 = vadd.f32 %v1814_v35, %v1596_v46  ;;  %v2051_v39 = vpop.f32.mrb[63].mxu1 }
 0x17b   : > { %v2072_v31 = vadd.f32 %v2051_v39, %v1835_v36 }
 0x17d   : > { %v3386_v40 = vpop.f32.mrb[64].mxu0 }
 0x17e   : > { %v2301_v42 = vadd.f32 %v3386_v40, %v2064_v41  ;;  %v3394_v37 = vpop.f32.mrb[64].mxu1  ;;  %v2240_v33 = vpop.f32.mrb[65].mxu0 }
 0x17f   : > { %v2307_v43 = vadd.f32 %v3394_v37, %v2070_v18  ;;  %v2299_v45 = vadd.f32 %v2240_v33, %v2062_v44  ;;  %v2270_v47 = vpop.f32.mrb[65].mxu1  ;;  %v3387_v49 = vpop.f32.mrb[66].mxu0 }
 0x180   : > { %v2305_v50 = vadd.f32 %v2270_v47, %v2068_v9  ;;  %v3395_v38 = vpop.f32.mrb[66].mxu1  ;;  %v2243_v46 = vpop.f32.mrb[67].mxu0  ;;  %v2320_v4 = vadd.f32 %v2906_v30, %v2301_v42 }
 0x181   : > { %v2318_v51 = vadd.f32 %v2906_v30, %v2299_v45  ;;  %v2300_v54 = vadd.f32 %v2243_v46, %v2063_v61  ;;  %v2273_v56 = vpop.f32.mrb[67].mxu1  ;;  %v2326_v2 = vadd.f32 %v2906_v30, %v2307_v43 }
 0x182   : > { %v2324_v57 = vadd.f32 %v2906_v30, %v2305_v50  ;;  %v2306_v48 = vadd.f32 %v2273_v56, %v2069_v25 }
 0x183   : > { %v2319_v41 = vadd.f32 %v2906_v30, %v2300_v54  ;;  %v2330_v60 = vmax.f32 %v2318_v51, 0.0  ;;  %v2338_v25 = vmax.f32 %v2326_v2, 0.0 }
 0x184   : > { %v2325_v58 = vadd.f32 %v2906_v30, %v2306_v48  ;;  %v2336_v0 = vmax.f32 %v2324_v57, 0.0 }
 0x185   : > { %v2331_v62 = vmax.f32 %v2319_v41, 0.0  ;;  %v3390_v63 = vpop.f32.mrb[68].mxu0 }
 0x186   : > { %v2337_v44 = vmax.f32 %v2325_v58, 0.0  ;;  %v2304_v53 = vadd.f32 %v3390_v63, %v4006_v52  ;;  %v3398_v61 = vpop.f32.mrb[68].mxu1  ;;  %v2255_v1 = vpop.f32.mrb[69].mxu0 }
 0x187   : > { %v2936_v5 = vpack.c.bf16 %v2331_v62, %v2330_v60  ;;  %v2310_v7 = vadd.f32 %v3398_v61, %v2073_v20  ;;  %v2302_v55 = vadd.f32 %v2255_v1, %v4008_v59  ;;  %v2285_v8 = vpop.f32.mrb[69].mxu1  ;;  %v3391_v10 = vpop.f32.mrb[70].mxu0  ;;  %v2332_v59 = vmax.f32 %v2320_v4, 0.0 }
 0x188   : > { %v2951_v12 = vpack.c.bf16 %v2337_v44, %v2336_v0  ;;  %v2308_v13 = vadd.f32 %v2285_v8, %v2071_v23  ;;  %v3399_v3 = vpop.f32.mrb[70].mxu1  ;;  %v2258_v14 = vpop.f32.mrb[71].mxu0  ;;  %v2323_v15 = vadd.f32 %v2906_v30, %v2304_v53 }
 0x189   : > { %2937 = vst [vmem:[%s4020_s4] sm:$0xff] %v2936_v5   ;;  %v2321_v6 = vadd.f32 %v2906_v30, %v2302_v55  ;;  %v2303_v52 = vadd.f32 %v2258_v14, %v4010_v11  ;;  %v2288_v18 = vpop.f32.mrb[71].mxu1  ;;  %v2329_v19 = vadd.f32 %v2906_v30, %v2310_v7 }
 0x18a   : > { %2965 = vst [vmem:[%s4020_s4 + $0x18] sm:$0xff] %v2951_v12   ;;  %v2327_v21 = vadd.f32 %v2906_v30, %v2308_v13  ;;  %v2309_v9 = vadd.f32 %v2288_v18, %v2072_v31  ;;  %v2335_v26 = vmax.f32 %v2323_v15, 0.0 }
 0x18b   : > { %v2333_v22 = vmax.f32 %v2321_v6, 0.0  ;;  %v2322_v24 = vadd.f32 %v2906_v30, %v2303_v52  ;;  %v2341_v29 = vmax.f32 %v2329_v19, 0.0 }
 0x18c   : > { %v2339_v16 = vmax.f32 %v2327_v21, 0.0  ;;  %v2328_v27 = vadd.f32 %v2906_v30, %v2309_v9 }
 0x18d   : > { %v2941_v28 = vpack.c.bf16 %v2333_v22, %v2332_v59  ;;  %v2334_v17 = vmax.f32 %v2322_v24, 0.0 }
 0x18e   : > { %v2956_v11 = vpack.c.bf16 %v2339_v16, %v2338_v25  ;;  %v2340_v32 = vmax.f32 %v2328_v27, 0.0 }
 0x18f   : > { %2963 = vst [vmem:[%s4020_s4 + $0x8] sm:$0xff] %v2941_v28   ;;  %v2946_v20 = vpack.c.bf16 %v2335_v26, %v2334_v17 }
 0x190   : > { %2966 = vst [vmem:[%s4020_s4 + $0x20] sm:$0xff] %v2956_v11   ;;  %v2961_v34 = vpack.c.bf16 %v2341_v29, %v2340_v32 }
 0x191   : > { %2964 = vst [vmem:[%s4020_s4 + $0x10] sm:$0xff] %v2946_v20  }
 0x192   : > { %2967 = vst [vmem:[%s4020_s4 + $0x28] sm:$0xff] %v2961_v34  }
 0x193 PF: > { %s13_s16 = sadd.s32 1, %s3641_s16   ;;  %s4050_s12 = smov %s3633_s14 }
 0x194   : > { %p10_p7 = scmp.ge.s32.totalorder %s13_s16, 14   ;;  %s4051_s13 = smov %s3637_s15 }
 0x195   : > { %s4052_s14 = smov %s4055_s17  ;;  %s4053_s15 = smov %s4059_s18 }
 0x196   :  { %12 = sbr.rel (!%p10_p7) target bundleno = 3 (0x3), region = 79 }

// kernel: _lambda_.27
= control target key start
LH: loop header
LB: loop body
LE: loop exit
PB: predicated region body
PF: predicated region fallthrough
CT: control target
= control target key end

     0   :  { %s1146_s1 = inlined_call_operand.vmem [shape: bf16[128,128], index: 1, kind: input, shape index: {}]   ;;  %s1147_s0 = inlined_call_operand.vmem [shape: bf16[288,128], index: 0, kind: input, shape index: {}]   ;;  %s1148_s2 = inlined_call_operand.vmem [shape: f32[1,128], index: 2, kind: input, shape index: {}]   ;;  %s1149_s3 = inlined_call_operand.vmem [shape: bf16[288,128], index: 3, kind: output, shape index: {}]  }
   0x1   :  { %v927_v0 = vld [vmem:[%s1146_s1] sm:$0xff]   ;;  %v928_v1 = vld [vmem:[%s1146_s1 + $0x8] sm:$0xff]   ;;  %v929_v2 = vld [vmem:[%s1146_s1 + $0x10] sm:$0xff]  }
   0x2   :  { %859 = vmatprep.subr.bf16.mxu0 %v927_v0  ;;  %911 = vmatprep.subr.bf16.mxu1 %v927_v0  ;;  %v930_v3 = vld [vmem:[%s1146_s1 + $0x18] sm:$0xff]   ;;  %v935_v4 = vld [vmem:[%s1147_s0] sm:$0xff]   ;;  %v937_v5 = vld [vmem:[%s1147_s0 + $0x50] sm:$0xff]  }
   0x3   :  { %860 = vmatpush3.bf16.msra.mxu0 %v927_v0  ;;  %919 = vmatpush3.bf16.msra.mxu1 %v927_v0  ;;  %v931_v6 = vld [vmem:[%s1146_s1 + $0x20] sm:$0xff]   ;;  %v932_v7 = vld [vmem:[%s1146_s1 + $0x28] sm:$0xff]   ;;  %v933_v8 = vld [vmem:[%s1146_s1 + $0x30] sm:$0xff]  }
   0x4   :  { %861 = vmatprep.subr.bf16.mxu0 %v928_v1  ;;  %912 = vmatprep.subr.bf16.mxu1 %v928_v1  ;;  %v934_v9 = vld [vmem:[%s1146_s1 + $0x38] sm:$0xff]   ;;  %v936_v10 = vld [vmem:[%s1147_s0 + $0x8] sm:$0xff]   ;;  %v939_v12 = vld [vmem:[%s1147_s0 + $0x10] sm:$0xff]  }
   0x5   :  { %875 = vmatprep.mubr.bf16.mxu0 %v935_v4  ;;  %895 = vmatprep.mubr.bf16.mxu1 %v937_v5  ;;  %v938_v11 = vld [vmem:[%s1147_s0 + $0x58] sm:$0xff]   ;;  %v941_v13 = vld [vmem:[%s1147_s0 + $0x60] sm:$0xff]   ;;  %v942_v15 = vld [vmem:[%s1147_s0 + $0x68] sm:$0xff]  }
   0x6   :  { %v940_v14 = vld [vmem:[%s1147_s0 + $0x18] sm:$0xff]   ;;  %v943_v16 = vld [vmem:[%s1147_s0 + $0x20] sm:$0xff]   ;;  %v945_v17 = vld [vmem:[%s1147_s0 + $0x70] sm:$0xff]  }
   0x7   :  { %862 = vmatpush3.bf16.msra.mxu0 %v928_v1  ;;  %920 = vmatpush3.bf16.msra.mxu1 %v928_v1  ;;  %v944_v18 = vld [vmem:[%s1147_s0 + $0x28] sm:$0xff]   ;;  %v946_v19 = vld [vmem:[%s1147_s0 + $0x78] sm:$0xff]   ;;  %v947_v20 = vld [vmem:[%s1147_s0 + $0x30] sm:$0xff]  }
   0x8   :  { %863 = vmatprep.subr.bf16.mxu0 %v929_v2  ;;  %913 = vmatprep.subr.bf16.mxu1 %v929_v2  ;;  %v949_v21 = vld [vmem:[%s1147_s0 + $0x80] sm:$0xff]   ;;  %v948_v22 = vld [vmem:[%s1147_s0 + $0x38] sm:$0xff]   ;;  %v950_v23 = vld [vmem:[%s1147_s0 + $0x88] sm:$0xff]  }
   0x9   :  { %v951_v24 = vld [vmem:[%s1147_s0 + $0x40] sm:$0xff]   ;;  %v952_v25 = vld [vmem:[%s1147_s0 + $0x48] sm:$0xff]  }
   0xa   :  { %v1054_v26 = vld [vmem:[%s1148_s2] ss:$0 sm:$0xff] }
   0xb   :  { %864 = vmatpush3.bf16.msra.mxu0 %v929_v2  ;;  %921 = vmatpush3.bf16.msra.mxu1 %v929_v2 }
   0xc   :  { %865 = vmatprep.subr.bf16.mxu0 %v930_v3  ;;  %914 = vmatprep.subr.bf16.mxu1 %v930_v3 }
   0xf   :  { %866 = vmatpush3.bf16.msra.mxu0 %v930_v3  ;;  %922 = vmatpush3.bf16.msra.mxu1 %v930_v3 }
  0x10   :  { %867 = vmatprep.subr.bf16.mxu0 %v931_v6  ;;  %915 = vmatprep.subr.bf16.mxu1 %v931_v6 }
  0x13   :  { %868 = vmatpush3.bf16.msra.mxu0 %v931_v6  ;;  %923 = vmatpush3.bf16.msra.mxu1 %v931_v6 }
  0x14   :  { %869 = vmatprep.subr.bf16.mxu0 %v932_v7  ;;  %916 = vmatprep.subr.bf16.mxu1 %v932_v7 }
  0x17   :  { %870 = vmatpush3.bf16.msra.mxu0 %v932_v7  ;;  %924 = vmatpush3.bf16.msra.mxu1 %v932_v7 }
  0x18   :  { %871 = vmatprep.subr.bf16.mxu0 %v933_v8  ;;  %917 = vmatprep.subr.bf16.mxu1 %v933_v8 }
  0x1b   :  { %872 = vmatpush3.bf16.msra.mxu0 %v933_v8  ;;  %925 = vmatpush3.bf16.msra.mxu1 %v933_v8 }
  0x1c   :  { %873 = vmatprep.subr.bf16.mxu0 %v934_v9  ;;  %918 = vmatprep.subr.bf16.mxu1 %v934_v9 }
  0x1f   :  { %874 = vmatpush3.bf16.msra.mxu0 %v934_v9  ;;  %926 = vmatpush3.bf16.msra.mxu1 %v934_v9 }
  0x22   :  { %876 = vmatmul.mubr.bf16.vlgmr.msra.gmra.mrb[0].mxu0 %v936_v10  ;;  %896 = vmatmul.mubr.bf16.vlgmr.msra.gmra.mrb[0].mxu1 %v938_v11 }
  0x23   :  { %879 = vmatprep.mubr.bf16.mxu0 %v939_v12  ;;  %899 = vmatprep.mubr.bf16.mxu1 %v941_v13 }
  0x2a   :  { %880 = vmatmul.mubr.bf16.gmra.mrb[4].mxu0 %v940_v14  ;;  %900 = vmatmul.mubr.bf16.gmra.mrb[4].mxu1 %v942_v15 }
  0x2b   :  { %883 = vmatprep.mubr.bf16.mxu0 %v943_v16  ;;  %903 = vmatprep.mubr.bf16.mxu1 %v945_v17 }
  0x32   :  { %884 = vmatmul.mubr.bf16.gmra.mrb[8].mxu0 %v944_v18  ;;  %904 = vmatmul.mubr.bf16.gmra.mrb[8].mxu1 %v946_v19 }
  0x33   :  { %887 = vmatprep.mubr.bf16.mxu0 %v947_v20  ;;  %907 = vmatprep.mubr.bf16.mxu1 %v949_v21 }
  0x3a   :  { %888 = vmatmul.mubr.bf16.gmra.mrb[12].mxu0 %v948_v22  ;;  %908 = vmatmul.mubr.bf16.gmra.mrb[12].mxu1 %v950_v23 }
  0x3b   :  { %891 = vmatprep.mubr.bf16.mxu0 %v951_v24 }
  0x42   :  { %892 = vmatmul.mubr.bf16.gmra.mrb[16].mxu0 %v952_v25 }
  0xf5   :  { %v877_v27 = vpop.f32.mrb[0].mxu0  ;;  %v897_v28 = vpop.f32.mrb[0].mxu1 }
  0xf6   :  { %v273_v29 = vadd.f32 %v877_v27, %v1054_v26  ;;  %v264_v30 = vpop.f32.mrb[1].mxu0  ;;  %v353_v31 = vadd.f32 %v897_v28, %v1054_v26  ;;  %v344_v32 = vpop.f32.mrb[1].mxu1 }
  0xf7   :  { %v265_v33 = vadd.f32 %v1054_v26, %v264_v30  ;;  %v878_v34 = vpop.f32.mrb[2].mxu0  ;;  %v345_v35 = vadd.f32 %v1054_v26, %v344_v32  ;;  %v898_v36 = vpop.f32.mrb[2].mxu1 }
  0xf8   :  { %v276_v37 = vadd.f32 %v878_v34, %v1054_v26  ;;  %v267_v38 = vpop.f32.mrb[3].mxu0  ;;  %v429_v39 = vmax.f32 %v353_v31, 0.0  ;;  %v356_v40 = vadd.f32 %v898_v36, %v1054_v26  ;;  %v347_v41 = vpop.f32.mrb[3].mxu1  ;;  %v409_v45 = vmax.f32 %v273_v29, 0.0 }
  0xf9   :  { %v268_v42 = vadd.f32 %v1054_v26, %v267_v38  ;;  %v427_v43 = vmax.f32 %v345_v35, 0.0  ;;  %v348_v44 = vadd.f32 %v1054_v26, %v347_v41  ;;  %v407_v48 = vmax.f32 %v265_v33, 0.0 }
  0xfa   :  { %v410_v46 = vmax.f32 %v276_v37, 0.0  ;;  %v430_v47 = vmax.f32 %v356_v40, 0.0 }
  0xfb   :  { %v408_v49 = vmax.f32 %v268_v42, 0.0  ;;  %v428_v50 = vmax.f32 %v348_v44, 0.0 }
  0xfc   :  { %v734_v51 = vpack.c.bf16 %v410_v46, %v409_v45  ;;  %v784_v52 = vpack.c.bf16 %v430_v47, %v429_v39 }
  0xfd   :  { %v729_v53 = vpack.c.bf16 %v408_v49, %v407_v48  ;;  %v881_v54 = vpop.f32.mrb[4].mxu0  ;;  %v779_v55 = vpack.c.bf16 %v428_v50, %v427_v43  ;;  %v901_v56 = vpop.f32.mrb[4].mxu1 }
  0xfe   :  { %816 = vst [vmem:[%s1149_s3 + $0x8] sm:$0xff] %v734_v51   ;;  %826 = vst [vmem:[%s1149_s3 + $0x58] sm:$0xff] %v784_v52   ;;  %v289_v57 = vadd.f32 %v881_v54, %v1054_v26  ;;  %v280_v58 = vpop.f32.mrb[5].mxu0  ;;  %v369_v59 = vadd.f32 %v901_v56, %v1054_v26  ;;  %v360_v60 = vpop.f32.mrb[5].mxu1 }
  0xff   :  { %730 = vst [vmem:[%s1149_s3] sm:$0xff] %v729_v53   ;;  %825 = vst [vmem:[%s1149_s3 + $0x50] sm:$0xff] %v779_v55   ;;  %v281_v61 = vadd.f32 %v1054_v26, %v280_v58  ;;  %v882_v62 = vpop.f32.mrb[6].mxu0  ;;  %v361_v63 = vadd.f32 %v1054_v26, %v360_v60  ;;  %v902_v0 = vpop.f32.mrb[6].mxu1 }
 0x100   :  { %v292_v1 = vadd.f32 %v882_v62, %v1054_v26  ;;  %v283_v2 = vpop.f32.mrb[7].mxu0  ;;  %v433_v3 = vmax.f32 %v369_v59, 0.0  ;;  %v372_v4 = vadd.f32 %v902_v0, %v1054_v26  ;;  %v363_v5 = vpop.f32.mrb[7].mxu1  ;;  %v413_v9 = vmax.f32 %v289_v57, 0.0 }
 0x101   :  { %v284_v6 = vadd.f32 %v1054_v26, %v283_v2  ;;  %v431_v7 = vmax.f32 %v361_v63, 0.0  ;;  %v364_v8 = vadd.f32 %v1054_v26, %v363_v5  ;;  %v411_v12 = vmax.f32 %v281_v61, 0.0 }
 0x102   :  { %v414_v10 = vmax.f32 %v292_v1, 0.0  ;;  %v434_v11 = vmax.f32 %v372_v4, 0.0 }
 0x103   :  { %v412_v13 = vmax.f32 %v284_v6, 0.0  ;;  %v432_v14 = vmax.f32 %v364_v8, 0.0 }
 0x104   :  { %v744_v15 = vpack.c.bf16 %v414_v10, %v413_v9  ;;  %v794_v16 = vpack.c.bf16 %v434_v11, %v433_v3 }
 0x105   :  { %v739_v17 = vpack.c.bf16 %v412_v13, %v411_v12  ;;  %v885_v18 = vpop.f32.mrb[8].mxu0  ;;  %v789_v19 = vpack.c.bf16 %v432_v14, %v431_v7  ;;  %v905_v20 = vpop.f32.mrb[8].mxu1 }
 0x106   :  { %818 = vst [vmem:[%s1149_s3 + $0x18] sm:$0xff] %v744_v15   ;;  %828 = vst [vmem:[%s1149_s3 + $0x68] sm:$0xff] %v794_v16   ;;  %v305_v21 = vadd.f32 %v885_v18, %v1054_v26  ;;  %v296_v22 = vpop.f32.mrb[9].mxu0  ;;  %v385_v23 = vadd.f32 %v905_v20, %v1054_v26  ;;  %v376_v24 = vpop.f32.mrb[9].mxu1 }
 0x107   :  { %817 = vst [vmem:[%s1149_s3 + $0x10] sm:$0xff] %v739_v17   ;;  %827 = vst [vmem:[%s1149_s3 + $0x60] sm:$0xff] %v789_v19   ;;  %v297_v25 = vadd.f32 %v1054_v26, %v296_v22  ;;  %v886_v27 = vpop.f32.mrb[10].mxu0  ;;  %v377_v28 = vadd.f32 %v1054_v26, %v376_v24  ;;  %v906_v29 = vpop.f32.mrb[10].mxu1 }
 0x108   :  { %v308_v30 = vadd.f32 %v886_v27, %v1054_v26  ;;  %v299_v31 = vpop.f32.mrb[11].mxu0  ;;  %v437_v32 = vmax.f32 %v385_v23, 0.0  ;;  %v388_v33 = vadd.f32 %v906_v29, %v1054_v26  ;;  %v379_v34 = vpop.f32.mrb[11].mxu1  ;;  %v417_v38 = vmax.f32 %v305_v21, 0.0 }
 0x109   :  { %v300_v35 = vadd.f32 %v1054_v26, %v299_v31  ;;  %v435_v36 = vmax.f32 %v377_v28, 0.0  ;;  %v380_v37 = vadd.f32 %v1054_v26, %v379_v34  ;;  %v415_v41 = vmax.f32 %v297_v25, 0.0 }
 0x10a   :  { %v418_v39 = vmax.f32 %v308_v30, 0.0  ;;  %v438_v40 = vmax.f32 %v388_v33, 0.0 }
 0x10b   :  { %v416_v42 = vmax.f32 %v300_v35, 0.0  ;;  %v436_v43 = vmax.f32 %v380_v37, 0.0 }
 0x10c   :  { %v754_v44 = vpack.c.bf16 %v418_v39, %v417_v38  ;;  %v804_v45 = vpack.c.bf16 %v438_v40, %v437_v32 }
 0x10d   :  { %v749_v46 = vpack.c.bf16 %v416_v42, %v415_v41  ;;  %v889_v47 = vpop.f32.mrb[12].mxu0  ;;  %v799_v48 = vpack.c.bf16 %v436_v43, %v435_v36  ;;  %v909_v49 = vpop.f32.mrb[12].mxu1 }
 0x10e   :  { %820 = vst [vmem:[%s1149_s3 + $0x28] sm:$0xff] %v754_v44   ;;  %830 = vst [vmem:[%s1149_s3 + $0x78] sm:$0xff] %v804_v45   ;;  %v321_v50 = vadd.f32 %v889_v47, %v1054_v26  ;;  %v312_v51 = vpop.f32.mrb[13].mxu0  ;;  %v401_v52 = vadd.f32 %v909_v49, %v1054_v26  ;;  %v392_v53 = vpop.f32.mrb[13].mxu1 }
 0x10f   :  { %819 = vst [vmem:[%s1149_s3 + $0x20] sm:$0xff] %v749_v46   ;;  %829 = vst [vmem:[%s1149_s3 + $0x70] sm:$0xff] %v799_v48   ;;  %v313_v54 = vadd.f32 %v1054_v26, %v312_v51  ;;  %v890_v55 = vpop.f32.mrb[14].mxu0  ;;  %v393_v56 = vadd.f32 %v1054_v26, %v392_v53  ;;  %v910_v57 = vpop.f32.mrb[14].mxu1 }
 0x110   :  { %v324_v58 = vadd.f32 %v890_v55, %v1054_v26  ;;  %v315_v59 = vpop.f32.mrb[15].mxu0  ;;  %v441_v60 = vmax.f32 %v401_v52, 0.0  ;;  %v404_v61 = vadd.f32 %v910_v57, %v1054_v26  ;;  %v395_v62 = vpop.f32.mrb[15].mxu1  ;;  %v421_v2 = vmax.f32 %v321_v50, 0.0 }
 0x111   :  { %v316_v63 = vadd.f32 %v1054_v26, %v315_v59  ;;  %v439_v0 = vmax.f32 %v393_v56, 0.0  ;;  %v396_v1 = vadd.f32 %v1054_v26, %v395_v62  ;;  %v419_v5 = vmax.f32 %v313_v54, 0.0 }
 0x112   :  { %v422_v3 = vmax.f32 %v324_v58, 0.0  ;;  %v442_v4 = vmax.f32 %v404_v61, 0.0 }
 0x113   :  { %v420_v6 = vmax.f32 %v316_v63, 0.0  ;;  %v440_v7 = vmax.f32 %v396_v1, 0.0 }
 0x114   :  { %v764_v8 = vpack.c.bf16 %v422_v3, %v421_v2  ;;  %v814_v9 = vpack.c.bf16 %v442_v4, %v441_v60 }
 0x115   :  { %v759_v10 = vpack.c.bf16 %v420_v6, %v419_v5  ;;  %v893_v11 = vpop.f32.mrb[16].mxu0  ;;  %v809_v12 = vpack.c.bf16 %v440_v7, %v439_v0 }
 0x116   :  { %822 = vst [vmem:[%s1149_s3 + $0x38] sm:$0xff] %v764_v8   ;;  %832 = vst [vmem:[%s1149_s3 + $0x88] sm:$0xff] %v814_v9   ;;  %v337_v13 = vadd.f32 %v893_v11, %v1054_v26  ;;  %v328_v14 = vpop.f32.mrb[17].mxu0 }
 0x117   :  { %821 = vst [vmem:[%s1149_s3 + $0x30] sm:$0xff] %v759_v10   ;;  %831 = vst [vmem:[%s1149_s3 + $0x80] sm:$0xff] %v809_v12   ;;  %v329_v15 = vadd.f32 %v1054_v26, %v328_v14  ;;  %v894_v16 = vpop.f32.mrb[18].mxu0 }
 0x118   :  { %v340_v17 = vadd.f32 %v894_v16, %v1054_v26  ;;  %v331_v18 = vpop.f32.mrb[19].mxu0  ;;  %v425_v20 = vmax.f32 %v337_v13, 0.0 }
 0x119   :  { %v332_v19 = vadd.f32 %v1054_v26, %v331_v18  ;;  %v423_v22 = vmax.f32 %v329_v15, 0.0 }
 0x11a   :  { %v426_v21 = vmax.f32 %v340_v17, 0.0 }
 0x11b   :  { %v424_v23 = vmax.f32 %v332_v19, 0.0 }
 0x11c   :  { %v774_v24 = vpack.c.bf16 %v426_v21, %v425_v20 }
 0x11d   :  { %v769_v25 = vpack.c.bf16 %v424_v23, %v423_v22 }
 0x11e   :  { %824 = vst [vmem:[%s1149_s3 + $0x48] sm:$0xff] %v774_v24  }
 0x11f   :  { %823 = vst [vmem:[%s1149_s3 + $0x40] sm:$0xff] %v769_v25  }

// kernel: _lambda_.24
= control target key start
LH: loop header
LB: loop body
LE: loop exit
PB: predicated region body
PF: predicated region fallthrough
CT: control target
= control target key end

     0   :  { %s1110_s1 = inlined_call_operand.vmem [shape: bf16[128,128], index: 1, kind: input, shape index: {}]   ;;  %s1111_s0 = inlined_call_operand.vmem [shape: bf16[288,128], index: 0, kind: input, shape index: {}]   ;;  %s1112_s2 = inlined_call_operand.vmem [shape: f32[1,128], index: 2, kind: input, shape index: {}]   ;;  %s1113_s3 = inlined_call_operand.vmem [shape: bf16[288,128], index: 3, kind: output, shape index: {}]  }
   0x1   :  { %v891_v0 = vld [vmem:[%s1110_s1] sm:$0xff]   ;;  %v892_v1 = vld [vmem:[%s1110_s1 + $0x8] sm:$0xff]   ;;  %v893_v2 = vld [vmem:[%s1110_s1 + $0x10] sm:$0xff]  }
   0x2   :  { %823 = vmatprep.subr.bf16.mxu0 %v891_v0  ;;  %875 = vmatprep.subr.bf16.mxu1 %v891_v0  ;;  %v894_v3 = vld [vmem:[%s1110_s1 + $0x18] sm:$0xff]   ;;  %v899_v4 = vld [vmem:[%s1111_s0] sm:$0xff]   ;;  %v901_v5 = vld [vmem:[%s1111_s0 + $0x50] sm:$0xff]  }
   0x3   :  { %824 = vmatpush3.bf16.msra.mxu0 %v891_v0  ;;  %883 = vmatpush3.bf16.msra.mxu1 %v891_v0  ;;  %v895_v6 = vld [vmem:[%s1110_s1 + $0x20] sm:$0xff]   ;;  %v896_v7 = vld [vmem:[%s1110_s1 + $0x28] sm:$0xff]   ;;  %v897_v8 = vld [vmem:[%s1110_s1 + $0x30] sm:$0xff]  }
   0x4   :  { %825 = vmatprep.subr.bf16.mxu0 %v892_v1  ;;  %876 = vmatprep.subr.bf16.mxu1 %v892_v1  ;;  %v898_v9 = vld [vmem:[%s1110_s1 + $0x38] sm:$0xff]   ;;  %v900_v10 = vld [vmem:[%s1111_s0 + $0x8] sm:$0xff]   ;;  %v903_v12 = vld [vmem:[%s1111_s0 + $0x10] sm:$0xff]  }
   0x5   :  { %839 = vmatprep.mubr.bf16.mxu0 %v899_v4  ;;  %859 = vmatprep.mubr.bf16.mxu1 %v901_v5  ;;  %v902_v11 = vld [vmem:[%s1111_s0 + $0x58] sm:$0xff]   ;;  %v905_v13 = vld [vmem:[%s1111_s0 + $0x60] sm:$0xff]   ;;  %v906_v15 = vld [vmem:[%s1111_s0 + $0x68] sm:$0xff]  }
   0x6   :  { %v904_v14 = vld [vmem:[%s1111_s0 + $0x18] sm:$0xff]   ;;  %v907_v16 = vld [vmem:[%s1111_s0 + $0x20] sm:$0xff]   ;;  %v909_v17 = vld [vmem:[%s1111_s0 + $0x70] sm:$0xff]  }
   0x7   :  { %826 = vmatpush3.bf16.msra.mxu0 %v892_v1  ;;  %884 = vmatpush3.bf16.msra.mxu1 %v892_v1  ;;  %v908_v18 = vld [vmem:[%s1111_s0 + $0x28] sm:$0xff]   ;;  %v910_v19 = vld [vmem:[%s1111_s0 + $0x78] sm:$0xff]   ;;  %v911_v20 = vld [vmem:[%s1111_s0 + $0x30] sm:$0xff]  }
   0x8   :  { %827 = vmatprep.subr.bf16.mxu0 %v893_v2  ;;  %877 = vmatprep.subr.bf16.mxu1 %v893_v2  ;;  %v913_v21 = vld [vmem:[%s1111_s0 + $0x80] sm:$0xff]   ;;  %v912_v22 = vld [vmem:[%s1111_s0 + $0x38] sm:$0xff]   ;;  %v914_v23 = vld [vmem:[%s1111_s0 + $0x88] sm:$0xff]  }
   0x9   :  { %v915_v24 = vld [vmem:[%s1111_s0 + $0x40] sm:$0xff]   ;;  %v916_v25 = vld [vmem:[%s1111_s0 + $0x48] sm:$0xff]  }
   0xa   :  { %v1018_v27 = vld [vmem:[%s1112_s2] ss:$0 sm:$0xff] }
   0xb   :  { %828 = vmatpush3.bf16.msra.mxu0 %v893_v2  ;;  %885 = vmatpush3.bf16.msra.mxu1 %v893_v2 }
   0xc   :  { %829 = vmatprep.subr.bf16.mxu0 %v894_v3  ;;  %878 = vmatprep.subr.bf16.mxu1 %v894_v3 }
   0xf   :  { %830 = vmatpush3.bf16.msra.mxu0 %v894_v3  ;;  %886 = vmatpush3.bf16.msra.mxu1 %v894_v3 }
  0x10   :  { %831 = vmatprep.subr.bf16.mxu0 %v895_v6  ;;  %879 = vmatprep.subr.bf16.mxu1 %v895_v6 }
  0x13   :  { %832 = vmatpush3.bf16.msra.mxu0 %v895_v6  ;;  %887 = vmatpush3.bf16.msra.mxu1 %v895_v6 }
  0x14   :  { %833 = vmatprep.subr.bf16.mxu0 %v896_v7  ;;  %880 = vmatprep.subr.bf16.mxu1 %v896_v7 }
  0x17   :  { %834 = vmatpush3.bf16.msra.mxu0 %v896_v7  ;;  %888 = vmatpush3.bf16.msra.mxu1 %v896_v7 }
  0x18   :  { %835 = vmatprep.subr.bf16.mxu0 %v897_v8  ;;  %881 = vmatprep.subr.bf16.mxu1 %v897_v8 }
  0x1b   :  { %836 = vmatpush3.bf16.msra.mxu0 %v897_v8  ;;  %889 = vmatpush3.bf16.msra.mxu1 %v897_v8 }
  0x1c   :  { %837 = vmatprep.subr.bf16.mxu0 %v898_v9  ;;  %882 = vmatprep.subr.bf16.mxu1 %v898_v9 }
  0x1f   :  { %838 = vmatpush3.bf16.msra.mxu0 %v898_v9  ;;  %890 = vmatpush3.bf16.msra.mxu1 %v898_v9 }
  0x22   :  { %840 = vmatmul.mubr.bf16.vlgmr.msra.gmra.mrb[0].mxu0 %v900_v10  ;;  %860 = vmatmul.mubr.bf16.vlgmr.msra.gmra.mrb[0].mxu1 %v902_v11 }
  0x23   :  { %843 = vmatprep.mubr.bf16.mxu0 %v903_v12  ;;  %863 = vmatprep.mubr.bf16.mxu1 %v905_v13 }
  0x2a   :  { %844 = vmatmul.mubr.bf16.gmra.mrb[4].mxu0 %v904_v14  ;;  %864 = vmatmul.mubr.bf16.gmra.mrb[4].mxu1 %v906_v15 }
  0x2b   :  { %847 = vmatprep.mubr.bf16.mxu0 %v907_v16  ;;  %867 = vmatprep.mubr.bf16.mxu1 %v909_v17 }
  0x32   :  { %848 = vmatmul.mubr.bf16.gmra.mrb[8].mxu0 %v908_v18  ;;  %868 = vmatmul.mubr.bf16.gmra.mrb[8].mxu1 %v910_v19 }
  0x33   :  { %851 = vmatprep.mubr.bf16.mxu0 %v911_v20  ;;  %871 = vmatprep.mubr.bf16.mxu1 %v913_v21 }
  0x3a   :  { %852 = vmatmul.mubr.bf16.gmra.mrb[12].mxu0 %v912_v22  ;;  %872 = vmatmul.mubr.bf16.gmra.mrb[12].mxu1 %v914_v23 }
  0x3b   :  { %855 = vmatprep.mubr.bf16.mxu0 %v915_v24 }
  0x42   :  { %856 = vmatmul.mubr.bf16.gmra.mrb[16].mxu0 %v916_v25 }
  0xf5   :  { %v841_v26 = vpop.f32.mrb[0].mxu0  ;;  %v861_v28 = vpop.f32.mrb[0].mxu1 }
  0xf6   :  { %v264_v29 = vpop.f32.mrb[1].mxu0  ;;  %v353_v30 = vadd.f32 %v861_v28, %v1018_v27  ;;  %v344_v31 = vpop.f32.mrb[1].mxu1  ;;  %v273_v35 = vadd.f32 %v841_v26, %v1018_v27 }
  0xf7   :  { %v842_v32 = vpop.f32.mrb[2].mxu0  ;;  %v345_v33 = vadd.f32 %v1018_v27, %v344_v31  ;;  %v862_v34 = vpop.f32.mrb[2].mxu1  ;;  %v265_v40 = vadd.f32 %v1018_v27, %v264_v29 }
  0xf8   :  { %v276_v36 = vadd.f32 %v842_v32, %v1018_v27  ;;  %v267_v37 = vpop.f32.mrb[3].mxu0  ;;  %v356_v38 = vadd.f32 %v862_v34, %v1018_v27  ;;  %v347_v39 = vpop.f32.mrb[3].mxu1 }
  0xf9   :  { %v268_v41 = vadd.f32 %v1018_v27, %v267_v37  ;;  %v348_v42 = vadd.f32 %v1018_v27, %v347_v39 }
  0xfa   :  { %v698_v43 = vpack.c.bf16 %v276_v36, %v273_v35  ;;  %v748_v44 = vpack.c.bf16 %v356_v38, %v353_v30 }
  0xfb   :  { %v693_v45 = vpack.c.bf16 %v268_v41, %v265_v40  ;;  %v743_v46 = vpack.c.bf16 %v348_v42, %v345_v33 }
  0xfc   :  { %780 = vst [vmem:[%s1113_s3 + $0x8] sm:$0xff] %v698_v43   ;;  %790 = vst [vmem:[%s1113_s3 + $0x58] sm:$0xff] %v748_v44  }
  0xfd   :  { %694 = vst [vmem:[%s1113_s3] sm:$0xff] %v693_v45   ;;  %v845_v47 = vpop.f32.mrb[4].mxu0  ;;  %789 = vst [vmem:[%s1113_s3 + $0x50] sm:$0xff] %v743_v46   ;;  %v865_v48 = vpop.f32.mrb[4].mxu1 }
  0xfe   :  { %v280_v49 = vpop.f32.mrb[5].mxu0  ;;  %v369_v50 = vadd.f32 %v865_v48, %v1018_v27  ;;  %v360_v51 = vpop.f32.mrb[5].mxu1  ;;  %v289_v55 = vadd.f32 %v845_v47, %v1018_v27 }
  0xff   :  { %v846_v52 = vpop.f32.mrb[6].mxu0  ;;  %v361_v53 = vadd.f32 %v1018_v27, %v360_v51  ;;  %v866_v54 = vpop.f32.mrb[6].mxu1  ;;  %v281_v60 = vadd.f32 %v1018_v27, %v280_v49 }
 0x100   :  { %v292_v56 = vadd.f32 %v846_v52, %v1018_v27  ;;  %v283_v57 = vpop.f32.mrb[7].mxu0  ;;  %v372_v58 = vadd.f32 %v866_v54, %v1018_v27  ;;  %v363_v59 = vpop.f32.mrb[7].mxu1 }
 0x101   :  { %v284_v61 = vadd.f32 %v1018_v27, %v283_v57  ;;  %v364_v62 = vadd.f32 %v1018_v27, %v363_v59 }
 0x102   :  { %v708_v63 = vpack.c.bf16 %v292_v56, %v289_v55  ;;  %v758_v0 = vpack.c.bf16 %v372_v58, %v369_v50 }
 0x103   :  { %v703_v1 = vpack.c.bf16 %v284_v61, %v281_v60  ;;  %v753_v2 = vpack.c.bf16 %v364_v62, %v361_v53 }
 0x104   :  { %782 = vst [vmem:[%s1113_s3 + $0x18] sm:$0xff] %v708_v63   ;;  %792 = vst [vmem:[%s1113_s3 + $0x68] sm:$0xff] %v758_v0  }
 0x105   :  { %781 = vst [vmem:[%s1113_s3 + $0x10] sm:$0xff] %v703_v1   ;;  %v849_v3 = vpop.f32.mrb[8].mxu0  ;;  %791 = vst [vmem:[%s1113_s3 + $0x60] sm:$0xff] %v753_v2   ;;  %v869_v4 = vpop.f32.mrb[8].mxu1 }
 0x106   :  { %v296_v5 = vpop.f32.mrb[9].mxu0  ;;  %v385_v6 = vadd.f32 %v869_v4, %v1018_v27  ;;  %v376_v7 = vpop.f32.mrb[9].mxu1  ;;  %v305_v11 = vadd.f32 %v849_v3, %v1018_v27 }
 0x107   :  { %v850_v8 = vpop.f32.mrb[10].mxu0  ;;  %v377_v9 = vadd.f32 %v1018_v27, %v376_v7  ;;  %v870_v10 = vpop.f32.mrb[10].mxu1  ;;  %v297_v16 = vadd.f32 %v1018_v27, %v296_v5 }
 0x108   :  { %v308_v12 = vadd.f32 %v850_v8, %v1018_v27  ;;  %v299_v13 = vpop.f32.mrb[11].mxu0  ;;  %v388_v14 = vadd.f32 %v870_v10, %v1018_v27  ;;  %v379_v15 = vpop.f32.mrb[11].mxu1 }
 0x109   :  { %v300_v17 = vadd.f32 %v1018_v27, %v299_v13  ;;  %v380_v18 = vadd.f32 %v1018_v27, %v379_v15 }
 0x10a   :  { %v718_v19 = vpack.c.bf16 %v308_v12, %v305_v11  ;;  %v768_v20 = vpack.c.bf16 %v388_v14, %v385_v6 }
 0x10b   :  { %v713_v21 = vpack.c.bf16 %v300_v17, %v297_v16  ;;  %v763_v22 = vpack.c.bf16 %v380_v18, %v377_v9 }
 0x10c   :  { %784 = vst [vmem:[%s1113_s3 + $0x28] sm:$0xff] %v718_v19   ;;  %794 = vst [vmem:[%s1113_s3 + $0x78] sm:$0xff] %v768_v20  }
 0x10d   :  { %783 = vst [vmem:[%s1113_s3 + $0x20] sm:$0xff] %v713_v21   ;;  %v853_v23 = vpop.f32.mrb[12].mxu0  ;;  %793 = vst [vmem:[%s1113_s3 + $0x70] sm:$0xff] %v763_v22   ;;  %v873_v24 = vpop.f32.mrb[12].mxu1 }
 0x10e   :  { %v312_v25 = vpop.f32.mrb[13].mxu0  ;;  %v401_v26 = vadd.f32 %v873_v24, %v1018_v27  ;;  %v392_v28 = vpop.f32.mrb[13].mxu1  ;;  %v321_v32 = vadd.f32 %v853_v23, %v1018_v27 }
 0x10f   :  { %v854_v29 = vpop.f32.mrb[14].mxu0  ;;  %v393_v30 = vadd.f32 %v1018_v27, %v392_v28  ;;  %v874_v31 = vpop.f32.mrb[14].mxu1  ;;  %v313_v37 = vadd.f32 %v1018_v27, %v312_v25 }
 0x110   :  { %v324_v33 = vadd.f32 %v854_v29, %v1018_v27  ;;  %v315_v34 = vpop.f32.mrb[15].mxu0  ;;  %v404_v35 = vadd.f32 %v874_v31, %v1018_v27  ;;  %v395_v36 = vpop.f32.mrb[15].mxu1 }
 0x111   :  { %v316_v38 = vadd.f32 %v1018_v27, %v315_v34  ;;  %v396_v39 = vadd.f32 %v1018_v27, %v395_v36 }
 0x112   :  { %v728_v40 = vpack.c.bf16 %v324_v33, %v321_v32  ;;  %v778_v41 = vpack.c.bf16 %v404_v35, %v401_v26 }
 0x113   :  { %v723_v42 = vpack.c.bf16 %v316_v38, %v313_v37  ;;  %v773_v43 = vpack.c.bf16 %v396_v39, %v393_v30 }
 0x114   :  { %786 = vst [vmem:[%s1113_s3 + $0x38] sm:$0xff] %v728_v40   ;;  %796 = vst [vmem:[%s1113_s3 + $0x88] sm:$0xff] %v778_v41  }
 0x115   :  { %785 = vst [vmem:[%s1113_s3 + $0x30] sm:$0xff] %v723_v42   ;;  %v857_v44 = vpop.f32.mrb[16].mxu0  ;;  %795 = vst [vmem:[%s1113_s3 + $0x80] sm:$0xff] %v773_v43  }
 0x116   :  { %v328_v45 = vpop.f32.mrb[17].mxu0  ;;  %v337_v47 = vadd.f32 %v857_v44, %v1018_v27 }
 0x117   :  { %v858_v46 = vpop.f32.mrb[18].mxu0  ;;  %v329_v50 = vadd.f32 %v1018_v27, %v328_v45 }
 0x118   :  { %v340_v48 = vadd.f32 %v858_v46, %v1018_v27  ;;  %v331_v49 = vpop.f32.mrb[19].mxu0 }
 0x119   :  { %v332_v51 = vadd.f32 %v1018_v27, %v331_v49 }
 0x11a   :  { %v738_v52 = vpack.c.bf16 %v340_v48, %v337_v47 }
 0x11b   :  { %v733_v53 = vpack.c.bf16 %v332_v51, %v329_v50 }
 0x11c   :  { %788 = vst [vmem:[%s1113_s3 + $0x48] sm:$0xff] %v738_v52  }
 0x11d   :  { %787 = vst [vmem:[%s1113_s3 + $0x40] sm:$0xff] %v733_v53  }

// kernel: _lambda_.25
= control target key start
LH: loop header
LB: loop body
LE: loop exit
PB: predicated region body
PF: predicated region fallthrough
CT: control target
= control target key end

     0   :  { %s3363_s12 = smov 0   ;;  %s3365_s13 = smov 0   ;;  %s3738_s0 = inlined_call_operand.vmem [shape: bf16[2,6,208,128], index: 0, kind: input, shape index: {}]   ;;  %s3739_s1 = inlined_call_operand.vmem [shape: bf16[9,128,128], index: 1, kind: input, shape index: {}]   ;;  %s3740_s2 = inlined_call_operand.vmem [shape: f32[1,128], index: 2, kind: input, shape index: {}]   ;;  %s3741_s3 = inlined_call_operand.vmem [shape: bf16[2,12,12,128], index: 3, kind: output, shape index: {}]  }
   0x1   :  { %s3367_s14 = smov 0   ;;  %s3369_s15 = smov 0  }
   0x2   :  { %s3371_s16 = smov 0  }
   0x3 LB: > { %s22_s17 = sadd.s32 1, %s3333_s14  ;;  %s25_s18 = sadd.s32 1, %s3337_s15  ;;  %s3341_s16 = sphi %s3371_s16, %s13_s16   ;;  %s3337_s15 = sphi %s3369_s15, %s3745_s15   ;;  %s3333_s14 = sphi %s3367_s14, %s3744_s14   ;;  %s3329_s13 = sphi %s3365_s13, %s3743_s13   ;;  %s3325_s12 = sphi %s3363_s12, %s3742_s12  }
   0x4   : > { %p23_p0 = scmp.ge.s32.totalorder %s22_s17, 2  ;;  %p2267_p1 = scmp.ge.s32.totalorder %s3341_s16, 1 }
   0x5   : > { %p151_p2 = scmp.lt.s32.totalorder %s3341_s16, 5 }
   0x6   : > { %s3747_s17 = smov (%p23_p0, %s22_s17), 0  ;;  %s3749_s18 = smov (!%p23_p0, %s25_s18), %s3337_s15 }
   0x7   : > { %p152_p3 = pnand %p2267_p1, %p151_p2  ;;  %p27_p4 = scmp.ge.s32.totalorder %s3749_s18, 2 }
   0x8   : > { %v3177_v0 = vld [vmem:[%s3739_s1 + $0x40] sm:$0xff] (!%p152_p3)   ;;  %p180_p5 = scmp.lt.s32.totalorder (!%p152_p3), %s3329_s13, 1  ;;  %v3179_v2 = vld [vmem:[%s3739_s1 + $0x48] sm:$0xff] (!%p152_p3)   ;;  %s197_s27 = smul.u32 (!%p152_p3), 96, %s3325_s12  ;;  %v3181_v4 = vld [vmem:[%s3739_s1 + $0x50] sm:$0xff] (!%p152_p3)  }
   0x9   : > { %s3751_s18 = smov (%p27_p4, %s3749_s18), 0  ;;  %155 = sbr.rel (%p152_p3) target bundleno = 402 (0x192), region = 32 }
   0xa   : > { %v3178_v1 = vld [vmem:[%s3739_s1 + $0x100] sm:$0xff] (!%p152_p3)   ;;  %2771 = vmatprep.subr.bf16.mxu1 (!%p152_p3), %v3177_v0  ;;  %v3180_v3 = vld [vmem:[%s3739_s1 + $0x108] sm:$0xff] (!%p152_p3)   ;;  %v3182_v5 = vld [vmem:[%s3739_s1 + $0x110] sm:$0xff] (!%p152_p3)   ;;  %s198_s6 = sshra.s32 (!%p152_p3), %s197_s27, 3  ;;  %s1428_s29 = sadd.s32 (!%p152_p3), 16, %s197_s27 }
   0xb   : > { %2883 = vmatprep.subr.bf16.mxu0 (!%p152_p3), %v3178_v1  ;;  %2772 = vmatpush3.bf16.msra.mxu1 (!%p152_p3), %v3177_v0  ;;  %v3183_v6 = vld [vmem:[%s3739_s1 + $0x58] sm:$0xff] (!%p152_p3)   ;;  %s2271_s21 = sshll.u32 (!%p152_p3), %s198_s6, 2  ;;  %v3185_v8 = vld [vmem:[%s3739_s1 + $0x60] sm:$0xff] (!%p152_p3)   ;;  %v3187_v10 = vld [vmem:[%s3739_s1 + $0x68] sm:$0xff] (!%p152_p3)   ;;  %s1429_s30 = sshra.s32 (!%p152_p3), %s1428_s29, 3 }
   0xc   : > { %2884 = vmatpush3.bf16.msra.mxu0 (!%p152_p3), %v3178_v1  ;;  %2773 = vmatprep.subr.bf16.mxu1 (!%p152_p3), %v3179_v2  ;;  %v3184_v7 = vld [vmem:[%s3739_s1 + $0x118] sm:$0xff] (!%p152_p3)   ;;  %v3186_v9 = vld [vmem:[%s3739_s1 + $0x120] sm:$0xff] (!%p152_p3)   ;;  %v3188_v12 = vld [vmem:[%s3739_s1 + $0x128] sm:$0xff] (!%p152_p3)   ;;  %s2501_s9 = sshll.u32 (!%p152_p3), %s1429_s30, 2 }
   0xd   : > { %2885 = vmatprep.subr.bf16.mxu0 (!%p152_p3), %v3180_v3  ;;  %v3189_v14 = vld [vmem:[%s3739_s1 + $0x70] sm:$0xff] (!%p152_p3)   ;;  %v3191_v16 = vld [vmem:[%s3739_s1 + $0x78] sm:$0xff] (!%p152_p3)   ;;  %v3194_v18 = vld [vmem:[%s3739_s1] sm:$0xff] (!%p152_p3)  }
   0xe   : > { %v3190_v15 = vld [vmem:[%s3739_s1 + $0x130] sm:$0xff] (!%p152_p3)   ;;  %v3192_v17 = vld [vmem:[%s3739_s1 + $0x138] sm:$0xff] (!%p152_p3)   ;;  %v3196_v19 = vld [vmem:[%s3739_s1 + $0x140] sm:$0xff] (!%p152_p3)  }
   0xf   : > { %2774 = vmatpush3.bf16.msra.mxu1 (!%p152_p3), %v3179_v2  ;;  %v3199_v22 = vld [vmem:[%s3739_s1 + $0x8] sm:$0xff] (!%p152_p3)   ;;  %v3201_v26 = vld [vmem:[%s3739_s1 + $0x10] sm:$0xff] (!%p152_p3)   ;;  %v3203_v28 = vld [vmem:[%s3739_s1 + $0x18] sm:$0xff] (!%p152_p3)  }
  0x10   : > { %s3753_s13 = smov (!%p180_p5, %s3329_s13), 1  ;;  %2886 = vmatpush3.bf16.msra.mxu0 %v3180_v3  ;;  %2775 = vmatprep.subr.bf16.mxu1 %v3181_v4  ;;  %v3200_v23 = vld [vmem:[%s3739_s1 + $0x148] sm:$0xff]   ;;  %v3202_v27 = vld [vmem:[%s3739_s1 + $0x150] sm:$0xff]   ;;  %v3204_v31 = vld [vmem:[%s3739_s1 + $0x158] sm:$0xff]  }
  0x11   : > { %s3135_s5 = smul.u32 624, %s3753_s13  ;;  %2887 = vmatprep.subr.bf16.mxu0 %v3182_v5  ;;  %v3206_v34 = vld [vmem:[%s3739_s1 + $0x20] sm:$0xff]   ;;  %v3211_v36 = vld [vmem:[%s3739_s1 + $0x28] sm:$0xff]   ;;  %v3214_v42 = vld [vmem:[%s3739_s1 + $0x30] sm:$0xff]  }
  0x12   : > { %v3208_v35 = vld [vmem:[%s3739_s1 + $0x160] sm:$0xff]   ;;  %v3212_v39 = vld [vmem:[%s3739_s1 + $0x168] sm:$0xff]   ;;  %v3216_v43 = vld [vmem:[%s3739_s1 + $0x170] sm:$0xff]   ;;  %s3136_s4 = smul.u32 24, %s3753_s13 }
  0x13   : > { %s3428_s20 = scalar_lea.vmem %s3738_s0, %s3135_s5  ;;  %2776 = vmatpush3.bf16.msra.mxu1 %v3181_v4  ;;  %v3219_v44 = vld [vmem:[%s3739_s1 + $0x38] sm:$0xff]   ;;  %v3222_v46 = vld [vmem:[%s3739_s1 + $0x80] sm:$0xff]   ;;  %v3227_v50 = vld [vmem:[%s3739_s1 + $0x88] sm:$0xff]  }
  0x14   : > { %2888 = vmatpush3.bf16.msra.mxu0 %v3182_v5  ;;  %2777 = vmatprep.subr.bf16.mxu1 %v3183_v6  ;;  %s3437_s26 = scalar_lea.vmem %s3428_s20, %s2271_s21  ;;  %v3220_v45 = vld [vmem:[%s3739_s1 + $0x178] sm:$0xff]   ;;  %v3224_v47 = vld [vmem:[%s3739_s1 + $0x180] sm:$0xff]   ;;  %v3228_v51 = vld [vmem:[%s3739_s1 + $0x188] sm:$0xff]   ;;  %s3553_s19 = scalar_lea.vmem %s3428_s20, %s2501_s9 }
  0x15   : > { %2889 = vmatprep.subr.bf16.mxu0 %v3184_v7  ;;  %v3193_v11 = vld [vmem:[%s3437_s26 + $0x68] sm:$0xff]   ;;  %v3195_v13 = vld [vmem:[%s3437_s26 + $0x1a0] sm:$0xff]   ;;  %v3197_v20 = vld [vmem:[%s3437_s26 + $0x70] sm:$0xff]  }
  0x16   : > { %2787 = vmatprep.mubr.bf16.mxu1 %v3193_v11  ;;  %2899 = vmatprep.mubr.bf16.mxu0 %v3195_v13  ;;  %v3198_v21 = vld [vmem:[%s3437_s26 + $0x1a8] sm:$0xff]   ;;  %v3205_v24 = vld [vmem:[%s3437_s26 + $0x78] sm:$0xff]   ;;  %v3207_v25 = vld [vmem:[%s3437_s26 + $0x1b0] sm:$0xff]  }
  0x17   : > { %2778 = vmatpush3.bf16.msra.mxu1 %v3183_v6  ;;  %v3209_v29 = vld [vmem:[%s3437_s26 + $0x80] sm:$0xff]   ;;  %v3210_v30 = vld [vmem:[%s3437_s26 + $0x1b8] sm:$0xff]   ;;  %v3213_v32 = vld [vmem:[%s3437_s26 + $0x88] sm:$0xff]  }
  0x18   : > { %2890 = vmatpush3.bf16.msra.mxu0 %v3184_v7  ;;  %2779 = vmatprep.subr.bf16.mxu1 %v3185_v8  ;;  %v3215_v33 = vld [vmem:[%s3437_s26 + $0x1c0] sm:$0xff]   ;;  %v3217_v37 = vld [vmem:[%s3437_s26 + $0x90] sm:$0xff]   ;;  %v3218_v38 = vld [vmem:[%s3437_s26 + $0x1c8] sm:$0xff]  }
  0x19   : > { %2891 = vmatprep.subr.bf16.mxu0 %v3186_v9  ;;  %v3221_v40 = vld [vmem:[%s3437_s26] sm:$0xff]   ;;  %v3223_v41 = vld [vmem:[%s3437_s26 + $0x208] sm:$0xff]   ;;  %v3226_v49 = vld [vmem:[%s3437_s26 + $0x210] sm:$0xff]  }
  0x1a   : > { %v3225_v48 = vld [vmem:[%s3437_s26 + $0x8] sm:$0xff]   ;;  %v3233_v52 = vld [vmem:[%s3437_s26 + $0x10] sm:$0xff]   ;;  %v3235_v53 = vld [vmem:[%s3437_s26 + $0x218] sm:$0xff]  }
  0x1b   : > { %2780 = vmatpush3.bf16.msra.mxu1 %v3185_v8  ;;  %v3229_v54 = vld [vmem:[%s3739_s1 + $0x90] sm:$0xff]   ;;  %v3231_v56 = vld [vmem:[%s3739_s1 + $0x98] sm:$0xff]   ;;  %v3238_v58 = vld [vmem:[%s3437_s26 + $0x220] sm:$0xff]  }
  0x1c   : > { %2892 = vmatpush3.bf16.msra.mxu0 %v3186_v9  ;;  %2781 = vmatprep.subr.bf16.mxu1 %v3187_v10  ;;  %v3230_v55 = vld [vmem:[%s3739_s1 + $0x190] sm:$0xff]   ;;  %v3237_v57 = vld [vmem:[%s3437_s26 + $0x18] sm:$0xff]   ;;  %v3241_v60 = vld [vmem:[%s3437_s26 + $0x20] sm:$0xff]  }
  0x1d   : > { %2893 = vmatprep.subr.bf16.mxu0 %v3188_v12  ;;  %v3232_v59 = vld [vmem:[%s3739_s1 + $0x198] sm:$0xff]   ;;  %v3243_v61 = vld [vmem:[%s3437_s26 + $0x228] sm:$0xff]   ;;  %v3234_v62 = vld [vmem:[%s3739_s1 + $0xa0] sm:$0xff]  }
  0x1e   : > { %v3236_v63 = vld [vmem:[%s3739_s1 + $0x1a0] sm:$0xff]   ;;  %v3239_v0 = vld [vmem:[%s3739_s1 + $0xa8] sm:$0xff]   ;;  %v3246_v2 = vld [vmem:[%s3437_s26 + $0x230] sm:$0xff]  }
  0x1f   : > { %2782 = vmatpush3.bf16.msra.mxu1 %v3187_v10  ;;  %v3245_v1 = vld [vmem:[%s3437_s26 + $0x28] sm:$0xff]   ;;  %v3249_v4 = vld [vmem:[%s3437_s26 + $0xd0] sm:$0xff]   ;;  %v3251_v5 = vld [vmem:[%s3553_s19] sm:$0xff]  }
  0x20   : > { %2894 = vmatpush3.bf16.msra.mxu0 %v3188_v12  ;;  %2783 = vmatprep.subr.bf16.mxu1 %v3189_v14  ;;  %v3240_v3 = vld [vmem:[%s3739_s1 + $0x1a8] sm:$0xff]   ;;  %v3242_v6 = vld [vmem:[%s3739_s1 + $0xb0] sm:$0xff]   ;;  %v3247_v8 = vld [vmem:[%s3739_s1 + $0xb8] sm:$0xff]  }
  0x21   : > { %2895 = vmatprep.subr.bf16.mxu0 %v3190_v15  ;;  %v3244_v7 = vld [vmem:[%s3739_s1 + $0x1b0] sm:$0xff]   ;;  %v3248_v9 = vld [vmem:[%s3739_s1 + $0x1b8] sm:$0xff]   ;;  %v3250_v10 = vld [vmem:[%s3739_s1 + $0xc0] sm:$0xff]  }
  0x22   : > { %v3252_v11 = vld [vmem:[%s3739_s1 + $0x1c0] sm:$0xff]   ;;  %v3253_v12 = vld [vmem:[%s3437_s26 + $0xd8] sm:$0xff]   ;;  %v3254_v13 = vld [vmem:[%s3553_s19 + $0x8] sm:$0xff]  }
  0x23   : > { %2784 = vmatpush3.bf16.msra.mxu1 %v3189_v14  ;;  %v3255_v14 = vld [vmem:[%s3739_s1 + $0xc8] sm:$0xff]  }
  0x24   : > { %2896 = vmatpush3.bf16.msra.mxu0 %v3190_v15  ;;  %2785 = vmatprep.subr.bf16.mxu1 %v3191_v16  ;;  %v3256_v15 = vld [vmem:[%s3739_s1 + $0x1c8] sm:$0xff]  }
  0x25   : > { %2897 = vmatprep.subr.bf16.mxu0 %v3192_v17 }
  0x27   : > { %2786 = vmatpush3.bf16.msra.mxu1 %v3191_v16  ;;  %v3261_v16 = vld [vmem:[%s3437_s26 + $0xe0] sm:$0xff]  }
  0x28   : > { %2898 = vmatpush3.bf16.msra.mxu0 %v3192_v17  ;;  %2799 = vmatprep.subr.bf16.mxu1 %v3194_v18  ;;  %v3262_v17 = vld [vmem:[%s3553_s19 + $0x10] sm:$0xff]  }
  0x29   : > { %2911 = vmatprep.subr.bf16.mxu0 %v3196_v19 }
  0x2a   : > { %2788 = vmatmul.mubr.bf16.vlgmr.msra.gmra.mrb[0].mxu1 %v3197_v20  ;;  %v3259_v20 = vld [vmem:[%s3739_s1 + $0xd8] sm:$0xff]  }
  0x2b   : > { %2800 = vmatpush3.bf16.msra.mxu1 %v3194_v18  ;;  %2900 = vmatmul.mubr.bf16.vlgmr.msra.gmra.mrb[0].mxu0 %v3198_v21  ;;  %v3257_v18 = vld [vmem:[%s3739_s1 + $0xd0] sm:$0xff]   ;;  %v3263_v21 = vld [vmem:[%s3437_s26 + $0xe8] sm:$0xff]  }
  0x2c   : > { %2912 = vmatpush3.bf16.msra.mxu0 %v3196_v19  ;;  %2801 = vmatprep.subr.bf16.mxu1 %v3199_v22  ;;  %v3258_v19 = vld [vmem:[%s3739_s1 + $0x1d0] sm:$0xff]  }
  0x2d   : > { %2913 = vmatprep.subr.bf16.mxu0 %v3200_v23  ;;  %2791 = vmatprep.mubr.bf16.mxu1 %v3205_v24  ;;  %v3269_v24 = vld [vmem:[%s3437_s26 + $0xf0] sm:$0xff]  }
  0x2e   : > { %2903 = vmatprep.mubr.bf16.mxu0 %v3207_v25  ;;  %v3270_v25 = vld [vmem:[%s3553_s19 + $0x20] sm:$0xff]  }
  0x2f   : > { %2802 = vmatpush3.bf16.msra.mxu1 %v3199_v22  ;;  %v3265_v22 = vld [vmem:[%s3553_s19 + $0x18] sm:$0xff]  }
  0x30   : > { %2914 = vmatpush3.bf16.msra.mxu0 %v3200_v23  ;;  %2803 = vmatprep.subr.bf16.mxu1 %v3201_v26  ;;  %v3260_v23 = vld [vmem:[%s3739_s1 + $0x1d8] sm:$0xff]  }
  0x31   : > { %2915 = vmatprep.subr.bf16.mxu0 %v3202_v27 }
  0x32   : > { %2792 = vmatmul.mubr.bf16.gmra.mrb[4].mxu1 %v3209_v29  ;;  %v3271_v29 = vld [vmem:[%s3437_s26 + $0xf8] sm:$0xff]  }
  0x33   : > { %2804 = vmatpush3.bf16.msra.mxu1 %v3201_v26  ;;  %2904 = vmatmul.mubr.bf16.gmra.mrb[4].mxu0 %v3210_v30  ;;  %v3264_v26 = vld [vmem:[%s3739_s1 + $0xe0] sm:$0xff]   ;;  %v3273_v30 = vld [vmem:[%s3553_s19 + $0x28] sm:$0xff]  }
  0x34   : > { %2916 = vmatpush3.bf16.msra.mxu0 %v3202_v27  ;;  %2805 = vmatprep.subr.bf16.mxu1 %v3203_v28  ;;  %v3266_v27 = vld [vmem:[%s3739_s1 + $0x1e0] sm:$0xff]  }
  0x35   : > { %2917 = vmatprep.subr.bf16.mxu0 %v3204_v31  ;;  %2795 = vmatprep.mubr.bf16.mxu1 %v3213_v32  ;;  %v3277_v32 = vld [vmem:[%s3437_s26 + $0x138] sm:$0xff]  }
  0x36   : > { %2907 = vmatprep.mubr.bf16.mxu0 %v3215_v33  ;;  %v3278_v33 = vld [vmem:[%s3553_s19 + $0x68] sm:$0xff]  }
  0x37   : > { %2806 = vmatpush3.bf16.msra.mxu1 %v3203_v28  ;;  %v3267_v28 = vld [vmem:[%s3739_s1 + $0xe8] sm:$0xff]  }
  0x38   : > { %2918 = vmatpush3.bf16.msra.mxu0 %v3204_v31  ;;  %2807 = vmatprep.subr.bf16.mxu1 %v3206_v34  ;;  %v3268_v31 = vld [vmem:[%s3739_s1 + $0x1e8] sm:$0xff]  }
  0x39   : > { %2919 = vmatprep.subr.bf16.mxu0 %v3208_v35 }
  0x3a   : > { %2796 = vmatmul.mubr.bf16.gmra.mrb[8].mxu1 %v3217_v37  ;;  %v3276_v37 = vld [vmem:[%s3739_s1 + $0x1f8] sm:$0xff]  }
  0x3b   : > { %2808 = vmatpush3.bf16.msra.mxu1 %v3206_v34  ;;  %2908 = vmatmul.mubr.bf16.gmra.mrb[8].mxu0 %v3218_v38  ;;  %v3272_v34 = vld [vmem:[%s3739_s1 + $0xf0] sm:$0xff]   ;;  %v3281_v38 = vld [vmem:[%s3739_s1 + $0x200] sm:$0xff]  }
  0x3c   : > { %2920 = vmatpush3.bf16.msra.mxu0 %v3208_v35  ;;  %2809 = vmatprep.subr.bf16.mxu1 %v3211_v36  ;;  %v3274_v35 = vld [vmem:[%s3739_s1 + $0x1f0] sm:$0xff]  }
  0x3d   : > { %2921 = vmatprep.subr.bf16.mxu0 %v3212_v39  ;;  %2815 = vmatprep.mubr.bf16.mxu1 %v3221_v40  ;;  %v3280_v40 = vld [vmem:[%s3553_s19 + $0x70] sm:$0xff]  }
  0x3e   : > { %2927 = vmatprep.mubr.bf16.mxu0 %v3223_v41  ;;  %v3282_v41 = vld [vmem:[%s3739_s1 + $0x208] sm:$0xff]  }
  0x3f   : > { %2810 = vmatpush3.bf16.msra.mxu1 %v3211_v36  ;;  %v3275_v36 = vld [vmem:[%s3739_s1 + $0xf8] sm:$0xff]  }
  0x40   : > { %2922 = vmatpush3.bf16.msra.mxu0 %v3212_v39  ;;  %2811 = vmatprep.subr.bf16.mxu1 %v3214_v42  ;;  %v3279_v39 = vld [vmem:[%s3437_s26 + $0x140] sm:$0xff]  }
  0x41   : > { %2923 = vmatprep.subr.bf16.mxu0 %v3216_v43 }
  0x43   : > { %2812 = vmatpush3.bf16.msra.mxu1 %v3214_v42  ;;  %v3283_v42 = vld [vmem:[%s3437_s26 + $0x148] sm:$0xff]  }
  0x44   : > { %2924 = vmatpush3.bf16.msra.mxu0 %v3216_v43  ;;  %2813 = vmatprep.subr.bf16.mxu1 %v3219_v44  ;;  %v3284_v43 = vld [vmem:[%s3553_s19 + $0x78] sm:$0xff]  }
  0x45   : > { %2925 = vmatprep.subr.bf16.mxu0 %v3220_v45 }
  0x47   : > { %2814 = vmatpush3.bf16.msra.mxu1 %v3219_v44  ;;  %v3287_v44 = vld [vmem:[%s3739_s1 + $0x210] sm:$0xff]  }
  0x48   : > { %2926 = vmatpush3.bf16.msra.mxu0 %v3220_v45  ;;  %2827 = vmatprep.subr.bf16.mxu1 %v3222_v46  ;;  %v3285_v45 = vld [vmem:[%s3437_s26 + $0x150] sm:$0xff]  }
  0x49   : > { %2939 = vmatprep.subr.bf16.mxu0 %v3224_v47 }
  0x4a   : > { %2816 = vmatmul.mubr.bf16.vlgmr.msra.gmra.mrb[0].mxu1 %v3225_v48  ;;  %v3289_v48 = vld [vmem:[%s3437_s26 + $0x158] sm:$0xff]  }
  0x4b   : > { %2828 = vmatpush3.bf16.msra.mxu1 %v3222_v46  ;;  %2928 = vmatmul.mubr.bf16.vlgmr.msra.gmra.mrb[0].mxu0 %v3226_v49  ;;  %v3286_v46 = vld [vmem:[%s3553_s19 + $0x80] sm:$0xff]   ;;  %v3290_v49 = vld [vmem:[%s3553_s19 + $0x88] sm:$0xff]  }
  0x4c   : > { %2940 = vmatpush3.bf16.msra.mxu0 %v3224_v47  ;;  %2829 = vmatprep.subr.bf16.mxu1 %v3227_v50  ;;  %v3288_v47 = vld [vmem:[%s3739_s1 + $0x218] sm:$0xff]  }
  0x4d   : > { %2941 = vmatprep.subr.bf16.mxu0 %v3228_v51  ;;  %2819 = vmatprep.mubr.bf16.mxu1 %v3233_v52  ;;  %v3292_v52 = vld [vmem:[%s3553_s19 + $0x90] sm:$0xff]  }
  0x4e   : > { %2931 = vmatprep.mubr.bf16.mxu0 %v3235_v53  ;;  %v3294_v53 = vld [vmem:[%s3739_s1 + $0x228] sm:$0xff]  }
  0x4f   : > { %2830 = vmatpush3.bf16.msra.mxu1 %v3227_v50  ;;  %v3293_v50 = vld [vmem:[%s3739_s1 + $0x220] sm:$0xff]  }
  0x50   : > { %2942 = vmatpush3.bf16.msra.mxu0 %v3228_v51  ;;  %2831 = vmatprep.subr.bf16.mxu1 %v3229_v54  ;;  %v3291_v51 = vld [vmem:[%s3437_s26 + $0x160] sm:$0xff]  }
  0x51   : > { %2943 = vmatprep.subr.bf16.mxu0 %v3230_v55 }
  0x52   : > { %2820 = vmatmul.mubr.bf16.gmra.mrb[4].mxu1 %v3237_v57  ;;  %v3296_v57 = vld [vmem:[%s3739_s1 + $0x238] sm:$0xff]  }
  0x53   : > { %2832 = vmatpush3.bf16.msra.mxu1 %v3229_v54  ;;  %2932 = vmatmul.mubr.bf16.gmra.mrb[4].mxu0 %v3238_v58  ;;  %v3297_v54 = vld [vmem:[%s3553_s19 + $0xd0] sm:$0xff]   ;;  %v3300_v58 = vld [vmem:[%s3553_s19 + $0xe8] sm:$0xff]  }
  0x54   : > { %2944 = vmatpush3.bf16.msra.mxu0 %v3230_v55  ;;  %2833 = vmatprep.subr.bf16.mxu1 %v3231_v56  ;;  %v3298_v55 = vld [vmem:[%s3553_s19 + $0xe0] sm:$0xff]  }
  0x55   : > { %2945 = vmatprep.subr.bf16.mxu0 %v3232_v59  ;;  %2823 = vmatprep.mubr.bf16.mxu1 %v3241_v60  ;;  %v3301_v60 = vld [vmem:[%s3553_s19 + $0xf0] sm:$0xff]  }
  0x56   : > { %2935 = vmatprep.mubr.bf16.mxu0 %v3243_v61  ;;  %v3302_v61 = vld [vmem:[%s3553_s19 + $0xf8] sm:$0xff]  }
  0x57   : > { %2834 = vmatpush3.bf16.msra.mxu1 %v3231_v56  ;;  %v3295_v56 = vld [vmem:[%s3739_s1 + $0x230] sm:$0xff]  }
  0x58   : > { %2946 = vmatpush3.bf16.msra.mxu0 %v3232_v59  ;;  %2835 = vmatprep.subr.bf16.mxu1 %v3234_v62  ;;  %v3299_v59 = vld [vmem:[%s3553_s19 + $0xd8] sm:$0xff]   ;;  %s185_s19 = smul.u32 6, %s3325_s12 }
  0x59   : > { %2947 = vmatprep.subr.bf16.mxu0 %v3236_v63 }
  0x5a   : > { %2824 = vmatmul.mubr.bf16.gmra.mrb[8].mxu1 %v3245_v1  ;;  %p188_p6 = scmp.lt.s32.totalorder %s185_s19, 11 }
  0x5b   : > { %2836 = vmatpush3.bf16.msra.mxu1 %v3234_v62  ;;  %2936 = vmatmul.mubr.bf16.gmra.mrb[8].mxu0 %v3246_v2 }
  0x5c   : > { %2948 = vmatpush3.bf16.msra.mxu0 %v3236_v63  ;;  %2837 = vmatprep.subr.bf16.mxu1 %v3239_v0  ;;  %s3755_s19 = smov (!%p188_p6, %s185_s19), 11 }
  0x5d   : > { %2949 = vmatprep.subr.bf16.mxu0 %v3240_v3  ;;  %2843 = vmatprep.mubr.bf16.mxu1 %v3249_v4  ;;  %s2269_s5 = sshll.u32 %s3755_s19, 1 }
  0x5e   : > { %2955 = vmatprep.mubr.bf16.mxu0 %v3251_v5  ;;  %s192_s6 = sadd.s32 %s3136_s4, %s2269_s5 }
  0x5f   : > { %2838 = vmatpush3.bf16.msra.mxu1 %v3239_v0  ;;  %s2270_s12 = sshll.u32 %s192_s6, 2 }
  0x60   : > { %2950 = vmatpush3.bf16.msra.mxu0 %v3240_v3  ;;  %2839 = vmatprep.subr.bf16.mxu1 %v3242_v6  ;;  %s3701_s9 = scalar_lea.vmem %s3741_s3, %s2270_s12 }
  0x61   : > { %2951 = vmatprep.subr.bf16.mxu0 %v3244_v7 }
  0x63   : > { %2840 = vmatpush3.bf16.msra.mxu1 %v3242_v6 }
  0x64   : > { %2952 = vmatpush3.bf16.msra.mxu0 %v3244_v7  ;;  %2841 = vmatprep.subr.bf16.mxu1 %v3247_v8 }
  0x65   : > { %2953 = vmatprep.subr.bf16.mxu0 %v3248_v9 }
  0x67   : > { %2842 = vmatpush3.bf16.msra.mxu1 %v3247_v8 }
  0x68   : > { %2954 = vmatpush3.bf16.msra.mxu0 %v3248_v9  ;;  %2855 = vmatprep.subr.bf16.mxu1 %v3250_v10 }
  0x69   : > { %2967 = vmatprep.subr.bf16.mxu0 %v3252_v11 }
  0x6a   : > { %2844 = vmatmul.mubr.bf16.vlgmr.msra.gmra.mrb[0].mxu1 %v3253_v12 }
  0x6b   : > { %2856 = vmatpush3.bf16.msra.mxu1 %v3250_v10  ;;  %2956 = vmatmul.mubr.bf16.vlgmr.msra.gmra.mrb[0].mxu0 %v3254_v13 }
  0x6c   : > { %2968 = vmatpush3.bf16.msra.mxu0 %v3252_v11  ;;  %2857 = vmatprep.subr.bf16.mxu1 %v3255_v14 }
  0x6d   : > { %2969 = vmatprep.subr.bf16.mxu0 %v3256_v15  ;;  %2847 = vmatprep.mubr.bf16.mxu1 %v3261_v16 }
  0x6e   : > { %2959 = vmatprep.mubr.bf16.mxu0 %v3262_v17 }
  0x6f   : > { %2858 = vmatpush3.bf16.msra.mxu1 %v3255_v14 }
  0x70   : > { %2970 = vmatpush3.bf16.msra.mxu0 %v3256_v15  ;;  %2859 = vmatprep.subr.bf16.mxu1 %v3257_v18 }
  0x71   : > { %2971 = vmatprep.subr.bf16.mxu0 %v3258_v19 }
  0x72   : > { %2848 = vmatmul.mubr.bf16.gmra.mrb[4].mxu1 %v3263_v21 }
  0x73   : > { %2860 = vmatpush3.bf16.msra.mxu1 %v3257_v18  ;;  %2960 = vmatmul.mubr.bf16.gmra.mrb[4].mxu0 %v3265_v22 }
  0x74   : > { %2972 = vmatpush3.bf16.msra.mxu0 %v3258_v19  ;;  %2861 = vmatprep.subr.bf16.mxu1 %v3259_v20 }
  0x75   : > { %2973 = vmatprep.subr.bf16.mxu0 %v3260_v23  ;;  %2851 = vmatprep.mubr.bf16.mxu1 %v3269_v24 }
  0x76   : > { %2963 = vmatprep.mubr.bf16.mxu0 %v3270_v25 }
  0x77   : > { %2862 = vmatpush3.bf16.msra.mxu1 %v3259_v20 }
  0x78   : > { %2974 = vmatpush3.bf16.msra.mxu0 %v3260_v23  ;;  %2863 = vmatprep.subr.bf16.mxu1 %v3264_v26 }
  0x79   : > { %2975 = vmatprep.subr.bf16.mxu0 %v3266_v27 }
  0x7a   : > { %2852 = vmatmul.mubr.bf16.gmra.mrb[8].mxu1 %v3271_v29 }
  0x7b   : > { %2864 = vmatpush3.bf16.msra.mxu1 %v3264_v26  ;;  %2964 = vmatmul.mubr.bf16.gmra.mrb[8].mxu0 %v3273_v30  ;;  %v3691_v26 = vld [vmem:[%s3740_s2] ss:$0 sm:$0xff] }
  0x7c   : > { %2976 = vmatpush3.bf16.msra.mxu0 %v3266_v27  ;;  %2865 = vmatprep.subr.bf16.mxu1 %v3267_v28 }
  0x7d   : > { %2977 = vmatprep.subr.bf16.mxu0 %v3268_v31  ;;  %2871 = vmatprep.mubr.bf16.mxu1 %v3277_v32 }
  0x7e   : > { %2983 = vmatprep.mubr.bf16.mxu0 %v3278_v33 }
  0x7f   : > { %2866 = vmatpush3.bf16.msra.mxu1 %v3267_v28 }
  0x80   : > { %2978 = vmatpush3.bf16.msra.mxu0 %v3268_v31  ;;  %2867 = vmatprep.subr.bf16.mxu1 %v3272_v34 }
  0x81   : > { %2979 = vmatprep.subr.bf16.mxu0 %v3274_v35 }
  0x83   : > { %2868 = vmatpush3.bf16.msra.mxu1 %v3272_v34 }
  0x84   : > { %2980 = vmatpush3.bf16.msra.mxu0 %v3274_v35  ;;  %2869 = vmatprep.subr.bf16.mxu1 %v3275_v36 }
  0x85   : > { %2981 = vmatprep.subr.bf16.mxu0 %v3276_v37 }
  0x87   : > { %2870 = vmatpush3.bf16.msra.mxu1 %v3275_v36 }
  0x88   : > { %2982 = vmatpush3.bf16.msra.mxu0 %v3276_v37  ;;  %3023 = vmatprep.subr.bf16.mxu1 %v3281_v38 }
  0x89   : > { %2995 = vmatprep.subr.bf16.mxu0 %v3281_v38 }
  0x8a   : > { %2872 = vmatmul.mubr.bf16.vlgmr.msra.gmra.mrb[0].mxu1 %v3279_v39 }
  0x8b   : > { %2984 = vmatmul.mubr.bf16.vlgmr.msra.gmra.mrb[0].mxu0 %v3280_v40  ;;  %3031 = vmatpush3.bf16.msra.mxu1 %v3281_v38 }
  0x8c   : > { %2996 = vmatpush3.bf16.msra.mxu0 %v3281_v38  ;;  %3024 = vmatprep.subr.bf16.mxu1 %v3282_v41 }
  0x8d   : > { %2997 = vmatprep.subr.bf16.mxu0 %v3282_v41  ;;  %2875 = vmatprep.mubr.bf16.mxu1 %v3283_v42 }
  0x8e   : > { %2987 = vmatprep.mubr.bf16.mxu0 %v3284_v43 }
  0x8f   : > { %3032 = vmatpush3.bf16.msra.mxu1 %v3282_v41 }
  0x90   : > { %2998 = vmatpush3.bf16.msra.mxu0 %v3282_v41  ;;  %3025 = vmatprep.subr.bf16.mxu1 %v3287_v44 }
  0x91   : > { %2999 = vmatprep.subr.bf16.mxu0 %v3287_v44 }
  0x92   : > { %2876 = vmatmul.mubr.bf16.gmra.mrb[4].mxu1 %v3285_v45 }
  0x93   : > { %2988 = vmatmul.mubr.bf16.gmra.mrb[4].mxu0 %v3286_v46  ;;  %3033 = vmatpush3.bf16.msra.mxu1 %v3287_v44 }
  0x94   : > { %3000 = vmatpush3.bf16.msra.mxu0 %v3287_v44  ;;  %3026 = vmatprep.subr.bf16.mxu1 %v3288_v47 }
  0x95   : > { %3001 = vmatprep.subr.bf16.mxu0 %v3288_v47  ;;  %2879 = vmatprep.mubr.bf16.mxu1 %v3289_v48 }
  0x96   : > { %2991 = vmatprep.mubr.bf16.mxu0 %v3290_v49 }
  0x97   : > { %3034 = vmatpush3.bf16.msra.mxu1 %v3288_v47 }
  0x98   : > { %3002 = vmatpush3.bf16.msra.mxu0 %v3288_v47  ;;  %3027 = vmatprep.subr.bf16.mxu1 %v3293_v50 }
  0x99   : > { %3003 = vmatprep.subr.bf16.mxu0 %v3293_v50 }
  0x9a   : > { %2880 = vmatmul.mubr.bf16.gmra.mrb[8].mxu1 %v3291_v51 }
  0x9b   : > { %2992 = vmatmul.mubr.bf16.gmra.mrb[8].mxu0 %v3292_v52  ;;  %3035 = vmatpush3.bf16.msra.mxu1 %v3293_v50 }
  0x9c   : > { %3004 = vmatpush3.bf16.msra.mxu0 %v3293_v50  ;;  %3028 = vmatprep.subr.bf16.mxu1 %v3294_v53 }
  0x9d   : > { %3005 = vmatprep.subr.bf16.mxu0 %v3294_v53  ;;  %3011 = vmatprep.mubr.bf16.mxu0 %v3297_v54 }
  0x9e   : > { %3015 = vmatprep.mubr.bf16.mxu1 %v3298_v55 }
  0x9f   : > { %3036 = vmatpush3.bf16.msra.mxu1 %v3294_v53 }
  0xa0   : > { %3006 = vmatpush3.bf16.msra.mxu0 %v3294_v53  ;;  %3029 = vmatprep.subr.bf16.mxu1 %v3295_v56 }
  0xa1   : > { %3007 = vmatprep.subr.bf16.mxu0 %v3295_v56 }
  0xa3   : > { %3037 = vmatpush3.bf16.msra.mxu1 %v3295_v56 }
  0xa4   : > { %3008 = vmatpush3.bf16.msra.mxu0 %v3295_v56  ;;  %3030 = vmatprep.subr.bf16.mxu1 %v3296_v57 }
  0xa5   : > { %3009 = vmatprep.subr.bf16.mxu0 %v3296_v57 }
  0xa7   : > { %3038 = vmatpush3.bf16.msra.mxu1 %v3296_v57 }
  0xa8   : > { %3010 = vmatpush3.bf16.msra.mxu0 %v3296_v57 }
  0xaa   : > { %3016 = vmatmul.mubr.bf16.vlgmr.msra.gmra.mrb[12].mxu1 %v3300_v58 }
  0xab   : > { %3012 = vmatmul.mubr.bf16.vlgmr.msra.gmra.mrb[0].mxu0 %v3299_v59  ;;  %3019 = vmatprep.mubr.bf16.mxu1 %v3301_v60 }
  0xb2   : > { %3020 = vmatmul.mubr.bf16.gmra.mrb[16].mxu1 %v3302_v61 }
 0x15d   : > { %v2873_v62 = vpop.f32.mrb[0].mxu1 }
 0x15e   : > { %v951_v63 = vpop.f32.mrb[1].mxu1 }
 0x15f   : > { %v2874_v0 = vpop.f32.mrb[2].mxu1 }
 0x160   : > { %v954_v1 = vpop.f32.mrb[3].mxu1 }
 0x165   : > { %v2877_v2 = vpop.f32.mrb[4].mxu1 }
 0x166   : > { %v2989_v3 = vpop.f32.mrb[4].mxu0  ;;  %v967_v4 = vpop.f32.mrb[5].mxu1 }
 0x167   : > { %v3043_v5 = vadd.f32 %v2989_v3, %v2877_v2  ;;  %v1805_v6 = vpop.f32.mrb[5].mxu0  ;;  %v2878_v7 = vpop.f32.mrb[6].mxu1 }
 0x168   : > { %v3045_v8 = vadd.f32 %v1805_v6, %v967_v4  ;;  %v2990_v9 = vpop.f32.mrb[6].mxu0  ;;  %v970_v10 = vpop.f32.mrb[7].mxu1 }
 0x169   : > { %v3047_v11 = vadd.f32 %v2990_v9, %v2878_v7  ;;  %v1808_v12 = vpop.f32.mrb[7].mxu0 }
 0x16a   : > { %v3049_v13 = vadd.f32 %v1808_v12, %v970_v10 }
 0x16d   : > { %v2881_v14 = vpop.f32.mrb[8].mxu1 }
 0x16e   : > { %v2993_v15 = vpop.f32.mrb[8].mxu0  ;;  %v983_v16 = vpop.f32.mrb[9].mxu1 }
 0x16f   : > { %v3051_v17 = vadd.f32 %v2993_v15, %v2881_v14  ;;  %v1821_v18 = vpop.f32.mrb[9].mxu0  ;;  %v2882_v19 = vpop.f32.mrb[10].mxu1 }
 0x170   : > { %v3053_v20 = vadd.f32 %v1821_v18, %v983_v16  ;;  %v2994_v21 = vpop.f32.mrb[10].mxu0  ;;  %v986_v22 = vpop.f32.mrb[11].mxu1 }
 0x171   : > { %v3055_v23 = vadd.f32 %v2994_v21, %v2882_v19  ;;  %v1824_v24 = vpop.f32.mrb[11].mxu0 }
 0x172   : > { %v3685_v25 = vadd.f32 %v1824_v24, %v986_v22 }
 0x17d   : > { %v3017_v27 = vpop.f32.mrb[12].mxu1 }
 0x17e   : > { %v3013_v28 = vpop.f32.mrb[0].mxu0  ;;  %v3044_v29 = vadd.f32 %v3043_v5, %v3017_v27  ;;  %v2014_v30 = vpop.f32.mrb[13].mxu1 }
 0x17f   : > { %v3039_v31 = vadd.f32 %v3013_v28, %v2873_v62  ;;  %v1998_v32 = vpop.f32.mrb[1].mxu0  ;;  %v3046_v33 = vadd.f32 %v3045_v8, %v2014_v30  ;;  %v3018_v34 = vpop.f32.mrb[14].mxu1 }
 0x180   : > { %v2070_v35 = vadd.f32 %v3044_v29, %v3691_v26  ;;  %v3040_v36 = vadd.f32 %v1998_v32, %v951_v63  ;;  %v3014_v37 = vpop.f32.mrb[2].mxu0  ;;  %v3048_v38 = vadd.f32 %v3047_v11, %v3018_v34  ;;  %v2017_v39 = vpop.f32.mrb[15].mxu1 }
 0x181   : > { %v2066_v40 = vadd.f32 %v3039_v31, %v3691_v26  ;;  %v2068_v41 = vadd.f32 %v3046_v33, %v3691_v26  ;;  %v3041_v42 = vadd.f32 %v3014_v37, %v2874_v0  ;;  %v2001_v43 = vpop.f32.mrb[3].mxu0  ;;  %v3050_v44 = vadd.f32 %v3049_v13, %v2017_v39 }
 0x182   : > { %v2082_v45 = vmax.f32 %v2070_v35, 0.0  ;;  %v2064_v46 = vadd.f32 %v3040_v36, %v3691_v26  ;;  %v2071_v47 = vadd.f32 %v3048_v38, %v3691_v26  ;;  %v3042_v48 = vadd.f32 %v2001_v43, %v954_v1 }
 0x183   : > { %v2078_v49 = vmax.f32 %v2066_v40, 0.0  ;;  %v2080_v50 = vmax.f32 %v2068_v41, 0.0  ;;  %v2067_v51 = vadd.f32 %v3041_v42, %v3691_v26  ;;  %v2069_v52 = vadd.f32 %v3050_v44, %v3691_v26 }
 0x184   : > { %v2639_v53 = vpack.c.bf16 %v2082_v45, %v2082_v45  ;;  %v2076_v54 = vmax.f32 %v2064_v46, 0.0  ;;  %v2083_v55 = vmax.f32 %v2071_v47, 0.0  ;;  %v2065_v56 = vadd.f32 %v3042_v48, %v3691_v26 }
 0x185   : > { %v2635_v57 = vpack.c.bf16 %v2078_v49, %v2078_v49  ;;  %v2637_v58 = vpack.c.bf16 %v2080_v50, %v2080_v50  ;;  %v2079_v59 = vmax.f32 %v2067_v51, 0.0  ;;  %v2081_v60 = vmax.f32 %v2069_v52, 0.0  ;;  %v3021_v61 = vpop.f32.mrb[16].mxu1 }
 0x186   : > { %2142 = vst [vmem:[%s3701_s9 + $0x18] sm:$0xf] %v2639_v53  ;;  %v2633_v62 = vpack.c.bf16 %v2076_v54, %v2076_v54  ;;  %v2640_v63 = vpack.c.bf16 %v2083_v55, %v2083_v55  ;;  %v2077_v0 = vmax.f32 %v2065_v56, 0.0  ;;  %v3052_v1 = vadd.f32 %v3051_v17, %v3021_v61  ;;  %v2030_v2 = vpop.f32.mrb[17].mxu1 }
 0x187   : > { %2138 = vst [vmem:[%s3701_s9 + $0x8] sm:$0xf] %v2635_v57  ;;  %2140 = vst [vmem:[%s3701_s9 + $0x10] sm:$0xf] %v2637_v58  ;;  %v2636_v3 = vpack.c.bf16 %v2079_v59, %v2079_v59  ;;  %v2638_v4 = vpack.c.bf16 %v2081_v60, %v2081_v60  ;;  %v3054_v5 = vadd.f32 %v3053_v20, %v2030_v2  ;;  %v3022_v6 = vpop.f32.mrb[18].mxu1 }
 0x188   : > { %2136 = vst [vmem:[%s3701_s9] sm:$0xf] %v2633_v62  ;;  %2143 = vst [vmem:[%s3701_s9 + $0x1c] sm:$0x3] %v2640_v63  ;;  %v2634_v7 = vpack.c.bf16 %v2077_v0, %v2077_v0  ;;  %v2074_v8 = vadd.f32 %v3052_v1, %v3691_v26  ;;  %v3056_v9 = vadd.f32 %v3055_v23, %v3022_v6  ;;  %v2033_v10 = vpop.f32.mrb[19].mxu1 }
 0x189   : > { %2139 = vst [vmem:[%s3701_s9 + $0xc] sm:$0x3] %v2636_v3  ;;  %2141 = vst [vmem:[%s3701_s9 + $0x14] sm:$0x3] %v2638_v4  ;;  %v2072_v11 = vadd.f32 %v3054_v5, %v3691_v26  ;;  %v3058_v12 = vadd.f32 %v3685_v25, %v2033_v10 }
 0x18a   : > { %2137 = vst [vmem:[%s3701_s9 + $0x4] sm:$0x3] %v2634_v7  ;;  %v2086_v13 = vmax.f32 %v2074_v8, 0.0  ;;  %v2075_v14 = vadd.f32 %v3056_v9, %v3691_v26 }
 0x18b   : > { %v2084_v15 = vmax.f32 %v2072_v11, 0.0  ;;  %v2073_v16 = vadd.f32 %v3058_v12, %v3691_v26 }
 0x18c   : > { %v2643_v17 = vpack.c.bf16 %v2086_v13, %v2086_v13  ;;  %v2087_v18 = vmax.f32 %v2075_v14, 0.0 }
 0x18d   : > { %v2641_v19 = vpack.c.bf16 %v2084_v15, %v2084_v15  ;;  %v2085_v20 = vmax.f32 %v2073_v16, 0.0 }
 0x18e   : > { %2146 = vst [vmem:[%s3701_s9 + $0x28] sm:$0xf] %v2643_v17  ;;  %v2644_v21 = vpack.c.bf16 %v2087_v18, %v2087_v18 }
 0x18f   : > { %2144 = vst [vmem:[%s3701_s9 + $0x20] sm:$0xf] %v2641_v19  ;;  %v2642_v22 = vpack.c.bf16 %v2085_v20, %v2085_v20 }
 0x190   : > { %2147 = vst [vmem:[%s3701_s9 + $0x2c] sm:$0x3] %v2644_v21 }
 0x191   : > { %2145 = vst [vmem:[%s3701_s9 + $0x24] sm:$0x3] %v2642_v22 }
 0x192 PF: > { %s13_s16 = sadd.s32 1, %s3341_s16   ;;  %s3742_s12 = smov %s3333_s14 }
 0x193   : > { %p10_p7 = scmp.ge.s32.totalorder %s13_s16, 6   ;;  %s3743_s13 = smov %s3337_s15 }
 0x194   : > { %s3744_s14 = smov %s3747_s17  ;;  %s3745_s15 = smov %s3751_s18 }
 0x195   :  { %12 = sbr.rel (!%p10_p7) target bundleno = 3 (0x3), region = 79 }

// kernel: _lambda_.26
= control target key start
LH: loop header
LB: loop body
LE: loop exit
PB: predicated region body
PF: predicated region fallthrough
CT: control target
= control target key end

     0   :  { %s1487_s1 = inlined_call_operand.vmem [shape: bf16[128,128], index: 1, kind: input, shape index: {}]   ;;  %s1488_s0 = inlined_call_operand.vmem [shape: bf16[288,128], index: 0, kind: input, shape index: {}]   ;;  %s1489_s3 = inlined_call_operand.vmem [shape: bf16[288,128], index: 3, kind: input, shape index: {}]   ;;  %s1490_s2 = inlined_call_operand.vmem [shape: f32[1,128], index: 2, kind: input, shape index: {}]   ;;  %s1491_s4 = inlined_call_operand.vmem [shape: bf16[288,128], index: 4, kind: output, shape index: {}]  }
   0x1   :  { %v1127_v0 = vld [vmem:[%s1487_s1] sm:$0xff]   ;;  %v1128_v1 = vld [vmem:[%s1487_s1 + $0x8] sm:$0xff]   ;;  %v1129_v2 = vld [vmem:[%s1487_s1 + $0x10] sm:$0xff]  }
   0x2   :  { %1059 = vmatprep.subr.bf16.mxu0 %v1127_v0  ;;  %1111 = vmatprep.subr.bf16.mxu1 %v1127_v0  ;;  %v1130_v3 = vld [vmem:[%s1487_s1 + $0x18] sm:$0xff]   ;;  %v1135_v4 = vld [vmem:[%s1488_s0] sm:$0xff]   ;;  %v1137_v5 = vld [vmem:[%s1488_s0 + $0x50] sm:$0xff]  }
   0x3   :  { %1060 = vmatpush3.bf16.msra.mxu0 %v1127_v0  ;;  %1119 = vmatpush3.bf16.msra.mxu1 %v1127_v0  ;;  %v1131_v6 = vld [vmem:[%s1487_s1 + $0x20] sm:$0xff]   ;;  %v1132_v7 = vld [vmem:[%s1487_s1 + $0x28] sm:$0xff]   ;;  %v1133_v8 = vld [vmem:[%s1487_s1 + $0x30] sm:$0xff]  }
   0x4   :  { %1061 = vmatprep.subr.bf16.mxu0 %v1128_v1  ;;  %1112 = vmatprep.subr.bf16.mxu1 %v1128_v1  ;;  %v1134_v9 = vld [vmem:[%s1487_s1 + $0x38] sm:$0xff]   ;;  %v1136_v10 = vld [vmem:[%s1488_s0 + $0x8] sm:$0xff]   ;;  %v1139_v12 = vld [vmem:[%s1488_s0 + $0x10] sm:$0xff]  }
   0x5   :  { %1075 = vmatprep.mubr.bf16.mxu0 %v1135_v4  ;;  %1095 = vmatprep.mubr.bf16.mxu1 %v1137_v5  ;;  %v1138_v11 = vld [vmem:[%s1488_s0 + $0x58] sm:$0xff]   ;;  %v1141_v13 = vld [vmem:[%s1488_s0 + $0x60] sm:$0xff]   ;;  %v1142_v15 = vld [vmem:[%s1488_s0 + $0x68] sm:$0xff]  }
   0x6   :  { %v1140_v14 = vld [vmem:[%s1488_s0 + $0x18] sm:$0xff]   ;;  %v1143_v16 = vld [vmem:[%s1488_s0 + $0x20] sm:$0xff]   ;;  %v1145_v17 = vld [vmem:[%s1488_s0 + $0x70] sm:$0xff]  }
   0x7   :  { %1062 = vmatpush3.bf16.msra.mxu0 %v1128_v1  ;;  %1120 = vmatpush3.bf16.msra.mxu1 %v1128_v1  ;;  %v1144_v18 = vld [vmem:[%s1488_s0 + $0x28] sm:$0xff]   ;;  %v1146_v19 = vld [vmem:[%s1488_s0 + $0x78] sm:$0xff]   ;;  %v1147_v20 = vld [vmem:[%s1488_s0 + $0x30] sm:$0xff]  }
   0x8   :  { %1063 = vmatprep.subr.bf16.mxu0 %v1129_v2  ;;  %1113 = vmatprep.subr.bf16.mxu1 %v1129_v2  ;;  %v1149_v21 = vld [vmem:[%s1488_s0 + $0x80] sm:$0xff]   ;;  %v1148_v22 = vld [vmem:[%s1488_s0 + $0x38] sm:$0xff]   ;;  %v1150_v23 = vld [vmem:[%s1488_s0 + $0x88] sm:$0xff]  }
   0x9   :  { %v1151_v24 = vld [vmem:[%s1488_s0 + $0x40] sm:$0xff]   ;;  %v1152_v25 = vld [vmem:[%s1488_s0 + $0x48] sm:$0xff]   ;;  %v1009_v28 = vld [vmem:[%s1489_s3 + $0x58] sm:$0xff]  }
   0xa   :  { %v999_v26 = vld [vmem:[%s1489_s3 + $0x8] sm:$0xff]   ;;  %v838_v27 = vld [vmem:[%s1489_s3] sm:$0xff]   ;;  %v1008_v29 = vld [vmem:[%s1489_s3 + $0x50] sm:$0xff]   ;;  %v883_v40 = vunpack.c.l.bf16 %v1009_v28  ;;  %v884_v42 = vunpack.c.h.bf16 %v1009_v28 }
   0xb   :  { %1064 = vmatpush3.bf16.msra.mxu0 %v1129_v2  ;;  %1121 = vmatpush3.bf16.msra.mxu1 %v1129_v2  ;;  %v1271_v30 = vld [vmem:[%s1489_s3 + $0x18] sm:$0xff]   ;;  %v1276_v31 = vld [vmem:[%s1489_s3 + $0x10] sm:$0xff]   ;;  %v843_v32 = vunpack.c.l.bf16 %v999_v26  ;;  %v839_v33 = vunpack.c.l.bf16 %v838_v27  ;;  %v844_v34 = vunpack.c.h.bf16 %v999_v26  ;;  %v840_v35 = vunpack.c.h.bf16 %v838_v27  ;;  %v1281_v36 = vld [vmem:[%s1489_s3 + $0x68] sm:$0xff]  }
   0xc   :  { %1065 = vmatprep.subr.bf16.mxu0 %v1130_v3  ;;  %1114 = vmatprep.subr.bf16.mxu1 %v1130_v3  ;;  %v1286_v37 = vld [vmem:[%s1489_s3 + $0x60] sm:$0xff]   ;;  %v1291_v38 = vld [vmem:[%s1489_s3 + $0x28] sm:$0xff]   ;;  %v879_v41 = vunpack.c.l.bf16 %v1008_v29  ;;  %v851_v43 = vunpack.c.l.bf16 %v1271_v30  ;;  %v880_v45 = vunpack.c.h.bf16 %v1008_v29  ;;  %v847_v46 = vunpack.c.l.bf16 %v1276_v31 }
   0xd   :  { %v1296_v39 = vld [vmem:[%s1490_s2] ss:$0 sm:$0xff]  ;;  %v852_v47 = vunpack.c.h.bf16 %v1271_v30  ;;  %v848_v48 = vunpack.c.h.bf16 %v1276_v31  ;;  %v891_v51 = vunpack.c.l.bf16 %v1281_v36  ;;  %v887_v52 = vunpack.c.l.bf16 %v1286_v37 }
   0xe   :  { %v1302_v44 = vld [vmem:[%s1489_s3 + $0x20] sm:$0xff]   ;;  %v892_v53 = vunpack.c.h.bf16 %v1281_v36  ;;  %v859_v54 = vunpack.c.l.bf16 %v1291_v38  ;;  %v888_v59 = vunpack.c.h.bf16 %v1286_v37  ;;  %v860_v1 = vunpack.c.h.bf16 %v1291_v38 }
   0xf   :  { %1066 = vmatpush3.bf16.msra.mxu0 %v1130_v3  ;;  %1122 = vmatpush3.bf16.msra.mxu1 %v1130_v3  ;;  %v855_v60 = vunpack.c.l.bf16 %v1302_v44  ;;  %v856_v2 = vunpack.c.h.bf16 %v1302_v44  ;;  %v1322_v3 = vld [vmem:[%s1489_s3 + $0x78] sm:$0xff]  }
  0x10   :  { %1067 = vmatprep.subr.bf16.mxu0 %v1131_v6  ;;  %1115 = vmatprep.subr.bf16.mxu1 %v1131_v6  ;;  %v900_v27 = vunpack.c.h.bf16 %v1322_v3 }
  0x13   :  { %1068 = vmatpush3.bf16.msra.mxu0 %v1131_v6  ;;  %1123 = vmatpush3.bf16.msra.mxu1 %v1131_v6 }
  0x14   :  { %1069 = vmatprep.subr.bf16.mxu0 %v1132_v7  ;;  %1116 = vmatprep.subr.bf16.mxu1 %v1132_v7 }
  0x17   :  { %1070 = vmatpush3.bf16.msra.mxu0 %v1132_v7  ;;  %1124 = vmatpush3.bf16.msra.mxu1 %v1132_v7 }
  0x18   :  { %1071 = vmatprep.subr.bf16.mxu0 %v1133_v8  ;;  %1117 = vmatprep.subr.bf16.mxu1 %v1133_v8 }
  0x1b   :  { %1072 = vmatpush3.bf16.msra.mxu0 %v1133_v8  ;;  %1125 = vmatpush3.bf16.msra.mxu1 %v1133_v8 }
  0x1c   :  { %1073 = vmatprep.subr.bf16.mxu0 %v1134_v9  ;;  %1118 = vmatprep.subr.bf16.mxu1 %v1134_v9 }
  0x1f   :  { %1074 = vmatpush3.bf16.msra.mxu0 %v1134_v9  ;;  %1126 = vmatpush3.bf16.msra.mxu1 %v1134_v9 }
  0x22   :  { %1076 = vmatmul.mubr.bf16.vlgmr.msra.gmra.mrb[0].mxu0 %v1136_v10  ;;  %1096 = vmatmul.mubr.bf16.vlgmr.msra.gmra.mrb[0].mxu1 %v1138_v11  ;;  %v1329_v10 = vld [vmem:[%s1489_s3 + $0x70] sm:$0xff]  }
  0x23   :  { %1079 = vmatprep.mubr.bf16.mxu0 %v1139_v12  ;;  %1099 = vmatprep.mubr.bf16.mxu1 %v1141_v13 }
  0x2a   :  { %1080 = vmatmul.mubr.bf16.gmra.mrb[4].mxu0 %v1140_v14  ;;  %1100 = vmatmul.mubr.bf16.gmra.mrb[4].mxu1 %v1142_v15 }
  0x2b   :  { %1083 = vmatprep.mubr.bf16.mxu0 %v1143_v16  ;;  %1103 = vmatprep.mubr.bf16.mxu1 %v1145_v17 }
  0x32   :  { %1084 = vmatmul.mubr.bf16.gmra.mrb[8].mxu0 %v1144_v18  ;;  %1104 = vmatmul.mubr.bf16.gmra.mrb[8].mxu1 %v1146_v19  ;;  %v899_v18 = vunpack.c.l.bf16 %v1322_v3  ;;  %v1337_v19 = vld [vmem:[%s1489_s3 + $0x38] sm:$0xff]  }
  0x33   :  { %1087 = vmatprep.mubr.bf16.mxu0 %v1147_v20  ;;  %1107 = vmatprep.mubr.bf16.mxu1 %v1149_v21  ;;  %v868_v30 = vunpack.c.h.bf16 %v1337_v19 }
  0x3a   :  { %1088 = vmatmul.mubr.bf16.gmra.mrb[12].mxu0 %v1148_v22  ;;  %1108 = vmatmul.mubr.bf16.gmra.mrb[12].mxu1 %v1150_v23  ;;  %v895_v23 = vunpack.c.l.bf16 %v1329_v10 }
  0x3b   :  { %1091 = vmatprep.mubr.bf16.mxu0 %v1151_v24 }
  0x42   :  { %1092 = vmatmul.mubr.bf16.gmra.mrb[16].mxu0 %v1152_v25 }
  0xf5   :  { %v1077_v49 = vpop.f32.mrb[0].mxu0  ;;  %v1097_v50 = vpop.f32.mrb[0].mxu1 }
  0xf6   :  { %v276_v55 = vadd.f32 %v1077_v49, %v1296_v39  ;;  %v267_v56 = vpop.f32.mrb[1].mxu0  ;;  %v356_v57 = vadd.f32 %v1097_v50, %v1296_v39  ;;  %v347_v58 = vpop.f32.mrb[1].mxu1 }
  0xf7   :  { %v268_v61 = vadd.f32 %v1296_v39, %v267_v56  ;;  %v1078_v62 = vpop.f32.mrb[2].mxu0  ;;  %v348_v63 = vadd.f32 %v1296_v39, %v347_v58  ;;  %v1098_v0 = vpop.f32.mrb[2].mxu1 }
  0xf8   :  { %v484_v4 = vadd.f32 %v843_v32, %v276_v55  ;;  %v279_v5 = vadd.f32 %v1078_v62, %v1296_v39  ;;  %v270_v6 = vpop.f32.mrb[3].mxu0  ;;  %v504_v7 = vadd.f32 %v883_v40, %v356_v57  ;;  %v359_v8 = vadd.f32 %v1098_v0, %v1296_v39  ;;  %v350_v9 = vpop.f32.mrb[3].mxu1 }
  0xf9   :  { %v482_v11 = vadd.f32 %v839_v33, %v268_v61  ;;  %v271_v12 = vadd.f32 %v1296_v39, %v270_v6  ;;  %v502_v13 = vadd.f32 %v879_v41, %v348_v63  ;;  %v351_v14 = vadd.f32 %v1296_v39, %v350_v9 }
  0xfa   :  { %v485_v15 = vadd.f32 %v844_v34, %v279_v5  ;;  %v540_v16 = vmax.f32 %v504_v7, 0.0  ;;  %v505_v17 = vadd.f32 %v884_v42, %v359_v8  ;;  %v520_v24 = vmax.f32 %v484_v4, 0.0  ;;  %v1361_v8 = vld [vmem:[%s1489_s3 + $0x30] sm:$0xff]  }
  0xfb   :  { %v483_v20 = vadd.f32 %v840_v35, %v271_v12  ;;  %v538_v21 = vmax.f32 %v502_v13, 0.0  ;;  %v503_v22 = vadd.f32 %v880_v45, %v351_v14  ;;  %v518_v28 = vmax.f32 %v482_v11, 0.0 }
  0xfc   :  { %v521_v25 = vmax.f32 %v485_v15, 0.0  ;;  %v541_v26 = vmax.f32 %v505_v17, 0.0  ;;  %v867_v40 = vunpack.c.l.bf16 %v1337_v19  ;;  %v896_v15 = vunpack.c.h.bf16 %v1329_v10 }
  0xfd   :  { %v519_v29 = vmax.f32 %v483_v20, 0.0  ;;  %v1081_v32 = vpop.f32.mrb[4].mxu0  ;;  %v539_v33 = vmax.f32 %v503_v22, 0.0  ;;  %v1101_v34 = vpop.f32.mrb[4].mxu1 }
  0xfe   :  { %v917_v41 = vpack.c.bf16 %v521_v25, %v520_v24  ;;  %v967_v42 = vpack.c.bf16 %v541_v26, %v540_v16  ;;  %v292_v35 = vadd.f32 %v1081_v32, %v1296_v39  ;;  %v283_v49 = vpop.f32.mrb[5].mxu0  ;;  %v372_v45 = vadd.f32 %v1101_v34, %v1296_v39  ;;  %v363_v50 = vpop.f32.mrb[5].mxu1 }
  0xff   :  { %v912_v55 = vpack.c.bf16 %v519_v29, %v518_v28  ;;  %v962_v56 = vpack.c.bf16 %v539_v33, %v538_v21  ;;  %v284_v57 = vadd.f32 %v1296_v39, %v283_v49  ;;  %v1082_v58 = vpop.f32.mrb[6].mxu0  ;;  %v364_v61 = vadd.f32 %v1296_v39, %v363_v50  ;;  %v1102_v62 = vpop.f32.mrb[6].mxu1  ;;  %v1394_v49 = vld [vmem:[%s1489_s3 + $0x88] sm:$0xff]  }
 0x100   :  { %1016 = vst [vmem:[%s1491_s4 + $0x8] sm:$0xff] %v917_v41   ;;  %1026 = vst [vmem:[%s1491_s4 + $0x58] sm:$0xff] %v967_v42   ;;  %v488_v63 = vadd.f32 %v851_v43, %v292_v35  ;;  %v295_v0 = vadd.f32 %v1082_v58, %v1296_v39  ;;  %v286_v4 = vpop.f32.mrb[7].mxu0  ;;  %v508_v5 = vadd.f32 %v891_v51, %v372_v45  ;;  %v366_v7 = vpop.f32.mrb[7].mxu1  ;;  %v864_v26 = vunpack.c.h.bf16 %v1361_v8 }
 0x101   :  { %v375_v6 = vadd.f32 %v1102_v62, %v1296_v39  ;;  %913 = vst [vmem:[%s1491_s4] sm:$0xff] %v912_v55   ;;  %1025 = vst [vmem:[%s1491_s4 + $0x50] sm:$0xff] %v962_v56   ;;  %v486_v43 = vadd.f32 %v847_v46, %v284_v57  ;;  %v287_v51 = vadd.f32 %v1296_v39, %v286_v4 }
 0x102   :  { %v506_v9 = vadd.f32 %v887_v52, %v364_v61  ;;  %v367_v11 = vadd.f32 %v1296_v39, %v366_v7  ;;  %v489_v12 = vadd.f32 %v852_v47, %v295_v0  ;;  %v544_v13 = vmax.f32 %v508_v5, 0.0  ;;  %v1014_v61 = vld [vmem:[%s1489_s3 + $0x80] sm:$0xff]  }
 0x103   :  { %v509_v14 = vadd.f32 %v892_v53, %v375_v6  ;;  %v487_v16 = vadd.f32 %v848_v48, %v287_v51  ;;  %v863_v52 = vunpack.c.l.bf16 %v1361_v8  ;;  %v524_v20 = vmax.f32 %v488_v63, 0.0 }
 0x104   :  { %v542_v46 = vmax.f32 %v506_v9, 0.0  ;;  %v507_v17 = vadd.f32 %v888_v59, %v367_v11  ;;  %v525_v21 = vmax.f32 %v489_v12, 0.0  ;;  %v522_v47 = vmax.f32 %v486_v43, 0.0 }
 0x105   :  { %v545_v22 = vmax.f32 %v509_v14, 0.0  ;;  %v523_v24 = vmax.f32 %v487_v16, 0.0  ;;  %v1085_v36 = vpop.f32.mrb[8].mxu0  ;;  %v1105_v25 = vpop.f32.mrb[8].mxu1  ;;  %v907_v6 = vunpack.c.l.bf16 %v1394_v49  ;;  %v903_v51 = vunpack.c.l.bf16 %v1014_v61 }
 0x106   :  { %v543_v53 = vmax.f32 %v507_v17, 0.0  ;;  %v927_v31 = vpack.c.bf16 %v525_v21, %v524_v20  ;;  %v308_v28 = vadd.f32 %v1085_v36, %v1296_v39  ;;  %v299_v37 = vpop.f32.mrb[9].mxu0  ;;  %v388_v59 = vadd.f32 %v1105_v25, %v1296_v39  ;;  %v379_v29 = vpop.f32.mrb[9].mxu1 }
 0x107   :  { %v977_v48 = vpack.c.bf16 %v545_v22, %v544_v13  ;;  %v922_v32 = vpack.c.bf16 %v523_v24, %v522_v47  ;;  %v300_v34 = vadd.f32 %v1296_v39, %v299_v37  ;;  %v1086_v41 = vpop.f32.mrb[10].mxu0  ;;  %v380_v42 = vadd.f32 %v1296_v39, %v379_v29  ;;  %v1106_v35 = vpop.f32.mrb[10].mxu1  ;;  %v1007_v29 = vld [vmem:[%s1489_s3 + $0x48] sm:$0xff]  }
 0x108   :  { %v972_v33 = vpack.c.bf16 %v543_v53, %v542_v46  ;;  %1018 = vst [vmem:[%s1491_s4 + $0x18] sm:$0xff] %v927_v31   ;;  %v492_v45 = vadd.f32 %v859_v54, %v308_v28  ;;  %v311_v50 = vadd.f32 %v1086_v41, %v1296_v39  ;;  %v302_v55 = vpop.f32.mrb[11].mxu0  ;;  %v512_v56 = vadd.f32 %v899_v18, %v388_v59  ;;  %v382_v58 = vpop.f32.mrb[11].mxu1 }
 0x109   :  { %1028 = vst [vmem:[%s1491_s4 + $0x68] sm:$0xff] %v977_v48   ;;  %v391_v57 = vadd.f32 %v1106_v35, %v1296_v39  ;;  %1017 = vst [vmem:[%s1491_s4 + $0x10] sm:$0xff] %v922_v32   ;;  %v490_v54 = vadd.f32 %v855_v60, %v300_v34  ;;  %v303_v18 = vadd.f32 %v1296_v39, %v302_v55  ;;  %v908_v11 = vunpack.c.h.bf16 %v1394_v49 }
 0x10a   :  { %1027 = vst [vmem:[%s1491_s4 + $0x60] sm:$0xff] %v972_v33   ;;  %v510_v62 = vadd.f32 %v895_v23, %v380_v42  ;;  %v383_v63 = vadd.f32 %v1296_v39, %v382_v58  ;;  %v493_v0 = vadd.f32 %v860_v1, %v311_v50  ;;  %v548_v4 = vmax.f32 %v512_v56, 0.0  ;;  %v1006_v42 = vld [vmem:[%s1489_s3 + $0x40] sm:$0xff]  }
 0x10b   :  { %v513_v5 = vadd.f32 %v900_v27, %v391_v57  ;;  %v491_v7 = vadd.f32 %v856_v2, %v303_v18  ;;  %v528_v9 = vmax.f32 %v492_v45, 0.0  ;;  %v526_v12 = vmax.f32 %v490_v54, 0.0 }
 0x10c   :  { %v546_v60 = vmax.f32 %v510_v62, 0.0  ;;  %v511_v43 = vadd.f32 %v896_v15, %v383_v63  ;;  %v529_v10 = vmax.f32 %v493_v0, 0.0  ;;  %v904_v3 = vunpack.c.h.bf16 %v1014_v61 }
 0x10d   :  { %v549_v23 = vmax.f32 %v513_v5, 0.0  ;;  %v527_v38 = vmax.f32 %v491_v7, 0.0  ;;  %v1089_v1 = vpop.f32.mrb[12].mxu0  ;;  %v1109_v14 = vpop.f32.mrb[12].mxu1  ;;  %v875_v56 = vunpack.c.l.bf16 %v1007_v29  ;;  %v876_v0 = vunpack.c.h.bf16 %v1007_v29 }
 0x10e   :  { %v547_v13 = vmax.f32 %v511_v43, 0.0  ;;  %v937_v27 = vpack.c.bf16 %v529_v10, %v528_v9  ;;  %v324_v46 = vadd.f32 %v1089_v1, %v1296_v39  ;;  %v315_v44 = vpop.f32.mrb[13].mxu0  ;;  %v404_v2 = vadd.f32 %v1109_v14, %v1296_v39  ;;  %v395_v15 = vpop.f32.mrb[13].mxu1 }
 0x10f   :  { %v987_v16 = vpack.c.bf16 %v549_v23, %v548_v4  ;;  %v932_v17 = vpack.c.bf16 %v527_v38, %v526_v12  ;;  %v316_v21 = vadd.f32 %v1296_v39, %v315_v44  ;;  %v1090_v22 = vpop.f32.mrb[14].mxu0  ;;  %v396_v47 = vadd.f32 %v1296_v39, %v395_v15  ;;  %v1110_v24 = vpop.f32.mrb[14].mxu1 }
 0x110   :  { %v982_v20 = vpack.c.bf16 %v547_v13, %v546_v60  ;;  %1020 = vst [vmem:[%s1491_s4 + $0x28] sm:$0xff] %v937_v27   ;;  %v496_v36 = vadd.f32 %v867_v40, %v324_v46  ;;  %v327_v53 = vadd.f32 %v1090_v22, %v1296_v39  ;;  %v318_v25 = vpop.f32.mrb[15].mxu0  ;;  %v516_v31 = vadd.f32 %v907_v6, %v404_v2  ;;  %v398_v28 = vpop.f32.mrb[15].mxu1 }
 0x111   :  { %1030 = vst [vmem:[%s1491_s4 + $0x78] sm:$0xff] %v987_v16   ;;  %v407_v48 = vadd.f32 %v1110_v24, %v1296_v39  ;;  %1019 = vst [vmem:[%s1491_s4 + $0x20] sm:$0xff] %v932_v17   ;;  %v494_v37 = vadd.f32 %v863_v52, %v316_v21  ;;  %v319_v40 = vadd.f32 %v1296_v39, %v318_v25  ;;  %v872_v6 = vunpack.c.h.bf16 %v1006_v42 }
 0x112   :  { %1029 = vst [vmem:[%s1491_s4 + $0x70] sm:$0xff] %v982_v20   ;;  %v514_v59 = vadd.f32 %v903_v51, %v396_v47  ;;  %v399_v32 = vadd.f32 %v1296_v39, %v398_v28  ;;  %v497_v33 = vadd.f32 %v868_v30, %v327_v53  ;;  %v552_v34 = vmax.f32 %v516_v31, 0.0 }
 0x113   :  { %v517_v41 = vadd.f32 %v908_v11, %v407_v48  ;;  %v495_v52 = vadd.f32 %v864_v26, %v319_v40  ;;  %v532_v45 = vmax.f32 %v496_v36, 0.0  ;;  %v530_v57 = vmax.f32 %v494_v37, 0.0 }
 0x114   :  { %v550_v35 = vmax.f32 %v514_v59, 0.0  ;;  %v515_v49 = vadd.f32 %v904_v3, %v399_v32  ;;  %v533_v50 = vmax.f32 %v497_v33, 0.0  ;;  %v871_v30 = vunpack.c.l.bf16 %v1006_v42 }
 0x115   :  { %v553_v55 = vmax.f32 %v517_v41, 0.0  ;;  %v531_v58 = vmax.f32 %v495_v52, 0.0  ;;  %v1093_v61 = vpop.f32.mrb[16].mxu0 }
 0x116   :  { %v551_v19 = vmax.f32 %v515_v49, 0.0  ;;  %v947_v54 = vpack.c.bf16 %v533_v50, %v532_v45  ;;  %v340_v62 = vadd.f32 %v1093_v61, %v1296_v39  ;;  %v331_v63 = vpop.f32.mrb[17].mxu0 }
 0x117   :  { %v997_v18 = vpack.c.bf16 %v553_v55, %v552_v34  ;;  %v942_v4 = vpack.c.bf16 %v531_v58, %v530_v57  ;;  %v332_v26 = vadd.f32 %v1296_v39, %v331_v63  ;;  %v1094_v5 = vpop.f32.mrb[18].mxu0 }
 0x118   :  { %v992_v8 = vpack.c.bf16 %v551_v19, %v550_v35  ;;  %1022 = vst [vmem:[%s1491_s4 + $0x38] sm:$0xff] %v947_v54   ;;  %v500_v7 = vadd.f32 %v875_v56, %v340_v62  ;;  %v343_v60 = vadd.f32 %v1094_v5, %v1296_v39  ;;  %v334_v43 = vpop.f32.mrb[19].mxu0 }
 0x119   :  { %1032 = vst [vmem:[%s1491_s4 + $0x88] sm:$0xff] %v997_v18   ;;  %1021 = vst [vmem:[%s1491_s4 + $0x30] sm:$0xff] %v942_v4   ;;  %v498_v51 = vadd.f32 %v871_v30, %v332_v26  ;;  %v335_v9 = vadd.f32 %v1296_v39, %v334_v43 }
 0x11a   :  { %1031 = vst [vmem:[%s1491_s4 + $0x80] sm:$0xff] %v992_v8   ;;  %v501_v10 = vadd.f32 %v876_v0, %v343_v60  ;;  %v536_v11 = vmax.f32 %v500_v7, 0.0 }
 0x11b   :  { %v499_v23 = vadd.f32 %v872_v6, %v335_v9  ;;  %v534_v38 = vmax.f32 %v498_v51, 0.0 }
 0x11c   :  { %v537_v12 = vmax.f32 %v501_v10, 0.0 }
 0x11d   :  { %v535_v1 = vmax.f32 %v499_v23, 0.0 }
 0x11e   :  { %v957_v13 = vpack.c.bf16 %v537_v12, %v536_v11 }
 0x11f   :  { %v952_v14 = vpack.c.bf16 %v535_v1, %v534_v38 }
 0x120   :  { %1024 = vst [vmem:[%s1491_s4 + $0x48] sm:$0xff] %v957_v13  }
 0x121   :  { %1023 = vst [vmem:[%s1491_s4 + $0x40] sm:$0xff] %v952_v14  }

// kernel: _lambda_.28
= control target key start
LH: loop header
LB: loop body
LE: loop exit
PB: predicated region body
PF: predicated region fallthrough
CT: control target
= control target key end

     0   :  { %v380_v0 = vmov 0.0   ;;  %vm381_vm0 = vmmov 0   ;;  %s464_s1 = inlined_call_operand.vmem [shape: bf16[128,128], index: 1, kind: input, shape index: {}]   ;;  %s465_s0 = inlined_call_operand.vmem [shape: bf16[72,128], index: 0, kind: input, shape index: {}]   ;;  %s466_s2 = inlined_call_operand.vmem [shape: f32[1,128], index: 2, kind: input, shape index: {}]   ;;  %s467_s3 = inlined_call_operand.vmem [shape: bf16[72,128], index: 3, kind: output, shape index: {}]  }
   0x1   :  { %313 = vmatprep.subr.bf16.mxu0 %v380_v0  ;;  %v367_v1 = vld [vmem:[%s464_s1] sm:$0xff]   ;;  %349 = vmatprep.subr.bf16.mxu1 %v380_v0  ;;  %v368_v2 = vld [vmem:[%s464_s1 + $0x8] sm:$0xff]   ;;  %v369_v3 = vld [vmem:[%s464_s1 + $0x10] sm:$0xff]  }
   0x2   :  { %329 = vmatprep.mubr.msk.bf16.mxu0 %vm381_vm0, %v380_v0  ;;  %341 = vmatprep.mubr.msk.bf16.mxu1 %vm381_vm0, %v380_v0  ;;  %v370_v4 = vld [vmem:[%s464_s1 + $0x18] sm:$0xff]   ;;  %v371_v5 = vld [vmem:[%s464_s1 + $0x20] sm:$0xff]   ;;  %v372_v6 = vld [vmem:[%s464_s1 + $0x28] sm:$0xff]  }
   0x3   :  { %314 = vmatpush3.bf16.msra.mxu0 %v367_v1  ;;  %357 = vmatpush3.bf16.msra.mxu1 %v367_v1  ;;  %v373_v7 = vld [vmem:[%s464_s1 + $0x30] sm:$0xff]   ;;  %v374_v8 = vld [vmem:[%s464_s1 + $0x38] sm:$0xff]   ;;  %v375_v9 = vld [vmem:[%s465_s0] sm:$0xff]  }
   0x4   :  { %315 = vmatprep.subr.bf16.mxu0 %v380_v0  ;;  %350 = vmatprep.subr.bf16.mxu1 %v380_v0  ;;  %v376_v10 = vld [vmem:[%s465_s0 + $0x18] sm:$0xff]   ;;  %v377_v11 = vld [vmem:[%s465_s0 + $0x8] sm:$0xff]   ;;  %v378_v12 = vld [vmem:[%s465_s0 + $0x20] ss:$0 sps:$4 sm:$0xff]  }
   0x5   :  { %v379_v13 = vld [vmem:[%s465_s0 + $0x10] sm:$0xff]   ;;  %v245_v14 = vld [vmem:[%s466_s2] ss:$0 sm:$0xff] }
   0x7   :  { %316 = vmatpush3.bf16.msra.mxu0 %v368_v2  ;;  %358 = vmatpush3.bf16.msra.mxu1 %v368_v2 }
   0x8   :  { %317 = vmatprep.subr.bf16.mxu0 %v380_v0  ;;  %351 = vmatprep.subr.bf16.mxu1 %v380_v0 }
   0xb   :  { %318 = vmatpush3.bf16.msra.mxu0 %v369_v3  ;;  %359 = vmatpush3.bf16.msra.mxu1 %v369_v3 }
   0xc   :  { %319 = vmatprep.subr.bf16.mxu0 %v380_v0  ;;  %352 = vmatprep.subr.bf16.mxu1 %v380_v0 }
   0xf   :  { %320 = vmatpush3.bf16.msra.mxu0 %v370_v4  ;;  %360 = vmatpush3.bf16.msra.mxu1 %v370_v4 }
  0x10   :  { %321 = vmatprep.subr.bf16.mxu0 %v380_v0  ;;  %353 = vmatprep.subr.bf16.mxu1 %v380_v0 }
  0x13   :  { %322 = vmatpush3.bf16.msra.mxu0 %v371_v5  ;;  %361 = vmatpush3.bf16.msra.mxu1 %v371_v5 }
  0x14   :  { %323 = vmatprep.subr.bf16.mxu0 %v380_v0  ;;  %354 = vmatprep.subr.bf16.mxu1 %v380_v0 }
  0x17   :  { %324 = vmatpush3.bf16.msra.mxu0 %v372_v6  ;;  %362 = vmatpush3.bf16.msra.mxu1 %v372_v6 }
  0x18   :  { %325 = vmatprep.subr.bf16.mxu0 %v380_v0  ;;  %355 = vmatprep.subr.bf16.mxu1 %v380_v0 }
  0x1b   :  { %326 = vmatpush3.bf16.msra.mxu0 %v373_v7  ;;  %363 = vmatpush3.bf16.msra.mxu1 %v373_v7 }
  0x1c   :  { %327 = vmatprep.subr.bf16.mxu0 %v380_v0  ;;  %356 = vmatprep.subr.bf16.mxu1 %v380_v0 }
  0x1f   :  { %328 = vmatpush3.bf16.msra.mxu0 %v374_v8  ;;  %364 = vmatpush3.bf16.msra.mxu1 %v374_v8 }
  0x22   :  { %330 = vmatmul.mubr.bf16.vlgmr.msra.gmra.mrb[0].mxu0 %v375_v9  ;;  %342 = vmatmul.mubr.bf16.vlgmr.msra.gmra.mrb[0].mxu1 %v376_v10 }
  0x23   :  { %333 = vmatprep.mubr.msk.bf16.mxu0 %vm381_vm0, %v380_v0  ;;  %345 = vmatprep.mubr.msk.bf16.mxu1 %vm381_vm0, %v380_v0 }
  0x2a   :  { %334 = vmatmul.mubr.bf16.gmra.mrb[4].mxu0 %v377_v11  ;;  %346 = vmatmul.mubr.bf16.gmra.mrb[4].mxu1 %v378_v12 }
  0x2b   :  { %337 = vmatprep.mubr.msk.bf16.mxu0 %vm381_vm0, %v380_v0 }
  0x32   :  { %338 = vmatmul.mubr.bf16.gmra.mrb[8].mxu0 %v379_v13 }
  0xf5   :  { %v157_v15 = vpop.f32.mrb[0].mxu0  ;;  %v181_v16 = vpop.f32.mrb[0].mxu1 }
  0xf6   :  { %v331_v17 = vpop.f32.mrb[1].mxu0  ;;  %v182_v18 = vadd.f32 %v245_v14, %v181_v16  ;;  %v343_v19 = vpop.f32.mrb[1].mxu1  ;;  %v158_v22 = vadd.f32 %v245_v14, %v157_v15 }
  0xf7   :  { %v160_v20 = vpop.f32.mrb[2].mxu0  ;;  %v184_v21 = vpop.f32.mrb[2].mxu1 }
  0xf8   :  { %v161_v23 = vadd.f32 %v245_v14, %v160_v20  ;;  %v332_v24 = vpop.f32.mrb[3].mxu0  ;;  %v185_v25 = vadd.f32 %v245_v14, %v184_v21  ;;  %v344_v26 = vpop.f32.mrb[3].mxu1 }
  0xfa   :  { %v280_v27 = vpack.c.bf16 %v161_v23, %v158_v22  ;;  %v295_v28 = vpack.c.bf16 %v185_v25, %v182_v18 }
  0xfc   :  { %281 = vst [vmem:[%s467_s3] sm:$0xff] %v280_v27   ;;  %299 = vst [vmem:[%s467_s3 + $0x18] sm:$0xff] %v295_v28  }
  0xfd   :  { %v165_v29 = vpop.f32.mrb[4].mxu0  ;;  %v189_v30 = vpop.f32.mrb[4].mxu1 }
  0xfe   :  { %v335_v31 = vpop.f32.mrb[5].mxu0  ;;  %v190_v32 = vadd.f32 %v245_v14, %v189_v30  ;;  %v347_v33 = vpop.f32.mrb[5].mxu1  ;;  %v166_v36 = vadd.f32 %v245_v14, %v165_v29 }
  0xff   :  { %v168_v34 = vpop.f32.mrb[6].mxu0  ;;  %v192_v35 = vpop.f32.mrb[6].mxu1 }
 0x100   :  { %v169_v37 = vadd.f32 %v245_v14, %v168_v34  ;;  %v336_v38 = vpop.f32.mrb[7].mxu0  ;;  %v276_v39 = vpack.c.bf16 %v190_v32, %v190_v32  ;;  %v348_v40 = vpop.f32.mrb[7].mxu1 }
 0x102   :  { %v285_v41 = vpack.c.bf16 %v169_v37, %v166_v36  ;;  %240 = vst [vmem:[%s467_s3 + $0x20] sm:$0xf] %v276_v39 }
 0x104   :  { %297 = vst [vmem:[%s467_s3 + $0x8] sm:$0xff] %v285_v41  }
 0x105   :  { %v173_v42 = vpop.f32.mrb[8].mxu0 }
 0x106   :  { %v339_v43 = vpop.f32.mrb[9].mxu0  ;;  %v174_v45 = vadd.f32 %v245_v14, %v173_v42 }
 0x107   :  { %v176_v44 = vpop.f32.mrb[10].mxu0 }
 0x108   :  { %v177_v46 = vadd.f32 %v245_v14, %v176_v44  ;;  %v340_v47 = vpop.f32.mrb[11].mxu0 }
 0x10a   :  { %v290_v48 = vpack.c.bf16 %v177_v46, %v174_v45 }
 0x10c   :  { %298 = vst [vmem:[%s467_s3 + $0x10] sm:$0xff] %v290_v48  }

// kernel: _lambda_.30
= control target key start
LH: loop header
LB: loop body
LE: loop exit
PB: predicated region body
PF: predicated region fallthrough
CT: control target
= control target key end

     0   :  { %v438_v0 = vmov 0.0   ;;  %vm439_vm0 = vmmov 0   ;;  %s553_s1 = inlined_call_operand.vmem [shape: bf16[128,128], index: 1, kind: input, shape index: {}]   ;;  %s554_s0 = inlined_call_operand.vmem [shape: bf16[72,128], index: 0, kind: input, shape index: {}]   ;;  %s555_s3 = inlined_call_operand.vmem [shape: bf16[72,128], index: 3, kind: input, shape index: {}]   ;;  %s556_s2 = inlined_call_operand.vmem [shape: f32[1,128], index: 2, kind: input, shape index: {}]   ;;  %s557_s4 = inlined_call_operand.vmem [shape: bf16[72,128], index: 4, kind: output, shape index: {}]  }
   0x1   :  { %371 = vmatprep.subr.bf16.mxu0 %v438_v0  ;;  %v425_v1 = vld [vmem:[%s553_s1] sm:$0xff]   ;;  %407 = vmatprep.subr.bf16.mxu1 %v438_v0  ;;  %v426_v2 = vld [vmem:[%s553_s1 + $0x8] sm:$0xff]   ;;  %v427_v3 = vld [vmem:[%s553_s1 + $0x10] sm:$0xff]  }
   0x2   :  { %387 = vmatprep.mubr.msk.bf16.mxu0 %vm439_vm0, %v438_v0  ;;  %399 = vmatprep.mubr.msk.bf16.mxu1 %vm439_vm0, %v438_v0  ;;  %v428_v4 = vld [vmem:[%s553_s1 + $0x18] sm:$0xff]   ;;  %v429_v5 = vld [vmem:[%s553_s1 + $0x20] sm:$0xff]   ;;  %v430_v6 = vld [vmem:[%s553_s1 + $0x28] sm:$0xff]  }
   0x3   :  { %372 = vmatpush3.bf16.msra.mxu0 %v425_v1  ;;  %415 = vmatpush3.bf16.msra.mxu1 %v425_v1  ;;  %v431_v7 = vld [vmem:[%s553_s1 + $0x30] sm:$0xff]   ;;  %v432_v8 = vld [vmem:[%s553_s1 + $0x38] sm:$0xff]   ;;  %v433_v9 = vld [vmem:[%s554_s0] sm:$0xff]  }
   0x4   :  { %373 = vmatprep.subr.bf16.mxu0 %v438_v0  ;;  %408 = vmatprep.subr.bf16.mxu1 %v438_v0  ;;  %v434_v10 = vld [vmem:[%s554_s0 + $0x18] sm:$0xff]   ;;  %v435_v11 = vld [vmem:[%s554_s0 + $0x8] sm:$0xff]   ;;  %v436_v12 = vld [vmem:[%s554_s0 + $0x20] ss:$0 sps:$4 sm:$0xff]  }
   0x5   :  { %v437_v13 = vld [vmem:[%s554_s0 + $0x10] sm:$0xff]   ;;  %v317_v14 = vld [vmem:[%s555_s3] sm:$0xff]   ;;  %v354_v15 = vld [vmem:[%s555_s3 + $0x18] sm:$0xff]  }
   0x6   :  { %v518_v16 = vld [vmem:[%s556_s2] ss:$0 sm:$0xff]  ;;  %v318_v17 = vunpack.c.l.bf16 %v317_v14  ;;  %v330_v18 = vunpack.c.l.bf16 %v354_v15  ;;  %v319_v23 = vunpack.c.h.bf16 %v317_v14  ;;  %v331_v26 = vunpack.c.h.bf16 %v354_v15  ;;  %v352_v33 = vld [vmem:[%s555_s3 + $0x8] sm:$0xff]   ;;  %v353_v61 = vld [vmem:[%s555_s3 + $0x10] sm:$0xff]  }
   0x7   :  { %374 = vmatpush3.bf16.msra.mxu0 %v426_v2  ;;  %416 = vmatpush3.bf16.msra.mxu1 %v426_v2  ;;  %v206_v36 = vld [vmem:[%s555_s3 + $0x20] sm:$0xf]  ;;  %v322_v40 = vunpack.c.l.bf16 %v352_v33  ;;  %v323_v46 = vunpack.c.h.bf16 %v352_v33 }
   0x8   :  { %375 = vmatprep.subr.bf16.mxu0 %v438_v0  ;;  %409 = vmatprep.subr.bf16.mxu1 %v438_v0  ;;  %v215_v44 = vunpack.c.l.bf16 %v206_v36 }
   0xb   :  { %376 = vmatpush3.bf16.msra.mxu0 %v427_v3  ;;  %417 = vmatpush3.bf16.msra.mxu1 %v427_v3  ;;  %v326_v3 = vunpack.c.l.bf16 %v353_v61 }
   0xc   :  { %377 = vmatprep.subr.bf16.mxu0 %v438_v0  ;;  %410 = vmatprep.subr.bf16.mxu1 %v438_v0 }
   0xf   :  { %378 = vmatpush3.bf16.msra.mxu0 %v428_v4  ;;  %418 = vmatpush3.bf16.msra.mxu1 %v428_v4 }
  0x10   :  { %379 = vmatprep.subr.bf16.mxu0 %v438_v0  ;;  %411 = vmatprep.subr.bf16.mxu1 %v438_v0 }
  0x13   :  { %380 = vmatpush3.bf16.msra.mxu0 %v429_v5  ;;  %419 = vmatpush3.bf16.msra.mxu1 %v429_v5 }
  0x14   :  { %381 = vmatprep.subr.bf16.mxu0 %v438_v0  ;;  %412 = vmatprep.subr.bf16.mxu1 %v438_v0 }
  0x17   :  { %382 = vmatpush3.bf16.msra.mxu0 %v430_v6  ;;  %420 = vmatpush3.bf16.msra.mxu1 %v430_v6 }
  0x18   :  { %383 = vmatprep.subr.bf16.mxu0 %v438_v0  ;;  %413 = vmatprep.subr.bf16.mxu1 %v438_v0 }
  0x1b   :  { %384 = vmatpush3.bf16.msra.mxu0 %v431_v7  ;;  %421 = vmatpush3.bf16.msra.mxu1 %v431_v7 }
  0x1c   :  { %385 = vmatprep.subr.bf16.mxu0 %v438_v0  ;;  %414 = vmatprep.subr.bf16.mxu1 %v438_v0 }
  0x1f   :  { %386 = vmatpush3.bf16.msra.mxu0 %v432_v8  ;;  %422 = vmatpush3.bf16.msra.mxu1 %v432_v8  ;;  %v327_v8 = vunpack.c.h.bf16 %v353_v61 }
  0x22   :  { %388 = vmatmul.mubr.bf16.vlgmr.msra.gmra.mrb[0].mxu0 %v433_v9  ;;  %400 = vmatmul.mubr.bf16.vlgmr.msra.gmra.mrb[0].mxu1 %v434_v10 }
  0x23   :  { %391 = vmatprep.mubr.msk.bf16.mxu0 %vm439_vm0, %v438_v0  ;;  %403 = vmatprep.mubr.msk.bf16.mxu1 %vm439_vm0, %v438_v0 }
  0x2a   :  { %392 = vmatmul.mubr.bf16.gmra.mrb[4].mxu0 %v435_v11  ;;  %404 = vmatmul.mubr.bf16.gmra.mrb[4].mxu1 %v436_v12 }
  0x2b   :  { %395 = vmatprep.mubr.msk.bf16.mxu0 %vm439_vm0, %v438_v0 }
  0x32   :  { %396 = vmatmul.mubr.bf16.gmra.mrb[8].mxu0 %v437_v13 }
  0xf5   :  { %v160_v19 = vpop.f32.mrb[0].mxu0  ;;  %v184_v20 = vpop.f32.mrb[0].mxu1 }
  0xf6   :  { %v161_v21 = vadd.f32 %v518_v16, %v160_v19  ;;  %v389_v22 = vpop.f32.mrb[1].mxu0  ;;  %v185_v24 = vadd.f32 %v518_v16, %v184_v20  ;;  %v401_v25 = vpop.f32.mrb[1].mxu1 }
  0xf7   :  { %v163_v27 = vpop.f32.mrb[2].mxu0  ;;  %v187_v28 = vpop.f32.mrb[2].mxu1 }
  0xf8   :  { %v216_v29 = vadd.f32 %v318_v17, %v161_v21  ;;  %v164_v30 = vadd.f32 %v518_v16, %v163_v27  ;;  %v390_v31 = vpop.f32.mrb[3].mxu0  ;;  %v222_v32 = vadd.f32 %v330_v18, %v185_v24  ;;  %v188_v34 = vadd.f32 %v518_v16, %v187_v28  ;;  %v402_v35 = vpop.f32.mrb[3].mxu1 }
  0xfa   :  { %v217_v37 = vadd.f32 %v319_v23, %v164_v30  ;;  %v231_v38 = vmax.f32 %v222_v32, 0.0  ;;  %v223_v39 = vadd.f32 %v331_v26, %v188_v34  ;;  %v225_v41 = vmax.f32 %v216_v29, 0.0 }
  0xfc   :  { %v226_v42 = vmax.f32 %v217_v37, 0.0  ;;  %v232_v43 = vmax.f32 %v223_v39, 0.0 }
  0xfd   :  { %v168_v45 = vpop.f32.mrb[4].mxu0  ;;  %v192_v47 = vpop.f32.mrb[4].mxu1 }
  0xfe   :  { %v335_v48 = vpack.c.bf16 %v226_v42, %v225_v41  ;;  %v169_v49 = vadd.f32 %v518_v16, %v168_v45  ;;  %v393_v50 = vpop.f32.mrb[5].mxu0  ;;  %v350_v51 = vpack.c.bf16 %v232_v43, %v231_v38  ;;  %v193_v52 = vadd.f32 %v518_v16, %v192_v47  ;;  %v405_v53 = vpop.f32.mrb[5].mxu1 }
  0xff   :  { %v171_v54 = vpop.f32.mrb[6].mxu0  ;;  %v195_v55 = vpop.f32.mrb[6].mxu1 }
 0x100   :  { %336 = vst [vmem:[%s557_s4] sm:$0xff] %v335_v48   ;;  %v218_v56 = vadd.f32 %v322_v40, %v169_v49  ;;  %357 = vst [vmem:[%s557_s4 + $0x18] sm:$0xff] %v350_v51   ;;  %v172_v57 = vadd.f32 %v518_v16, %v171_v54  ;;  %v394_v58 = vpop.f32.mrb[7].mxu0  ;;  %v224_v59 = vadd.f32 %v215_v44, %v193_v52  ;;  %v406_v60 = vpop.f32.mrb[7].mxu1 }
 0x102   :  { %v219_v62 = vadd.f32 %v323_v46, %v172_v57  ;;  %v233_v63 = vmax.f32 %v224_v59, 0.0  ;;  %v227_v0 = vmax.f32 %v218_v56, 0.0 }
 0x104   :  { %v228_v1 = vmax.f32 %v219_v62, 0.0  ;;  %v315_v2 = vpack.c.bf16 %v233_v63, %v233_v63 }
 0x105   :  { %v176_v4 = vpop.f32.mrb[8].mxu0 }
 0x106   :  { %v340_v5 = vpack.c.bf16 %v228_v1, %v227_v0  ;;  %279 = vst [vmem:[%s557_s4 + $0x20] sm:$0xf] %v315_v2  ;;  %v177_v6 = vadd.f32 %v518_v16, %v176_v4  ;;  %v397_v7 = vpop.f32.mrb[9].mxu0 }
 0x107   :  { %v179_v9 = vpop.f32.mrb[10].mxu0 }
 0x108   :  { %355 = vst [vmem:[%s557_s4 + $0x8] sm:$0xff] %v340_v5   ;;  %v220_v10 = vadd.f32 %v326_v3, %v177_v6  ;;  %v180_v11 = vadd.f32 %v518_v16, %v179_v9  ;;  %v398_v12 = vpop.f32.mrb[11].mxu0 }
 0x10a   :  { %v221_v13 = vadd.f32 %v327_v8, %v180_v11  ;;  %v229_v14 = vmax.f32 %v220_v10, 0.0 }
 0x10c   :  { %v230_v15 = vmax.f32 %v221_v13, 0.0 }
 0x10e   :  { %v345_v17 = vpack.c.bf16 %v230_v15, %v229_v14 }
 0x110   :  { %356 = vst [vmem:[%s557_s4 + $0x10] sm:$0xff] %v345_v17  }

// kernel: _lambda_.31
= control target key start
LH: loop header
LB: loop body
LE: loop exit
PB: predicated region body
PF: predicated region fallthrough
CT: control target
= control target key end

     0   :  { %v389_v0 = vmov 0.0   ;;  %vm390_vm0 = vmmov 0   ;;  %s473_s1 = inlined_call_operand.vmem [shape: bf16[128,128], index: 1, kind: input, shape index: {}]   ;;  %s474_s0 = inlined_call_operand.vmem [shape: bf16[72,128], index: 0, kind: input, shape index: {}]   ;;  %s475_s2 = inlined_call_operand.vmem [shape: f32[1,128], index: 2, kind: input, shape index: {}]   ;;  %s476_s3 = inlined_call_operand.vmem [shape: bf16[72,128], index: 3, kind: output, shape index: {}]  }
   0x1   :  { %322 = vmatprep.subr.bf16.mxu0 %v389_v0  ;;  %v376_v1 = vld [vmem:[%s473_s1] sm:$0xff]   ;;  %358 = vmatprep.subr.bf16.mxu1 %v389_v0  ;;  %v377_v2 = vld [vmem:[%s473_s1 + $0x8] sm:$0xff]   ;;  %v378_v3 = vld [vmem:[%s473_s1 + $0x10] sm:$0xff]  }
   0x2   :  { %338 = vmatprep.mubr.msk.bf16.mxu0 %vm390_vm0, %v389_v0  ;;  %350 = vmatprep.mubr.msk.bf16.mxu1 %vm390_vm0, %v389_v0  ;;  %v379_v4 = vld [vmem:[%s473_s1 + $0x18] sm:$0xff]   ;;  %v380_v5 = vld [vmem:[%s473_s1 + $0x20] sm:$0xff]   ;;  %v381_v6 = vld [vmem:[%s473_s1 + $0x28] sm:$0xff]  }
   0x3   :  { %323 = vmatpush3.bf16.msra.mxu0 %v376_v1  ;;  %366 = vmatpush3.bf16.msra.mxu1 %v376_v1  ;;  %v382_v7 = vld [vmem:[%s473_s1 + $0x30] sm:$0xff]   ;;  %v383_v8 = vld [vmem:[%s473_s1 + $0x38] sm:$0xff]   ;;  %v384_v9 = vld [vmem:[%s474_s0] sm:$0xff]  }
   0x4   :  { %324 = vmatprep.subr.bf16.mxu0 %v389_v0  ;;  %359 = vmatprep.subr.bf16.mxu1 %v389_v0  ;;  %v385_v10 = vld [vmem:[%s474_s0 + $0x18] sm:$0xff]   ;;  %v386_v11 = vld [vmem:[%s474_s0 + $0x8] sm:$0xff]   ;;  %v387_v12 = vld [vmem:[%s474_s0 + $0x20] ss:$0 sps:$4 sm:$0xff]  }
   0x5   :  { %v388_v13 = vld [vmem:[%s474_s0 + $0x10] sm:$0xff]   ;;  %v254_v14 = vld [vmem:[%s475_s2] ss:$0 sm:$0xff] }
   0x7   :  { %325 = vmatpush3.bf16.msra.mxu0 %v377_v2  ;;  %367 = vmatpush3.bf16.msra.mxu1 %v377_v2 }
   0x8   :  { %326 = vmatprep.subr.bf16.mxu0 %v389_v0  ;;  %360 = vmatprep.subr.bf16.mxu1 %v389_v0 }
   0xb   :  { %327 = vmatpush3.bf16.msra.mxu0 %v378_v3  ;;  %368 = vmatpush3.bf16.msra.mxu1 %v378_v3 }
   0xc   :  { %328 = vmatprep.subr.bf16.mxu0 %v389_v0  ;;  %361 = vmatprep.subr.bf16.mxu1 %v389_v0 }
   0xf   :  { %329 = vmatpush3.bf16.msra.mxu0 %v379_v4  ;;  %369 = vmatpush3.bf16.msra.mxu1 %v379_v4 }
  0x10   :  { %330 = vmatprep.subr.bf16.mxu0 %v389_v0  ;;  %362 = vmatprep.subr.bf16.mxu1 %v389_v0 }
  0x13   :  { %331 = vmatpush3.bf16.msra.mxu0 %v380_v5  ;;  %370 = vmatpush3.bf16.msra.mxu1 %v380_v5 }
  0x14   :  { %332 = vmatprep.subr.bf16.mxu0 %v389_v0  ;;  %363 = vmatprep.subr.bf16.mxu1 %v389_v0 }
  0x17   :  { %333 = vmatpush3.bf16.msra.mxu0 %v381_v6  ;;  %371 = vmatpush3.bf16.msra.mxu1 %v381_v6 }
  0x18   :  { %334 = vmatprep.subr.bf16.mxu0 %v389_v0  ;;  %364 = vmatprep.subr.bf16.mxu1 %v389_v0 }
  0x1b   :  { %335 = vmatpush3.bf16.msra.mxu0 %v382_v7  ;;  %372 = vmatpush3.bf16.msra.mxu1 %v382_v7 }
  0x1c   :  { %336 = vmatprep.subr.bf16.mxu0 %v389_v0  ;;  %365 = vmatprep.subr.bf16.mxu1 %v389_v0 }
  0x1f   :  { %337 = vmatpush3.bf16.msra.mxu0 %v383_v8  ;;  %373 = vmatpush3.bf16.msra.mxu1 %v383_v8 }
  0x22   :  { %339 = vmatmul.mubr.bf16.vlgmr.msra.gmra.mrb[0].mxu0 %v384_v9  ;;  %351 = vmatmul.mubr.bf16.vlgmr.msra.gmra.mrb[0].mxu1 %v385_v10 }
  0x23   :  { %342 = vmatprep.mubr.msk.bf16.mxu0 %vm390_vm0, %v389_v0  ;;  %354 = vmatprep.mubr.msk.bf16.mxu1 %vm390_vm0, %v389_v0 }
  0x2a   :  { %343 = vmatmul.mubr.bf16.gmra.mrb[4].mxu0 %v386_v11  ;;  %355 = vmatmul.mubr.bf16.gmra.mrb[4].mxu1 %v387_v12 }
  0x2b   :  { %346 = vmatprep.mubr.msk.bf16.mxu0 %vm390_vm0, %v389_v0 }
  0x32   :  { %347 = vmatmul.mubr.bf16.gmra.mrb[8].mxu0 %v388_v13 }
  0xf5   :  { %v157_v15 = vpop.f32.mrb[0].mxu0  ;;  %v181_v16 = vpop.f32.mrb[0].mxu1 }
  0xf6   :  { %v158_v17 = vadd.f32 %v254_v14, %v157_v15  ;;  %v340_v18 = vpop.f32.mrb[1].mxu0  ;;  %v182_v19 = vadd.f32 %v254_v14, %v181_v16  ;;  %v352_v20 = vpop.f32.mrb[1].mxu1 }
  0xf7   :  { %v160_v21 = vpop.f32.mrb[2].mxu0  ;;  %v184_v22 = vpop.f32.mrb[2].mxu1 }
  0xf8   :  { %v161_v23 = vadd.f32 %v254_v14, %v160_v21  ;;  %v341_v24 = vpop.f32.mrb[3].mxu0  ;;  %v201_v25 = vmax.f32 %v182_v19, 0.0  ;;  %v185_v26 = vadd.f32 %v254_v14, %v184_v22  ;;  %v353_v27 = vpop.f32.mrb[3].mxu1  ;;  %v195_v28 = vmax.f32 %v158_v17, 0.0 }
  0xfa   :  { %v196_v29 = vmax.f32 %v161_v23, 0.0  ;;  %v202_v30 = vmax.f32 %v185_v26, 0.0 }
  0xfc   :  { %v289_v31 = vpack.c.bf16 %v196_v29, %v195_v28  ;;  %v304_v32 = vpack.c.bf16 %v202_v30, %v201_v25 }
  0xfd   :  { %v165_v33 = vpop.f32.mrb[4].mxu0  ;;  %v189_v34 = vpop.f32.mrb[4].mxu1 }
  0xfe   :  { %290 = vst [vmem:[%s476_s3] sm:$0xff] %v289_v31   ;;  %v166_v35 = vadd.f32 %v254_v14, %v165_v33  ;;  %v344_v36 = vpop.f32.mrb[5].mxu0  ;;  %308 = vst [vmem:[%s476_s3 + $0x18] sm:$0xff] %v304_v32   ;;  %v190_v37 = vadd.f32 %v254_v14, %v189_v34  ;;  %v356_v38 = vpop.f32.mrb[5].mxu1 }
  0xff   :  { %v168_v39 = vpop.f32.mrb[6].mxu0  ;;  %v192_v40 = vpop.f32.mrb[6].mxu1 }
 0x100   :  { %v169_v41 = vadd.f32 %v254_v14, %v168_v39  ;;  %v345_v42 = vpop.f32.mrb[7].mxu0  ;;  %v203_v43 = vmax.f32 %v190_v37, 0.0  ;;  %v357_v44 = vpop.f32.mrb[7].mxu1  ;;  %v197_v45 = vmax.f32 %v166_v35, 0.0 }
 0x102   :  { %v198_v46 = vmax.f32 %v169_v41, 0.0  ;;  %v285_v47 = vpack.c.bf16 %v203_v43, %v203_v43 }
 0x104   :  { %v294_v48 = vpack.c.bf16 %v198_v46, %v197_v45  ;;  %249 = vst [vmem:[%s476_s3 + $0x20] sm:$0xf] %v285_v47 }
 0x105   :  { %v173_v49 = vpop.f32.mrb[8].mxu0 }
 0x106   :  { %306 = vst [vmem:[%s476_s3 + $0x8] sm:$0xff] %v294_v48   ;;  %v174_v50 = vadd.f32 %v254_v14, %v173_v49  ;;  %v348_v51 = vpop.f32.mrb[9].mxu0 }
 0x107   :  { %v176_v52 = vpop.f32.mrb[10].mxu0 }
 0x108   :  { %v177_v53 = vadd.f32 %v254_v14, %v176_v52  ;;  %v349_v54 = vpop.f32.mrb[11].mxu0  ;;  %v199_v55 = vmax.f32 %v174_v50, 0.0 }
 0x10a   :  { %v200_v56 = vmax.f32 %v177_v53, 0.0 }
 0x10c   :  { %v299_v57 = vpack.c.bf16 %v200_v56, %v199_v55 }
 0x10e   :  { %307 = vst [vmem:[%s476_s3 + $0x10] sm:$0xff] %v299_v57  }

// kernel: _lambda_.32
= control target key start
LH: loop header
LB: loop body
LE: loop exit
PB: predicated region body
PF: predicated region fallthrough
CT: control target
= control target key end

     0   :  { %v281_v1 = vmov 0   ;;  %v36_v19 = vlaneseq  ;;  %s368_s1 = inlined_call_operand.vmem [shape: bf16[128,256], index: 1, kind: input, shape index: {}]   ;;  %s369_s0 = inlined_call_operand.vmem [shape: bf16[18,128], index: 0, kind: input, shape index: {}]   ;;  %s370_s2 = inlined_call_operand.vmem [shape: f32[1,256], index: 2, kind: input, shape index: {}]   ;;  %s371_s3 = inlined_call_operand.vmem [shape: bf16[18,256], index: 3, kind: output, shape index: {}]  }
   0x1   :  { %v255_v0 = vld [vmem:[%s368_s1 + $0x4] ss:$8 sps:$4 sm:$0xff]   ;;  %168 = vmatprep.mubr.bf16.mxu0 %v281_v1  ;;  %178 = vmatprep.mubr.bf16.mxu1 %v281_v1  ;;  %v257_v2 = vld [vmem:[%s368_s1] ss:$8 sps:$4 sm:$0xff]   ;;  %v258_v3 = vld [vmem:[%s368_s1 + $0x14] ss:$8 sps:$4 sm:$0xff]  }
   0x2   :  { %136 = vmatprep.subr.bf16.mxu0 %v255_v0  ;;  %238 = vmatprep.subr.bf16.mxu1 %v255_v0  ;;  %v260_v4 = vld [vmem:[%s368_s1 + $0x10] ss:$8 sps:$4 sm:$0xff]   ;;  %v261_v5 = vld [vmem:[%s368_s1 + $0x24] ss:$8 sps:$4 sm:$0xff]   ;;  %v263_v6 = vld [vmem:[%s368_s1 + $0x20] ss:$8 sps:$4 sm:$0xff]  }
   0x3   :  { %137 = vmatpush1.bf16.msra.mxu0 %v257_v2  ;;  %246 = vmatpush1.bf16.msra.mxu1 %v257_v2  ;;  %v264_v7 = vld [vmem:[%s368_s1 + $0x34] ss:$8 sps:$4 sm:$0xff]   ;;  %v266_v8 = vld [vmem:[%s368_s1 + $0x30] ss:$8 sps:$4 sm:$0xff]   ;;  %v267_v9 = vld [vmem:[%s368_s1 + $0x44] ss:$8 sps:$4 sm:$0xff]  }
   0x4   :  { %138 = vmatprep.subr.bf16.mxu0 %v258_v3  ;;  %239 = vmatprep.subr.bf16.mxu1 %v258_v3  ;;  %v269_v10 = vld [vmem:[%s368_s1 + $0x40] ss:$8 sps:$4 sm:$0xff]   ;;  %v270_v11 = vld [vmem:[%s368_s1 + $0x54] ss:$8 sps:$4 sm:$0xff]   ;;  %v272_v12 = vld [vmem:[%s368_s1 + $0x50] ss:$8 sps:$4 sm:$0xff]  }
   0x5   :  { %v273_v13 = vld [vmem:[%s368_s1 + $0x64] ss:$8 sps:$4 sm:$0xff]   ;;  %v275_v14 = vld [vmem:[%s368_s1 + $0x60] ss:$8 sps:$4 sm:$0xff]   ;;  %v276_v15 = vld [vmem:[%s368_s1 + $0x74] ss:$8 sps:$4 sm:$0xff]  }
   0x6   :  { %v278_v16 = vld [vmem:[%s368_s1 + $0x70] ss:$8 sps:$4 sm:$0xff]   ;;  %v279_v17 = vld [vmem:[%s369_s0] sm:$0xff]   ;;  %v280_v18 = vld [vmem:[%s369_s0 + $0x8] ss:$0 sps:$4 sm:$0x11]  }
   0x7   :  { %139 = vmatpush1.bf16.msra.mxu0 %v260_v4  ;;  %247 = vmatpush1.bf16.msra.mxu1 %v260_v4  ;;  %v37_v20 = vshrl.u32 %v36_v19, 7  ;;  %v34_v22 = vld [vmem:[%s370_s2] sm:$0x3] }
   0x8   :  { %140 = vmatprep.subr.bf16.mxu0 %v261_v5  ;;  %240 = vmatprep.subr.bf16.mxu1 %v261_v5 }
   0x9   :  { %v38_v21 = vsub.s32 0, %v37_v20  ;;  %v42_v23 = vsub.s32 1, %v37_v20 }
   0xb   :  { %141 = vmatpush1.bf16.msra.mxu0 %v263_v6  ;;  %248 = vmatpush1.bf16.msra.mxu1 %v263_v6  ;;  %v39_v24 = vrot.slane %v34_v22, %v38_v21  ;;  %v43_v25 = vrot.slane %v34_v22, %v42_v23 }
   0xc   :  { %142 = vmatprep.subr.bf16.mxu0 %v264_v7  ;;  %241 = vmatprep.subr.bf16.mxu1 %v264_v7 }
   0xf   :  { %143 = vmatpush1.bf16.msra.mxu0 %v266_v8  ;;  %249 = vmatpush1.bf16.msra.mxu1 %v266_v8 }
  0x10   :  { %144 = vmatprep.subr.bf16.mxu0 %v267_v9  ;;  %242 = vmatprep.subr.bf16.mxu1 %v267_v9 }
  0x13   :  { %145 = vmatpush1.bf16.msra.mxu0 %v269_v10  ;;  %250 = vmatpush1.bf16.msra.mxu1 %v269_v10 }
  0x14   :  { %146 = vmatprep.subr.bf16.mxu0 %v270_v11  ;;  %243 = vmatprep.subr.bf16.mxu1 %v270_v11 }
  0x17   :  { %147 = vmatpush1.bf16.msra.mxu0 %v272_v12  ;;  %251 = vmatpush1.bf16.msra.mxu1 %v272_v12 }
  0x18   :  { %148 = vmatprep.subr.bf16.mxu0 %v273_v13  ;;  %244 = vmatprep.subr.bf16.mxu1 %v273_v13 }
  0x1b   :  { %149 = vmatpush1.bf16.msra.mxu0 %v275_v14  ;;  %252 = vmatpush1.bf16.msra.mxu1 %v275_v14 }
  0x1c   :  { %150 = vmatprep.subr.bf16.mxu0 %v276_v15  ;;  %245 = vmatprep.subr.bf16.mxu1 %v276_v15 }
  0x1f   :  { %151 = vmatpush1.bf16.msra.mxu0 %v278_v16  ;;  %253 = vmatpush1.bf16.msra.mxu1 %v278_v16 }
  0x22   :  { %169 = vmatmul.mubr.bf16.vlgmr.msra.gmra.mrb[0].mxu0 %v279_v17  ;;  %179 = vmatmul.mubr.bf16.vlgmr.msra.gmra.mrb[0].mxu1 %v280_v18 }
  0xf5   :  { %v170_v26 = vpop.f32.mrb[0].mxu0  ;;  %v180_v27 = vpop.f32.mrb[0].mxu1 }
  0xf6   :  { %v171_v28 = vadd.f32 %v170_v26, %v39_v24  ;;  %v181_v29 = vadd.f32 %v180_v27, %v39_v24  ;;  %v172_v30 = vpop.f32.mrb[1].mxu0  ;;  %v182_v31 = vpop.f32.mrb[1].mxu1 }
  0xf7   :  { %v173_v32 = vadd.f32 %v172_v30, %v43_v25  ;;  %v183_v33 = vadd.f32 %v182_v31, %v43_v25  ;;  %v174_v34 = vpop.f32.mrb[2].mxu0  ;;  %v184_v35 = vpop.f32.mrb[2].mxu1 }
  0xf8   :  { %v175_v36 = vadd.f32 %v174_v34, %v39_v24  ;;  %v176_v37 = vpop.f32.mrb[3].mxu0  ;;  %v185_v38 = vpop.f32.mrb[3].mxu1 }
  0xf9   :  { %v235_v39 = vpack.c.bf16 %v173_v32, %v171_v28  ;;  %v237_v40 = vpack.c.bf16 %v183_v33, %v181_v29  ;;  %v177_v41 = vadd.f32 %v176_v37, %v43_v25 }
  0xfb   :  { %207 = vst [vmem:[%s371_s3] sm:$0xff] %v235_v39  ;;  %209 = vst [vmem:[%s371_s3 + $0x10] sm:$0x11] %v237_v40  ;;  %v236_v42 = vpack.c.bf16 %v177_v41, %v175_v36 }
  0xfd   :  { %208 = vst [vmem:[%s371_s3 + $0x8] sm:$0xff] %v236_v42 }

// kernel: _lambda_.29
= control target key start
LH: loop header
LB: loop body
LE: loop exit
PB: predicated region body
PF: predicated region fallthrough
CT: control target
= control target key end

     0   :  { %s2545_s12 = smov 0   ;;  %s2547_s13 = smov 0   ;;  %s2968_s0 = inlined_call_operand.vmem [shape: bf16[2,6,56,128], index: 0, kind: input, shape index: {}]   ;;  %s2969_s1 = inlined_call_operand.vmem [shape: bf16[9,128,128], index: 1, kind: input, shape index: {}]   ;;  %s2970_s2 = inlined_call_operand.vmem [shape: f32[1,128], index: 2, kind: input, shape index: {}]   ;;  %s2971_s3 = inlined_call_operand.vmem [shape: bf16[2,6,6,128], index: 3, kind: output, shape index: {}]  }
   0x1   :  { %s2549_s14 = smov 0  }
   0x2 LB: > { %s25_s15 = sadd.s32 1, %s2517_s13  ;;  %p1722_p0 = scmp.ge.s32.totalorder %s2521_s14, 1  ;;  %s2521_s14 = sphi %s2549_s14, %s13_s14   ;;  %s2517_s13 = sphi %s2547_s13, %s2973_s13   ;;  %s2513_s12 = sphi %s2545_s12, %s2972_s12  }
   0x3   : > { %p27_p1 = scmp.ge.s32.totalorder %s25_s15, 2  ;;  %p151_p2 = scmp.lt.s32.totalorder %s2521_s14, 3 }
   0x5   : > { %s2975_s15 = smov (%p27_p1, %s25_s15), 0  ;;  %p152_p3 = pnand %p1722_p0, %p151_p2 }
   0x6   : > { %v2400_v0 = vld [vmem:[%s2969_s1 + $0x40] sm:$0xff] (!%p152_p3)   ;;  %v2523_v1 = vmov (!%p152_p3), 0.0   ;;  %v2402_v3 = vld [vmem:[%s2969_s1 + $0x48] sm:$0xff] (!%p152_p3)   ;;  %vm2524_vm0 = vmmov (!%p152_p3), 0   ;;  %p179_p4 = scmp.lt.s32.totalorder (!%p152_p3), %s2513_s12, 1  ;;  %v2404_v5 = vld [vmem:[%s2969_s1 + $0x50] sm:$0xff] (!%p152_p3)  }
   0x7   : > { %155 = sbr.rel (%p152_p3) target bundleno = 399 (0x18f), region = 32  ;;  %2104 = vmatprep.subr.bf16.mxu0 (!%p152_p3), %v2523_v1  ;;  %2132 = vmatprep.subr.bf16.mxu1 (!%p152_p3), %v2523_v1  ;;  %v2401_v2 = vld [vmem:[%s2969_s1] sm:$0xff] (!%p152_p3)   ;;  %v2403_v4 = vld [vmem:[%s2969_s1 + $0x8] sm:$0xff] (!%p152_p3)   ;;  %v2405_v6 = vld [vmem:[%s2969_s1 + $0x10] sm:$0xff] (!%p152_p3)  }
   0x8   : > { %2105 = vmatpush3.bf16.msra.mxu0 (!%p152_p3), %v2400_v0  ;;  %2120 = vmatprep.mubr.msk.bf16.mxu0 (!%p152_p3), %vm2524_vm0, %v2523_v1  ;;  %v2406_v7 = vld [vmem:[%s2969_s1 + $0x58] sm:$0xff] (!%p152_p3)   ;;  %v2408_v9 = vld [vmem:[%s2969_s1 + $0x60] sm:$0xff] (!%p152_p3)   ;;  %v2410_v11 = vld [vmem:[%s2969_s1 + $0x68] sm:$0xff] (!%p152_p3)  }
   0x9   : > { %2133 = vmatpush3.bf16.msra.mxu1 (!%p152_p3), %v2401_v2  ;;  %2106 = vmatprep.subr.bf16.mxu0 (!%p152_p3), %v2523_v1  ;;  %v2407_v8 = vld [vmem:[%s2969_s1 + $0x18] sm:$0xff] (!%p152_p3)   ;;  %v2409_v10 = vld [vmem:[%s2969_s1 + $0x20] sm:$0xff] (!%p152_p3)   ;;  %v2411_v12 = vld [vmem:[%s2969_s1 + $0x28] sm:$0xff] (!%p152_p3)  }
   0xa   : > { %2134 = vmatprep.subr.bf16.mxu1 (!%p152_p3), %v2523_v1  ;;  %2148 = vmatprep.mubr.msk.bf16.mxu1 (!%p152_p3), %vm2524_vm0, %v2523_v1  ;;  %v2412_v13 = vld [vmem:[%s2969_s1 + $0x70] sm:$0xff] (!%p152_p3)   ;;  %v2414_v15 = vld [vmem:[%s2969_s1 + $0x78] sm:$0xff] (!%p152_p3)   ;;  %v2418_v19 = vld [vmem:[%s2969_s1 + $0x80] sm:$0xff] (!%p152_p3)  }
   0xb   : > { %v2413_v14 = vld [vmem:[%s2969_s1 + $0x30] sm:$0xff] (!%p152_p3)   ;;  %v2415_v16 = vld [vmem:[%s2969_s1 + $0x38] sm:$0xff] (!%p152_p3)   ;;  %v2419_v20 = vld [vmem:[%s2969_s1 + $0xc0] sm:$0xff] (!%p152_p3)  }
   0xc   : > { %2107 = vmatpush3.bf16.msra.mxu0 (!%p152_p3), %v2402_v3  ;;  %v2420_v21 = vld [vmem:[%s2969_s1 + $0x88] sm:$0xff] (!%p152_p3)   ;;  %v2422_v23 = vld [vmem:[%s2969_s1 + $0x90] sm:$0xff] (!%p152_p3)   ;;  %v2424_v27 = vld [vmem:[%s2969_s1 + $0x98] sm:$0xff] (!%p152_p3)  }
   0xd   : > { %2135 = vmatpush3.bf16.msra.mxu1 (!%p152_p3), %v2403_v4  ;;  %2108 = vmatprep.subr.bf16.mxu0 (!%p152_p3), %v2523_v1  ;;  %v2421_v22 = vld [vmem:[%s2969_s1 + $0xc8] sm:$0xff] (!%p152_p3)   ;;  %v2423_v26 = vld [vmem:[%s2969_s1 + $0xd0] sm:$0xff] (!%p152_p3)   ;;  %v2425_v28 = vld [vmem:[%s2969_s1 + $0xd8] sm:$0xff] (!%p152_p3)  }
   0xe   : > { %s2977_s12 = smov (!%p179_p4, %s2513_s12), 1  ;;  %2136 = vmatprep.subr.bf16.mxu1 %v2523_v1  ;;  %v2428_v29 = vld [vmem:[%s2969_s1 + $0xa0] sm:$0xff]   ;;  %v2430_v33 = vld [vmem:[%s2969_s1 + $0xa8] sm:$0xff]   ;;  %v2434_v35 = vld [vmem:[%s2969_s1 + $0xb0] sm:$0xff]  }
   0xf   : > { %s2372_s5 = smul.u32 168, %s2977_s12  ;;  %v2429_v32 = vld [vmem:[%s2969_s1 + $0xe0] sm:$0xff]   ;;  %v2431_v34 = vld [vmem:[%s2969_s1 + $0xe8] sm:$0xff]   ;;  %v2435_v36 = vld [vmem:[%s2969_s1 + $0xf0] sm:$0xff]  }
  0x10   : > { %2109 = vmatpush3.bf16.msra.mxu0 %v2404_v5  ;;  %v2436_v37 = vld [vmem:[%s2969_s1 + $0xb8] sm:$0xff]   ;;  %v2440_v41 = vld [vmem:[%s2969_s1 + $0x100] sm:$0xff]   ;;  %v2442_v43 = vld [vmem:[%s2969_s1 + $0x108] sm:$0xff]  }
  0x11   : > { %2137 = vmatpush3.bf16.msra.mxu1 %v2405_v6  ;;  %2110 = vmatprep.subr.bf16.mxu0 %v2523_v1  ;;  %s2616_s16 = scalar_lea.vmem %s2968_s0, %s2372_s5  ;;  %v2437_v38 = vld [vmem:[%s2969_s1 + $0xf8] sm:$0xff]   ;;  %v2441_v42 = vld [vmem:[%s2969_s1 + $0x140] sm:$0xff]   ;;  %v2443_v44 = vld [vmem:[%s2969_s1 + $0x148] sm:$0xff]   ;;  %s2373_s5 = smul.u32 24, %s2977_s12 }
  0x12   : > { %2138 = vmatprep.subr.bf16.mxu1 %v2523_v1  ;;  %v2416_v17 = vld [vmem:[%s2616_s16 + $0x1c] sm:$0xff]   ;;  %v2427_v24 = vld [vmem:[%s2616_s16 + $0x24] sm:$0xff]   ;;  %v2433_v30 = vld [vmem:[%s2616_s16 + $0x2c] sm:$0xff]  }
  0x13   : > { %v2417_v18 = vld [vmem:[%s2616_s16] sm:$0xff]   ;;  %v2426_v25 = vld [vmem:[%s2616_s16 + $0x8] sm:$0xff]   ;;  %v2432_v31 = vld [vmem:[%s2616_s16 + $0x10] sm:$0xff]   ;;  %s192_s8 = scalar_lea.vmem %s2971_s3, %s2373_s5 }
  0x14   : > { %2111 = vmatpush3.bf16.msra.mxu0 %v2406_v7  ;;  %v2438_v39 = vld [vmem:[%s2616_s16 + $0x38] sm:$0xff]   ;;  %v2444_v45 = vld [vmem:[%s2616_s16 + $0x40] sm:$0xff]   ;;  %v2445_v46 = vld [vmem:[%s2969_s1 + $0x110] sm:$0xff]  }
  0x15   : > { %2139 = vmatpush3.bf16.msra.mxu1 %v2407_v8  ;;  %2112 = vmatprep.subr.bf16.mxu0 %v2523_v1  ;;  %v2439_v40 = vld [vmem:[%s2616_s16 + $0x54] sm:$0xff]   ;;  %v2447_v47 = vld [vmem:[%s2616_s16 + $0x5c] sm:$0xff]   ;;  %v2450_v51 = vld [vmem:[%s2616_s16 + $0x48] sm:$0xff]  }
  0x16   : > { %2140 = vmatprep.subr.bf16.mxu1 %v2523_v1  ;;  %v2446_v48 = vld [vmem:[%s2969_s1 + $0x150] sm:$0xff]   ;;  %v2448_v49 = vld [vmem:[%s2969_s1 + $0x118] sm:$0xff]   ;;  %v2451_v52 = vld [vmem:[%s2969_s1 + $0x120] sm:$0xff]  }
  0x17   : > { %v2449_v50 = vld [vmem:[%s2969_s1 + $0x158] sm:$0xff]   ;;  %v2453_v53 = vld [vmem:[%s2616_s16 + $0x64] sm:$0xff]   ;;  %v2456_v57 = vld [vmem:[%s2969_s1 + $0x130] sm:$0xff]  }
  0x18   : > { %2113 = vmatpush3.bf16.msra.mxu0 %v2408_v9  ;;  %v2452_v54 = vld [vmem:[%s2969_s1 + $0x160] sm:$0xff]   ;;  %v2454_v55 = vld [vmem:[%s2969_s1 + $0x128] sm:$0xff]   ;;  %v2457_v58 = vld [vmem:[%s2969_s1 + $0x170] sm:$0xff]  }
  0x19   : > { %2141 = vmatpush3.bf16.msra.mxu1 %v2409_v10  ;;  %2114 = vmatprep.subr.bf16.mxu0 %v2523_v1  ;;  %v2455_v56 = vld [vmem:[%s2969_s1 + $0x168] sm:$0xff]   ;;  %v2458_v59 = vld [vmem:[%s2969_s1 + $0x138] sm:$0xff]   ;;  %v2460_v61 = vld [vmem:[%s2616_s16 + $0x70] sm:$0xff]  }
  0x1a   : > { %2142 = vmatprep.subr.bf16.mxu1 %v2523_v1  ;;  %v2459_v60 = vld [vmem:[%s2969_s1 + $0x178] sm:$0xff]   ;;  %v2461_v62 = vld [vmem:[%s2616_s16 + $0x8c] sm:$0xff]   ;;  %v2462_v63 = vld [vmem:[%s2969_s1 + $0x180] sm:$0xff]  }
  0x1b   : > { %v2463_v0 = vld [vmem:[%s2969_s1 + $0x1c0] sm:$0xff]   ;;  %v2464_v2 = vld [vmem:[%s2969_s1 + $0x188] sm:$0xff]   ;;  %v2466_v4 = vld [vmem:[%s2616_s16 + $0x78] sm:$0xff]  }
  0x1c   : > { %2115 = vmatpush3.bf16.msra.mxu0 %v2410_v11  ;;  %v2465_v3 = vld [vmem:[%s2969_s1 + $0x1c8] sm:$0xff]   ;;  %v2467_v5 = vld [vmem:[%s2969_s1 + $0x190] sm:$0xff]   ;;  %v2470_v8 = vld [vmem:[%s2969_s1 + $0x198] sm:$0xff]  }
  0x1d   : > { %2143 = vmatpush3.bf16.msra.mxu1 %v2411_v12  ;;  %2116 = vmatprep.subr.bf16.mxu0 %v2523_v1  ;;  %v2469_v6 = vld [vmem:[%s2616_s16 + $0x94] sm:$0xff]   ;;  %v2472_v10 = vld [vmem:[%s2616_s16 + $0x80] sm:$0xff]  }
  0x1e   : > { %2144 = vmatprep.subr.bf16.mxu1 %v2523_v1  ;;  %v2468_v7 = vld [vmem:[%s2969_s1 + $0x1d0] sm:$0xff]   ;;  %v2471_v9 = vld [vmem:[%s2969_s1 + $0x1d8] sm:$0xff]   ;;  %v2473_v11 = vld [vmem:[%s2969_s1 + $0x1a0] sm:$0xff]  }
  0x1f   : > { %v2475_v12 = vld [vmem:[%s2616_s16 + $0x9c] sm:$0xff]  }
  0x20   : > { %2117 = vmatpush3.bf16.msra.mxu0 %v2412_v13  ;;  %v2474_v13 = vld [vmem:[%s2969_s1 + $0x1e0] sm:$0xff]  }
  0x21   : > { %2145 = vmatpush3.bf16.msra.mxu1 %v2413_v14  ;;  %2118 = vmatprep.subr.bf16.mxu0 %v2523_v1  ;;  %v2476_v14 = vld [vmem:[%s2969_s1 + $0x1a8] sm:$0xff]  }
  0x22   : > { %2146 = vmatprep.subr.bf16.mxu1 %v2523_v1 }
  0x24   : > { %2119 = vmatpush3.bf16.msra.mxu0 %v2414_v15  ;;  %v2477_v15 = vld [vmem:[%s2969_s1 + $0x1e8] sm:$0xff]  }
  0x25   : > { %2147 = vmatpush3.bf16.msra.mxu1 %v2415_v16  ;;  %2160 = vmatprep.subr.bf16.mxu0 %v2523_v1  ;;  %v2478_v16 = vld [vmem:[%s2969_s1 + $0x1b0] sm:$0xff]  }
  0x26   : > { %2188 = vmatprep.subr.bf16.mxu1 %v2523_v1 }
  0x27   : > { %2121 = vmatmul.mubr.bf16.vlgmr.msra.gmra.mrb[0].mxu0 %v2416_v17  ;;  %v2479_v17 = vld [vmem:[%s2969_s1 + $0x1f0] sm:$0xff]  }
  0x28   : > { %2149 = vmatmul.mubr.bf16.vlgmr.msra.gmra.mrb[0].mxu1 %v2417_v18  ;;  %2161 = vmatpush3.bf16.msra.mxu0 %v2418_v19  ;;  %v2480_v18 = vld [vmem:[%s2969_s1 + $0x1b8] sm:$0xff]  }
  0x29   : > { %2189 = vmatpush3.bf16.msra.mxu1 %v2419_v20  ;;  %2162 = vmatprep.subr.bf16.mxu0 %v2523_v1  ;;  %v2481_v19 = vld [vmem:[%s2969_s1 + $0x1f8] sm:$0xff]   ;;  %v2482_v20 = vld [vmem:[%s2616_s16 + $0x4] sm:$0xff]  }
  0x2a   : > { %2190 = vmatprep.subr.bf16.mxu1 %v2523_v1  ;;  %2152 = vmatprep.mubr.msk.bf16.mxu1 %vm2524_vm0, %v2523_v1 }
  0x2b   : > { %2124 = vmatprep.mubr.msk.bf16.mxu0 %vm2524_vm0, %v2523_v1 }
  0x2c   : > { %2163 = vmatpush3.bf16.msra.mxu0 %v2420_v21  ;;  %v2483_v21 = vld [vmem:[%s2616_s16 + $0x20] sm:$0xff]  }
  0x2d   : > { %2191 = vmatpush3.bf16.msra.mxu1 %v2421_v22  ;;  %2164 = vmatprep.subr.bf16.mxu0 %v2523_v1  ;;  %v2484_v22 = vld [vmem:[%s2969_s1 + $0x200] sm:$0xff]  }
  0x2e   : > { %2192 = vmatprep.subr.bf16.mxu1 %v2523_v1 }
  0x2f   : > { %2125 = vmatmul.mubr.bf16.gmra.mrb[4].mxu0 %v2427_v24  ;;  %v2486_v24 = vld [vmem:[%s2616_s16 + $0xc] sm:$0xff]  }
  0x30   : > { %2165 = vmatpush3.bf16.msra.mxu0 %v2422_v23  ;;  %2153 = vmatmul.mubr.bf16.gmra.mrb[4].mxu1 %v2426_v25  ;;  %v2485_v23 = vld [vmem:[%s2969_s1 + $0x208] sm:$0xff]   ;;  %v2487_v25 = vld [vmem:[%s2969_s1 + $0x210] sm:$0xff]  }
  0x31   : > { %2193 = vmatpush3.bf16.msra.mxu1 %v2423_v26  ;;  %2166 = vmatprep.subr.bf16.mxu0 %v2523_v1  ;;  %v2488_v26 = vld [vmem:[%s2616_s16 + $0x28] sm:$0xff]  }
  0x32   : > { %2194 = vmatprep.subr.bf16.mxu1 %v2523_v1  ;;  %2156 = vmatprep.mubr.msk.bf16.mxu1 %vm2524_vm0, %v2523_v1 }
  0x33   : > { %2128 = vmatprep.mubr.msk.bf16.mxu0 %vm2524_vm0, %v2523_v1 }
  0x34   : > { %2167 = vmatpush3.bf16.msra.mxu0 %v2424_v27  ;;  %v2489_v27 = vld [vmem:[%s2969_s1 + $0x218] sm:$0xff]  }
  0x35   : > { %2195 = vmatpush3.bf16.msra.mxu1 %v2425_v28  ;;  %2168 = vmatprep.subr.bf16.mxu0 %v2523_v1  ;;  %v2490_v28 = vld [vmem:[%s2616_s16 + $0x14] sm:$0xff]  }
  0x36   : > { %2196 = vmatprep.subr.bf16.mxu1 %v2523_v1 }
  0x37   : > { %2129 = vmatmul.mubr.bf16.gmra.mrb[8].mxu0 %v2433_v30  ;;  %v2492_v30 = vld [vmem:[%s2616_s16 + $0x30] sm:$0xff]  }
  0x38   : > { %2169 = vmatpush3.bf16.msra.mxu0 %v2428_v29  ;;  %2157 = vmatmul.mubr.bf16.gmra.mrb[8].mxu1 %v2432_v31  ;;  %v2491_v29 = vld [vmem:[%s2969_s1 + $0x220] sm:$0xff]   ;;  %v2493_v31 = vld [vmem:[%s2969_s1 + $0x228] sm:$0xff]  }
  0x39   : > { %2197 = vmatpush3.bf16.msra.mxu1 %v2429_v32  ;;  %2170 = vmatprep.subr.bf16.mxu0 %v2523_v1  ;;  %v2494_v32 = vld [vmem:[%s2969_s1 + $0x230] sm:$0xff]  }
  0x3a   : > { %2198 = vmatprep.subr.bf16.mxu1 %v2523_v1  ;;  %2176 = vmatprep.mubr.msk.bf16.mxu0 %vm2524_vm0, %v2523_v1 }
  0x3b   : > { %2204 = vmatprep.mubr.msk.bf16.mxu1 %vm2524_vm0, %v2523_v1 }
  0x3c   : > { %2171 = vmatpush3.bf16.msra.mxu0 %v2430_v33  ;;  %v2495_v33 = vld [vmem:[%s2969_s1 + $0x238] sm:$0xff]  }
  0x3d   : > { %2199 = vmatpush3.bf16.msra.mxu1 %v2431_v34  ;;  %2172 = vmatprep.subr.bf16.mxu0 %v2523_v1  ;;  %v2496_v34 = vld [vmem:[%s2616_s16 + $0x3c] sm:$0xff]  }
  0x3e   : > { %2200 = vmatprep.subr.bf16.mxu1 %v2523_v1 }
  0x40   : > { %2173 = vmatpush3.bf16.msra.mxu0 %v2434_v35  ;;  %v2497_v35 = vld [vmem:[%s2616_s16 + $0x44] sm:$0xff]  }
  0x41   : > { %2201 = vmatpush3.bf16.msra.mxu1 %v2435_v36  ;;  %2174 = vmatprep.subr.bf16.mxu0 %v2523_v1  ;;  %v2498_v36 = vld [vmem:[%s2616_s16 + $0x4c] sm:$0xff]  }
  0x42   : > { %2202 = vmatprep.subr.bf16.mxu1 %v2523_v1 }
  0x44   : > { %2175 = vmatpush3.bf16.msra.mxu0 %v2436_v37 }
  0x45   : > { %2203 = vmatpush3.bf16.msra.mxu1 %v2437_v38  ;;  %2216 = vmatprep.subr.bf16.mxu0 %v2523_v1 }
  0x46   : > { %2244 = vmatprep.subr.bf16.mxu1 %v2523_v1 }
  0x47   : > { %2177 = vmatmul.mubr.bf16.vlgmr.msra.gmra.mrb[12].mxu0 %v2438_v39 }
  0x48   : > { %2205 = vmatmul.mubr.bf16.vlgmr.msra.gmra.mrb[12].mxu1 %v2439_v40  ;;  %2217 = vmatpush3.bf16.msra.mxu0 %v2440_v41 }
  0x49   : > { %2245 = vmatpush3.bf16.msra.mxu1 %v2441_v42  ;;  %2218 = vmatprep.subr.bf16.mxu0 %v2523_v1 }
  0x4a   : > { %2246 = vmatprep.subr.bf16.mxu1 %v2523_v1  ;;  %2180 = vmatprep.mubr.msk.bf16.mxu0 %vm2524_vm0, %v2523_v1 }
  0x4b   : > { %2208 = vmatprep.mubr.msk.bf16.mxu1 %vm2524_vm0, %v2523_v1 }
  0x4c   : > { %2219 = vmatpush3.bf16.msra.mxu0 %v2442_v43 }
  0x4d   : > { %2247 = vmatpush3.bf16.msra.mxu1 %v2443_v44  ;;  %2220 = vmatprep.subr.bf16.mxu0 %v2523_v1 }
  0x4e   : > { %2248 = vmatprep.subr.bf16.mxu1 %v2523_v1 }
  0x4f   : > { %2181 = vmatmul.mubr.bf16.gmra.mrb[16].mxu0 %v2444_v45 }
  0x50   : > { %2221 = vmatpush3.bf16.msra.mxu0 %v2445_v46  ;;  %2209 = vmatmul.mubr.bf16.gmra.mrb[16].mxu1 %v2447_v47 }
  0x51   : > { %2249 = vmatpush3.bf16.msra.mxu1 %v2446_v48  ;;  %2222 = vmatprep.subr.bf16.mxu0 %v2523_v1 }
  0x52   : > { %2250 = vmatprep.subr.bf16.mxu1 %v2523_v1  ;;  %2184 = vmatprep.mubr.msk.bf16.mxu0 %vm2524_vm0, %v2523_v1 }
  0x53   : > { %2212 = vmatprep.mubr.msk.bf16.mxu1 %vm2524_vm0, %v2523_v1 }
  0x54   : > { %2223 = vmatpush3.bf16.msra.mxu0 %v2448_v49 }
  0x55   : > { %2251 = vmatpush3.bf16.msra.mxu1 %v2449_v50  ;;  %2224 = vmatprep.subr.bf16.mxu0 %v2523_v1 }
  0x56   : > { %2252 = vmatprep.subr.bf16.mxu1 %v2523_v1 }
  0x57   : > { %2185 = vmatmul.mubr.bf16.gmra.mrb[20].mxu0 %v2450_v51 }
  0x58   : > { %2225 = vmatpush3.bf16.msra.mxu0 %v2451_v52  ;;  %2213 = vmatmul.mubr.bf16.gmra.mrb[20].mxu1 %v2453_v53 }
  0x59   : > { %2253 = vmatpush3.bf16.msra.mxu1 %v2452_v54  ;;  %2226 = vmatprep.subr.bf16.mxu0 %v2523_v1 }
  0x5a   : > { %2254 = vmatprep.subr.bf16.mxu1 %v2523_v1  ;;  %2232 = vmatprep.mubr.msk.bf16.mxu0 %vm2524_vm0, %v2523_v1 }
  0x5b   : > { %2260 = vmatprep.mubr.msk.bf16.mxu1 %vm2524_vm0, %v2523_v1 }
  0x5c   : > { %2227 = vmatpush3.bf16.msra.mxu0 %v2454_v55 }
  0x5d   : > { %2255 = vmatpush3.bf16.msra.mxu1 %v2455_v56  ;;  %2228 = vmatprep.subr.bf16.mxu0 %v2523_v1 }
  0x5e   : > { %2256 = vmatprep.subr.bf16.mxu1 %v2523_v1 }
  0x60   : > { %2229 = vmatpush3.bf16.msra.mxu0 %v2456_v57 }
  0x61   : > { %2257 = vmatpush3.bf16.msra.mxu1 %v2457_v58  ;;  %2230 = vmatprep.subr.bf16.mxu0 %v2523_v1 }
  0x62   : > { %2258 = vmatprep.subr.bf16.mxu1 %v2523_v1 }
  0x64   : > { %2231 = vmatpush3.bf16.msra.mxu0 %v2458_v59 }
  0x65   : > { %2259 = vmatpush3.bf16.msra.mxu1 %v2459_v60  ;;  %2272 = vmatprep.subr.bf16.mxu0 %v2523_v1 }
  0x66   : > { %2300 = vmatprep.subr.bf16.mxu1 %v2523_v1 }
  0x67   : > { %2233 = vmatmul.mubr.bf16.vlgmr.msra.gmra.mrb[24].mxu0 %v2460_v61 }
  0x68   : > { %2261 = vmatmul.mubr.bf16.vlgmr.msra.gmra.mrb[24].mxu1 %v2461_v62  ;;  %2273 = vmatpush3.bf16.msra.mxu0 %v2462_v63 }
  0x69   : > { %2301 = vmatpush3.bf16.msra.mxu1 %v2463_v0  ;;  %2274 = vmatprep.subr.bf16.mxu0 %v2523_v1 }
  0x6a   : > { %2302 = vmatprep.subr.bf16.mxu1 %v2523_v1  ;;  %2236 = vmatprep.mubr.msk.bf16.mxu0 %vm2524_vm0, %v2523_v1 }
  0x6b   : > { %2264 = vmatprep.mubr.msk.bf16.mxu1 %vm2524_vm0, %v2523_v1 }
  0x6c   : > { %2275 = vmatpush3.bf16.msra.mxu0 %v2464_v2 }
  0x6d   : > { %2303 = vmatpush3.bf16.msra.mxu1 %v2465_v3  ;;  %2276 = vmatprep.subr.bf16.mxu0 %v2523_v1 }
  0x6e   : > { %2304 = vmatprep.subr.bf16.mxu1 %v2523_v1 }
  0x6f   : > { %2237 = vmatmul.mubr.bf16.gmra.mrb[28].mxu0 %v2466_v4 }
  0x70   : > { %2277 = vmatpush3.bf16.msra.mxu0 %v2467_v5  ;;  %2265 = vmatmul.mubr.bf16.gmra.mrb[28].mxu1 %v2469_v6 }
  0x71   : > { %2305 = vmatpush3.bf16.msra.mxu1 %v2468_v7  ;;  %2278 = vmatprep.subr.bf16.mxu0 %v2523_v1 }
  0x72   : > { %2306 = vmatprep.subr.bf16.mxu1 %v2523_v1  ;;  %2240 = vmatprep.mubr.msk.bf16.mxu0 %vm2524_vm0, %v2523_v1 }
  0x73   : > { %2268 = vmatprep.mubr.msk.bf16.mxu1 %vm2524_vm0, %v2523_v1 }
  0x74   : > { %2279 = vmatpush3.bf16.msra.mxu0 %v2470_v8 }
  0x75   : > { %2307 = vmatpush3.bf16.msra.mxu1 %v2471_v9  ;;  %2280 = vmatprep.subr.bf16.mxu0 %v2523_v1 }
  0x76   : > { %2308 = vmatprep.subr.bf16.mxu1 %v2523_v1 }
  0x77   : > { %2241 = vmatmul.mubr.bf16.gmra.mrb[32].mxu0 %v2472_v10 }
  0x78   : > { %2281 = vmatpush3.bf16.msra.mxu0 %v2473_v11  ;;  %2269 = vmatmul.mubr.bf16.gmra.mrb[32].mxu1 %v2475_v12 }
  0x79   : > { %2309 = vmatpush3.bf16.msra.mxu1 %v2474_v13  ;;  %2282 = vmatprep.subr.bf16.mxu0 %v2523_v1 }
  0x7a   : > { %2310 = vmatprep.subr.bf16.mxu1 %v2523_v1  ;;  %2288 = vmatprep.mubr.msk.bf16.mxu0 %vm2524_vm0, %v2523_v1 }
  0x7b   : > { %2316 = vmatprep.mubr.msk.bf16.mxu1 %vm2524_vm0, %v2523_v1 }
  0x7c   : > { %2283 = vmatpush3.bf16.msra.mxu0 %v2476_v14 }
  0x7d   : > { %2311 = vmatpush3.bf16.msra.mxu1 %v2477_v15  ;;  %2284 = vmatprep.subr.bf16.mxu0 %v2523_v1 }
  0x7e   : > { %2312 = vmatprep.subr.bf16.mxu1 %v2523_v1 }
  0x80   : > { %2285 = vmatpush3.bf16.msra.mxu0 %v2478_v16 }
  0x81   : > { %2313 = vmatpush3.bf16.msra.mxu1 %v2479_v17  ;;  %2286 = vmatprep.subr.bf16.mxu0 %v2523_v1 }
  0x82   : > { %2314 = vmatprep.subr.bf16.mxu1 %v2523_v1 }
  0x84   : > { %2287 = vmatpush3.bf16.msra.mxu0 %v2480_v18 }
  0x85   : > { %2315 = vmatpush3.bf16.msra.mxu1 %v2481_v19  ;;  %2328 = vmatprep.subr.bf16.mxu0 %v2523_v1 }
  0x86   : > { %2356 = vmatprep.subr.bf16.mxu1 %v2523_v1 }
  0x87   : > { %2289 = vmatmul.mubr.bf16.vlgmr.msra.gmra.mrb[36].mxu0 %v2482_v20 }
  0x88   : > { %2317 = vmatmul.mubr.bf16.vlgmr.msra.gmra.mrb[36].mxu1 %v2483_v21  ;;  %2329 = vmatpush3.bf16.msra.mxu0 %v2484_v22 }
  0x89   : > { %2364 = vmatpush3.bf16.msra.mxu1 %v2484_v22  ;;  %2330 = vmatprep.subr.bf16.mxu0 %v2523_v1 }
  0x8a   : > { %2357 = vmatprep.subr.bf16.mxu1 %v2523_v1  ;;  %2292 = vmatprep.mubr.msk.bf16.mxu0 %vm2524_vm0, %v2523_v1 }
  0x8b   : > { %2320 = vmatprep.mubr.msk.bf16.mxu1 %vm2524_vm0, %v2523_v1 }
  0x8c   : > { %2331 = vmatpush3.bf16.msra.mxu0 %v2485_v23 }
  0x8d   : > { %2365 = vmatpush3.bf16.msra.mxu1 %v2485_v23  ;;  %2332 = vmatprep.subr.bf16.mxu0 %v2523_v1 }
  0x8e   : > { %2358 = vmatprep.subr.bf16.mxu1 %v2523_v1 }
  0x8f   : > { %2293 = vmatmul.mubr.bf16.gmra.mrb[40].mxu0 %v2486_v24 }
  0x90   : > { %2333 = vmatpush3.bf16.msra.mxu0 %v2487_v25  ;;  %2321 = vmatmul.mubr.bf16.gmra.mrb[40].mxu1 %v2488_v26 }
  0x91   : > { %2366 = vmatpush3.bf16.msra.mxu1 %v2487_v25  ;;  %2334 = vmatprep.subr.bf16.mxu0 %v2523_v1 }
  0x92   : > { %2359 = vmatprep.subr.bf16.mxu1 %v2523_v1  ;;  %2296 = vmatprep.mubr.msk.bf16.mxu0 %vm2524_vm0, %v2523_v1 }
  0x93   : > { %2324 = vmatprep.mubr.msk.bf16.mxu1 %vm2524_vm0, %v2523_v1 }
  0x94   : > { %2335 = vmatpush3.bf16.msra.mxu0 %v2489_v27 }
  0x95   : > { %2367 = vmatpush3.bf16.msra.mxu1 %v2489_v27  ;;  %2336 = vmatprep.subr.bf16.mxu0 %v2523_v1 }
  0x96   : > { %2360 = vmatprep.subr.bf16.mxu1 %v2523_v1 }
  0x97   : > { %2297 = vmatmul.mubr.bf16.gmra.mrb[44].mxu0 %v2490_v28 }
  0x98   : > { %2337 = vmatpush3.bf16.msra.mxu0 %v2491_v29  ;;  %2325 = vmatmul.mubr.bf16.gmra.mrb[44].mxu1 %v2492_v30 }
  0x99   : > { %2368 = vmatpush3.bf16.msra.mxu1 %v2491_v29  ;;  %2338 = vmatprep.subr.bf16.mxu0 %v2523_v1 }
  0x9a   : > { %2361 = vmatprep.subr.bf16.mxu1 %v2523_v1  ;;  %2344 = vmatprep.mubr.msk.bf16.mxu0 %vm2524_vm0, %v2523_v1 }
  0x9b   : > { %2348 = vmatprep.mubr.msk.bf16.mxu1 %vm2524_vm0, %v2523_v1 }
  0x9c   : > { %2339 = vmatpush3.bf16.msra.mxu0 %v2493_v31 }
  0x9d   : > { %2369 = vmatpush3.bf16.msra.mxu1 %v2493_v31  ;;  %2340 = vmatprep.subr.bf16.mxu0 %v2523_v1 }
  0x9e   : > { %2362 = vmatprep.subr.bf16.mxu1 %v2523_v1 }
  0xa0   : > { %2341 = vmatpush3.bf16.msra.mxu0 %v2494_v32 }
  0xa1   : > { %2370 = vmatpush3.bf16.msra.mxu1 %v2494_v32  ;;  %2342 = vmatprep.subr.bf16.mxu0 %v2523_v1 }
  0xa2   : > { %2363 = vmatprep.subr.bf16.mxu1 %v2523_v1 }
  0xa4   : > { %2343 = vmatpush3.bf16.msra.mxu0 %v2495_v33 }
  0xa5   : > { %2371 = vmatpush3.bf16.msra.mxu1 %v2495_v33 }
  0xa7   : > { %2345 = vmatmul.mubr.bf16.vlgmr.msra.gmra.mrb[48].mxu0 %v2496_v34 }
  0xa8   : > { %2349 = vmatmul.mubr.bf16.vlgmr.msra.gmra.mrb[48].mxu1 %v2497_v35 }
  0xa9   : > { %2352 = vmatprep.mubr.msk.bf16.mxu1 %vm2524_vm0, %v2523_v1 }
  0xb0   : > { %2353 = vmatmul.mubr.bf16.gmra.mrb[52].mxu1 %v2498_v36 }
  0xfa   : > { %v348_v37 = vpop.f32.mrb[0].mxu0 }
  0xfb   : > { %v471_v38 = vpop.f32.mrb[0].mxu1  ;;  %v2122_v39 = vpop.f32.mrb[1].mxu0 }
  0xfc   : > { %v472_v40 = vadd.f32 %v471_v38, %v348_v37  ;;  %v2150_v41 = vpop.f32.mrb[1].mxu1  ;;  %v351_v42 = vpop.f32.mrb[2].mxu0 }
  0xfd   : > { %v474_v43 = vpop.f32.mrb[2].mxu1  ;;  %v2123_v44 = vpop.f32.mrb[3].mxu0 }
  0xfe   : > { %v475_v45 = vadd.f32 %v474_v43, %v351_v42  ;;  %v2151_v46 = vpop.f32.mrb[3].mxu1 }
 0x102   : > { %v356_v47 = vpop.f32.mrb[4].mxu0 }
 0x103   : > { %v479_v48 = vpop.f32.mrb[4].mxu1  ;;  %v2126_v49 = vpop.f32.mrb[5].mxu0 }
 0x104   : > { %v480_v50 = vadd.f32 %v479_v48, %v356_v47  ;;  %v2154_v51 = vpop.f32.mrb[5].mxu1  ;;  %v359_v52 = vpop.f32.mrb[6].mxu0 }
 0x105   : > { %v482_v53 = vpop.f32.mrb[6].mxu1  ;;  %v2127_v1 = vpop.f32.mrb[7].mxu0 }
 0x106   : > { %v483_v54 = vadd.f32 %v482_v53, %v359_v52  ;;  %v2155_v55 = vpop.f32.mrb[7].mxu1 }
 0x10a   : > { %v364_v56 = vpop.f32.mrb[8].mxu0 }
 0x10b   : > { %v487_v57 = vpop.f32.mrb[8].mxu1  ;;  %v2130_v58 = vpop.f32.mrb[9].mxu0 }
 0x10c   : > { %v488_v59 = vadd.f32 %v487_v57, %v364_v56  ;;  %v2158_v60 = vpop.f32.mrb[9].mxu1  ;;  %v367_v61 = vpop.f32.mrb[10].mxu0 }
 0x10d   : > { %v490_v62 = vpop.f32.mrb[10].mxu1  ;;  %v2131_v63 = vpop.f32.mrb[11].mxu0 }
 0x10e   : > { %v491_v0 = vadd.f32 %v490_v62, %v367_v61  ;;  %v2159_v2 = vpop.f32.mrb[11].mxu1 }
 0x11a   : > { %v620_v3 = vpop.f32.mrb[12].mxu0 }
 0x11b   : > { %v643_v4 = vadd.f32 %v620_v3, %v472_v40  ;;  %v775_v5 = vpop.f32.mrb[12].mxu1  ;;  %v2178_v6 = vpop.f32.mrb[13].mxu0 }
 0x11c   : > { %v2206_v7 = vpop.f32.mrb[13].mxu1  ;;  %v623_v8 = vpop.f32.mrb[14].mxu0 }
 0x11d   : > { %v798_v9 = vadd.f32 %v775_v5, %v643_v4  ;;  %v644_v10 = vadd.f32 %v623_v8, %v475_v45  ;;  %v778_v11 = vpop.f32.mrb[14].mxu1  ;;  %v2179_v12 = vpop.f32.mrb[15].mxu0 }
 0x11e   : > { %v2207_v13 = vpop.f32.mrb[15].mxu1 }
 0x11f   : > { %v799_v14 = vadd.f32 %v778_v11, %v644_v10 }
 0x122   : > { %v628_v15 = vpop.f32.mrb[16].mxu0 }
 0x123   : > { %v645_v16 = vadd.f32 %v628_v15, %v480_v50  ;;  %v2182_v17 = vpop.f32.mrb[17].mxu0  ;;  %v783_v18 = vpop.f32.mrb[16].mxu1 }
 0x124   : > { %v631_v19 = vpop.f32.mrb[18].mxu0  ;;  %v2210_v20 = vpop.f32.mrb[17].mxu1 }
 0x125   : > { %v646_v21 = vadd.f32 %v631_v19, %v483_v54  ;;  %v800_v22 = vadd.f32 %v783_v18, %v645_v16  ;;  %v786_v23 = vpop.f32.mrb[18].mxu1  ;;  %v2183_v24 = vpop.f32.mrb[19].mxu0 }
 0x126   : > { %v2211_v25 = vpop.f32.mrb[19].mxu1 }
 0x127   : > { %v801_v26 = vadd.f32 %v786_v23, %v646_v21 }
 0x12a   : > { %v636_v27 = vpop.f32.mrb[20].mxu0 }
 0x12b   : > { %v647_v28 = vadd.f32 %v636_v27, %v488_v59  ;;  %v2186_v29 = vpop.f32.mrb[21].mxu0  ;;  %v791_v30 = vpop.f32.mrb[20].mxu1 }
 0x12c   : > { %v639_v31 = vpop.f32.mrb[22].mxu0  ;;  %v2214_v32 = vpop.f32.mrb[21].mxu1 }
 0x12d   : > { %v648_v33 = vadd.f32 %v639_v31, %v491_v0  ;;  %v802_v34 = vadd.f32 %v791_v30, %v647_v28  ;;  %v794_v35 = vpop.f32.mrb[22].mxu1  ;;  %v2187_v36 = vpop.f32.mrb[23].mxu0 }
 0x12e   : > { %v2215_v37 = vpop.f32.mrb[23].mxu1 }
 0x12f   : > { %v803_v38 = vadd.f32 %v794_v35, %v648_v33 }
 0x13a   : > { %v930_v39 = vpop.f32.mrb[24].mxu0 }
 0x13b   : > { %v953_v40 = vadd.f32 %v930_v39, %v798_v9  ;;  %v1085_v41 = vpop.f32.mrb[24].mxu1  ;;  %v2234_v42 = vpop.f32.mrb[25].mxu0 }
 0x13c   : > { %v2262_v43 = vpop.f32.mrb[25].mxu1  ;;  %v933_v44 = vpop.f32.mrb[26].mxu0 }
 0x13d   : > { %v1108_v45 = vadd.f32 %v1085_v41, %v953_v40  ;;  %v954_v46 = vadd.f32 %v933_v44, %v799_v14  ;;  %v1088_v47 = vpop.f32.mrb[26].mxu1  ;;  %v2235_v48 = vpop.f32.mrb[27].mxu0 }
 0x13e   : > { %v2263_v49 = vpop.f32.mrb[27].mxu1  ;;  %v2002_v48 = vld [vmem:[%s2970_s2] ss:$0 sm:$0xff] }
 0x13f   : > { %v1109_v50 = vadd.f32 %v1088_v47, %v954_v46 }
 0x142   : > { %v938_v51 = vpop.f32.mrb[28].mxu0 }
 0x143   : > { %v955_v52 = vadd.f32 %v938_v51, %v800_v22  ;;  %v2238_v53 = vpop.f32.mrb[29].mxu0  ;;  %v1093_v1 = vpop.f32.mrb[28].mxu1 }
 0x144   : > { %v941_v54 = vpop.f32.mrb[30].mxu0  ;;  %v2266_v55 = vpop.f32.mrb[29].mxu1 }
 0x145   : > { %v956_v56 = vadd.f32 %v941_v54, %v801_v26  ;;  %v1110_v57 = vadd.f32 %v1093_v1, %v955_v52  ;;  %v1096_v58 = vpop.f32.mrb[30].mxu1  ;;  %v2239_v59 = vpop.f32.mrb[31].mxu0 }
 0x146   : > { %v2267_v60 = vpop.f32.mrb[31].mxu1 }
 0x147   : > { %v1111_v61 = vadd.f32 %v1096_v58, %v956_v56 }
 0x14a   : > { %v946_v62 = vpop.f32.mrb[32].mxu0 }
 0x14b   : > { %v957_v63 = vadd.f32 %v946_v62, %v802_v34  ;;  %v2242_v0 = vpop.f32.mrb[33].mxu0  ;;  %v1101_v2 = vpop.f32.mrb[32].mxu1 }
 0x14c   : > { %v949_v3 = vpop.f32.mrb[34].mxu0  ;;  %v2270_v4 = vpop.f32.mrb[33].mxu1 }
 0x14d   : > { %v958_v5 = vadd.f32 %v949_v3, %v803_v38  ;;  %v1112_v6 = vadd.f32 %v1101_v2, %v957_v63  ;;  %v1104_v7 = vpop.f32.mrb[34].mxu1  ;;  %v2243_v8 = vpop.f32.mrb[35].mxu0 }
 0x14e   : > { %v2271_v9 = vpop.f32.mrb[35].mxu1 }
 0x14f   : > { %v1113_v10 = vadd.f32 %v1104_v7, %v958_v5 }
 0x15a   : > { %v1242_v11 = vpop.f32.mrb[36].mxu0 }
 0x15b   : > { %v1265_v12 = vadd.f32 %v1242_v11, %v1108_v45  ;;  %v1397_v13 = vpop.f32.mrb[36].mxu1  ;;  %v2290_v14 = vpop.f32.mrb[37].mxu0 }
 0x15c   : > { %v2318_v15 = vpop.f32.mrb[37].mxu1  ;;  %v1245_v16 = vpop.f32.mrb[38].mxu0 }
 0x15d   : > { %v1420_v17 = vadd.f32 %v1397_v13, %v1265_v12  ;;  %v1266_v18 = vadd.f32 %v1245_v16, %v1109_v50  ;;  %v1400_v19 = vpop.f32.mrb[38].mxu1  ;;  %v2291_v20 = vpop.f32.mrb[39].mxu0 }
 0x15e   : > { %v2319_v21 = vpop.f32.mrb[39].mxu1 }
 0x15f   : > { %v1421_v22 = vadd.f32 %v1400_v19, %v1266_v18 }
 0x162   : > { %v1250_v23 = vpop.f32.mrb[40].mxu0 }
 0x163   : > { %v1267_v24 = vadd.f32 %v1250_v23, %v1110_v57  ;;  %v2294_v25 = vpop.f32.mrb[41].mxu0  ;;  %v1405_v26 = vpop.f32.mrb[40].mxu1 }
 0x164   : > { %v1253_v27 = vpop.f32.mrb[42].mxu0  ;;  %v2322_v28 = vpop.f32.mrb[41].mxu1 }
 0x165   : > { %v1268_v29 = vadd.f32 %v1253_v27, %v1111_v61  ;;  %v1422_v30 = vadd.f32 %v1405_v26, %v1267_v24  ;;  %v1408_v31 = vpop.f32.mrb[42].mxu1  ;;  %v2295_v32 = vpop.f32.mrb[43].mxu0 }
 0x166   : > { %v2323_v33 = vpop.f32.mrb[43].mxu1 }
 0x167   : > { %v1423_v34 = vadd.f32 %v1408_v31, %v1268_v29 }
 0x16a   : > { %v1258_v35 = vpop.f32.mrb[44].mxu0 }
 0x16b   : > { %v1269_v36 = vadd.f32 %v1258_v35, %v1112_v6  ;;  %v2298_v37 = vpop.f32.mrb[45].mxu0  ;;  %v1413_v38 = vpop.f32.mrb[44].mxu1 }
 0x16c   : > { %v1261_v39 = vpop.f32.mrb[46].mxu0  ;;  %v2326_v40 = vpop.f32.mrb[45].mxu1 }
 0x16d   : > { %v1270_v41 = vadd.f32 %v1261_v39, %v1113_v10  ;;  %v1424_v42 = vadd.f32 %v1413_v38, %v1269_v36  ;;  %v1416_v43 = vpop.f32.mrb[46].mxu1  ;;  %v2299_v44 = vpop.f32.mrb[47].mxu0 }
 0x16e   : > { %v2327_v45 = vpop.f32.mrb[47].mxu1 }
 0x16f   : > { %v1425_v46 = vadd.f32 %v1416_v43, %v1270_v41 }
 0x17a   : > { %v1552_v47 = vpop.f32.mrb[48].mxu0 }
 0x17b   : > { %v1575_v49 = vadd.f32 %v1552_v47, %v1420_v17  ;;  %v1560_v50 = vpop.f32.mrb[48].mxu1  ;;  %v2346_v51 = vpop.f32.mrb[49].mxu0 }
 0x17c   : > { %v1577_v52 = vadd.f32 %v1560_v50, %v1422_v30  ;;  %v2350_v53 = vpop.f32.mrb[49].mxu1  ;;  %v1555_v1 = vpop.f32.mrb[50].mxu0 }
 0x17d   : > { %v1588_v54 = vadd.f32 %v2002_v48, %v1575_v49  ;;  %v1576_v55 = vadd.f32 %v1555_v1, %v1421_v22  ;;  %v1563_v56 = vpop.f32.mrb[50].mxu1  ;;  %v2347_v57 = vpop.f32.mrb[51].mxu0 }
 0x17e   : > { %v1590_v58 = vadd.f32 %v2002_v48, %v1577_v52  ;;  %v1578_v59 = vadd.f32 %v1563_v56, %v1423_v34  ;;  %v2351_v60 = vpop.f32.mrb[51].mxu1 }
 0x17f   : > { %v1594_v61 = vmax.f32 %v1588_v54, 0.0  ;;  %v1589_v62 = vadd.f32 %v2002_v48, %v1576_v55 }
 0x180   : > { %v1596_v63 = vmax.f32 %v1590_v58, 0.0  ;;  %v1591_v0 = vadd.f32 %v2002_v48, %v1578_v59 }
 0x181   : > { %v1600_v2 = vpack.c.bf16 %v1594_v61, %v1594_v61  ;;  %v1595_v3 = vmax.f32 %v1589_v62, 0.0 }
 0x182   : > { %v1602_v4 = vpack.c.bf16 %v1596_v63, %v1596_v63  ;;  %v1597_v5 = vmax.f32 %v1591_v0, 0.0 }
 0x183   : > { %1606 = vst [vmem:[%s192_s8] sm:$0x7] %v1600_v2  ;;  %v1601_v6 = vpack.c.bf16 %v1595_v3, %v1595_v3  ;;  %v1568_v7 = vpop.f32.mrb[52].mxu1 }
 0x184   : > { %1608 = vst [vmem:[%s192_s8 + $0x8] sm:$0x7] %v1602_v4  ;;  %v1603_v8 = vpack.c.bf16 %v1597_v5, %v1597_v5  ;;  %v1579_v9 = vadd.f32 %v1568_v7, %v1424_v42  ;;  %v2354_v10 = vpop.f32.mrb[53].mxu1 }
 0x185   : > { %1607 = vst [vmem:[%s192_s8 + $0x4] sm:$0x7] %v1601_v6  ;;  %v1571_v11 = vpop.f32.mrb[54].mxu1 }
 0x186   : > { %1609 = vst [vmem:[%s192_s8 + $0xc] sm:$0x7] %v1603_v8  ;;  %v1592_v12 = vadd.f32 %v2002_v48, %v1579_v9  ;;  %v1580_v13 = vadd.f32 %v1571_v11, %v1425_v46  ;;  %v2355_v14 = vpop.f32.mrb[55].mxu1 }
 0x188   : > { %v1598_v15 = vmax.f32 %v1592_v12, 0.0  ;;  %v1593_v16 = vadd.f32 %v2002_v48, %v1580_v13 }
 0x18a   : > { %v1604_v17 = vpack.c.bf16 %v1598_v15, %v1598_v15  ;;  %v1599_v18 = vmax.f32 %v1593_v16, 0.0 }
 0x18c   : > { %1610 = vst [vmem:[%s192_s8 + $0x10] sm:$0x7] %v1604_v17  ;;  %v1605_v19 = vpack.c.bf16 %v1599_v18, %v1599_v18 }
 0x18e   : > { %1611 = vst [vmem:[%s192_s8 + $0x14] sm:$0x7] %v1605_v19 }
 0x18f PF: > { %s13_s14 = sadd.s32 1, %s2521_s14   ;;  %s2972_s12 = smov %s2517_s13 }
 0x190   : > { %p10_p5 = scmp.ge.s32.totalorder %s13_s14, 4   ;;  %s2973_s13 = smov %s2975_s15 }
 0x192   :  { %12 = sbr.rel (!%p10_p5) target bundleno = 2 (0x2), region = 79 }

// kernel: _lambda_.34
= control target key start
LH: loop header
LB: loop body
LE: loop exit
PB: predicated region body
PF: predicated region fallthrough
CT: control target
= control target key end

     0   :  { %v305_v1 = vmov 0   ;;  %v39_v19 = vlaneseq  ;;  %s406_s1 = inlined_call_operand.vmem [shape: bf16[128,256], index: 1, kind: input, shape index: {}]   ;;  %s407_s0 = inlined_call_operand.vmem [shape: bf16[18,128], index: 0, kind: input, shape index: {}]   ;;  %s408_s2 = inlined_call_operand.vmem [shape: f32[1,256], index: 2, kind: input, shape index: {}]   ;;  %s409_s3 = inlined_call_operand.vmem [shape: bf16[18,256], index: 3, kind: input, shape index: {}]   ;;  %s410_s4 = inlined_call_operand.vmem [shape: bf16[18,256], index: 4, kind: output, shape index: {}]  }
   0x1   :  { %v279_v0 = vld [vmem:[%s406_s1 + $0x4] ss:$8 sps:$4 sm:$0xff]   ;;  %171 = vmatprep.mubr.bf16.mxu0 %v305_v1  ;;  %181 = vmatprep.mubr.bf16.mxu1 %v305_v1  ;;  %v281_v2 = vld [vmem:[%s406_s1] ss:$8 sps:$4 sm:$0xff]   ;;  %v282_v3 = vld [vmem:[%s406_s1 + $0x14] ss:$8 sps:$4 sm:$0xff]  }
   0x2   :  { %139 = vmatprep.subr.bf16.mxu0 %v279_v0  ;;  %262 = vmatprep.subr.bf16.mxu1 %v279_v0  ;;  %v284_v4 = vld [vmem:[%s406_s1 + $0x10] ss:$8 sps:$4 sm:$0xff]   ;;  %v285_v5 = vld [vmem:[%s406_s1 + $0x24] ss:$8 sps:$4 sm:$0xff]   ;;  %v287_v6 = vld [vmem:[%s406_s1 + $0x20] ss:$8 sps:$4 sm:$0xff]  }
   0x3   :  { %140 = vmatpush1.bf16.msra.mxu0 %v281_v2  ;;  %270 = vmatpush1.bf16.msra.mxu1 %v281_v2  ;;  %v288_v7 = vld [vmem:[%s406_s1 + $0x34] ss:$8 sps:$4 sm:$0xff]   ;;  %v290_v8 = vld [vmem:[%s406_s1 + $0x30] ss:$8 sps:$4 sm:$0xff]   ;;  %v291_v9 = vld [vmem:[%s406_s1 + $0x44] ss:$8 sps:$4 sm:$0xff]  }
   0x4   :  { %141 = vmatprep.subr.bf16.mxu0 %v282_v3  ;;  %263 = vmatprep.subr.bf16.mxu1 %v282_v3  ;;  %v293_v10 = vld [vmem:[%s406_s1 + $0x40] ss:$8 sps:$4 sm:$0xff]   ;;  %v294_v11 = vld [vmem:[%s406_s1 + $0x54] ss:$8 sps:$4 sm:$0xff]   ;;  %v296_v12 = vld [vmem:[%s406_s1 + $0x50] ss:$8 sps:$4 sm:$0xff]  }
   0x5   :  { %v297_v13 = vld [vmem:[%s406_s1 + $0x64] ss:$8 sps:$4 sm:$0xff]   ;;  %v299_v14 = vld [vmem:[%s406_s1 + $0x60] ss:$8 sps:$4 sm:$0xff]   ;;  %v300_v15 = vld [vmem:[%s406_s1 + $0x74] ss:$8 sps:$4 sm:$0xff]  }
   0x6   :  { %v302_v16 = vld [vmem:[%s406_s1 + $0x70] ss:$8 sps:$4 sm:$0xff]   ;;  %v303_v17 = vld [vmem:[%s407_s0] sm:$0xff]   ;;  %v304_v18 = vld [vmem:[%s407_s0 + $0x8] ss:$0 sps:$4 sm:$0x11]  }
   0x7   :  { %142 = vmatpush1.bf16.msra.mxu0 %v284_v4  ;;  %271 = vmatpush1.bf16.msra.mxu1 %v284_v4  ;;  %v40_v20 = vshrl.u32 %v39_v19, 7  ;;  %v37_v22 = vld [vmem:[%s408_s2] sm:$0x3]  ;;  %v192_v25 = vld [vmem:[%s409_s3 + $0x10] sm:$0x11]  ;;  %v191_v28 = vld [vmem:[%s409_s3 + $0x8] sm:$0xff] }
   0x8   :  { %143 = vmatprep.subr.bf16.mxu0 %v285_v5  ;;  %264 = vmatprep.subr.bf16.mxu1 %v285_v5  ;;  %v190_v24 = vld [vmem:[%s409_s3] sm:$0xff]  ;;  %v197_v30 = vunpack.c.l.bf16 %v192_v25  ;;  %v198_v34 = vunpack.c.h.bf16 %v192_v25  ;;  %v195_v39 = vunpack.c.l.bf16 %v191_v28  ;;  %v196_v44 = vunpack.c.h.bf16 %v191_v28 }
   0x9   :  { %v41_v21 = vsub.s32 0, %v40_v20  ;;  %v45_v23 = vsub.s32 1, %v40_v20  ;;  %v193_v29 = vunpack.c.l.bf16 %v190_v24  ;;  %v194_v33 = vunpack.c.h.bf16 %v190_v24 }
   0xb   :  { %144 = vmatpush1.bf16.msra.mxu0 %v287_v6  ;;  %272 = vmatpush1.bf16.msra.mxu1 %v287_v6  ;;  %v42_v26 = vrot.slane %v37_v22, %v41_v21  ;;  %v46_v27 = vrot.slane %v37_v22, %v45_v23 }
   0xc   :  { %145 = vmatprep.subr.bf16.mxu0 %v288_v7  ;;  %265 = vmatprep.subr.bf16.mxu1 %v288_v7 }
   0xf   :  { %146 = vmatpush1.bf16.msra.mxu0 %v290_v8  ;;  %273 = vmatpush1.bf16.msra.mxu1 %v290_v8 }
  0x10   :  { %147 = vmatprep.subr.bf16.mxu0 %v291_v9  ;;  %266 = vmatprep.subr.bf16.mxu1 %v291_v9 }
  0x13   :  { %148 = vmatpush1.bf16.msra.mxu0 %v293_v10  ;;  %274 = vmatpush1.bf16.msra.mxu1 %v293_v10 }
  0x14   :  { %149 = vmatprep.subr.bf16.mxu0 %v294_v11  ;;  %267 = vmatprep.subr.bf16.mxu1 %v294_v11 }
  0x17   :  { %150 = vmatpush1.bf16.msra.mxu0 %v296_v12  ;;  %275 = vmatpush1.bf16.msra.mxu1 %v296_v12 }
  0x18   :  { %151 = vmatprep.subr.bf16.mxu0 %v297_v13  ;;  %268 = vmatprep.subr.bf16.mxu1 %v297_v13 }
  0x1b   :  { %152 = vmatpush1.bf16.msra.mxu0 %v299_v14  ;;  %276 = vmatpush1.bf16.msra.mxu1 %v299_v14 }
  0x1c   :  { %153 = vmatprep.subr.bf16.mxu0 %v300_v15  ;;  %269 = vmatprep.subr.bf16.mxu1 %v300_v15 }
  0x1f   :  { %154 = vmatpush1.bf16.msra.mxu0 %v302_v16  ;;  %277 = vmatpush1.bf16.msra.mxu1 %v302_v16 }
  0x22   :  { %172 = vmatmul.mubr.bf16.vlgmr.msra.gmra.mrb[0].mxu0 %v303_v17  ;;  %182 = vmatmul.mubr.bf16.vlgmr.msra.gmra.mrb[0].mxu1 %v304_v18 }
  0xf5   :  { %v173_v31 = vpop.f32.mrb[0].mxu0  ;;  %v183_v32 = vpop.f32.mrb[0].mxu1 }
  0xf6   :  { %v174_v35 = vadd.f32 %v173_v31, %v42_v26  ;;  %v184_v36 = vadd.f32 %v183_v32, %v42_v26  ;;  %v175_v37 = vpop.f32.mrb[1].mxu0  ;;  %v185_v38 = vpop.f32.mrb[1].mxu1 }
  0xf7   :  { %v176_v40 = vadd.f32 %v175_v37, %v46_v27  ;;  %v186_v41 = vadd.f32 %v185_v38, %v46_v27  ;;  %v177_v42 = vpop.f32.mrb[2].mxu0  ;;  %v187_v43 = vpop.f32.mrb[2].mxu1 }
  0xf8   :  { %v199_v45 = vadd.f32 %v193_v29, %v174_v35  ;;  %v203_v46 = vadd.f32 %v197_v30, %v184_v36  ;;  %v178_v47 = vadd.f32 %v177_v42, %v42_v26  ;;  %v179_v48 = vpop.f32.mrb[3].mxu0  ;;  %v188_v49 = vpop.f32.mrb[3].mxu1 }
  0xf9   :  { %v200_v50 = vadd.f32 %v194_v33, %v176_v40  ;;  %v204_v51 = vadd.f32 %v198_v34, %v186_v41  ;;  %v180_v52 = vadd.f32 %v179_v48, %v46_v27 }
  0xfa   :  { %v205_v53 = vmax.f32 %v199_v45, 0.0  ;;  %v209_v54 = vmax.f32 %v203_v46, 0.0  ;;  %v201_v55 = vadd.f32 %v195_v39, %v178_v47 }
  0xfb   :  { %v206_v56 = vmax.f32 %v200_v50, 0.0  ;;  %v210_v57 = vmax.f32 %v204_v51, 0.0  ;;  %v202_v58 = vadd.f32 %v196_v44, %v180_v52 }
  0xfc   :  { %v207_v59 = vmax.f32 %v201_v55, 0.0 }
  0xfd   :  { %v259_v60 = vpack.c.bf16 %v206_v56, %v205_v53  ;;  %v261_v61 = vpack.c.bf16 %v210_v57, %v209_v54  ;;  %v208_v62 = vmax.f32 %v202_v58, 0.0 }
  0xff   :  { %231 = vst [vmem:[%s410_s4] sm:$0xff] %v259_v60  ;;  %233 = vst [vmem:[%s410_s4 + $0x10] sm:$0x11] %v261_v61  ;;  %v260_v63 = vpack.c.bf16 %v208_v62, %v207_v59 }
 0x101   :  { %232 = vst [vmem:[%s410_s4 + $0x8] sm:$0xff] %v260_v63 }

// kernel: _lambda_.35
= control target key start
LH: loop header
LB: loop body
LE: loop exit
PB: predicated region body
PF: predicated region fallthrough
CT: control target
= control target key end

     0   :  { %s394_s6 = smov 0   ;;  %s436_s0 = inlined_call_operand.vmem [shape: bf16[2,3,3,256], index: 0, kind: input, shape index: {}]   ;;  %s437_s1 = inlined_call_operand.vmem [shape: f32[2,4,256], index: 1, kind: output, shape index: {}]  }
   0x1 LB: > { %s347_s7 = sadd.s32 4294967295, %s381_s6   ;;  %p351_p0 = scmp.ge.s32.totalorder %s381_s6, 1  ;;  %s381_s6 = sphi %s394_s6, %s11_s6  }
   0x2   : > { %p87_p1 = scmp.lt.s32.totalorder %s381_s6, 3 }
   0x4   : > { %p88_p2 = pnand %p351_p0, %p87_p1 }
   0x5   : > { %p107_p3 = scmp.lt.s32.totalorder (!%p88_p2), %s347_s7, 1  ;;  %v128_v0 = vlaneseq (!%p88_p2)  ;;  %v383_v1 = vmov (!%p88_p2), 1983009808   ;;  %vm170_vm0 = vcmask (!%p88_p2), 1040384   ;;  %vm171_vm1 = vcmask (!%p88_p2), 1042434  }
   0x6   : > { %91 = sbr.rel (%p88_p2) target bundleno = 56 (0x38), region = 24  ;;  %v126_v2 = vunpack.c.l.s4 (!%p88_p2), %v383_v1  ;;  %vm172_vm2 = vmor (!%p88_p2), %vm170_vm0, %vm171_vm1  ;;  %vm173_vm3 = vcmask (!%p88_p2), 1044484   ;;  %vm175_vm5 = vcmask (!%p88_p2), 1046534   ;;  %vm150_vm6 = vcmask (!%p88_p2), 1043456  }
   0x7   : > { %v129_v3 = vshrl.u32 (!%p88_p2), %v128_v0, 7  ;;  %vm174_vm4 = vmor (!%p88_p2), %vm172_vm2, %vm173_vm3  ;;  %vm281_vm8 = vcmask (!%p88_p2), 1041408   ;;  %vm284_vm9 = vcmask (!%p88_p2), 1042432  }
   0x8   : > { %v127_v4 = vunpack.c.0.s8 (!%p88_p2), %v126_v2  ;;  %vm409_vm7 = vmor (!%p88_p2), %vm174_vm4, %vm175_vm5 }
   0xa   : > { %v130_v5 = vsub.s32 (!%p88_p2), %v127_v4, %v129_v3 }
   0xd   : > { %s441_s7 = smov (!%p107_p3, %s347_s7), 1 }
   0xe   : > { %s365_s8 = smul.u32 12, %s441_s7  ;;  %s360_s12 = sshll.u32 %s441_s7, 3 }
   0xf   : > { %s116_s15 = scalar_lea.vmem %s437_s1, %s360_s12 }
  0x10   : > { %s111_s11 = scalar_lea.vmem %s436_s0, %s365_s8 }
  0x11   : > { %v362_v6 = vld [vmem:[%s111_s11] sm:$0xff]   ;;  %v119_v7 = vld [vmem:[%s111_s11 + $0x8] sm:$0xf] }
  0x12   : > { %v363_v8 = vunpack.c.l.bf16 %v362_v6  ;;  %v364_v9 = vunpack.c.h.bf16 %v362_v6  ;;  %v122_v10 = vunpack.c.l.bf16 %v119_v7 }
  0x14   : > { %v131_v11 = vrot.slane %v363_v8, %v130_v5  ;;  %v138_v12 = vrot.slane %v364_v9, %v130_v5  ;;  %v219_v13 = vrot.slane %v122_v10, %v130_v5 }
  0x16   : > { %v139_v14 = vcombine.low %v131_v11, %v138_v12  ;;  %v168_v15 = vcombine.high %v131_v11, %v131_v11  ;;  %v169_v16 = vcombine.high %v138_v12, %v138_v12  ;;  %v355_v17 = vrot.slane %v131_v11, 9 }
  0x17   : > { %v356_v19 = vrot.slane %v138_v12, 9  ;;  %v220_v20 = vcombine.low %v138_v12, %v219_v13  ;;  %v247_v21 = vcombine.high %v219_v13, %v219_v13  ;;  %v357_v25 = vrot.slane %v219_v13, 9 }
  0x18   : > { %v146_v22 = vrot.slane %v139_v14, %v130_v5  ;;  %v179_v23 = vrot.slane %v168_v15, 7  ;;  %v183_v24 = vrot.slane %v169_v16, 7 }
  0x19   : > { %v227_v26 = vrot.slane %v220_v20, %v130_v5  ;;  %v250_v27 = vrot.slane %v247_v21, 7 }
  0x1a   : > { %v147_v28 = vcombine.high %v146_v22, %v146_v22  ;;  %v151_v29 = vsel %vm150_vm6, %v146_v22, 0.0  ;;  %v180_v30 = vsel %vm409_vm7, %v355_v17, %v179_v23  ;;  %v184_v31 = vsel %vm409_vm7, %v356_v19, %v183_v24 }
  0x1b   : > { %v152_v32 = vrot.slane %v151_v29, 4  ;;  %v185_v33 = vcombine.low %v180_v30, %v184_v31  ;;  %v228_v34 = vcombine.high %v227_v26, %v227_v26  ;;  %v231_v35 = vsel %vm150_vm6, %v227_v26, 0.0 }
  0x1c   : > { %v158_v36 = vsel %vm150_vm6, %v147_v28, 0.0  ;;  %v232_v37 = vrot.slane %v231_v35, 4  ;;  %v251_v38 = vsel %vm409_vm7, %v357_v25, %v250_v27 }
  0x1d   : > { %v153_v39 = vadd.f32 %v152_v32, %v151_v29  ;;  %v159_v40 = vrot.slane %v158_v36, 4  ;;  %v192_v41 = vrot.slane %v185_v33, %v130_v5  ;;  %v238_v42 = vsel %vm150_vm6, %v228_v34, 0.0 }
  0x1e   : > { %v233_v43 = vadd.f32 %v232_v37, %v231_v35  ;;  %v239_v44 = vrot.slane %v238_v42, 4  ;;  %v252_v45 = vcombine.low %v184_v31, %v251_v38 }
  0x1f   : > { %v154_v46 = vrot.slane %v153_v39, 2  ;;  %v160_v47 = vadd.f32 %v159_v40, %v158_v36  ;;  %v193_v48 = vcombine.high %v192_v41, %v192_v41  ;;  %v196_v49 = vsel %vm150_vm6, %v192_v41, 0.0 }
  0x20   : > { %v197_v50 = vrot.slane %v196_v49, 4  ;;  %v234_v51 = vrot.slane %v233_v43, 2  ;;  %v240_v52 = vadd.f32 %v239_v44, %v238_v42  ;;  %v259_v53 = vrot.slane %v252_v45, %v130_v5 }
  0x21   : > { %v155_v54 = vadd.f32 %v154_v46, %v153_v39  ;;  %v161_v55 = vrot.slane %v160_v47, 2  ;;  %v203_v56 = vsel %vm150_vm6, %v193_v48, 0.0 }
  0x22   : > { %v198_v57 = vadd.f32 %v197_v50, %v196_v49  ;;  %v204_v58 = vrot.slane %v203_v56, 4  ;;  %v235_v59 = vadd.f32 %v234_v51, %v233_v43  ;;  %v241_v60 = vrot.slane %v240_v52, 2 }
  0x23   : > { %v156_v61 = vrot.slane %v155_v54, 1  ;;  %v162_v62 = vadd.f32 %v161_v55, %v160_v47  ;;  %v260_v63 = vcombine.high %v259_v53, %v259_v53  ;;  %v263_v0 = vsel %vm150_vm6, %v259_v53, 0.0 }
  0x24   : > { %v199_v1 = vrot.slane %v198_v57, 2  ;;  %v205_v2 = vadd.f32 %v204_v58, %v203_v56  ;;  %v236_v3 = vrot.slane %v235_v59, 1  ;;  %v242_v4 = vadd.f32 %v241_v60, %v240_v52 }
  0x25   : > { %v163_v6 = vrot.slane %v162_v62, 1  ;;  %v264_v7 = vrot.slane %v263_v0, 4  ;;  %v270_v5 = vsel %vm150_vm6, %v260_v63, 0.0  ;;  %v157_v8 = vadd.f32 %v156_v61, %v155_v54 }
  0x26   : > { %v200_v9 = vadd.f32 %v199_v1, %v198_v57  ;;  %v206_v10 = vrot.slane %v205_v2, 2  ;;  %v243_v11 = vrot.slane %v242_v4, 1  ;;  %v271_v13 = vrot.slane %v270_v5, 4 }
  0x27   : > { %v265_v12 = vadd.f32 %v264_v7, %v263_v0  ;;  %v164_v14 = vadd.f32 %v163_v6, %v162_v62  ;;  %v237_v17 = vadd.f32 %v236_v3, %v235_v59  ;;  %v166_v20 = vmul.f32 0.25, %v157_v8 }
  0x28   : > { %v201_v15 = vrot.slane %v200_v9, 1  ;;  %v207_v16 = vadd.f32 %v206_v10, %v205_v2  ;;  %v272_v19 = vadd.f32 %v271_v13, %v270_v5  ;;  %v244_v23 = vadd.f32 %v243_v11, %v242_v4 }
  0x29   : > { %v266_v18 = vrot.slane %v265_v12, 2  ;;  %v167_v26 = vmul.f32 0.25, %v164_v14  ;;  %v245_v29 = vmul.f32 0.25, %v237_v17 }
  0x2a   : > { %v202_v21 = vadd.f32 %v201_v15, %v200_v9  ;;  %v208_v22 = vrot.slane %v207_v16, 1  ;;  %v273_v25 = vrot.slane %v272_v19, 2  ;;  %v246_v33 = vmul.f32 0.25, %v244_v23 }
  0x2b   : > { %v267_v24 = vadd.f32 %v266_v18, %v265_v12 }
  0x2c   : > { %v209_v27 = vadd.f32 %v208_v22, %v207_v16  ;;  %v210_v28 = vmul.f32 0.25, %v202_v21  ;;  %v274_v31 = vadd.f32 %v273_v25, %v272_v19 }
  0x2d   : > { %v268_v30 = vrot.slane %v267_v24, 1 }
  0x2e   : > { %v211_v32 = vmul.f32 0.25, %v209_v27  ;;  %v279_v34 = vsel %vm170_vm0, %v166_v20, %v210_v28  ;;  %v275_v36 = vrot.slane %v274_v31, 1 }
  0x2f   : > { %v269_v35 = vadd.f32 %v268_v30, %v267_v24  ;;  %v282_v38 = vsel %vm281_vm8, %v279_v34, %v245_v29 }
  0x30   : > { %v280_v37 = vsel %vm170_vm0, %v167_v26, %v211_v32  ;;  %v276_v39 = vadd.f32 %v275_v36, %v274_v31 }
  0x31   : > { %v277_v40 = vmul.f32 0.25, %v269_v35  ;;  %v283_v41 = vsel %vm281_vm8, %v280_v37, %v246_v33 }
  0x32   : > { %v278_v42 = vmul.f32 0.25, %v276_v39 }
  0x33   : > { %v285_v43 = vsel %vm284_vm9, %v282_v38, %v277_v40 }
  0x34   : > { %v286_v44 = vsel %vm284_vm9, %v283_v41, %v278_v42 }
  0x35   : > { %v289_v45 = vcombine.low %v285_v43, %v286_v44 }
  0x37   : > { %291 = vst [vmem:[%s116_s15] sm:$0xff] %v289_v45 }
  0x38 PF: > { %s11_s6 = sadd.s32 1, %s381_s6  }
  0x39   : > { %p8_p4 = scmp.ge.s32.totalorder %s11_s6, 4  }
  0x3b   :  { %10 = sbr.rel (!%p8_p4) target bundleno = 1 (0x1), region = 54 }

// kernel: _lambda_.33
= control target key start
LH: loop header
LB: loop body
LE: loop exit
PB: predicated region body
PF: predicated region fallthrough
CT: control target
= control target key end

     0   :  { %s2198_s12 = smov 0   ;;  %s2200_s13 = smov 0   ;;  %s2474_s0 = inlined_call_operand.vmem [shape: bf16[2,6,32,128], index: 0, kind: input, shape index: {}]   ;;  %s2475_s1 = inlined_call_operand.vmem [shape: bf16[9,128,128], index: 1, kind: input, shape index: {}]   ;;  %s2476_s2 = inlined_call_operand.vmem [shape: f32[1,128], index: 2, kind: input, shape index: {}]   ;;  %s2477_s3 = inlined_call_operand.vmem [shape: bf16[2,3,3,128], index: 3, kind: output, shape index: {}]  }
   0x1   :  { %s2202_s14 = smov 0  }
   0x2 LB: > { %s25_s15 = sadd.s32 1, %s2172_s13  ;;  %p1518_p0 = scmp.ge.s32.totalorder %s2176_s14, 1  ;;  %s2176_s14 = sphi %s2202_s14, %s13_s14   ;;  %s2172_s13 = sphi %s2200_s13, %s2479_s13   ;;  %s2168_s12 = sphi %s2198_s12, %s2478_s12  }
   0x3   : > { %p27_p1 = scmp.ge.s32.totalorder %s25_s15, 2  ;;  %p151_p2 = scmp.lt.s32.totalorder %s2176_s14, 3 }
   0x5   : > { %s2481_s15 = smov (%p27_p1, %s25_s15), 0  ;;  %p152_p3 = pnand %p1518_p0, %p151_p2 }
   0x6   : > { %v2064_v0 = vld [vmem:[%s2475_s1 + $0x40] sm:$0xff] (!%p152_p3)   ;;  %p179_p4 = scmp.lt.s32.totalorder (!%p152_p3), %s2168_s12, 1  ;;  %v2066_v2 = vld [vmem:[%s2475_s1 + $0x48] sm:$0xff] (!%p152_p3)   ;;  %v2068_v4 = vld [vmem:[%s2475_s1 + $0x50] sm:$0xff] (!%p152_p3)   ;;  %vm1396_vm0 = vcmask (!%p152_p3), 1041408  }
   0x7   : > { %155 = sbr.rel (%p152_p3) target bundleno = 392 (0x188), region = 32  ;;  %v2065_v1 = vld [vmem:[%s2475_s1] sm:$0xff] (!%p152_p3)   ;;  %1858 = vmatprep.subr.bf16.mxu0 (!%p152_p3), %v2064_v0  ;;  %v2067_v3 = vld [vmem:[%s2475_s1 + $0x8] sm:$0xff] (!%p152_p3)   ;;  %v2069_v5 = vld [vmem:[%s2475_s1 + $0x10] sm:$0xff] (!%p152_p3)   ;;  %vm1397_vm1 = vsmask.f32 (!%p152_p3), 1280 }
   0x8   : > { %1878 = vmatprep.subr.bf16.mxu1 (!%p152_p3), %v2065_v1  ;;  %1859 = vmatpush3.bf16.msra.mxu0 (!%p152_p3), %v2064_v0  ;;  %v2070_v6 = vld [vmem:[%s2475_s1 + $0x58] sm:$0xff] (!%p152_p3)   ;;  %v2072_v8 = vld [vmem:[%s2475_s1 + $0x60] sm:$0xff] (!%p152_p3)   ;;  %v2074_v10 = vld [vmem:[%s2475_s1 + $0x68] sm:$0xff] (!%p152_p3)  }
   0x9   : > { %1879 = vmatpush3.bf16.msra.mxu1 (!%p152_p3), %v2065_v1  ;;  %1860 = vmatprep.subr.bf16.mxu0 (!%p152_p3), %v2066_v2  ;;  %v2071_v7 = vld [vmem:[%s2475_s1 + $0x18] sm:$0xff] (!%p152_p3)   ;;  %v2073_v9 = vld [vmem:[%s2475_s1 + $0x20] sm:$0xff] (!%p152_p3)   ;;  %v2075_v11 = vld [vmem:[%s2475_s1 + $0x28] sm:$0xff] (!%p152_p3)  }
   0xa   : > { %1880 = vmatprep.subr.bf16.mxu1 (!%p152_p3), %v2067_v3  ;;  %v2076_v14 = vld [vmem:[%s2475_s1 + $0x70] sm:$0xff] (!%p152_p3)   ;;  %v2078_v16 = vld [vmem:[%s2475_s1 + $0x78] sm:$0xff] (!%p152_p3)   ;;  %v2084_v18 = vld [vmem:[%s2475_s1 + $0x80] sm:$0xff] (!%p152_p3)  }
   0xb   : > { %v2077_v15 = vld [vmem:[%s2475_s1 + $0x30] sm:$0xff] (!%p152_p3)   ;;  %v2079_v17 = vld [vmem:[%s2475_s1 + $0x38] sm:$0xff] (!%p152_p3)   ;;  %v2085_v19 = vld [vmem:[%s2475_s1 + $0xc0] sm:$0xff] (!%p152_p3)  }
   0xc   : > { %1861 = vmatpush3.bf16.msra.mxu0 (!%p152_p3), %v2066_v2  ;;  %v2086_v22 = vld [vmem:[%s2475_s1 + $0x88] sm:$0xff] (!%p152_p3)   ;;  %v2088_v24 = vld [vmem:[%s2475_s1 + $0x90] sm:$0xff] (!%p152_p3)   ;;  %v2090_v28 = vld [vmem:[%s2475_s1 + $0x98] sm:$0xff] (!%p152_p3)  }
   0xd   : > { %1881 = vmatpush3.bf16.msra.mxu1 (!%p152_p3), %v2067_v3  ;;  %1862 = vmatprep.subr.bf16.mxu0 (!%p152_p3), %v2068_v4  ;;  %v2087_v23 = vld [vmem:[%s2475_s1 + $0xc8] sm:$0xff] (!%p152_p3)   ;;  %v2089_v26 = vld [vmem:[%s2475_s1 + $0xd0] sm:$0xff] (!%p152_p3)   ;;  %v2091_v29 = vld [vmem:[%s2475_s1 + $0xd8] sm:$0xff] (!%p152_p3)  }
   0xe   : > { %s2483_s12 = smov (!%p179_p4, %s2168_s12), 1  ;;  %1882 = vmatprep.subr.bf16.mxu1 %v2069_v5  ;;  %v2092_v30 = vld [vmem:[%s2475_s1 + $0xa0] sm:$0xff]   ;;  %v2094_v32 = vld [vmem:[%s2475_s1 + $0xa8] sm:$0xff]   ;;  %v2096_v34 = vld [vmem:[%s2475_s1 + $0xb0] sm:$0xff]  }
   0xf   : > { %s2038_s5 = smul.u32 96, %s2483_s12  ;;  %v2093_v31 = vld [vmem:[%s2475_s1 + $0xe0] sm:$0xff]   ;;  %v2095_v33 = vld [vmem:[%s2475_s1 + $0xe8] sm:$0xff]   ;;  %v2097_v35 = vld [vmem:[%s2475_s1 + $0xf0] sm:$0xff]  }
  0x10   : > { %1863 = vmatpush3.bf16.msra.mxu0 %v2068_v4  ;;  %v2098_v36 = vld [vmem:[%s2475_s1 + $0xb8] sm:$0xff]   ;;  %v2102_v39 = vld [vmem:[%s2475_s1 + $0x100] sm:$0xff]   ;;  %v2106_v42 = vld [vmem:[%s2475_s1 + $0x108] sm:$0xff]  }
  0x11   : > { %1883 = vmatpush3.bf16.msra.mxu1 %v2069_v5  ;;  %1864 = vmatprep.subr.bf16.mxu0 %v2070_v6  ;;  %s2252_s16 = scalar_lea.vmem %s2474_s0, %s2038_s5  ;;  %v2099_v37 = vld [vmem:[%s2475_s1 + $0xf8] sm:$0xff]   ;;  %v2105_v40 = vld [vmem:[%s2475_s1 + $0x140] sm:$0xff]   ;;  %v2107_v43 = vld [vmem:[%s2475_s1 + $0x148] sm:$0xff]  }
  0x12   : > { %1884 = vmatprep.subr.bf16.mxu1 %v2071_v7  ;;  %v2080_v12 = vld [vmem:[%s2252_s16 + $0x10] sm:$0xff]   ;;  %v2081_v13 = vld [vmem:[%s2252_s16] sm:$0xff]   ;;  %v2082_v20 = vld [vmem:[%s2252_s16 + $0x18] ss:$0 sps:$4 sm:$0xff]  }
  0x13   : > { %1874 = vmatprep.mubr.bf16.mxu0 %v2080_v12  ;;  %1894 = vmatprep.mubr.bf16.mxu1 %v2081_v13  ;;  %v2083_v21 = vld [vmem:[%s2252_s16 + $0x8] ss:$0 sps:$4 sm:$0xff]   ;;  %v2100_v25 = vld [vmem:[%s2252_s16 + $0x20] sm:$0xff]   ;;  %v2103_v27 = vld [vmem:[%s2252_s16 + $0x30] sm:$0xff]  }
  0x14   : > { %1865 = vmatpush3.bf16.msra.mxu0 %v2070_v6  ;;  %v2101_v38 = vld [vmem:[%s2252_s16 + $0x28] ss:$0 sps:$4 sm:$0xff]   ;;  %v2104_v41 = vld [vmem:[%s2252_s16 + $0x38] ss:$0 sps:$4 sm:$0xff]   ;;  %v2120_v44 = vld [vmem:[%s2252_s16 + $0x40] sm:$0xff]  }
  0x15   : > { %1885 = vmatpush3.bf16.msra.mxu1 %v2071_v7  ;;  %1866 = vmatprep.subr.bf16.mxu0 %v2072_v8  ;;  %v2123_v45 = vld [vmem:[%s2252_s16 + $0x50] sm:$0xff]   ;;  %v2110_v48 = vld [vmem:[%s2475_s1 + $0x118] sm:$0xff]   ;;  %v2112_v50 = vld [vmem:[%s2475_s1 + $0x120] sm:$0xff]  }
  0x16   : > { %1886 = vmatprep.subr.bf16.mxu1 %v2073_v9  ;;  %v2108_v46 = vld [vmem:[%s2475_s1 + $0x110] sm:$0xff]   ;;  %v2111_v49 = vld [vmem:[%s2475_s1 + $0x158] sm:$0xff]   ;;  %v2113_v51 = vld [vmem:[%s2475_s1 + $0x160] sm:$0xff]  }
  0x17   : > { %v2109_v47 = vld [vmem:[%s2475_s1 + $0x150] sm:$0xff]   ;;  %v2114_v52 = vld [vmem:[%s2475_s1 + $0x128] sm:$0xff]   ;;  %v2118_v56 = vld [vmem:[%s2475_s1 + $0x138] sm:$0xff]  }
  0x18   : > { %1867 = vmatpush3.bf16.msra.mxu0 %v2072_v8  ;;  %v2115_v53 = vld [vmem:[%s2475_s1 + $0x168] sm:$0xff]   ;;  %v2116_v54 = vld [vmem:[%s2475_s1 + $0x130] sm:$0xff]   ;;  %v2119_v57 = vld [vmem:[%s2475_s1 + $0x178] sm:$0xff]  }
  0x19   : > { %1887 = vmatpush3.bf16.msra.mxu1 %v2073_v9  ;;  %1868 = vmatprep.subr.bf16.mxu0 %v2074_v10  ;;  %v2117_v55 = vld [vmem:[%s2475_s1 + $0x170] sm:$0xff]   ;;  %v2122_v58 = vld [vmem:[%s2475_s1 + $0x180] sm:$0xff]   ;;  %v2121_v60 = vld [vmem:[%s2252_s16 + $0x48] ss:$0 sps:$4 sm:$0xff]  }
  0x1a   : > { %1888 = vmatprep.subr.bf16.mxu1 %v2075_v11  ;;  %v2125_v59 = vld [vmem:[%s2475_s1 + $0x1c0] sm:$0xff]   ;;  %v2124_v61 = vld [vmem:[%s2252_s16 + $0x58] ss:$0 sps:$4 sm:$0xff]   ;;  %v2126_v62 = vld [vmem:[%s2475_s1 + $0x188] sm:$0xff]  }
  0x1b   : > { %v2127_v63 = vld [vmem:[%s2475_s1 + $0x1c8] sm:$0xff]   ;;  %v2143_v1 = vld [vmem:[%s2252_s16 + $0x14] sm:$0xff]   ;;  %v2132_v6 = vld [vmem:[%s2475_s1 + $0x1a0] sm:$0xff]  }
  0x1c   : > { %1869 = vmatpush3.bf16.msra.mxu0 %v2074_v10  ;;  %v2140_v0 = vld [vmem:[%s2252_s16 + $0x4] sm:$0xff]   ;;  %v2128_v2 = vld [vmem:[%s2475_s1 + $0x190] sm:$0xff]   ;;  %v2130_v4 = vld [vmem:[%s2475_s1 + $0x198] sm:$0xff]  }
  0x1d   : > { %1889 = vmatpush3.bf16.msra.mxu1 %v2075_v11  ;;  %1870 = vmatprep.subr.bf16.mxu0 %v2076_v14  ;;  %v2129_v3 = vld [vmem:[%s2475_s1 + $0x1d0] sm:$0xff]   ;;  %v2131_v5 = vld [vmem:[%s2475_s1 + $0x1d8] sm:$0xff]   ;;  %v2133_v7 = vld [vmem:[%s2475_s1 + $0x1e0] sm:$0xff]  }
  0x1e   : > { %1890 = vmatprep.subr.bf16.mxu1 %v2077_v15  ;;  %v2134_v8 = vld [vmem:[%s2475_s1 + $0x1a8] sm:$0xff]   ;;  %v2136_v10 = vld [vmem:[%s2475_s1 + $0x1b0] sm:$0xff]   ;;  %v2138_v12 = vld [vmem:[%s2475_s1 + $0x1b8] sm:$0xff]  }
  0x1f   : > { %v2135_v9 = vld [vmem:[%s2475_s1 + $0x1e8] sm:$0xff]   ;;  %v2137_v11 = vld [vmem:[%s2475_s1 + $0x1f0] sm:$0xff]   ;;  %v2139_v13 = vld [vmem:[%s2475_s1 + $0x1f8] sm:$0xff]  }
  0x20   : > { %1871 = vmatpush3.bf16.msra.mxu0 %v2076_v14  ;;  %v2142_v14 = vld [vmem:[%s2475_s1 + $0x200] sm:$0xff]   ;;  %vm1398_vm2 = vmand %vm1396_vm0, %vm1397_vm1 }
  0x21   : > { %1891 = vmatpush3.bf16.msra.mxu1 %v2077_v15  ;;  %1872 = vmatprep.subr.bf16.mxu0 %v2078_v16  ;;  %v2141_v15 = vld [vmem:[%s2252_s16 + $0xc] ss:$0 sps:$4 sm:$0xff]  }
  0x22   : > { %1892 = vmatprep.subr.bf16.mxu1 %v2079_v17 }
  0x24   : > { %1873 = vmatpush3.bf16.msra.mxu0 %v2078_v16  ;;  %v2144_v16 = vld [vmem:[%s2252_s16 + $0x1c] ss:$0 sps:$4 sm:$0xff]  }
  0x25   : > { %1893 = vmatpush3.bf16.msra.mxu1 %v2079_v17  ;;  %1898 = vmatprep.subr.bf16.mxu0 %v2084_v18  ;;  %v2145_v17 = vld [vmem:[%s2475_s1 + $0x208] sm:$0xff]  }
  0x26   : > { %1918 = vmatprep.subr.bf16.mxu1 %v2085_v19 }
  0x27   : > { %1875 = vmatmul.mubr.bf16.vlgmr.msra.gmra.mrb[0].mxu0 %v2082_v20  ;;  %v2147_v20 = vld [vmem:[%s2475_s1 + $0x218] sm:$0xff]  }
  0x28   : > { %1895 = vmatmul.mubr.bf16.vlgmr.msra.gmra.mrb[0].mxu1 %v2083_v21  ;;  %1899 = vmatpush3.bf16.msra.mxu0 %v2084_v18  ;;  %v2152_v18 = vld [vmem:[%s2252_s16 + $0x24] sm:$0xff]  }
  0x29   : > { %1919 = vmatpush3.bf16.msra.mxu1 %v2085_v19  ;;  %1900 = vmatprep.subr.bf16.mxu0 %v2086_v22  ;;  %v2146_v19 = vld [vmem:[%s2475_s1 + $0x210] sm:$0xff]   ;;  %v2148_v21 = vld [vmem:[%s2475_s1 + $0x220] sm:$0xff]  }
  0x2a   : > { %1920 = vmatprep.subr.bf16.mxu1 %v2087_v23  ;;  %1914 = vmatprep.mubr.bf16.mxu0 %v2100_v25  ;;  %v2153_v25 = vld [vmem:[%s2252_s16 + $0x2c] ss:$0 sps:$4 sm:$0xff]   ;;  %s2039_s16 = smul.u32 6, %s2483_s12 }
  0x2b   : > { %1934 = vmatprep.mubr.bf16.mxu1 %v2103_v27 }
  0x2c   : > { %1901 = vmatpush3.bf16.msra.mxu0 %v2086_v22  ;;  %v2149_v22 = vld [vmem:[%s2475_s1 + $0x228] sm:$0xff]   ;;  %s192_s8 = scalar_lea.vmem %s2477_s3, %s2039_s16 }
  0x2d   : > { %1921 = vmatpush3.bf16.msra.mxu1 %v2087_v23  ;;  %1902 = vmatprep.subr.bf16.mxu0 %v2088_v24  ;;  %v2150_v23 = vld [vmem:[%s2475_s1 + $0x230] sm:$0xff]  }
  0x2e   : > { %1922 = vmatprep.subr.bf16.mxu1 %v2089_v26 }
  0x30   : > { %1903 = vmatpush3.bf16.msra.mxu0 %v2088_v24  ;;  %v2151_v24 = vld [vmem:[%s2475_s1 + $0x238] sm:$0xff]  }
  0x31   : > { %1923 = vmatpush3.bf16.msra.mxu1 %v2089_v26  ;;  %1904 = vmatprep.subr.bf16.mxu0 %v2090_v28 }
  0x32   : > { %1924 = vmatprep.subr.bf16.mxu1 %v2091_v29 }
  0x34   : > { %1905 = vmatpush3.bf16.msra.mxu0 %v2090_v28 }
  0x35   : > { %1925 = vmatpush3.bf16.msra.mxu1 %v2091_v29  ;;  %1906 = vmatprep.subr.bf16.mxu0 %v2092_v30 }
  0x36   : > { %1926 = vmatprep.subr.bf16.mxu1 %v2093_v31 }
  0x38   : > { %1907 = vmatpush3.bf16.msra.mxu0 %v2092_v30 }
  0x39   : > { %1927 = vmatpush3.bf16.msra.mxu1 %v2093_v31  ;;  %1908 = vmatprep.subr.bf16.mxu0 %v2094_v32 }
  0x3a   : > { %1928 = vmatprep.subr.bf16.mxu1 %v2095_v33 }
  0x3c   : > { %1909 = vmatpush3.bf16.msra.mxu0 %v2094_v32 }
  0x3d   : > { %1929 = vmatpush3.bf16.msra.mxu1 %v2095_v33  ;;  %1910 = vmatprep.subr.bf16.mxu0 %v2096_v34 }
  0x3e   : > { %1930 = vmatprep.subr.bf16.mxu1 %v2097_v35 }
  0x40   : > { %1911 = vmatpush3.bf16.msra.mxu0 %v2096_v34 }
  0x41   : > { %1931 = vmatpush3.bf16.msra.mxu1 %v2097_v35  ;;  %1912 = vmatprep.subr.bf16.mxu0 %v2098_v36 }
  0x42   : > { %1932 = vmatprep.subr.bf16.mxu1 %v2099_v37 }
  0x44   : > { %1913 = vmatpush3.bf16.msra.mxu0 %v2098_v36 }
  0x45   : > { %1933 = vmatpush3.bf16.msra.mxu1 %v2099_v37  ;;  %1938 = vmatprep.subr.bf16.mxu0 %v2102_v39 }
  0x46   : > { %1958 = vmatprep.subr.bf16.mxu1 %v2105_v40 }
  0x47   : > { %1915 = vmatmul.mubr.bf16.vlgmr.msra.gmra.mrb[4].mxu0 %v2101_v38 }
  0x48   : > { %1939 = vmatpush3.bf16.msra.mxu0 %v2102_v39  ;;  %1935 = vmatmul.mubr.bf16.vlgmr.msra.gmra.mrb[4].mxu1 %v2104_v41 }
  0x49   : > { %1959 = vmatpush3.bf16.msra.mxu1 %v2105_v40  ;;  %1940 = vmatprep.subr.bf16.mxu0 %v2106_v42 }
  0x4a   : > { %1960 = vmatprep.subr.bf16.mxu1 %v2107_v43  ;;  %1954 = vmatprep.mubr.bf16.mxu0 %v2120_v44 }
  0x4b   : > { %1974 = vmatprep.mubr.bf16.mxu1 %v2123_v45 }
  0x4c   : > { %1941 = vmatpush3.bf16.msra.mxu0 %v2106_v42 }
  0x4d   : > { %1961 = vmatpush3.bf16.msra.mxu1 %v2107_v43  ;;  %1942 = vmatprep.subr.bf16.mxu0 %v2108_v46 }
  0x4e   : > { %1962 = vmatprep.subr.bf16.mxu1 %v2109_v47 }
  0x50   : > { %1943 = vmatpush3.bf16.msra.mxu0 %v2108_v46 }
  0x51   : > { %1963 = vmatpush3.bf16.msra.mxu1 %v2109_v47  ;;  %1944 = vmatprep.subr.bf16.mxu0 %v2110_v48 }
  0x52   : > { %1964 = vmatprep.subr.bf16.mxu1 %v2111_v49 }
  0x54   : > { %1945 = vmatpush3.bf16.msra.mxu0 %v2110_v48 }
  0x55   : > { %1965 = vmatpush3.bf16.msra.mxu1 %v2111_v49  ;;  %1946 = vmatprep.subr.bf16.mxu0 %v2112_v50 }
  0x56   : > { %1966 = vmatprep.subr.bf16.mxu1 %v2113_v51 }
  0x58   : > { %1947 = vmatpush3.bf16.msra.mxu0 %v2112_v50 }
  0x59   : > { %1967 = vmatpush3.bf16.msra.mxu1 %v2113_v51  ;;  %1948 = vmatprep.subr.bf16.mxu0 %v2114_v52 }
  0x5a   : > { %1968 = vmatprep.subr.bf16.mxu1 %v2115_v53 }
  0x5c   : > { %1949 = vmatpush3.bf16.msra.mxu0 %v2114_v52 }
  0x5d   : > { %1969 = vmatpush3.bf16.msra.mxu1 %v2115_v53  ;;  %1950 = vmatprep.subr.bf16.mxu0 %v2116_v54 }
  0x5e   : > { %1970 = vmatprep.subr.bf16.mxu1 %v2117_v55 }
  0x60   : > { %1951 = vmatpush3.bf16.msra.mxu0 %v2116_v54 }
  0x61   : > { %1971 = vmatpush3.bf16.msra.mxu1 %v2117_v55  ;;  %1952 = vmatprep.subr.bf16.mxu0 %v2118_v56 }
  0x62   : > { %1972 = vmatprep.subr.bf16.mxu1 %v2119_v57 }
  0x64   : > { %1953 = vmatpush3.bf16.msra.mxu0 %v2118_v56 }
  0x65   : > { %1973 = vmatpush3.bf16.msra.mxu1 %v2119_v57  ;;  %1978 = vmatprep.subr.bf16.mxu0 %v2122_v58 }
  0x66   : > { %1998 = vmatprep.subr.bf16.mxu1 %v2125_v59 }
  0x67   : > { %1955 = vmatmul.mubr.bf16.vlgmr.msra.gmra.mrb[8].mxu0 %v2121_v60 }
  0x68   : > { %1979 = vmatpush3.bf16.msra.mxu0 %v2122_v58  ;;  %1975 = vmatmul.mubr.bf16.vlgmr.msra.gmra.mrb[8].mxu1 %v2124_v61 }
  0x69   : > { %1999 = vmatpush3.bf16.msra.mxu1 %v2125_v59  ;;  %1980 = vmatprep.subr.bf16.mxu0 %v2126_v62 }
  0x6a   : > { %2000 = vmatprep.subr.bf16.mxu1 %v2127_v63  ;;  %1994 = vmatprep.mubr.bf16.mxu0 %v2140_v0 }
  0x6b   : > { %2014 = vmatprep.mubr.bf16.mxu1 %v2143_v1 }
  0x6c   : > { %1981 = vmatpush3.bf16.msra.mxu0 %v2126_v62 }
  0x6d   : > { %2001 = vmatpush3.bf16.msra.mxu1 %v2127_v63  ;;  %1982 = vmatprep.subr.bf16.mxu0 %v2128_v2 }
  0x6e   : > { %2002 = vmatprep.subr.bf16.mxu1 %v2129_v3 }
  0x70   : > { %1983 = vmatpush3.bf16.msra.mxu0 %v2128_v2 }
  0x71   : > { %2003 = vmatpush3.bf16.msra.mxu1 %v2129_v3  ;;  %1984 = vmatprep.subr.bf16.mxu0 %v2130_v4 }
  0x72   : > { %2004 = vmatprep.subr.bf16.mxu1 %v2131_v5 }
  0x74   : > { %1985 = vmatpush3.bf16.msra.mxu0 %v2130_v4 }
  0x75   : > { %2005 = vmatpush3.bf16.msra.mxu1 %v2131_v5  ;;  %1986 = vmatprep.subr.bf16.mxu0 %v2132_v6 }
  0x76   : > { %2006 = vmatprep.subr.bf16.mxu1 %v2133_v7 }
  0x78   : > { %1987 = vmatpush3.bf16.msra.mxu0 %v2132_v6 }
  0x79   : > { %2007 = vmatpush3.bf16.msra.mxu1 %v2133_v7  ;;  %1988 = vmatprep.subr.bf16.mxu0 %v2134_v8 }
  0x7a   : > { %2008 = vmatprep.subr.bf16.mxu1 %v2135_v9 }
  0x7c   : > { %1989 = vmatpush3.bf16.msra.mxu0 %v2134_v8 }
  0x7d   : > { %2009 = vmatpush3.bf16.msra.mxu1 %v2135_v9  ;;  %1990 = vmatprep.subr.bf16.mxu0 %v2136_v10 }
  0x7e   : > { %2010 = vmatprep.subr.bf16.mxu1 %v2137_v11 }
  0x80   : > { %1991 = vmatpush3.bf16.msra.mxu0 %v2136_v10 }
  0x81   : > { %2011 = vmatpush3.bf16.msra.mxu1 %v2137_v11  ;;  %1992 = vmatprep.subr.bf16.mxu0 %v2138_v12 }
  0x82   : > { %2012 = vmatprep.subr.bf16.mxu1 %v2139_v13 }
  0x84   : > { %1993 = vmatpush3.bf16.msra.mxu0 %v2138_v12 }
  0x85   : > { %2013 = vmatpush3.bf16.msra.mxu1 %v2139_v13  ;;  %2018 = vmatprep.subr.bf16.mxu0 %v2142_v14 }
  0x87   : > { %1995 = vmatmul.mubr.bf16.vlgmr.msra.gmra.mrb[12].mxu0 %v2141_v15 }
  0x88   : > { %2019 = vmatpush3.bf16.msra.mxu0 %v2142_v14  ;;  %2015 = vmatmul.mubr.bf16.vlgmr.msra.gmra.mrb[12].mxu1 %v2144_v16  ;;  %v1765_v16 = vld [vmem:[%s2476_s2] ss:$0 sm:$0xff] }
  0x89   : > { %2020 = vmatprep.subr.bf16.mxu0 %v2145_v17  ;;  %2034 = vmatprep.mubr.bf16.mxu0 %v2152_v18 }
  0x8c   : > { %2021 = vmatpush3.bf16.msra.mxu0 %v2145_v17 }
  0x8d   : > { %2022 = vmatprep.subr.bf16.mxu0 %v2146_v19 }
  0x90   : > { %2023 = vmatpush3.bf16.msra.mxu0 %v2146_v19 }
  0x91   : > { %2024 = vmatprep.subr.bf16.mxu0 %v2147_v20 }
  0x94   : > { %2025 = vmatpush3.bf16.msra.mxu0 %v2147_v20 }
  0x95   : > { %2026 = vmatprep.subr.bf16.mxu0 %v2148_v21 }
  0x98   : > { %2027 = vmatpush3.bf16.msra.mxu0 %v2148_v21 }
  0x99   : > { %2028 = vmatprep.subr.bf16.mxu0 %v2149_v22 }
  0x9c   : > { %2029 = vmatpush3.bf16.msra.mxu0 %v2149_v22 }
  0x9d   : > { %2030 = vmatprep.subr.bf16.mxu0 %v2150_v23 }
  0xa0   : > { %2031 = vmatpush3.bf16.msra.mxu0 %v2150_v23 }
  0xa1   : > { %2032 = vmatprep.subr.bf16.mxu0 %v2151_v24 }
  0xa4   : > { %2033 = vmatpush3.bf16.msra.mxu0 %v2151_v24 }
  0xa7   : > { %2035 = vmatmul.mubr.bf16.vlgmr.msra.gmra.mrb[16].mxu0 %v2153_v25 }
  0xfa   : > { %v1876_v26 = vpop.f32.mrb[0].mxu0 }
  0xfb   : > { %v1896_v27 = vpop.f32.mrb[0].mxu1  ;;  %v334_v28 = vpop.f32.mrb[1].mxu0 }
  0xfc   : > { %v449_v29 = vadd.f32 %v1896_v27, %v1876_v26  ;;  %v440_v30 = vpop.f32.mrb[1].mxu1  ;;  %v1877_v31 = vpop.f32.mrb[2].mxu0  ;;  %v1405_v26 = vld [vmem:[%s192_s8 + $0x4] sm:$0x3] }
  0xfd   : > { %v441_v32 = vadd.f32 %v440_v30, %v334_v28  ;;  %v1897_v33 = vpop.f32.mrb[2].mxu1  ;;  %v337_v34 = vpop.f32.mrb[3].mxu0  ;;  %v1399_v30 = vld [vmem:[%s192_s8] sm:$0x3] }
  0xfe   : > { %v443_v35 = vpop.f32.mrb[3].mxu1 }
  0xff   : > { %v444_v36 = vadd.f32 %v443_v35, %v337_v34  ;;  %v1402_v34 = vld [vmem:[%s192_s8 + $0x2] sm:$0x3] }
 0x11a   : > { %v1916_v37 = vpop.f32.mrb[4].mxu0 }
 0x11b   : > { %v585_v38 = vadd.f32 %v1916_v37, %v449_v29  ;;  %v569_v39 = vpop.f32.mrb[5].mxu0  ;;  %v1936_v40 = vpop.f32.mrb[4].mxu1 }
 0x11c   : > { %v583_v41 = vadd.f32 %v569_v39, %v441_v32  ;;  %v1917_v42 = vpop.f32.mrb[6].mxu0  ;;  %v701_v43 = vpop.f32.mrb[5].mxu1 }
 0x11d   : > { %v717_v44 = vadd.f32 %v1936_v40, %v585_v38  ;;  %v572_v45 = vpop.f32.mrb[7].mxu0  ;;  %v1937_v46 = vpop.f32.mrb[6].mxu1 }
 0x11e   : > { %v584_v47 = vadd.f32 %v572_v45, %v444_v36  ;;  %v715_v48 = vadd.f32 %v701_v43, %v583_v41  ;;  %v704_v49 = vpop.f32.mrb[7].mxu1 }
 0x120   : > { %v716_v50 = vadd.f32 %v704_v49, %v584_v47 }
 0x13a   : > { %v1956_v51 = vpop.f32.mrb[8].mxu0 }
 0x13b   : > { %v849_v52 = vadd.f32 %v1956_v51, %v717_v44  ;;  %v833_v53 = vpop.f32.mrb[9].mxu0  ;;  %v1976_v54 = vpop.f32.mrb[8].mxu1 }
 0x13c   : > { %v847_v55 = vadd.f32 %v833_v53, %v715_v48  ;;  %v1957_v56 = vpop.f32.mrb[10].mxu0  ;;  %v965_v57 = vpop.f32.mrb[9].mxu1 }
 0x13d   : > { %v981_v58 = vadd.f32 %v1976_v54, %v849_v52  ;;  %v836_v59 = vpop.f32.mrb[11].mxu0  ;;  %v1977_v60 = vpop.f32.mrb[10].mxu1 }
 0x13e   : > { %v848_v61 = vadd.f32 %v836_v59, %v716_v50  ;;  %v979_v62 = vadd.f32 %v965_v57, %v847_v55  ;;  %v968_v63 = vpop.f32.mrb[11].mxu1 }
 0x140   : > { %v980_v0 = vadd.f32 %v968_v63, %v848_v61 }
 0x15a   : > { %v1996_v1 = vpop.f32.mrb[12].mxu0 }
 0x15b   : > { %v1115_v2 = vadd.f32 %v1996_v1, %v981_v58  ;;  %v1099_v3 = vpop.f32.mrb[13].mxu0  ;;  %v2016_v4 = vpop.f32.mrb[12].mxu1 }
 0x15c   : > { %v1113_v5 = vadd.f32 %v1099_v3, %v979_v62  ;;  %v1997_v6 = vpop.f32.mrb[14].mxu0  ;;  %v1231_v7 = vpop.f32.mrb[13].mxu1 }
 0x15d   : > { %v1247_v8 = vadd.f32 %v2016_v4, %v1115_v2  ;;  %v1102_v9 = vpop.f32.mrb[15].mxu0  ;;  %v2017_v10 = vpop.f32.mrb[14].mxu1 }
 0x15e   : > { %v1114_v11 = vadd.f32 %v1102_v9, %v980_v0  ;;  %v1245_v12 = vadd.f32 %v1231_v7, %v1113_v5  ;;  %v1234_v13 = vpop.f32.mrb[15].mxu1 }
 0x160   : > { %v1246_v14 = vadd.f32 %v1234_v13, %v1114_v11 }
 0x17a   : > { %v2036_v15 = vpop.f32.mrb[16].mxu0 }
 0x17b   : > { %v1379_v17 = vadd.f32 %v2036_v15, %v1247_v8  ;;  %v1363_v18 = vpop.f32.mrb[17].mxu0 }
 0x17c   : > { %v1377_v19 = vadd.f32 %v1363_v18, %v1245_v12  ;;  %v2037_v20 = vpop.f32.mrb[18].mxu0 }
 0x17d   : > { %v1389_v21 = vadd.f32 %v1765_v16, %v1379_v17  ;;  %v1366_v22 = vpop.f32.mrb[19].mxu0 }
 0x17e   : > { %v1387_v23 = vadd.f32 %v1765_v16, %v1377_v19  ;;  %v1378_v24 = vadd.f32 %v1366_v22, %v1246_v14 }
 0x17f   : > { %v1392_v25 = vmax.f32 %v1389_v21, 0.0 }
 0x180   : > { %v1390_v27 = vmax.f32 %v1387_v23, 0.0  ;;  %v1388_v28 = vadd.f32 %v1765_v16, %v1378_v24 }
 0x181   : > { %v1395_v29 = vpack.c.bf16 %v1392_v25, %v1392_v25 }
 0x182   : > { %v1393_v31 = vpack.c.bf16 %v1390_v27, %v1390_v27  ;;  %v1391_v32 = vmax.f32 %v1388_v28, 0.0 }
 0x183   : > { %v1406_v33 = vsel %vm1398_vm2, %v1395_v29, %v1405_v26 }
 0x184   : > { %1407 = vst [vmem:[%s192_s8 + $0x4] sm:$0x3] %v1406_v33  ;;  %v1400_v35 = vsel %vm1398_vm2, %v1393_v31, %v1399_v30  ;;  %v1394_v36 = vpack.c.bf16 %v1391_v32, %v1391_v32 }
 0x185   : > { %1401 = vst [vmem:[%s192_s8] sm:$0x3] %v1400_v35 }
 0x186   : > { %v1403_v37 = vsel %vm1398_vm2, %v1394_v36, %v1402_v34 }
 0x187   : > { %1404 = vst [vmem:[%s192_s8 + $0x2] sm:$0x3] %v1403_v37 }
 0x188 PF: > { %s13_s14 = sadd.s32 1, %s2176_s14   ;;  %s2478_s12 = smov %s2172_s13 }
 0x189   : > { %p10_p5 = scmp.ge.s32.totalorder %s13_s14, 4   ;;  %s2479_s13 = smov %s2481_s15 }
 0x18b   :  { %12 = sbr.rel (!%p10_p5) target bundleno = 2 (0x2), region = 79 }

</bundles_post_ra>
